<compile_context>
chip_gen: v5e
topology: v5e:2x2
jax: 0.10.0
libtpu: 0.0.40
codegen_flags: <defaults>
</compile_context>

<pallas_src>
import functools

import jax
import jax.numpy as jnp
from jax import lax
from jax.experimental import pallas as pl
from jax.experimental.pallas import tpu as pltpu

# Small synthetic configuration (hidden=100 is hard-coded in the PyTorch module).
T, B = 8, 2
EMB_DIM = 32
HIDDEN = 100          # logical hidden size
N_LABELS = 8
VOCAB = 50
PAD_WORD_ID = 0
PAD_LABEL_ID = 0

HP = 128              # hidden padded to a lane multiple
LP = 128              # label dim padded to a lane multiple
G4 = 4 * HP           # 512: one direction's gate width (i, f, g, o)


def _lstm_cell_ref(x, h, c, wih, whh, b, H):
    """Plain-JAX LSTM cell (PyTorch gate order i,f,g,o) — reference only."""
    gates = x @ wih + h @ whh + b
    i = jax.nn.sigmoid(gates[:, 0:H])
    f = jax.nn.sigmoid(gates[:, H:2 * H])
    g = jnp.tanh(gates[:, 2 * H:3 * H])
    o = jax.nn.sigmoid(gates[:, 3 * H:4 * H])
    c_new = f * c + i * g
    h_new = o * jnp.tanh(c_new)
    return h_new, c_new


def bilstm_tagger_kernel(sent_ref, lab_ref, emb_ref,
                         wih_ref, bih_ref,
                         whh_f_ref, whh_b_ref,
                         wtop_ref, btop_ref,
                         loss_ref, logits_ref,
                         xg_scr, *, Tn, Bn):
    # ---- hoisted, loop-invariant pieces ----
    col = lax.broadcasted_iota(jnp.int32, (Bn, LP), 1)
    pad_col = (col == PAD_LABEL_ID)
    btop = jnp.broadcast_to(btop_ref[...], (Bn, LP))     # padded cols hold -1e30

    # Input projection for both directions, all timesteps, biases folded in:
    #   (T*B, E) @ (E, 8*HP) -> (T*B, 8*HP); cols [0:4HP] fwd gates, [4HP:8HP] bwd.
    xg_scr[...] = (jnp.dot(emb_ref[...], wih_ref[...],
                           preferred_element_type=jnp.float32)
                   + bih_ref[...])

    def cell(xg_t, h, c, whh_ref):
        # only the h @ Whh matmul remains inside the recurrence
        gates = xg_t + jnp.dot(h, whh_ref[...],
                               preferred_element_type=jnp.float32)
        i = jax.nn.sigmoid(gates[:, 0:HP])               # lane-aligned gate slices
        f = jax.nn.sigmoid(gates[:, HP:2 * HP])
        g = jnp.tanh(gates[:, 2 * HP:3 * HP])
        o = jax.nn.sigmoid(gates[:, 3 * HP:4 * HP])
        c_new = f * c + i * g
        h_new = o * jnp.tanh(c_new)
        return h_new, c_new

    zeros = jnp.zeros((Bn, HP), jnp.float32)

    # ---- forward-direction recurrence (fully unrolled, T is small & static) ----
    h, c = zeros, zeros
    hf = [None] * Tn
    for t in range(Tn):
        h, c = cell(xg_scr[t * Bn:(t + 1) * Bn, 0:G4], h, c, whh_f_ref)
        hf[t] = h

    # ---- backward recurrence with fused top layer, pad mask and CE ----
    h, c = zeros, zeros
    loss_acc = jnp.zeros((Bn, 1), jnp.float32)
    for step in range(Tn):
        t = Tn - 1 - step
        h, c = cell(xg_scr[t * Bn:(t + 1) * Bn, G4:2 * G4], h, c, whh_b_ref)

        # top layer: concat(h_fwd, h_bwd) @ W_top + b_top
        # (concat avoided by splitting W_top into its two HP-row halves)
        row = (jnp.dot(hf[t], wtop_ref[0:HP, :],
                       preferred_element_type=jnp.float32)
               + jnp.dot(h, wtop_ref[HP:2 * HP, :],
                         preferred_element_type=jnp.float32)
               + btop)

        # out[:, :, pad_label_id] += (sentence == pad_word_id) * 10000
        pad = (sent_ref[t * Bn:(t + 1) * Bn, :] == PAD_WORD_ID).astype(jnp.float32)
        row = row + jnp.where(pad_col, pad * 10000.0, 0.0)
        logits_ref[t * Bn:(t + 1) * Bn, :] = row          # lane-dense (Bn, 128) store

        # summed cross-entropy contribution of this timestep's Bn tokens
        labels_t = lab_ref[t * Bn:(t + 1) * Bn, :]
        m = jnp.max(row, axis=-1, keepdims=True)
        lse = m + jnp.log(jnp.sum(jnp.exp(row - m), axis=-1, keepdims=True))
        true_logit = jnp.sum(jnp.where(col == labels_t, row, 0.0),
                             axis=-1, keepdims=True)
        loss_acc = loss_acc + (lse - true_logit)

    loss_ref[...] = jnp.sum(loss_acc, axis=0, keepdims=True)       # (1, 1)


def _pad_gate_cols(w, H):
    """Pad each per-gate column block (i,f,g,o) from H to HP along the last axis."""
    parts = []
    for k in range(4):
        blk = w[..., k * H:(k + 1) * H]
        pad_cfg = [(0, 0)] * (w.ndim - 1) + [(0, HP - H)]
        parts.append(jnp.pad(blk, pad_cfg))
    return jnp.concatenate(parts, axis=-1)


def _pad_params(params):
    H, L = HIDDEN, N_LABELS
    wih_f = _pad_gate_cols(params["wih_f"], H)                          # (E, 4HP)
    wih_b = _pad_gate_cols(params["wih_b"], H)
    wih = jnp.concatenate([wih_f, wih_b], axis=1)                       # (E, 8HP)
    bih = jnp.concatenate([_pad_gate_cols(params["b_f"], H),
                           _pad_gate_cols(params["b_b"], H)], axis=1)   # (1, 8HP)
    whh_f = _pad_gate_cols(jnp.pad(params["whh_f"], ((0, HP - H), (0, 0))), H)
    whh_b = _pad_gate_cols(jnp.pad(params["whh_b"], ((0, HP - H), (0, 0))), H)
    wt = params["w_top"]
    wtop = jnp.concatenate(
        [jnp.pad(wt[:H], ((0, HP - H), (0, LP - L))),
         jnp.pad(wt[H:], ((0, HP - H), (0, LP - L)))], axis=0)          # (2HP, LP)
    # padded logit columns get -1e30 so exp() kills them in the softmax/CE
    btop = jnp.pad(params["b_top"], ((0, 0), (0, LP - L)),
                   constant_values=-1e30)                               # (1, LP)
    return wih, bih, whh_f, whh_b, wtop, btop


@jax.jit
def bilstm_tagger_forward(sentence, labels, params):
    Tn, Bn = sentence.shape
    L = params["b_top"].shape[-1]

    # glue: embedding lookup from the frozen pretrained table
    # TODO(synk): the vocab gather stays outside the kernel (dynamic gather in
    # VMEM is not worth it at this size).
    embedded = jnp.take(params["emb"], sentence, axis=0).astype(jnp.float32)
    emb_flat = embedded.reshape(Tn * Bn, EMB_DIM)
    sent_flat = sentence.reshape(Tn * Bn, 1).astype(jnp.int32)
    lab_flat = labels.reshape(Tn * Bn, 1).astype(jnp.int32)

    wih, bih, whh_f, whh_b, wtop, btop = _pad_params(params)

    vmem = pl.BlockSpec(memory_space=pltpu.MemorySpace.VMEM)
    loss, logits_pad = pl.pallas_call(
        functools.partial(bilstm_tagger_kernel, Tn=Tn, Bn=Bn),
        out_shape=(jax.ShapeDtypeStruct((1, 1), jnp.float32),
                   jax.ShapeDtypeStruct((Tn * Bn, LP), jnp.float32)),
        in_specs=[vmem] * 9,
        out_specs=(vmem, vmem),
        scratch_shapes=[pltpu.VMEM((Tn * Bn, 8 * HP), jnp.float32)],
    )(sent_flat, lab_flat, emb_flat, wih, bih, whh_f, whh_b, wtop, btop)

    logits = logits_pad.reshape(Tn, Bn, LP)[:, :, :L]
    return loss[0, 0], logits


def init_params(key):
    ks = jax.random.split(key, 9)
    s = 0.1
    return {
        "emb":   jax.random.normal(ks[0], (VOCAB, EMB_DIM), jnp.float32),
        # weights stored transposed relative to PyTorch ((in, 4H) so we do x @ W)
        "wih_f": s * jax.random.normal(ks[1], (EMB_DIM, 4 * HIDDEN), jnp.float32),
        "whh_f": s * jax.random.normal(ks[2], (HIDDEN, 4 * HIDDEN), jnp.float32),
        "b_f":   s * jax.random.normal(ks[3], (1, 4 * HIDDEN), jnp.float32),  # b_ih+b_hh
        "wih_b": s * jax.random.normal(ks[4], (EMB_DIM, 4 * HIDDEN), jnp.float32),
        "whh_b": s * jax.random.normal(ks[5], (HIDDEN, 4 * HIDDEN), jnp.float32),
        "b_b":   s * jax.random.normal(ks[6], (1, 4 * HIDDEN), jnp.float32),
        "w_top": s * jax.random.normal(ks[7], (2 * HIDDEN, N_LABELS), jnp.float32),
        "b_top": s * jax.random.normal(ks[8], (1, N_LABELS), jnp.float32),
    }


def reference_forward(sentence, labels, params):
    """Pure-JAX reference of BiLSTMTagger.forward (loss) + compute_outputs (logits)."""
    H = HIDDEN
    emb = params["emb"][sentence]

    def run(x, wih, whh, b):
        def step(carry, xt):
            h, c = carry
            h, c = _lstm_cell_ref(xt, h, c, wih, whh, b, H)
            return (h, c), h
        h0 = jnp.zeros((x.shape[1], H), jnp.float32)
        _, hs = lax.scan(step, (h0, h0), x)
        return hs

    hf = run(emb, params["wih_f"], params["whh_f"], params["b_f"])
    hb = run(emb[::-1], params["wih_b"], params["whh_b"], params["b_b"])[::-1]
    out = jnp.concatenate([hf, hb], axis=-1) @ params["w_top"] + params["b_top"]
    pad_mask = (sentence == PAD_WORD_ID).astype(jnp.float32)
    out = out.at[:, :, PAD_LABEL_ID].add(pad_mask * 10000.0)
    flat = out.reshape(-1, out.shape[-1])
    lab = labels.reshape(-1)
    lse = jax.scipy.special.logsumexp(flat, axis=-1)
    loss = jnp.sum(lse - flat[jnp.arange(flat.shape[0]), lab])
    return loss, out


if __name__ == "__main__":
    key = jax.random.PRNGKey(0)
    pkey, skey, lkey = jax.random.split(key, 3)
    params = init_params(pkey)

    sentence = jax.random.randint(skey, (T, B), 1, VOCAB, dtype=jnp.int32)
    labels = jax.random.randint(lkey, (T, B), 1, N_LABELS, dtype=jnp.int32)
    # make the last two steps of the second sequence padding
    sentence = sentence.at[T - 2:, 1].set(PAD_WORD_ID)
    labels = labels.at[T - 2:, 1].set(PAD_LABEL_ID)

    loss, logits = bilstm_tagger_forward(sentence, labels, params)
    jax.block_until_ready((loss, logits))

    ref_loss, ref_logits = reference_forward(sentence, labels, params)
    assert jnp.allclose(loss, ref_loss, rtol=1e-3, atol=1e-3), (loss, ref_loss)
    assert jnp.allclose(logits, ref_logits, rtol=1e-3, atol=1e-3)

    print("KERNEL_OK")
</pallas_src>

<mosaic_0001>
module attributes {stable_mosaic.version = 11 : i64} {
  func.func @bilstm_tagger_kernel(%arg0: memref<16x1xi32, #tpu.memory_space<vmem>>, %arg1: memref<16x1xi32, #tpu.memory_space<vmem>>, %arg2: memref<16x32xf32, #tpu.memory_space<vmem>>, %arg3: memref<32x1024xf32, #tpu.memory_space<vmem>>, %arg4: memref<1x1024xf32, #tpu.memory_space<vmem>>, %arg5: memref<128x512xf32, #tpu.memory_space<vmem>>, %arg6: memref<128x512xf32, #tpu.memory_space<vmem>>, %arg7: memref<256x128xf32, #tpu.memory_space<vmem>>, %arg8: memref<1x128xf32, #tpu.memory_space<vmem>>, %arg9: memref<1x1xf32, #tpu.memory_space<vmem>>, %arg10: memref<16x128xf32, #tpu.memory_space<vmem>>, %arg11: memref<16x1024xf32, #tpu.memory_space<vmem>>) attributes {dimension_semantics = [], scalar_prefetch = 0 : i64, scratch_operands = 1 : i64, tpu.core_type = #tpu.core_type<tc>} {
    %0 = tpu.iota {dimensions = array<i32: 1>} : vector<2x128xi32>
    %c0_i32 = arith.constant 0 : i32
    %1 = vector.broadcast %c0_i32 : i32 to vector<2x128xi32>
    %2 = arith.cmpi eq, %0, %1 : vector<2x128xi32>
    %c0 = arith.constant 0 : index
    %c0_0 = arith.constant 0 : index
    %3 = vector.load %arg8[%c0, %c0_0] : memref<1x128xf32, #tpu.memory_space<vmem>>, vector<1x128xf32>
    %4 = vector.shape_cast %3 : vector<1x128xf32> to vector<1x128xf32>
    %5 = vector.broadcast %4 : vector<1x128xf32> to vector<2x128xf32>
    %c0_1 = arith.constant 0 : index
    %c0_2 = arith.constant 0 : index
    %6 = vector.load %arg2[%c0_1, %c0_2] : memref<16x32xf32, #tpu.memory_space<vmem>>, vector<16x32xf32>
    %c0_3 = arith.constant 0 : index
    %c0_4 = arith.constant 0 : index
    %7 = vector.load %arg3[%c0_3, %c0_4] : memref<32x1024xf32, #tpu.memory_space<vmem>>, vector<32x1024xf32>
    %cst = arith.constant dense<0.000000e+00> : vector<16x1024xf32>
    %8 = tpu.matmul %6, %7, %cst {dimension_numbers = #tpu.dot_dimension_numbers<[1], [0], [0], [1], [0, 0, 1, 1], [], []>} : vector<16x32xf32>, vector<32x1024xf32>, vector<16x1024xf32> -> vector<16x1024xf32>
    %c0_5 = arith.constant 0 : index
    %c0_6 = arith.constant 0 : index
    %9 = vector.load %arg4[%c0_5, %c0_6] : memref<1x1024xf32, #tpu.memory_space<vmem>>, vector<1x1024xf32>
    %10 = vector.broadcast %9 : vector<1x1024xf32> to vector<16x1024xf32>
    %11 = arith.addf %8, %10 : vector<16x1024xf32>
    %c0_7 = arith.constant 0 : index
    %c0_8 = arith.constant 0 : index
    %12 = vector.load %arg11[%c0_7, %c0_8] : memref<16x1024xf32, #tpu.memory_space<vmem>>, vector<16x1024xf32>
    tpu.vector_store %arg11[%c0_7, %c0_8], %11 {strides = array<i32>} : memref<16x1024xf32, #tpu.memory_space<vmem>>, vector<16x1024xf32>,
    %cst_9 = arith.constant 0.000000e+00 : f32
    %13 = vector.broadcast %cst_9 : f32 to vector<2x128xf32>
    %c0_10 = arith.constant 0 : index
    %c0_11 = arith.constant 0 : index
    %14 = vector.load %arg11[%c0_10, %c0_11] : memref<16x1024xf32, #tpu.memory_space<vmem>>, vector<2x512xf32>
    %c0_12 = arith.constant 0 : index
    %c0_13 = arith.constant 0 : index
    %15 = vector.load %arg5[%c0_12, %c0_13] : memref<128x512xf32, #tpu.memory_space<vmem>>, vector<128x512xf32>
    %cst_14 = arith.constant dense<0.000000e+00> : vector<2x512xf32>
    %16 = tpu.matmul %13, %15, %cst_14 {dimension_numbers = #tpu.dot_dimension_numbers<[1], [0], [0], [1], [0, 0, 1, 1], [], []>} : vector<2x128xf32>, vector<128x512xf32>, vector<2x512xf32> -> vector<2x512xf32>
    %17 = arith.addf %14, %16 : vector<2x512xf32>
    %18 = vector.extract_strided_slice %17 {offsets = [0, 0], sizes = [2, 128], strides = [1, 1]} : vector<2x512xf32> to vector<2x128xf32>
    %19 = arith.negf %18 : vector<2x128xf32>
    %20 = math.exp %19 : vector<2x128xf32>
    %cst_15 = arith.constant 1.000000e+00 : f32
    %21 = vector.broadcast %cst_15 : f32 to vector<2x128xf32>
    %22 = arith.addf %21, %20 : vector<2x128xf32>
    %23 = arith.divf %21, %22 : vector<2x128xf32>
    %24 = vector.extract_strided_slice %17 {offsets = [0, 128], sizes = [2, 128], strides = [1, 1]} : vector<2x512xf32> to vector<2x128xf32>
    %25 = arith.negf %24 : vector<2x128xf32>
    %26 = math.exp %25 : vector<2x128xf32>
    %cst_16 = arith.constant 1.000000e+00 : f32
    %27 = vector.broadcast %cst_16 : f32 to vector<2x128xf32>
    %28 = arith.addf %27, %26 : vector<2x128xf32>
    %29 = arith.divf %27, %28 : vector<2x128xf32>
    %30 = vector.extract_strided_slice %17 {offsets = [0, 256], sizes = [2, 128], strides = [1, 1]} : vector<2x512xf32> to vector<2x128xf32>
    %31 = math.tanh %30 : vector<2x128xf32>
    %32 = vector.extract_strided_slice %17 {offsets = [0, 384], sizes = [2, 128], strides = [1, 1]} : vector<2x512xf32> to vector<2x128xf32>
    %33 = arith.negf %32 : vector<2x128xf32>
    %34 = math.exp %33 : vector<2x128xf32>
    %cst_17 = arith.constant 1.000000e+00 : f32
    %35 = vector.broadcast %cst_17 : f32 to vector<2x128xf32>
    %36 = arith.addf %35, %34 : vector<2x128xf32>
    %37 = arith.divf %35, %36 : vector<2x128xf32>
    %38 = arith.mulf %29, %13 : vector<2x128xf32>
    %39 = arith.mulf %23, %31 : vector<2x128xf32>
    %40 = arith.addf %38, %39 : vector<2x128xf32>
    %41 = math.tanh %40 : vector<2x128xf32>
    %42 = arith.mulf %37, %41 : vector<2x128xf32>
    %c2 = arith.constant 2 : index
    %c0_18 = arith.constant 0 : index
    %43 = vector.load %arg11[%c2, %c0_18] : memref<16x1024xf32, #tpu.memory_space<vmem>>, vector<2x512xf32>
    %c0_19 = arith.constant 0 : index
    %c0_20 = arith.constant 0 : index
    %44 = vector.load %arg5[%c0_19, %c0_20] : memref<128x512xf32, #tpu.memory_space<vmem>>, vector<128x512xf32>
    %cst_21 = arith.constant dense<0.000000e+00> : vector<2x512xf32>
    %45 = tpu.matmul %42, %44, %cst_21 {dimension_numbers = #tpu.dot_dimension_numbers<[1], [0], [0], [1], [0, 0, 1, 1], [], []>} : vector<2x128xf32>, vector<128x512xf32>, vector<2x512xf32> -> vector<2x512xf32>
    %46 = arith.addf %43, %45 : vector<2x512xf32>
    %47 = vector.extract_strided_slice %46 {offsets = [0, 0], sizes = [2, 128], strides = [1, 1]} : vector<2x512xf32> to vector<2x128xf32>
    %48 = arith.negf %47 : vector<2x128xf32>
    %49 = math.exp %48 : vector<2x128xf32>
    %cst_22 = arith.constant 1.000000e+00 : f32
    %50 = vector.broadcast %cst_22 : f32 to vector<2x128xf32>
    %51 = arith.addf %50, %49 : vector<2x128xf32>
    %52 = arith.divf %50, %51 : vector<2x128xf32>
    %53 = vector.extract_strided_slice %46 {offsets = [0, 128], sizes = [2, 128], strides = [1, 1]} : vector<2x512xf32> to vector<2x128xf32>
    %54 = arith.negf %53 : vector<2x128xf32>
    %55 = math.exp %54 : vector<2x128xf32>
    %cst_23 = arith.constant 1.000000e+00 : f32
    %56 = vector.broadcast %cst_23 : f32 to vector<2x128xf32>
    %57 = arith.addf %56, %55 : vector<2x128xf32>
    %58 = arith.divf %56, %57 : vector<2x128xf32>
    %59 = vector.extract_strided_slice %46 {offsets = [0, 256], sizes = [2, 128], strides = [1, 1]} : vector<2x512xf32> to vector<2x128xf32>
    %60 = math.tanh %59 : vector<2x128xf32>
    %61 = vector.extract_strided_slice %46 {offsets = [0, 384], sizes = [2, 128], strides = [1, 1]} : vector<2x512xf32> to vector<2x128xf32>
    %62 = arith.negf %61 : vector<2x128xf32>
    %63 = math.exp %62 : vector<2x128xf32>
    %cst_24 = arith.constant 1.000000e+00 : f32
    %64 = vector.broadcast %cst_24 : f32 to vector<2x128xf32>
    %65 = arith.addf %64, %63 : vector<2x128xf32>
    %66 = arith.divf %64, %65 : vector<2x128xf32>
    %67 = arith.mulf %58, %40 : vector<2x128xf32>
    %68 = arith.mulf %52, %60 : vector<2x128xf32>
    %69 = arith.addf %67, %68 : vector<2x128xf32>
    %70 = math.tanh %69 : vector<2x128xf32>
    %71 = arith.mulf %66, %70 : vector<2x128xf32>
    %c4 = arith.constant 4 : index
    %c0_25 = arith.constant 0 : index
    %72 = vector.load %arg11[%c4, %c0_25] : memref<16x1024xf32, #tpu.memory_space<vmem>>, vector<2x512xf32>
    %c0_26 = arith.constant 0 : index
    %c0_27 = arith.constant 0 : index
    %73 = vector.load %arg5[%c0_26, %c0_27] : memref<128x512xf32, #tpu.memory_space<vmem>>, vector<128x512xf32>
    %cst_28 = arith.constant dense<0.000000e+00> : vector<2x512xf32>
    %74 = tpu.matmul %71, %73, %cst_28 {dimension_numbers = #tpu.dot_dimension_numbers<[1], [0], [0], [1], [0, 0, 1, 1], [], []>} : vector<2x128xf32>, vector<128x512xf32>, vector<2x512xf32> -> vector<2x512xf32>
    %75 = arith.addf %72, %74 : vector<2x512xf32>
    %76 = vector.extract_strided_slice %75 {offsets = [0, 0], sizes = [2, 128], strides = [1, 1]} : vector<2x512xf32> to vector<2x128xf32>
    %77 = arith.negf %76 : vector<2x128xf32>
    %78 = math.exp %77 : vector<2x128xf32>
    %cst_29 = arith.constant 1.000000e+00 : f32
    %79 = vector.broadcast %cst_29 : f32 to vector<2x128xf32>
    %80 = arith.addf %79, %78 : vector<2x128xf32>
    %81 = arith.divf %79, %80 : vector<2x128xf32>
    %82 = vector.extract_strided_slice %75 {offsets = [0, 128], sizes = [2, 128], strides = [1, 1]} : vector<2x512xf32> to vector<2x128xf32>
    %83 = arith.negf %82 : vector<2x128xf32>
    %84 = math.exp %83 : vector<2x128xf32>
    %cst_30 = arith.constant 1.000000e+00 : f32
    %85 = vector.broadcast %cst_30 : f32 to vector<2x128xf32>
    %86 = arith.addf %85, %84 : vector<2x128xf32>
    %87 = arith.divf %85, %86 : vector<2x128xf32>
    %88 = vector.extract_strided_slice %75 {offsets = [0, 256], sizes = [2, 128], strides = [1, 1]} : vector<2x512xf32> to vector<2x128xf32>
    %89 = math.tanh %88 : vector<2x128xf32>
    %90 = vector.extract_strided_slice %75 {offsets = [0, 384], sizes = [2, 128], strides = [1, 1]} : vector<2x512xf32> to vector<2x128xf32>
    %91 = arith.negf %90 : vector<2x128xf32>
    %92 = math.exp %91 : vector<2x128xf32>
    %cst_31 = arith.constant 1.000000e+00 : f32
    %93 = vector.broadcast %cst_31 : f32 to vector<2x128xf32>
    %94 = arith.addf %93, %92 : vector<2x128xf32>
    %95 = arith.divf %93, %94 : vector<2x128xf32>
    %96 = arith.mulf %87, %69 : vector<2x128xf32>
    %97 = arith.mulf %81, %89 : vector<2x128xf32>
    %98 = arith.addf %96, %97 : vector<2x128xf32>
    %99 = math.tanh %98 : vector<2x128xf32>
    %100 = arith.mulf %95, %99 : vector<2x128xf32>
    %c6 = arith.constant 6 : index
    %c0_32 = arith.constant 0 : index
    %101 = vector.load %arg11[%c6, %c0_32] : memref<16x1024xf32, #tpu.memory_space<vmem>>, vector<2x512xf32>
    %c0_33 = arith.constant 0 : index
    %c0_34 = arith.constant 0 : index
    %102 = vector.load %arg5[%c0_33, %c0_34] : memref<128x512xf32, #tpu.memory_space<vmem>>, vector<128x512xf32>
    %cst_35 = arith.constant dense<0.000000e+00> : vector<2x512xf32>
    %103 = tpu.matmul %100, %102, %cst_35 {dimension_numbers = #tpu.dot_dimension_numbers<[1], [0], [0], [1], [0, 0, 1, 1], [], []>} : vector<2x128xf32>, vector<128x512xf32>, vector<2x512xf32> -> vector<2x512xf32>
    %104 = arith.addf %101, %103 : vector<2x512xf32>
    %105 = vector.extract_strided_slice %104 {offsets = [0, 0], sizes = [2, 128], strides = [1, 1]} : vector<2x512xf32> to vector<2x128xf32>
    %106 = arith.negf %105 : vector<2x128xf32>
    %107 = math.exp %106 : vector<2x128xf32>
    %cst_36 = arith.constant 1.000000e+00 : f32
    %108 = vector.broadcast %cst_36 : f32 to vector<2x128xf32>
    %109 = arith.addf %108, %107 : vector<2x128xf32>
    %110 = arith.divf %108, %109 : vector<2x128xf32>
    %111 = vector.extract_strided_slice %104 {offsets = [0, 128], sizes = [2, 128], strides = [1, 1]} : vector<2x512xf32> to vector<2x128xf32>
    %112 = arith.negf %111 : vector<2x128xf32>
    %113 = math.exp %112 : vector<2x128xf32>
    %cst_37 = arith.constant 1.000000e+00 : f32
    %114 = vector.broadcast %cst_37 : f32 to vector<2x128xf32>
    %115 = arith.addf %114, %113 : vector<2x128xf32>
    %116 = arith.divf %114, %115 : vector<2x128xf32>
    %117 = vector.extract_strided_slice %104 {offsets = [0, 256], sizes = [2, 128], strides = [1, 1]} : vector<2x512xf32> to vector<2x128xf32>
    %118 = math.tanh %117 : vector<2x128xf32>
    %119 = vector.extract_strided_slice %104 {offsets = [0, 384], sizes = [2, 128], strides = [1, 1]} : vector<2x512xf32> to vector<2x128xf32>
    %120 = arith.negf %119 : vector<2x128xf32>
    %121 = math.exp %120 : vector<2x128xf32>
    %cst_38 = arith.constant 1.000000e+00 : f32
    %122 = vector.broadcast %cst_38 : f32 to vector<2x128xf32>
    %123 = arith.addf %122, %121 : vector<2x128xf32>
    %124 = arith.divf %122, %123 : vector<2x128xf32>
    %125 = arith.mulf %116, %98 : vector<2x128xf32>
    %126 = arith.mulf %110, %118 : vector<2x128xf32>
    %127 = arith.addf %125, %126 : vector<2x128xf32>
    %128 = math.tanh %127 : vector<2x128xf32>
    %129 = arith.mulf %124, %128 : vector<2x128xf32>
    %c8 = arith.constant 8 : index
    %c0_39 = arith.constant 0 : index
    %130 = vector.load %arg11[%c8, %c0_39] : memref<16x1024xf32, #tpu.memory_space<vmem>>, vector<2x512xf32>
    %c0_40 = arith.constant 0 : index
    %c0_41 = arith.constant 0 : index
    %131 = vector.load %arg5[%c0_40, %c0_41] : memref<128x512xf32, #tpu.memory_space<vmem>>, vector<128x512xf32>
    %cst_42 = arith.constant dense<0.000000e+00> : vector<2x512xf32>
    %132 = tpu.matmul %129, %131, %cst_42 {dimension_numbers = #tpu.dot_dimension_numbers<[1], [0], [0], [1], [0, 0, 1, 1], [], []>} : vector<2x128xf32>, vector<128x512xf32>, vector<2x512xf32> -> vector<2x512xf32>
    %133 = arith.addf %130, %132 : vector<2x512xf32>
    %134 = vector.extract_strided_slice %133 {offsets = [0, 0], sizes = [2, 128], strides = [1, 1]} : vector<2x512xf32> to vector<2x128xf32>
    %135 = arith.negf %134 : vector<2x128xf32>
    %136 = math.exp %135 : vector<2x128xf32>
    %cst_43 = arith.constant 1.000000e+00 : f32
    %137 = vector.broadcast %cst_43 : f32 to vector<2x128xf32>
    %138 = arith.addf %137, %136 : vector<2x128xf32>
    %139 = arith.divf %137, %138 : vector<2x128xf32>
    %140 = vector.extract_strided_slice %133 {offsets = [0, 128], sizes = [2, 128], strides = [1, 1]} : vector<2x512xf32> to vector<2x128xf32>
    %141 = arith.negf %140 : vector<2x128xf32>
    %142 = math.exp %141 : vector<2x128xf32>
    %cst_44 = arith.constant 1.000000e+00 : f32
    %143 = vector.broadcast %cst_44 : f32 to vector<2x128xf32>
    %144 = arith.addf %143, %142 : vector<2x128xf32>
    %145 = arith.divf %143, %144 : vector<2x128xf32>
    %146 = vector.extract_strided_slice %133 {offsets = [0, 256], sizes = [2, 128], strides = [1, 1]} : vector<2x512xf32> to vector<2x128xf32>
    %147 = math.tanh %146 : vector<2x128xf32>
    %148 = vector.extract_strided_slice %133 {offsets = [0, 384], sizes = [2, 128], strides = [1, 1]} : vector<2x512xf32> to vector<2x128xf32>
    %149 = arith.negf %148 : vector<2x128xf32>
    %150 = math.exp %149 : vector<2x128xf32>
    %cst_45 = arith.constant 1.000000e+00 : f32
    %151 = vector.broadcast %cst_45 : f32 to vector<2x128xf32>
    %152 = arith.addf %151, %150 : vector<2x128xf32>
    %153 = arith.divf %151, %152 : vector<2x128xf32>
    %154 = arith.mulf %145, %127 : vector<2x128xf32>
    %155 = arith.mulf %139, %147 : vector<2x128xf32>
    %156 = arith.addf %154, %155 : vector<2x128xf32>
    %157 = math.tanh %156 : vector<2x128xf32>
    %158 = arith.mulf %153, %157 : vector<2x128xf32>
    %c10 = arith.constant 10 : index
    %c0_46 = arith.constant 0 : index
    %159 = vector.load %arg11[%c10, %c0_46] : memref<16x1024xf32, #tpu.memory_space<vmem>>, vector<2x512xf32>
    %c0_47 = arith.constant 0 : index
    %c0_48 = arith.constant 0 : index
    %160 = vector.load %arg5[%c0_47, %c0_48] : memref<128x512xf32, #tpu.memory_space<vmem>>, vector<128x512xf32>
    %cst_49 = arith.constant dense<0.000000e+00> : vector<2x512xf32>
    %161 = tpu.matmul %158, %160, %cst_49 {dimension_numbers = #tpu.dot_dimension_numbers<[1], [0], [0], [1], [0, 0, 1, 1], [], []>} : vector<2x128xf32>, vector<128x512xf32>, vector<2x512xf32> -> vector<2x512xf32>
    %162 = arith.addf %159, %161 : vector<2x512xf32>
    %163 = vector.extract_strided_slice %162 {offsets = [0, 0], sizes = [2, 128], strides = [1, 1]} : vector<2x512xf32> to vector<2x128xf32>
    %164 = arith.negf %163 : vector<2x128xf32>
    %165 = math.exp %164 : vector<2x128xf32>
    %cst_50 = arith.constant 1.000000e+00 : f32
    %166 = vector.broadcast %cst_50 : f32 to vector<2x128xf32>
    %167 = arith.addf %166, %165 : vector<2x128xf32>
    %168 = arith.divf %166, %167 : vector<2x128xf32>
    %169 = vector.extract_strided_slice %162 {offsets = [0, 128], sizes = [2, 128], strides = [1, 1]} : vector<2x512xf32> to vector<2x128xf32>
    %170 = arith.negf %169 : vector<2x128xf32>
    %171 = math.exp %170 : vector<2x128xf32>
    %cst_51 = arith.constant 1.000000e+00 : f32
    %172 = vector.broadcast %cst_51 : f32 to vector<2x128xf32>
    %173 = arith.addf %172, %171 : vector<2x128xf32>
    %174 = arith.divf %172, %173 : vector<2x128xf32>
    %175 = vector.extract_strided_slice %162 {offsets = [0, 256], sizes = [2, 128], strides = [1, 1]} : vector<2x512xf32> to vector<2x128xf32>
    %176 = math.tanh %175 : vector<2x128xf32>
    %177 = vector.extract_strided_slice %162 {offsets = [0, 384], sizes = [2, 128], strides = [1, 1]} : vector<2x512xf32> to vector<2x128xf32>
    %178 = arith.negf %177 : vector<2x128xf32>
    %179 = math.exp %178 : vector<2x128xf32>
    %cst_52 = arith.constant 1.000000e+00 : f32
    %180 = vector.broadcast %cst_52 : f32 to vector<2x128xf32>
    %181 = arith.addf %180, %179 : vector<2x128xf32>
    %182 = arith.divf %180, %181 : vector<2x128xf32>
    %183 = arith.mulf %174, %156 : vector<2x128xf32>
    %184 = arith.mulf %168, %176 : vector<2x128xf32>
    %185 = arith.addf %183, %184 : vector<2x128xf32>
    %186 = math.tanh %185 : vector<2x128xf32>
    %187 = arith.mulf %182, %186 : vector<2x128xf32>
    %c12 = arith.constant 12 : index
    %c0_53 = arith.constant 0 : index
    %188 = vector.load %arg11[%c12, %c0_53] : memref<16x1024xf32, #tpu.memory_space<vmem>>, vector<2x512xf32>
    %c0_54 = arith.constant 0 : index
    %c0_55 = arith.constant 0 : index
    %189 = vector.load %arg5[%c0_54, %c0_55] : memref<128x512xf32, #tpu.memory_space<vmem>>, vector<128x512xf32>
    %cst_56 = arith.constant dense<0.000000e+00> : vector<2x512xf32>
    %190 = tpu.matmul %187, %189, %cst_56 {dimension_numbers = #tpu.dot_dimension_numbers<[1], [0], [0], [1], [0, 0, 1, 1], [], []>} : vector<2x128xf32>, vector<128x512xf32>, vector<2x512xf32> -> vector<2x512xf32>
    %191 = arith.addf %188, %190 : vector<2x512xf32>
    %192 = vector.extract_strided_slice %191 {offsets = [0, 0], sizes = [2, 128], strides = [1, 1]} : vector<2x512xf32> to vector<2x128xf32>
    %193 = arith.negf %192 : vector<2x128xf32>
    %194 = math.exp %193 : vector<2x128xf32>
    %cst_57 = arith.constant 1.000000e+00 : f32
    %195 = vector.broadcast %cst_57 : f32 to vector<2x128xf32>
    %196 = arith.addf %195, %194 : vector<2x128xf32>
    %197 = arith.divf %195, %196 : vector<2x128xf32>
    %198 = vector.extract_strided_slice %191 {offsets = [0, 128], sizes = [2, 128], strides = [1, 1]} : vector<2x512xf32> to vector<2x128xf32>
    %199 = arith.negf %198 : vector<2x128xf32>
    %200 = math.exp %199 : vector<2x128xf32>
    %cst_58 = arith.constant 1.000000e+00 : f32
    %201 = vector.broadcast %cst_58 : f32 to vector<2x128xf32>
    %202 = arith.addf %201, %200 : vector<2x128xf32>
    %203 = arith.divf %201, %202 : vector<2x128xf32>
    %204 = vector.extract_strided_slice %191 {offsets = [0, 256], sizes = [2, 128], strides = [1, 1]} : vector<2x512xf32> to vector<2x128xf32>
    %205 = math.tanh %204 : vector<2x128xf32>
    %206 = vector.extract_strided_slice %191 {offsets = [0, 384], sizes = [2, 128], strides = [1, 1]} : vector<2x512xf32> to vector<2x128xf32>
    %207 = arith.negf %206 : vector<2x128xf32>
    %208 = math.exp %207 : vector<2x128xf32>
    %cst_59 = arith.constant 1.000000e+00 : f32
    %209 = vector.broadcast %cst_59 : f32 to vector<2x128xf32>
    %210 = arith.addf %209, %208 : vector<2x128xf32>
    %211 = arith.divf %209, %210 : vector<2x128xf32>
    %212 = arith.mulf %203, %185 : vector<2x128xf32>
    %213 = arith.mulf %197, %205 : vector<2x128xf32>
    %214 = arith.addf %212, %213 : vector<2x128xf32>
    %215 = math.tanh %214 : vector<2x128xf32>
    %216 = arith.mulf %211, %215 : vector<2x128xf32>
    %c14 = arith.constant 14 : index
    %c0_60 = arith.constant 0 : index
    %217 = vector.load %arg11[%c14, %c0_60] : memref<16x1024xf32, #tpu.memory_space<vmem>>, vector<2x512xf32>
    %c0_61 = arith.constant 0 : index
    %c0_62 = arith.constant 0 : index
    %218 = vector.load %arg5[%c0_61, %c0_62] : memref<128x512xf32, #tpu.memory_space<vmem>>, vector<128x512xf32>
    %cst_63 = arith.constant dense<0.000000e+00> : vector<2x512xf32>
    %219 = tpu.matmul %216, %218, %cst_63 {dimension_numbers = #tpu.dot_dimension_numbers<[1], [0], [0], [1], [0, 0, 1, 1], [], []>} : vector<2x128xf32>, vector<128x512xf32>, vector<2x512xf32> -> vector<2x512xf32>
    %220 = arith.addf %217, %219 : vector<2x512xf32>
    %221 = vector.extract_strided_slice %220 {offsets = [0, 0], sizes = [2, 128], strides = [1, 1]} : vector<2x512xf32> to vector<2x128xf32>
    %222 = arith.negf %221 : vector<2x128xf32>
    %223 = math.exp %222 : vector<2x128xf32>
    %cst_64 = arith.constant 1.000000e+00 : f32
    %224 = vector.broadcast %cst_64 : f32 to vector<2x128xf32>
    %225 = arith.addf %224, %223 : vector<2x128xf32>
    %226 = arith.divf %224, %225 : vector<2x128xf32>
    %227 = vector.extract_strided_slice %220 {offsets = [0, 128], sizes = [2, 128], strides = [1, 1]} : vector<2x512xf32> to vector<2x128xf32>
    %228 = arith.negf %227 : vector<2x128xf32>
    %229 = math.exp %228 : vector<2x128xf32>
    %cst_65 = arith.constant 1.000000e+00 : f32
    %230 = vector.broadcast %cst_65 : f32 to vector<2x128xf32>
    %231 = arith.addf %230, %229 : vector<2x128xf32>
    %232 = arith.divf %230, %231 : vector<2x128xf32>
    %233 = vector.extract_strided_slice %220 {offsets = [0, 256], sizes = [2, 128], strides = [1, 1]} : vector<2x512xf32> to vector<2x128xf32>
    %234 = math.tanh %233 : vector<2x128xf32>
    %235 = vector.extract_strided_slice %220 {offsets = [0, 384], sizes = [2, 128], strides = [1, 1]} : vector<2x512xf32> to vector<2x128xf32>
    %236 = arith.negf %235 : vector<2x128xf32>
    %237 = math.exp %236 : vector<2x128xf32>
    %cst_66 = arith.constant 1.000000e+00 : f32
    %238 = vector.broadcast %cst_66 : f32 to vector<2x128xf32>
    %239 = arith.addf %238, %237 : vector<2x128xf32>
    %240 = arith.divf %238, %239 : vector<2x128xf32>
    %241 = arith.mulf %232, %214 : vector<2x128xf32>
    %242 = arith.mulf %226, %234 : vector<2x128xf32>
    %243 = arith.addf %241, %242 : vector<2x128xf32>
    %244 = math.tanh %243 : vector<2x128xf32>
    %245 = arith.mulf %240, %244 : vector<2x128xf32>
    %cst_67 = arith.constant 0.000000e+00 : f32
    %246 = vector.broadcast %cst_67 : f32 to vector<2x1xf32>
    %c14_68 = arith.constant 14 : index
    %c512 = arith.constant 512 : index
    %247 = vector.load %arg11[%c14_68, %c512] : memref<16x1024xf32, #tpu.memory_space<vmem>>, vector<2x512xf32>
    %c0_69 = arith.constant 0 : index
    %c0_70 = arith.constant 0 : index
    %248 = vector.load %arg6[%c0_69, %c0_70] : memref<128x512xf32, #tpu.memory_space<vmem>>, vector<128x512xf32>
    %cst_71 = arith.constant dense<0.000000e+00> : vector<2x512xf32>
    %249 = tpu.matmul %13, %248, %cst_71 {dimension_numbers = #tpu.dot_dimension_numbers<[1], [0], [0], [1], [0, 0, 1, 1], [], []>} : vector<2x128xf32>, vector<128x512xf32>, vector<2x512xf32> -> vector<2x512xf32>
    %250 = arith.addf %247, %249 : vector<2x512xf32>
    %251 = vector.extract_strided_slice %250 {offsets = [0, 0], sizes = [2, 128], strides = [1, 1]} : vector<2x512xf32> to vector<2x128xf32>
    %252 = arith.negf %251 : vector<2x128xf32>
    %253 = math.exp %252 : vector<2x128xf32>
    %cst_72 = arith.constant 1.000000e+00 : f32
    %254 = vector.broadcast %cst_72 : f32 to vector<2x128xf32>
    %255 = arith.addf %254, %253 : vector<2x128xf32>
    %256 = arith.divf %254, %255 : vector<2x128xf32>
    %257 = vector.extract_strided_slice %250 {offsets = [0, 128], sizes = [2, 128], strides = [1, 1]} : vector<2x512xf32> to vector<2x128xf32>
    %258 = arith.negf %257 : vector<2x128xf32>
    %259 = math.exp %258 : vector<2x128xf32>
    %cst_73 = arith.constant 1.000000e+00 : f32
    %260 = vector.broadcast %cst_73 : f32 to vector<2x128xf32>
    %261 = arith.addf %260, %259 : vector<2x128xf32>
    %262 = arith.divf %260, %261 : vector<2x128xf32>
    %263 = vector.extract_strided_slice %250 {offsets = [0, 256], sizes = [2, 128], strides = [1, 1]} : vector<2x512xf32> to vector<2x128xf32>
    %264 = math.tanh %263 : vector<2x128xf32>
    %265 = vector.extract_strided_slice %250 {offsets = [0, 384], sizes = [2, 128], strides = [1, 1]} : vector<2x512xf32> to vector<2x128xf32>
    %266 = arith.negf %265 : vector<2x128xf32>
    %267 = math.exp %266 : vector<2x128xf32>
    %cst_74 = arith.constant 1.000000e+00 : f32
    %268 = vector.broadcast %cst_74 : f32 to vector<2x128xf32>
    %269 = arith.addf %268, %267 : vector<2x128xf32>
    %270 = arith.divf %268, %269 : vector<2x128xf32>
    %271 = arith.mulf %262, %13 : vector<2x128xf32>
    %272 = arith.mulf %256, %264 : vector<2x128xf32>
    %273 = arith.addf %271, %272 : vector<2x128xf32>
    %274 = math.tanh %273 : vector<2x128xf32>
    %275 = arith.mulf %270, %274 : vector<2x128xf32>
    %c0_75 = arith.constant 0 : index
    %c0_76 = arith.constant 0 : index
    %276 = vector.load %arg7[%c0_75, %c0_76] : memref<256x128xf32, #tpu.memory_space<vmem>>, vector<128x128xf32>
    %cst_77 = arith.constant dense<0.000000e+00> : vector<2x128xf32>
    %277 = tpu.matmul %245, %276, %cst_77 {dimension_numbers = #tpu.dot_dimension_numbers<[1], [0], [0], [1], [0, 0, 1, 1], [], []>} : vector<2x128xf32>, vector<128x128xf32>, vector<2x128xf32> -> vector<2x128xf32>
    %c128 = arith.constant 128 : index
    %c0_78 = arith.constant 0 : index
    %278 = vector.load %arg7[%c128, %c0_78] : memref<256x128xf32, #tpu.memory_space<vmem>>, vector<128x128xf32>
    %cst_79 = arith.constant dense<0.000000e+00> : vector<2x128xf32>
    %279 = tpu.matmul %275, %278, %cst_79 {dimension_numbers = #tpu.dot_dimension_numbers<[1], [0], [0], [1], [0, 0, 1, 1], [], []>} : vector<2x128xf32>, vector<128x128xf32>, vector<2x128xf32> -> vector<2x128xf32>
    %280 = arith.addf %277, %279 : vector<2x128xf32>
    %281 = arith.addf %280, %5 : vector<2x128xf32>
    %c14_80 = arith.constant 14 : index
    %c0_81 = arith.constant 0 : index
    %282 = vector.load %arg0[%c14_80, %c0_81] : memref<16x1xi32, #tpu.memory_space<vmem>>, vector<2x1xi32>
    %c0_i32_82 = arith.constant 0 : i32
    %283 = vector.broadcast %c0_i32_82 : i32 to vector<2x1xi32>
    %284 = arith.cmpi eq, %282, %283 : vector<2x1xi32>
    %285 = arith.extui %284 : vector<2x1xi1> to vector<2x1xi32>
    %286 = arith.sitofp %285 : vector<2x1xi32> to vector<2x1xf32>
    %cst_83 = arith.constant 1.000000e+04 : f32
    %287 = vector.broadcast %cst_83 : f32 to vector<2x1xf32>
    %288 = arith.mulf %286, %287 : vector<2x1xf32>
    %cst_84 = arith.constant 0.000000e+00 : f32
    %289 = vector.shape_cast %288 : vector<2x1xf32> to vector<2x1xf32>
    %290 = vector.broadcast %289 : vector<2x1xf32> to vector<2x128xf32>
    %291 = vector.broadcast %cst_84 : f32 to vector<2x128xf32>
    %292 = arith.select %2, %290, %291 : vector<2x128xi1>, vector<2x128xf32>
    %293 = arith.addf %281, %292 : vector<2x128xf32>
    %c14_85 = arith.constant 14 : index
    %c0_86 = arith.constant 0 : index
    %294 = vector.load %arg10[%c14_85, %c0_86] : memref<16x128xf32, #tpu.memory_space<vmem>>, vector<2x128xf32>
    tpu.vector_store %arg10[%c14_85, %c0_86], %293 {strides = array<i32>} : memref<16x128xf32, #tpu.memory_space<vmem>>, vector<2x128xf32>,
    %c14_87 = arith.constant 14 : index
    %c0_88 = arith.constant 0 : index
    %295 = vector.load %arg1[%c14_87, %c0_88] : memref<16x1xi32, #tpu.memory_space<vmem>>, vector<2x1xi32>
    %cst_89 = arith.constant dense<0xFF800000> : vector<2xf32>
    %296 = vector.multi_reduction <maximumf>, %293, %cst_89 [1] : vector<2x128xf32> to vector<2xf32>
    %297 = vector.shape_cast %296 : vector<2xf32> to vector<2x1xf32>
    %298 = vector.broadcast %297 : vector<2x1xf32> to vector<2x128xf32>
    %299 = arith.subf %293, %298 : vector<2x128xf32>
    %300 = math.exp %299 : vector<2x128xf32>
    %cst_90 = arith.constant dense<0.000000e+00> : vector<2xf32>
    %301 = vector.multi_reduction <add>, %300, %cst_90 [1] : vector<2x128xf32> to vector<2xf32>
    %302 = vector.shape_cast %301 : vector<2xf32> to vector<2x1xf32>
    %303 = math.log %302 : vector<2x1xf32>
    %304 = arith.addf %297, %303 : vector<2x1xf32>
    %305 = vector.broadcast %295 : vector<2x1xi32> to vector<2x128xi32>
    %306 = arith.cmpi eq, %0, %305 : vector<2x128xi32>
    %cst_91 = arith.constant 0.000000e+00 : f32
    %307 = vector.broadcast %cst_91 : f32 to vector<2x128xf32>
    %308 = arith.select %306, %293, %307 : vector<2x128xi1>, vector<2x128xf32>
    %cst_92 = arith.constant dense<0.000000e+00> : vector<2xf32>
    %309 = vector.multi_reduction <add>, %308, %cst_92 [1] : vector<2x128xf32> to vector<2xf32>
    %310 = vector.shape_cast %309 : vector<2xf32> to vector<2x1xf32>
    %311 = arith.subf %304, %310 : vector<2x1xf32>
    %312 = arith.addf %246, %311 : vector<2x1xf32>
    %c12_93 = arith.constant 12 : index
    %c512_94 = arith.constant 512 : index
    %313 = vector.load %arg11[%c12_93, %c512_94] : memref<16x1024xf32, #tpu.memory_space<vmem>>, vector<2x512xf32>
    %c0_95 = arith.constant 0 : index
    %c0_96 = arith.constant 0 : index
    %314 = vector.load %arg6[%c0_95, %c0_96] : memref<128x512xf32, #tpu.memory_space<vmem>>, vector<128x512xf32>
    %cst_97 = arith.constant dense<0.000000e+00> : vector<2x512xf32>
    %315 = tpu.matmul %275, %314, %cst_97 {dimension_numbers = #tpu.dot_dimension_numbers<[1], [0], [0], [1], [0, 0, 1, 1], [], []>} : vector<2x128xf32>, vector<128x512xf32>, vector<2x512xf32> -> vector<2x512xf32>
    %316 = arith.addf %313, %315 : vector<2x512xf32>
    %317 = vector.extract_strided_slice %316 {offsets = [0, 0], sizes = [2, 128], strides = [1, 1]} : vector<2x512xf32> to vector<2x128xf32>
    %318 = arith.negf %317 : vector<2x128xf32>
    %319 = math.exp %318 : vector<2x128xf32>
    %cst_98 = arith.constant 1.000000e+00 : f32
    %320 = vector.broadcast %cst_98 : f32 to vector<2x128xf32>
    %321 = arith.addf %320, %319 : vector<2x128xf32>
    %322 = arith.divf %320, %321 : vector<2x128xf32>
    %323 = vector.extract_strided_slice %316 {offsets = [0, 128], sizes = [2, 128], strides = [1, 1]} : vector<2x512xf32> to vector<2x128xf32>
    %324 = arith.negf %323 : vector<2x128xf32>
    %325 = math.exp %324 : vector<2x128xf32>
    %cst_99 = arith.constant 1.000000e+00 : f32
    %326 = vector.broadcast %cst_99 : f32 to vector<2x128xf32>
    %327 = arith.addf %326, %325 : vector<2x128xf32>
    %328 = arith.divf %326, %327 : vector<2x128xf32>
    %329 = vector.extract_strided_slice %316 {offsets = [0, 256], sizes = [2, 128], strides = [1, 1]} : vector<2x512xf32> to vector<2x128xf32>
    %330 = math.tanh %329 : vector<2x128xf32>
    %331 = vector.extract_strided_slice %316 {offsets = [0, 384], sizes = [2, 128], strides = [1, 1]} : vector<2x512xf32> to vector<2x128xf32>
    %332 = arith.negf %331 : vector<2x128xf32>
    %333 = math.exp %332 : vector<2x128xf32>
    %cst_100 = arith.constant 1.000000e+00 : f32
    %334 = vector.broadcast %cst_100 : f32 to vector<2x128xf32>
    %335 = arith.addf %334, %333 : vector<2x128xf32>
    %336 = arith.divf %334, %335 : vector<2x128xf32>
    %337 = arith.mulf %328, %273 : vector<2x128xf32>
    %338 = arith.mulf %322, %330 : vector<2x128xf32>
    %339 = arith.addf %337, %338 : vector<2x128xf32>
    %340 = math.tanh %339 : vector<2x128xf32>
    %341 = arith.mulf %336, %340 : vector<2x128xf32>
    %c0_101 = arith.constant 0 : index
    %c0_102 = arith.constant 0 : index
    %342 = vector.load %arg7[%c0_101, %c0_102] : memref<256x128xf32, #tpu.memory_space<vmem>>, vector<128x128xf32>
    %cst_103 = arith.constant dense<0.000000e+00> : vector<2x128xf32>
    %343 = tpu.matmul %216, %342, %cst_103 {dimension_numbers = #tpu.dot_dimension_numbers<[1], [0], [0], [1], [0, 0, 1, 1], [], []>} : vector<2x128xf32>, vector<128x128xf32>, vector<2x128xf32> -> vector<2x128xf32>
    %c128_104 = arith.constant 128 : index
    %c0_105 = arith.constant 0 : index
    %344 = vector.load %arg7[%c128_104, %c0_105] : memref<256x128xf32, #tpu.memory_space<vmem>>, vector<128x128xf32>
    %cst_106 = arith.constant dense<0.000000e+00> : vector<2x128xf32>
    %345 = tpu.matmul %341, %344, %cst_106 {dimension_numbers = #tpu.dot_dimension_numbers<[1], [0], [0], [1], [0, 0, 1, 1], [], []>} : vector<2x128xf32>, vector<128x128xf32>, vector<2x128xf32> -> vector<2x128xf32>
    %346 = arith.addf %343, %345 : vector<2x128xf32>
    %347 = arith.addf %346, %5 : vector<2x128xf32>
    %c12_107 = arith.constant 12 : index
    %c0_108 = arith.constant 0 : index
    %348 = vector.load %arg0[%c12_107, %c0_108] : memref<16x1xi32, #tpu.memory_space<vmem>>, vector<2x1xi32>
    %c0_i32_109 = arith.constant 0 : i32
    %349 = vector.broadcast %c0_i32_109 : i32 to vector<2x1xi32>
    %350 = arith.cmpi eq, %348, %349 : vector<2x1xi32>
    %351 = arith.extui %350 : vector<2x1xi1> to vector<2x1xi32>
    %352 = arith.sitofp %351 : vector<2x1xi32> to vector<2x1xf32>
    %cst_110 = arith.constant 1.000000e+04 : f32
    %353 = vector.broadcast %cst_110 : f32 to vector<2x1xf32>
    %354 = arith.mulf %352, %353 : vector<2x1xf32>
    %cst_111 = arith.constant 0.000000e+00 : f32
    %355 = vector.shape_cast %354 : vector<2x1xf32> to vector<2x1xf32>
    %356 = vector.broadcast %355 : vector<2x1xf32> to vector<2x128xf32>
    %357 = vector.broadcast %cst_111 : f32 to vector<2x128xf32>
    %358 = arith.select %2, %356, %357 : vector<2x128xi1>, vector<2x128xf32>
    %359 = arith.addf %347, %358 : vector<2x128xf32>
    %c12_112 = arith.constant 12 : index
    %c0_113 = arith.constant 0 : index
    %360 = vector.load %arg10[%c12_112, %c0_113] : memref<16x128xf32, #tpu.memory_space<vmem>>, vector<2x128xf32>
    tpu.vector_store %arg10[%c12_112, %c0_113], %359 {strides = array<i32>} : memref<16x128xf32, #tpu.memory_space<vmem>>, vector<2x128xf32>,
    %c12_114 = arith.constant 12 : index
    %c0_115 = arith.constant 0 : index
    %361 = vector.load %arg1[%c12_114, %c0_115] : memref<16x1xi32, #tpu.memory_space<vmem>>, vector<2x1xi32>
    %cst_116 = arith.constant dense<0xFF800000> : vector<2xf32>
    %362 = vector.multi_reduction <maximumf>, %359, %cst_116 [1] : vector<2x128xf32> to vector<2xf32>
    %363 = vector.shape_cast %362 : vector<2xf32> to vector<2x1xf32>
    %364 = vector.broadcast %363 : vector<2x1xf32> to vector<2x128xf32>
    %365 = arith.subf %359, %364 : vector<2x128xf32>
    %366 = math.exp %365 : vector<2x128xf32>
    %cst_117 = arith.constant dense<0.000000e+00> : vector<2xf32>
    %367 = vector.multi_reduction <add>, %366, %cst_117 [1] : vector<2x128xf32> to vector<2xf32>
    %368 = vector.shape_cast %367 : vector<2xf32> to vector<2x1xf32>
    %369 = math.log %368 : vector<2x1xf32>
    %370 = arith.addf %363, %369 : vector<2x1xf32>
    %371 = vector.broadcast %361 : vector<2x1xi32> to vector<2x128xi32>
    %372 = arith.cmpi eq, %0, %371 : vector<2x128xi32>
    %cst_118 = arith.constant 0.000000e+00 : f32
    %373 = vector.broadcast %cst_118 : f32 to vector<2x128xf32>
    %374 = arith.select %372, %359, %373 : vector<2x128xi1>, vector<2x128xf32>
    %cst_119 = arith.constant dense<0.000000e+00> : vector<2xf32>
    %375 = vector.multi_reduction <add>, %374, %cst_119 [1] : vector<2x128xf32> to vector<2xf32>
    %376 = vector.shape_cast %375 : vector<2xf32> to vector<2x1xf32>
    %377 = arith.subf %370, %376 : vector<2x1xf32>
    %378 = arith.addf %312, %377 : vector<2x1xf32>
    %c10_120 = arith.constant 10 : index
    %c512_121 = arith.constant 512 : index
    %379 = vector.load %arg11[%c10_120, %c512_121] : memref<16x1024xf32, #tpu.memory_space<vmem>>, vector<2x512xf32>
    %c0_122 = arith.constant 0 : index
    %c0_123 = arith.constant 0 : index
    %380 = vector.load %arg6[%c0_122, %c0_123] : memref<128x512xf32, #tpu.memory_space<vmem>>, vector<128x512xf32>
    %cst_124 = arith.constant dense<0.000000e+00> : vector<2x512xf32>
    %381 = tpu.matmul %341, %380, %cst_124 {dimension_numbers = #tpu.dot_dimension_numbers<[1], [0], [0], [1], [0, 0, 1, 1], [], []>} : vector<2x128xf32>, vector<128x512xf32>, vector<2x512xf32> -> vector<2x512xf32>
    %382 = arith.addf %379, %381 : vector<2x512xf32>
    %383 = vector.extract_strided_slice %382 {offsets = [0, 0], sizes = [2, 128], strides = [1, 1]} : vector<2x512xf32> to vector<2x128xf32>
    %384 = arith.negf %383 : vector<2x128xf32>
    %385 = math.exp %384 : vector<2x128xf32>
    %cst_125 = arith.constant 1.000000e+00 : f32
    %386 = vector.broadcast %cst_125 : f32 to vector<2x128xf32>
    %387 = arith.addf %386, %385 : vector<2x128xf32>
    %388 = arith.divf %386, %387 : vector<2x128xf32>
    %389 = vector.extract_strided_slice %382 {offsets = [0, 128], sizes = [2, 128], strides = [1, 1]} : vector<2x512xf32> to vector<2x128xf32>
    %390 = arith.negf %389 : vector<2x128xf32>
    %391 = math.exp %390 : vector<2x128xf32>
    %cst_126 = arith.constant 1.000000e+00 : f32
    %392 = vector.broadcast %cst_126 : f32 to vector<2x128xf32>
    %393 = arith.addf %392, %391 : vector<2x128xf32>
    %394 = arith.divf %392, %393 : vector<2x128xf32>
    %395 = vector.extract_strided_slice %382 {offsets = [0, 256], sizes = [2, 128], strides = [1, 1]} : vector<2x512xf32> to vector<2x128xf32>
    %396 = math.tanh %395 : vector<2x128xf32>
    %397 = vector.extract_strided_slice %382 {offsets = [0, 384], sizes = [2, 128], strides = [1, 1]} : vector<2x512xf32> to vector<2x128xf32>
    %398 = arith.negf %397 : vector<2x128xf32>
    %399 = math.exp %398 : vector<2x128xf32>
    %cst_127 = arith.constant 1.000000e+00 : f32
    %400 = vector.broadcast %cst_127 : f32 to vector<2x128xf32>
    %401 = arith.addf %400, %399 : vector<2x128xf32>
    %402 = arith.divf %400, %401 : vector<2x128xf32>
    %403 = arith.mulf %394, %339 : vector<2x128xf32>
    %404 = arith.mulf %388, %396 : vector<2x128xf32>
    %405 = arith.addf %403, %404 : vector<2x128xf32>
    %406 = math.tanh %405 : vector<2x128xf32>
    %407 = arith.mulf %402, %406 : vector<2x128xf32>
    %c0_128 = arith.constant 0 : index
    %c0_129 = arith.constant 0 : index
    %408 = vector.load %arg7[%c0_128, %c0_129] : memref<256x128xf32, #tpu.memory_space<vmem>>, vector<128x128xf32>
    %cst_130 = arith.constant dense<0.000000e+00> : vector<2x128xf32>
    %409 = tpu.matmul %187, %408, %cst_130 {dimension_numbers = #tpu.dot_dimension_numbers<[1], [0], [0], [1], [0, 0, 1, 1], [], []>} : vector<2x128xf32>, vector<128x128xf32>, vector<2x128xf32> -> vector<2x128xf32>
    %c128_131 = arith.constant 128 : index
    %c0_132 = arith.constant 0 : index
    %410 = vector.load %arg7[%c128_131, %c0_132] : memref<256x128xf32, #tpu.memory_space<vmem>>, vector<128x128xf32>
    %cst_133 = arith.constant dense<0.000000e+00> : vector<2x128xf32>
    %411 = tpu.matmul %407, %410, %cst_133 {dimension_numbers = #tpu.dot_dimension_numbers<[1], [0], [0], [1], [0, 0, 1, 1], [], []>} : vector<2x128xf32>, vector<128x128xf32>, vector<2x128xf32> -> vector<2x128xf32>
    %412 = arith.addf %409, %411 : vector<2x128xf32>
    %413 = arith.addf %412, %5 : vector<2x128xf32>
    %c10_134 = arith.constant 10 : index
    %c0_135 = arith.constant 0 : index
    %414 = vector.load %arg0[%c10_134, %c0_135] : memref<16x1xi32, #tpu.memory_space<vmem>>, vector<2x1xi32>
    %c0_i32_136 = arith.constant 0 : i32
    %415 = vector.broadcast %c0_i32_136 : i32 to vector<2x1xi32>
    %416 = arith.cmpi eq, %414, %415 : vector<2x1xi32>
    %417 = arith.extui %416 : vector<2x1xi1> to vector<2x1xi32>
    %418 = arith.sitofp %417 : vector<2x1xi32> to vector<2x1xf32>
    %cst_137 = arith.constant 1.000000e+04 : f32
    %419 = vector.broadcast %cst_137 : f32 to vector<2x1xf32>
    %420 = arith.mulf %418, %419 : vector<2x1xf32>
    %cst_138 = arith.constant 0.000000e+00 : f32
    %421 = vector.shape_cast %420 : vector<2x1xf32> to vector<2x1xf32>
    %422 = vector.broadcast %421 : vector<2x1xf32> to vector<2x128xf32>
    %423 = vector.broadcast %cst_138 : f32 to vector<2x128xf32>
    %424 = arith.select %2, %422, %423 : vector<2x128xi1>, vector<2x128xf32>
    %425 = arith.addf %413, %424 : vector<2x128xf32>
    %c10_139 = arith.constant 10 : index
    %c0_140 = arith.constant 0 : index
    %426 = vector.load %arg10[%c10_139, %c0_140] : memref<16x128xf32, #tpu.memory_space<vmem>>, vector<2x128xf32>
    tpu.vector_store %arg10[%c10_139, %c0_140], %425 {strides = array<i32>} : memref<16x128xf32, #tpu.memory_space<vmem>>, vector<2x128xf32>,
    %c10_141 = arith.constant 10 : index
    %c0_142 = arith.constant 0 : index
    %427 = vector.load %arg1[%c10_141, %c0_142] : memref<16x1xi32, #tpu.memory_space<vmem>>, vector<2x1xi32>
    %cst_143 = arith.constant dense<0xFF800000> : vector<2xf32>
    %428 = vector.multi_reduction <maximumf>, %425, %cst_143 [1] : vector<2x128xf32> to vector<2xf32>
    %429 = vector.shape_cast %428 : vector<2xf32> to vector<2x1xf32>
    %430 = vector.broadcast %429 : vector<2x1xf32> to vector<2x128xf32>
    %431 = arith.subf %425, %430 : vector<2x128xf32>
    %432 = math.exp %431 : vector<2x128xf32>
    %cst_144 = arith.constant dense<0.000000e+00> : vector<2xf32>
    %433 = vector.multi_reduction <add>, %432, %cst_144 [1] : vector<2x128xf32> to vector<2xf32>
    %434 = vector.shape_cast %433 : vector<2xf32> to vector<2x1xf32>
    %435 = math.log %434 : vector<2x1xf32>
    %436 = arith.addf %429, %435 : vector<2x1xf32>
    %437 = vector.broadcast %427 : vector<2x1xi32> to vector<2x128xi32>
    %438 = arith.cmpi eq, %0, %437 : vector<2x128xi32>
    %cst_145 = arith.constant 0.000000e+00 : f32
    %439 = vector.broadcast %cst_145 : f32 to vector<2x128xf32>
    %440 = arith.select %438, %425, %439 : vector<2x128xi1>, vector<2x128xf32>
    %cst_146 = arith.constant dense<0.000000e+00> : vector<2xf32>
    %441 = vector.multi_reduction <add>, %440, %cst_146 [1] : vector<2x128xf32> to vector<2xf32>
    %442 = vector.shape_cast %441 : vector<2xf32> to vector<2x1xf32>
    %443 = arith.subf %436, %442 : vector<2x1xf32>
    %444 = arith.addf %378, %443 : vector<2x1xf32>
    %c8_147 = arith.constant 8 : index
    %c512_148 = arith.constant 512 : index
    %445 = vector.load %arg11[%c8_147, %c512_148] : memref<16x1024xf32, #tpu.memory_space<vmem>>, vector<2x512xf32>
    %c0_149 = arith.constant 0 : index
    %c0_150 = arith.constant 0 : index
    %446 = vector.load %arg6[%c0_149, %c0_150] : memref<128x512xf32, #tpu.memory_space<vmem>>, vector<128x512xf32>
    %cst_151 = arith.constant dense<0.000000e+00> : vector<2x512xf32>
    %447 = tpu.matmul %407, %446, %cst_151 {dimension_numbers = #tpu.dot_dimension_numbers<[1], [0], [0], [1], [0, 0, 1, 1], [], []>} : vector<2x128xf32>, vector<128x512xf32>, vector<2x512xf32> -> vector<2x512xf32>
    %448 = arith.addf %445, %447 : vector<2x512xf32>
    %449 = vector.extract_strided_slice %448 {offsets = [0, 0], sizes = [2, 128], strides = [1, 1]} : vector<2x512xf32> to vector<2x128xf32>
    %450 = arith.negf %449 : vector<2x128xf32>
    %451 = math.exp %450 : vector<2x128xf32>
    %cst_152 = arith.constant 1.000000e+00 : f32
    %452 = vector.broadcast %cst_152 : f32 to vector<2x128xf32>
    %453 = arith.addf %452, %451 : vector<2x128xf32>
    %454 = arith.divf %452, %453 : vector<2x128xf32>
    %455 = vector.extract_strided_slice %448 {offsets = [0, 128], sizes = [2, 128], strides = [1, 1]} : vector<2x512xf32> to vector<2x128xf32>
    %456 = arith.negf %455 : vector<2x128xf32>
    %457 = math.exp %456 : vector<2x128xf32>
    %cst_153 = arith.constant 1.000000e+00 : f32
    %458 = vector.broadcast %cst_153 : f32 to vector<2x128xf32>
    %459 = arith.addf %458, %457 : vector<2x128xf32>
    %460 = arith.divf %458, %459 : vector<2x128xf32>
    %461 = vector.extract_strided_slice %448 {offsets = [0, 256], sizes = [2, 128], strides = [1, 1]} : vector<2x512xf32> to vector<2x128xf32>
    %462 = math.tanh %461 : vector<2x128xf32>
    %463 = vector.extract_strided_slice %448 {offsets = [0, 384], sizes = [2, 128], strides = [1, 1]} : vector<2x512xf32> to vector<2x128xf32>
    %464 = arith.negf %463 : vector<2x128xf32>
    %465 = math.exp %464 : vector<2x128xf32>
    %cst_154 = arith.constant 1.000000e+00 : f32
    %466 = vector.broadcast %cst_154 : f32 to vector<2x128xf32>
    %467 = arith.addf %466, %465 : vector<2x128xf32>
    %468 = arith.divf %466, %467 : vector<2x128xf32>
    %469 = arith.mulf %460, %405 : vector<2x128xf32>
    %470 = arith.mulf %454, %462 : vector<2x128xf32>
    %471 = arith.addf %469, %470 : vector<2x128xf32>
    %472 = math.tanh %471 : vector<2x128xf32>
    %473 = arith.mulf %468, %472 : vector<2x128xf32>
    %c0_155 = arith.constant 0 : index
    %c0_156 = arith.constant 0 : index
    %474 = vector.load %arg7[%c0_155, %c0_156] : memref<256x128xf32, #tpu.memory_space<vmem>>, vector<128x128xf32>
    %cst_157 = arith.constant dense<0.000000e+00> : vector<2x128xf32>
    %475 = tpu.matmul %158, %474, %cst_157 {dimension_numbers = #tpu.dot_dimension_numbers<[1], [0], [0], [1], [0, 0, 1, 1], [], []>} : vector<2x128xf32>, vector<128x128xf32>, vector<2x128xf32> -> vector<2x128xf32>
    %c128_158 = arith.constant 128 : index
    %c0_159 = arith.constant 0 : index
    %476 = vector.load %arg7[%c128_158, %c0_159] : memref<256x128xf32, #tpu.memory_space<vmem>>, vector<128x128xf32>
    %cst_160 = arith.constant dense<0.000000e+00> : vector<2x128xf32>
    %477 = tpu.matmul %473, %476, %cst_160 {dimension_numbers = #tpu.dot_dimension_numbers<[1], [0], [0], [1], [0, 0, 1, 1], [], []>} : vector<2x128xf32>, vector<128x128xf32>, vector<2x128xf32> -> vector<2x128xf32>
    %478 = arith.addf %475, %477 : vector<2x128xf32>
    %479 = arith.addf %478, %5 : vector<2x128xf32>
    %c8_161 = arith.constant 8 : index
    %c0_162 = arith.constant 0 : index
    %480 = vector.load %arg0[%c8_161, %c0_162] : memref<16x1xi32, #tpu.memory_space<vmem>>, vector<2x1xi32>
    %c0_i32_163 = arith.constant 0 : i32
    %481 = vector.broadcast %c0_i32_163 : i32 to vector<2x1xi32>
    %482 = arith.cmpi eq, %480, %481 : vector<2x1xi32>
    %483 = arith.extui %482 : vector<2x1xi1> to vector<2x1xi32>
    %484 = arith.sitofp %483 : vector<2x1xi32> to vector<2x1xf32>
    %cst_164 = arith.constant 1.000000e+04 : f32
    %485 = vector.broadcast %cst_164 : f32 to vector<2x1xf32>
    %486 = arith.mulf %484, %485 : vector<2x1xf32>
    %cst_165 = arith.constant 0.000000e+00 : f32
    %487 = vector.shape_cast %486 : vector<2x1xf32> to vector<2x1xf32>
    %488 = vector.broadcast %487 : vector<2x1xf32> to vector<2x128xf32>
    %489 = vector.broadcast %cst_165 : f32 to vector<2x128xf32>
    %490 = arith.select %2, %488, %489 : vector<2x128xi1>, vector<2x128xf32>
    %491 = arith.addf %479, %490 : vector<2x128xf32>
    %c8_166 = arith.constant 8 : index
    %c0_167 = arith.constant 0 : index
    %492 = vector.load %arg10[%c8_166, %c0_167] : memref<16x128xf32, #tpu.memory_space<vmem>>, vector<2x128xf32>
    tpu.vector_store %arg10[%c8_166, %c0_167], %491 {strides = array<i32>} : memref<16x128xf32, #tpu.memory_space<vmem>>, vector<2x128xf32>,
    %c8_168 = arith.constant 8 : index
    %c0_169 = arith.constant 0 : index
    %493 = vector.load %arg1[%c8_168, %c0_169] : memref<16x1xi32, #tpu.memory_space<vmem>>, vector<2x1xi32>
    %cst_170 = arith.constant dense<0xFF800000> : vector<2xf32>
    %494 = vector.multi_reduction <maximumf>, %491, %cst_170 [1] : vector<2x128xf32> to vector<2xf32>
    %495 = vector.shape_cast %494 : vector<2xf32> to vector<2x1xf32>
    %496 = vector.broadcast %495 : vector<2x1xf32> to vector<2x128xf32>
    %497 = arith.subf %491, %496 : vector<2x128xf32>
    %498 = math.exp %497 : vector<2x128xf32>
    %cst_171 = arith.constant dense<0.000000e+00> : vector<2xf32>
    %499 = vector.multi_reduction <add>, %498, %cst_171 [1] : vector<2x128xf32> to vector<2xf32>
    %500 = vector.shape_cast %499 : vector<2xf32> to vector<2x1xf32>
    %501 = math.log %500 : vector<2x1xf32>
    %502 = arith.addf %495, %501 : vector<2x1xf32>
    %503 = vector.broadcast %493 : vector<2x1xi32> to vector<2x128xi32>
    %504 = arith.cmpi eq, %0, %503 : vector<2x128xi32>
    %cst_172 = arith.constant 0.000000e+00 : f32
    %505 = vector.broadcast %cst_172 : f32 to vector<2x128xf32>
    %506 = arith.select %504, %491, %505 : vector<2x128xi1>, vector<2x128xf32>
    %cst_173 = arith.constant dense<0.000000e+00> : vector<2xf32>
    %507 = vector.multi_reduction <add>, %506, %cst_173 [1] : vector<2x128xf32> to vector<2xf32>
    %508 = vector.shape_cast %507 : vector<2xf32> to vector<2x1xf32>
    %509 = arith.subf %502, %508 : vector<2x1xf32>
    %510 = arith.addf %444, %509 : vector<2x1xf32>
    %c6_174 = arith.constant 6 : index
    %c512_175 = arith.constant 512 : index
    %511 = vector.load %arg11[%c6_174, %c512_175] : memref<16x1024xf32, #tpu.memory_space<vmem>>, vector<2x512xf32>
    %c0_176 = arith.constant 0 : index
    %c0_177 = arith.constant 0 : index
    %512 = vector.load %arg6[%c0_176, %c0_177] : memref<128x512xf32, #tpu.memory_space<vmem>>, vector<128x512xf32>
    %cst_178 = arith.constant dense<0.000000e+00> : vector<2x512xf32>
    %513 = tpu.matmul %473, %512, %cst_178 {dimension_numbers = #tpu.dot_dimension_numbers<[1], [0], [0], [1], [0, 0, 1, 1], [], []>} : vector<2x128xf32>, vector<128x512xf32>, vector<2x512xf32> -> vector<2x512xf32>
    %514 = arith.addf %511, %513 : vector<2x512xf32>
    %515 = vector.extract_strided_slice %514 {offsets = [0, 0], sizes = [2, 128], strides = [1, 1]} : vector<2x512xf32> to vector<2x128xf32>
    %516 = arith.negf %515 : vector<2x128xf32>
    %517 = math.exp %516 : vector<2x128xf32>
    %cst_179 = arith.constant 1.000000e+00 : f32
    %518 = vector.broadcast %cst_179 : f32 to vector<2x128xf32>
    %519 = arith.addf %518, %517 : vector<2x128xf32>
    %520 = arith.divf %518, %519 : vector<2x128xf32>
    %521 = vector.extract_strided_slice %514 {offsets = [0, 128], sizes = [2, 128], strides = [1, 1]} : vector<2x512xf32> to vector<2x128xf32>
    %522 = arith.negf %521 : vector<2x128xf32>
    %523 = math.exp %522 : vector<2x128xf32>
    %cst_180 = arith.constant 1.000000e+00 : f32
    %524 = vector.broadcast %cst_180 : f32 to vector<2x128xf32>
    %525 = arith.addf %524, %523 : vector<2x128xf32>
    %526 = arith.divf %524, %525 : vector<2x128xf32>
    %527 = vector.extract_strided_slice %514 {offsets = [0, 256], sizes = [2, 128], strides = [1, 1]} : vector<2x512xf32> to vector<2x128xf32>
    %528 = math.tanh %527 : vector<2x128xf32>
    %529 = vector.extract_strided_slice %514 {offsets = [0, 384], sizes = [2, 128], strides = [1, 1]} : vector<2x512xf32> to vector<2x128xf32>
    %530 = arith.negf %529 : vector<2x128xf32>
    %531 = math.exp %530 : vector<2x128xf32>
    %cst_181 = arith.constant 1.000000e+00 : f32
    %532 = vector.broadcast %cst_181 : f32 to vector<2x128xf32>
    %533 = arith.addf %532, %531 : vector<2x128xf32>
    %534 = arith.divf %532, %533 : vector<2x128xf32>
    %535 = arith.mulf %526, %471 : vector<2x128xf32>
    %536 = arith.mulf %520, %528 : vector<2x128xf32>
    %537 = arith.addf %535, %536 : vector<2x128xf32>
    %538 = math.tanh %537 : vector<2x128xf32>
    %539 = arith.mulf %534, %538 : vector<2x128xf32>
    %c0_182 = arith.constant 0 : index
    %c0_183 = arith.constant 0 : index
    %540 = vector.load %arg7[%c0_182, %c0_183] : memref<256x128xf32, #tpu.memory_space<vmem>>, vector<128x128xf32>
    %cst_184 = arith.constant dense<0.000000e+00> : vector<2x128xf32>
    %541 = tpu.matmul %129, %540, %cst_184 {dimension_numbers = #tpu.dot_dimension_numbers<[1], [0], [0], [1], [0, 0, 1, 1], [], []>} : vector<2x128xf32>, vector<128x128xf32>, vector<2x128xf32> -> vector<2x128xf32>
    %c128_185 = arith.constant 128 : index
    %c0_186 = arith.constant 0 : index
    %542 = vector.load %arg7[%c128_185, %c0_186] : memref<256x128xf32, #tpu.memory_space<vmem>>, vector<128x128xf32>
    %cst_187 = arith.constant dense<0.000000e+00> : vector<2x128xf32>
    %543 = tpu.matmul %539, %542, %cst_187 {dimension_numbers = #tpu.dot_dimension_numbers<[1], [0], [0], [1], [0, 0, 1, 1], [], []>} : vector<2x128xf32>, vector<128x128xf32>, vector<2x128xf32> -> vector<2x128xf32>
    %544 = arith.addf %541, %543 : vector<2x128xf32>
    %545 = arith.addf %544, %5 : vector<2x128xf32>
    %c6_188 = arith.constant 6 : index
    %c0_189 = arith.constant 0 : index
    %546 = vector.load %arg0[%c6_188, %c0_189] : memref<16x1xi32, #tpu.memory_space<vmem>>, vector<2x1xi32>
    %c0_i32_190 = arith.constant 0 : i32
    %547 = vector.broadcast %c0_i32_190 : i32 to vector<2x1xi32>
    %548 = arith.cmpi eq, %546, %547 : vector<2x1xi32>
    %549 = arith.extui %548 : vector<2x1xi1> to vector<2x1xi32>
    %550 = arith.sitofp %549 : vector<2x1xi32> to vector<2x1xf32>
    %cst_191 = arith.constant 1.000000e+04 : f32
    %551 = vector.broadcast %cst_191 : f32 to vector<2x1xf32>
    %552 = arith.mulf %550, %551 : vector<2x1xf32>
    %cst_192 = arith.constant 0.000000e+00 : f32
    %553 = vector.shape_cast %552 : vector<2x1xf32> to vector<2x1xf32>
    %554 = vector.broadcast %553 : vector<2x1xf32> to vector<2x128xf32>
    %555 = vector.broadcast %cst_192 : f32 to vector<2x128xf32>
    %556 = arith.select %2, %554, %555 : vector<2x128xi1>, vector<2x128xf32>
    %557 = arith.addf %545, %556 : vector<2x128xf32>
    %c6_193 = arith.constant 6 : index
    %c0_194 = arith.constant 0 : index
    %558 = vector.load %arg10[%c6_193, %c0_194] : memref<16x128xf32, #tpu.memory_space<vmem>>, vector<2x128xf32>
    tpu.vector_store %arg10[%c6_193, %c0_194], %557 {strides = array<i32>} : memref<16x128xf32, #tpu.memory_space<vmem>>, vector<2x128xf32>,
    %c6_195 = arith.constant 6 : index
    %c0_196 = arith.constant 0 : index
    %559 = vector.load %arg1[%c6_195, %c0_196] : memref<16x1xi32, #tpu.memory_space<vmem>>, vector<2x1xi32>
    %cst_197 = arith.constant dense<0xFF800000> : vector<2xf32>
    %560 = vector.multi_reduction <maximumf>, %557, %cst_197 [1] : vector<2x128xf32> to vector<2xf32>
    %561 = vector.shape_cast %560 : vector<2xf32> to vector<2x1xf32>
    %562 = vector.broadcast %561 : vector<2x1xf32> to vector<2x128xf32>
    %563 = arith.subf %557, %562 : vector<2x128xf32>
    %564 = math.exp %563 : vector<2x128xf32>
    %cst_198 = arith.constant dense<0.000000e+00> : vector<2xf32>
    %565 = vector.multi_reduction <add>, %564, %cst_198 [1] : vector<2x128xf32> to vector<2xf32>
    %566 = vector.shape_cast %565 : vector<2xf32> to vector<2x1xf32>
    %567 = math.log %566 : vector<2x1xf32>
    %568 = arith.addf %561, %567 : vector<2x1xf32>
    %569 = vector.broadcast %559 : vector<2x1xi32> to vector<2x128xi32>
    %570 = arith.cmpi eq, %0, %569 : vector<2x128xi32>
    %cst_199 = arith.constant 0.000000e+00 : f32
    %571 = vector.broadcast %cst_199 : f32 to vector<2x128xf32>
    %572 = arith.select %570, %557, %571 : vector<2x128xi1>, vector<2x128xf32>
    %cst_200 = arith.constant dense<0.000000e+00> : vector<2xf32>
    %573 = vector.multi_reduction <add>, %572, %cst_200 [1] : vector<2x128xf32> to vector<2xf32>
    %574 = vector.shape_cast %573 : vector<2xf32> to vector<2x1xf32>
    %575 = arith.subf %568, %574 : vector<2x1xf32>
    %576 = arith.addf %510, %575 : vector<2x1xf32>
    %c4_201 = arith.constant 4 : index
    %c512_202 = arith.constant 512 : index
    %577 = vector.load %arg11[%c4_201, %c512_202] : memref<16x1024xf32, #tpu.memory_space<vmem>>, vector<2x512xf32>
    %c0_203 = arith.constant 0 : index
    %c0_204 = arith.constant 0 : index
    %578 = vector.load %arg6[%c0_203, %c0_204] : memref<128x512xf32, #tpu.memory_space<vmem>>, vector<128x512xf32>
    %cst_205 = arith.constant dense<0.000000e+00> : vector<2x512xf32>
    %579 = tpu.matmul %539, %578, %cst_205 {dimension_numbers = #tpu.dot_dimension_numbers<[1], [0], [0], [1], [0, 0, 1, 1], [], []>} : vector<2x128xf32>, vector<128x512xf32>, vector<2x512xf32> -> vector<2x512xf32>
    %580 = arith.addf %577, %579 : vector<2x512xf32>
    %581 = vector.extract_strided_slice %580 {offsets = [0, 0], sizes = [2, 128], strides = [1, 1]} : vector<2x512xf32> to vector<2x128xf32>
    %582 = arith.negf %581 : vector<2x128xf32>
    %583 = math.exp %582 : vector<2x128xf32>
    %cst_206 = arith.constant 1.000000e+00 : f32
    %584 = vector.broadcast %cst_206 : f32 to vector<2x128xf32>
    %585 = arith.addf %584, %583 : vector<2x128xf32>
    %586 = arith.divf %584, %585 : vector<2x128xf32>
    %587 = vector.extract_strided_slice %580 {offsets = [0, 128], sizes = [2, 128], strides = [1, 1]} : vector<2x512xf32> to vector<2x128xf32>
    %588 = arith.negf %587 : vector<2x128xf32>
    %589 = math.exp %588 : vector<2x128xf32>
    %cst_207 = arith.constant 1.000000e+00 : f32
    %590 = vector.broadcast %cst_207 : f32 to vector<2x128xf32>
    %591 = arith.addf %590, %589 : vector<2x128xf32>
    %592 = arith.divf %590, %591 : vector<2x128xf32>
    %593 = vector.extract_strided_slice %580 {offsets = [0, 256], sizes = [2, 128], strides = [1, 1]} : vector<2x512xf32> to vector<2x128xf32>
    %594 = math.tanh %593 : vector<2x128xf32>
    %595 = vector.extract_strided_slice %580 {offsets = [0, 384], sizes = [2, 128], strides = [1, 1]} : vector<2x512xf32> to vector<2x128xf32>
    %596 = arith.negf %595 : vector<2x128xf32>
    %597 = math.exp %596 : vector<2x128xf32>
    %cst_208 = arith.constant 1.000000e+00 : f32
    %598 = vector.broadcast %cst_208 : f32 to vector<2x128xf32>
    %599 = arith.addf %598, %597 : vector<2x128xf32>
    %600 = arith.divf %598, %599 : vector<2x128xf32>
    %601 = arith.mulf %592, %537 : vector<2x128xf32>
    %602 = arith.mulf %586, %594 : vector<2x128xf32>
    %603 = arith.addf %601, %602 : vector<2x128xf32>
    %604 = math.tanh %603 : vector<2x128xf32>
    %605 = arith.mulf %600, %604 : vector<2x128xf32>
    %c0_209 = arith.constant 0 : index
    %c0_210 = arith.constant 0 : index
    %606 = vector.load %arg7[%c0_209, %c0_210] : memref<256x128xf32, #tpu.memory_space<vmem>>, vector<128x128xf32>
    %cst_211 = arith.constant dense<0.000000e+00> : vector<2x128xf32>
    %607 = tpu.matmul %100, %606, %cst_211 {dimension_numbers = #tpu.dot_dimension_numbers<[1], [0], [0], [1], [0, 0, 1, 1], [], []>} : vector<2x128xf32>, vector<128x128xf32>, vector<2x128xf32> -> vector<2x128xf32>
    %c128_212 = arith.constant 128 : index
    %c0_213 = arith.constant 0 : index
    %608 = vector.load %arg7[%c128_212, %c0_213] : memref<256x128xf32, #tpu.memory_space<vmem>>, vector<128x128xf32>
    %cst_214 = arith.constant dense<0.000000e+00> : vector<2x128xf32>
    %609 = tpu.matmul %605, %608, %cst_214 {dimension_numbers = #tpu.dot_dimension_numbers<[1], [0], [0], [1], [0, 0, 1, 1], [], []>} : vector<2x128xf32>, vector<128x128xf32>, vector<2x128xf32> -> vector<2x128xf32>
    %610 = arith.addf %607, %609 : vector<2x128xf32>
    %611 = arith.addf %610, %5 : vector<2x128xf32>
    %c4_215 = arith.constant 4 : index
    %c0_216 = arith.constant 0 : index
    %612 = vector.load %arg0[%c4_215, %c0_216] : memref<16x1xi32, #tpu.memory_space<vmem>>, vector<2x1xi32>
    %c0_i32_217 = arith.constant 0 : i32
    %613 = vector.broadcast %c0_i32_217 : i32 to vector<2x1xi32>
    %614 = arith.cmpi eq, %612, %613 : vector<2x1xi32>
    %615 = arith.extui %614 : vector<2x1xi1> to vector<2x1xi32>
    %616 = arith.sitofp %615 : vector<2x1xi32> to vector<2x1xf32>
    %cst_218 = arith.constant 1.000000e+04 : f32
    %617 = vector.broadcast %cst_218 : f32 to vector<2x1xf32>
    %618 = arith.mulf %616, %617 : vector<2x1xf32>
    %cst_219 = arith.constant 0.000000e+00 : f32
    %619 = vector.shape_cast %618 : vector<2x1xf32> to vector<2x1xf32>
    %620 = vector.broadcast %619 : vector<2x1xf32> to vector<2x128xf32>
    %621 = vector.broadcast %cst_219 : f32 to vector<2x128xf32>
    %622 = arith.select %2, %620, %621 : vector<2x128xi1>, vector<2x128xf32>
    %623 = arith.addf %611, %622 : vector<2x128xf32>
    %c4_220 = arith.constant 4 : index
    %c0_221 = arith.constant 0 : index
    %624 = vector.load %arg10[%c4_220, %c0_221] : memref<16x128xf32, #tpu.memory_space<vmem>>, vector<2x128xf32>
    tpu.vector_store %arg10[%c4_220, %c0_221], %623 {strides = array<i32>} : memref<16x128xf32, #tpu.memory_space<vmem>>, vector<2x128xf32>,
    %c4_222 = arith.constant 4 : index
    %c0_223 = arith.constant 0 : index
    %625 = vector.load %arg1[%c4_222, %c0_223] : memref<16x1xi32, #tpu.memory_space<vmem>>, vector<2x1xi32>
    %cst_224 = arith.constant dense<0xFF800000> : vector<2xf32>
    %626 = vector.multi_reduction <maximumf>, %623, %cst_224 [1] : vector<2x128xf32> to vector<2xf32>
    %627 = vector.shape_cast %626 : vector<2xf32> to vector<2x1xf32>
    %628 = vector.broadcast %627 : vector<2x1xf32> to vector<2x128xf32>
    %629 = arith.subf %623, %628 : vector<2x128xf32>
    %630 = math.exp %629 : vector<2x128xf32>
    %cst_225 = arith.constant dense<0.000000e+00> : vector<2xf32>
    %631 = vector.multi_reduction <add>, %630, %cst_225 [1] : vector<2x128xf32> to vector<2xf32>
    %632 = vector.shape_cast %631 : vector<2xf32> to vector<2x1xf32>
    %633 = math.log %632 : vector<2x1xf32>
    %634 = arith.addf %627, %633 : vector<2x1xf32>
    %635 = vector.broadcast %625 : vector<2x1xi32> to vector<2x128xi32>
    %636 = arith.cmpi eq, %0, %635 : vector<2x128xi32>
    %cst_226 = arith.constant 0.000000e+00 : f32
    %637 = vector.broadcast %cst_226 : f32 to vector<2x128xf32>
    %638 = arith.select %636, %623, %637 : vector<2x128xi1>, vector<2x128xf32>
    %cst_227 = arith.constant dense<0.000000e+00> : vector<2xf32>
    %639 = vector.multi_reduction <add>, %638, %cst_227 [1] : vector<2x128xf32> to vector<2xf32>
    %640 = vector.shape_cast %639 : vector<2xf32> to vector<2x1xf32>
    %641 = arith.subf %634, %640 : vector<2x1xf32>
    %642 = arith.addf %576, %641 : vector<2x1xf32>
    %c2_228 = arith.constant 2 : index
    %c512_229 = arith.constant 512 : index
    %643 = vector.load %arg11[%c2_228, %c512_229] : memref<16x1024xf32, #tpu.memory_space<vmem>>, vector<2x512xf32>
    %c0_230 = arith.constant 0 : index
    %c0_231 = arith.constant 0 : index
    %644 = vector.load %arg6[%c0_230, %c0_231] : memref<128x512xf32, #tpu.memory_space<vmem>>, vector<128x512xf32>
    %cst_232 = arith.constant dense<0.000000e+00> : vector<2x512xf32>
    %645 = tpu.matmul %605, %644, %cst_232 {dimension_numbers = #tpu.dot_dimension_numbers<[1], [0], [0], [1], [0, 0, 1, 1], [], []>} : vector<2x128xf32>, vector<128x512xf32>, vector<2x512xf32> -> vector<2x512xf32>
    %646 = arith.addf %643, %645 : vector<2x512xf32>
    %647 = vector.extract_strided_slice %646 {offsets = [0, 0], sizes = [2, 128], strides = [1, 1]} : vector<2x512xf32> to vector<2x128xf32>
    %648 = arith.negf %647 : vector<2x128xf32>
    %649 = math.exp %648 : vector<2x128xf32>
    %cst_233 = arith.constant 1.000000e+00 : f32
    %650 = vector.broadcast %cst_233 : f32 to vector<2x128xf32>
    %651 = arith.addf %650, %649 : vector<2x128xf32>
    %652 = arith.divf %650, %651 : vector<2x128xf32>
    %653 = vector.extract_strided_slice %646 {offsets = [0, 128], sizes = [2, 128], strides = [1, 1]} : vector<2x512xf32> to vector<2x128xf32>
    %654 = arith.negf %653 : vector<2x128xf32>
    %655 = math.exp %654 : vector<2x128xf32>
    %cst_234 = arith.constant 1.000000e+00 : f32
    %656 = vector.broadcast %cst_234 : f32 to vector<2x128xf32>
    %657 = arith.addf %656, %655 : vector<2x128xf32>
    %658 = arith.divf %656, %657 : vector<2x128xf32>
    %659 = vector.extract_strided_slice %646 {offsets = [0, 256], sizes = [2, 128], strides = [1, 1]} : vector<2x512xf32> to vector<2x128xf32>
    %660 = math.tanh %659 : vector<2x128xf32>
    %661 = vector.extract_strided_slice %646 {offsets = [0, 384], sizes = [2, 128], strides = [1, 1]} : vector<2x512xf32> to vector<2x128xf32>
    %662 = arith.negf %661 : vector<2x128xf32>
    %663 = math.exp %662 : vector<2x128xf32>
    %cst_235 = arith.constant 1.000000e+00 : f32
    %664 = vector.broadcast %cst_235 : f32 to vector<2x128xf32>
    %665 = arith.addf %664, %663 : vector<2x128xf32>
    %666 = arith.divf %664, %665 : vector<2x128xf32>
    %667 = arith.mulf %658, %603 : vector<2x128xf32>
    %668 = arith.mulf %652, %660 : vector<2x128xf32>
    %669 = arith.addf %667, %668 : vector<2x128xf32>
    %670 = math.tanh %669 : vector<2x128xf32>
    %671 = arith.mulf %666, %670 : vector<2x128xf32>
    %c0_236 = arith.constant 0 : index
    %c0_237 = arith.constant 0 : index
    %672 = vector.load %arg7[%c0_236, %c0_237] : memref<256x128xf32, #tpu.memory_space<vmem>>, vector<128x128xf32>
    %cst_238 = arith.constant dense<0.000000e+00> : vector<2x128xf32>
    %673 = tpu.matmul %71, %672, %cst_238 {dimension_numbers = #tpu.dot_dimension_numbers<[1], [0], [0], [1], [0, 0, 1, 1], [], []>} : vector<2x128xf32>, vector<128x128xf32>, vector<2x128xf32> -> vector<2x128xf32>
    %c128_239 = arith.constant 128 : index
    %c0_240 = arith.constant 0 : index
    %674 = vector.load %arg7[%c128_239, %c0_240] : memref<256x128xf32, #tpu.memory_space<vmem>>, vector<128x128xf32>
    %cst_241 = arith.constant dense<0.000000e+00> : vector<2x128xf32>
    %675 = tpu.matmul %671, %674, %cst_241 {dimension_numbers = #tpu.dot_dimension_numbers<[1], [0], [0], [1], [0, 0, 1, 1], [], []>} : vector<2x128xf32>, vector<128x128xf32>, vector<2x128xf32> -> vector<2x128xf32>
    %676 = arith.addf %673, %675 : vector<2x128xf32>
    %677 = arith.addf %676, %5 : vector<2x128xf32>
    %c2_242 = arith.constant 2 : index
    %c0_243 = arith.constant 0 : index
    %678 = vector.load %arg0[%c2_242, %c0_243] : memref<16x1xi32, #tpu.memory_space<vmem>>, vector<2x1xi32>
    %c0_i32_244 = arith.constant 0 : i32
    %679 = vector.broadcast %c0_i32_244 : i32 to vector<2x1xi32>
    %680 = arith.cmpi eq, %678, %679 : vector<2x1xi32>
    %681 = arith.extui %680 : vector<2x1xi1> to vector<2x1xi32>
    %682 = arith.sitofp %681 : vector<2x1xi32> to vector<2x1xf32>
    %cst_245 = arith.constant 1.000000e+04 : f32
    %683 = vector.broadcast %cst_245 : f32 to vector<2x1xf32>
    %684 = arith.mulf %682, %683 : vector<2x1xf32>
    %cst_246 = arith.constant 0.000000e+00 : f32
    %685 = vector.shape_cast %684 : vector<2x1xf32> to vector<2x1xf32>
    %686 = vector.broadcast %685 : vector<2x1xf32> to vector<2x128xf32>
    %687 = vector.broadcast %cst_246 : f32 to vector<2x128xf32>
    %688 = arith.select %2, %686, %687 : vector<2x128xi1>, vector<2x128xf32>
    %689 = arith.addf %677, %688 : vector<2x128xf32>
    %c2_247 = arith.constant 2 : index
    %c0_248 = arith.constant 0 : index
    %690 = vector.load %arg10[%c2_247, %c0_248] : memref<16x128xf32, #tpu.memory_space<vmem>>, vector<2x128xf32>
    tpu.vector_store %arg10[%c2_247, %c0_248], %689 {strides = array<i32>} : memref<16x128xf32, #tpu.memory_space<vmem>>, vector<2x128xf32>,
    %c2_249 = arith.constant 2 : index
    %c0_250 = arith.constant 0 : index
    %691 = vector.load %arg1[%c2_249, %c0_250] : memref<16x1xi32, #tpu.memory_space<vmem>>, vector<2x1xi32>
    %cst_251 = arith.constant dense<0xFF800000> : vector<2xf32>
    %692 = vector.multi_reduction <maximumf>, %689, %cst_251 [1] : vector<2x128xf32> to vector<2xf32>
    %693 = vector.shape_cast %692 : vector<2xf32> to vector<2x1xf32>
    %694 = vector.broadcast %693 : vector<2x1xf32> to vector<2x128xf32>
    %695 = arith.subf %689, %694 : vector<2x128xf32>
    %696 = math.exp %695 : vector<2x128xf32>
    %cst_252 = arith.constant dense<0.000000e+00> : vector<2xf32>
    %697 = vector.multi_reduction <add>, %696, %cst_252 [1] : vector<2x128xf32> to vector<2xf32>
    %698 = vector.shape_cast %697 : vector<2xf32> to vector<2x1xf32>
    %699 = math.log %698 : vector<2x1xf32>
    %700 = arith.addf %693, %699 : vector<2x1xf32>
    %701 = vector.broadcast %691 : vector<2x1xi32> to vector<2x128xi32>
    %702 = arith.cmpi eq, %0, %701 : vector<2x128xi32>
    %cst_253 = arith.constant 0.000000e+00 : f32
    %703 = vector.broadcast %cst_253 : f32 to vector<2x128xf32>
    %704 = arith.select %702, %689, %703 : vector<2x128xi1>, vector<2x128xf32>
    %cst_254 = arith.constant dense<0.000000e+00> : vector<2xf32>
    %705 = vector.multi_reduction <add>, %704, %cst_254 [1] : vector<2x128xf32> to vector<2xf32>
    %706 = vector.shape_cast %705 : vector<2xf32> to vector<2x1xf32>
    %707 = arith.subf %700, %706 : vector<2x1xf32>
    %708 = arith.addf %642, %707 : vector<2x1xf32>
    %c0_255 = arith.constant 0 : index
    %c512_256 = arith.constant 512 : index
    %709 = vector.load %arg11[%c0_255, %c512_256] : memref<16x1024xf32, #tpu.memory_space<vmem>>, vector<2x512xf32>
    %c0_257 = arith.constant 0 : index
    %c0_258 = arith.constant 0 : index
    %710 = vector.load %arg6[%c0_257, %c0_258] : memref<128x512xf32, #tpu.memory_space<vmem>>, vector<128x512xf32>
    %cst_259 = arith.constant dense<0.000000e+00> : vector<2x512xf32>
    %711 = tpu.matmul %671, %710, %cst_259 {dimension_numbers = #tpu.dot_dimension_numbers<[1], [0], [0], [1], [0, 0, 1, 1], [], []>} : vector<2x128xf32>, vector<128x512xf32>, vector<2x512xf32> -> vector<2x512xf32>
    %712 = arith.addf %709, %711 : vector<2x512xf32>
    %713 = vector.extract_strided_slice %712 {offsets = [0, 0], sizes = [2, 128], strides = [1, 1]} : vector<2x512xf32> to vector<2x128xf32>
    %714 = arith.negf %713 : vector<2x128xf32>
    %715 = math.exp %714 : vector<2x128xf32>
    %cst_260 = arith.constant 1.000000e+00 : f32
    %716 = vector.broadcast %cst_260 : f32 to vector<2x128xf32>
    %717 = arith.addf %716, %715 : vector<2x128xf32>
    %718 = arith.divf %716, %717 : vector<2x128xf32>
    %719 = vector.extract_strided_slice %712 {offsets = [0, 128], sizes = [2, 128], strides = [1, 1]} : vector<2x512xf32> to vector<2x128xf32>
    %720 = arith.negf %719 : vector<2x128xf32>
    %721 = math.exp %720 : vector<2x128xf32>
    %cst_261 = arith.constant 1.000000e+00 : f32
    %722 = vector.broadcast %cst_261 : f32 to vector<2x128xf32>
    %723 = arith.addf %722, %721 : vector<2x128xf32>
    %724 = arith.divf %722, %723 : vector<2x128xf32>
    %725 = vector.extract_strided_slice %712 {offsets = [0, 256], sizes = [2, 128], strides = [1, 1]} : vector<2x512xf32> to vector<2x128xf32>
    %726 = math.tanh %725 : vector<2x128xf32>
    %727 = vector.extract_strided_slice %712 {offsets = [0, 384], sizes = [2, 128], strides = [1, 1]} : vector<2x512xf32> to vector<2x128xf32>
    %728 = arith.negf %727 : vector<2x128xf32>
    %729 = math.exp %728 : vector<2x128xf32>
    %cst_262 = arith.constant 1.000000e+00 : f32
    %730 = vector.broadcast %cst_262 : f32 to vector<2x128xf32>
    %731 = arith.addf %730, %729 : vector<2x128xf32>
    %732 = arith.divf %730, %731 : vector<2x128xf32>
    %733 = arith.mulf %724, %669 : vector<2x128xf32>
    %734 = arith.mulf %718, %726 : vector<2x128xf32>
    %735 = arith.addf %733, %734 : vector<2x128xf32>
    %736 = math.tanh %735 : vector<2x128xf32>
    %737 = arith.mulf %732, %736 : vector<2x128xf32>
    %c0_263 = arith.constant 0 : index
    %c0_264 = arith.constant 0 : index
    %738 = vector.load %arg7[%c0_263, %c0_264] : memref<256x128xf32, #tpu.memory_space<vmem>>, vector<128x128xf32>
    %cst_265 = arith.constant dense<0.000000e+00> : vector<2x128xf32>
    %739 = tpu.matmul %42, %738, %cst_265 {dimension_numbers = #tpu.dot_dimension_numbers<[1], [0], [0], [1], [0, 0, 1, 1], [], []>} : vector<2x128xf32>, vector<128x128xf32>, vector<2x128xf32> -> vector<2x128xf32>
    %c128_266 = arith.constant 128 : index
    %c0_267 = arith.constant 0 : index
    %740 = vector.load %arg7[%c128_266, %c0_267] : memref<256x128xf32, #tpu.memory_space<vmem>>, vector<128x128xf32>
    %cst_268 = arith.constant dense<0.000000e+00> : vector<2x128xf32>
    %741 = tpu.matmul %737, %740, %cst_268 {dimension_numbers = #tpu.dot_dimension_numbers<[1], [0], [0], [1], [0, 0, 1, 1], [], []>} : vector<2x128xf32>, vector<128x128xf32>, vector<2x128xf32> -> vector<2x128xf32>
    %742 = arith.addf %739, %741 : vector<2x128xf32>
    %743 = arith.addf %742, %5 : vector<2x128xf32>
    %c0_269 = arith.constant 0 : index
    %c0_270 = arith.constant 0 : index
    %744 = vector.load %arg0[%c0_269, %c0_270] : memref<16x1xi32, #tpu.memory_space<vmem>>, vector<2x1xi32>
    %c0_i32_271 = arith.constant 0 : i32
    %745 = vector.broadcast %c0_i32_271 : i32 to vector<2x1xi32>
    %746 = arith.cmpi eq, %744, %745 : vector<2x1xi32>
    %747 = arith.extui %746 : vector<2x1xi1> to vector<2x1xi32>
    %748 = arith.sitofp %747 : vector<2x1xi32> to vector<2x1xf32>
    %cst_272 = arith.constant 1.000000e+04 : f32
    %749 = vector.broadcast %cst_272 : f32 to vector<2x1xf32>
    %750 = arith.mulf %748, %749 : vector<2x1xf32>
    %cst_273 = arith.constant 0.000000e+00 : f32
    %751 = vector.shape_cast %750 : vector<2x1xf32> to vector<2x1xf32>
    %752 = vector.broadcast %751 : vector<2x1xf32> to vector<2x128xf32>
    %753 = vector.broadcast %cst_273 : f32 to vector<2x128xf32>
    %754 = arith.select %2, %752, %753 : vector<2x128xi1>, vector<2x128xf32>
    %755 = arith.addf %743, %754 : vector<2x128xf32>
    %c0_274 = arith.constant 0 : index
    %c0_275 = arith.constant 0 : index
    %756 = vector.load %arg10[%c0_274, %c0_275] : memref<16x128xf32, #tpu.memory_space<vmem>>, vector<2x128xf32>
    tpu.vector_store %arg10[%c0_274, %c0_275], %755 {strides = array<i32>} : memref<16x128xf32, #tpu.memory_space<vmem>>, vector<2x128xf32>,
    %c0_276 = arith.constant 0 : index
    %c0_277 = arith.constant 0 : index
    %757 = vector.load %arg1[%c0_276, %c0_277] : memref<16x1xi32, #tpu.memory_space<vmem>>, vector<2x1xi32>
    %cst_278 = arith.constant dense<0xFF800000> : vector<2xf32>
    %758 = vector.multi_reduction <maximumf>, %755, %cst_278 [1] : vector<2x128xf32> to vector<2xf32>
    %759 = vector.shape_cast %758 : vector<2xf32> to vector<2x1xf32>
    %760 = vector.broadcast %759 : vector<2x1xf32> to vector<2x128xf32>
    %761 = arith.subf %755, %760 : vector<2x128xf32>
    %762 = math.exp %761 : vector<2x128xf32>
    %cst_279 = arith.constant dense<0.000000e+00> : vector<2xf32>
    %763 = vector.multi_reduction <add>, %762, %cst_279 [1] : vector<2x128xf32> to vector<2xf32>
    %764 = vector.shape_cast %763 : vector<2xf32> to vector<2x1xf32>
    %765 = math.log %764 : vector<2x1xf32>
    %766 = arith.addf %759, %765 : vector<2x1xf32>
    %767 = vector.broadcast %757 : vector<2x1xi32> to vector<2x128xi32>
    %768 = arith.cmpi eq, %0, %767 : vector<2x128xi32>
    %cst_280 = arith.constant 0.000000e+00 : f32
    %769 = vector.broadcast %cst_280 : f32 to vector<2x128xf32>
    %770 = arith.select %768, %755, %769 : vector<2x128xi1>, vector<2x128xf32>
    %cst_281 = arith.constant dense<0.000000e+00> : vector<2xf32>
    %771 = vector.multi_reduction <add>, %770, %cst_281 [1] : vector<2x128xf32> to vector<2xf32>
    %772 = vector.shape_cast %771 : vector<2xf32> to vector<2x1xf32>
    %773 = arith.subf %766, %772 : vector<2x1xf32>
    %774 = arith.addf %708, %773 : vector<2x1xf32>
    %cst_282 = arith.constant dense<0.000000e+00> : vector<1xf32>
    %775 = vector.multi_reduction <add>, %774, %cst_282 [0] : vector<2x1xf32> to vector<1xf32>
    %776 = vector.shape_cast %775 : vector<1xf32> to vector<1x1xf32>
    %c0_283 = arith.constant 0 : index
    %c0_284 = arith.constant 0 : index
    %777 = vector.load %arg9[%c0_283, %c0_284] : memref<1x1xf32, #tpu.memory_space<vmem>>, vector<1x1xf32>
    tpu.vector_store %arg9[%c0_283, %c0_284], %776 {strides = array<i32>} : memref<1x1xf32, #tpu.memory_space<vmem>>, vector<1x1xf32>,
    return
  }
}

</mosaic_0001>

<bundles_post_ra>
// kernel: bilstm_tagger_forward.1
= control target key start
LH: loop header
LB: loop body
LE: loop exit
PB: predicated region body
PF: predicated region fallthrough
CT: control target
= control target key end

     0   :  { %16 = vsyncpa [#allocation4], 0  ;;  %vm95_vm0 = vcmask 261120   ;;  %s9212_s0 = inlined_call_operand.vmem [shape: s32[16,1], index: 0, kind: input, shape index: {}]   ;;  %s9213_s1 = inlined_call_operand.vmem [shape: s32[16,1], index: 1, kind: input, shape index: {}]   ;;  %s9214_s2 = inlined_call_operand.vmem [shape: f32[16,32], index: 2, kind: input, shape index: {}]   ;;  %s9215_s3 = inlined_call_operand.vmem [shape: f32[32,1024], index: 3, kind: input, shape index: {}]   ;;  %s9216_s4 = inlined_call_operand.vmem [shape: f32[1,1024], index: 4, kind: input, shape index: {}]   ;;  %s9217_s5 = inlined_call_operand.vmem [shape: f32[128,512], index: 5, kind: input, shape index: {}]   ;;  %s9218_s6 = inlined_call_operand.vmem [shape: f32[128,512], index: 6, kind: input, shape index: {}]   ;;  %s9219_s7 = inlined_call_operand.vmem [shape: f32[256,128], index: 7, kind: input, shape index: {}]   ;;  %s9220_s8 = inlined_call_operand.vmem [shape: f32[1,128], index: 8, kind: input, shape index: {}]   ;;  %s9221_s9 = inlined_call_operand.hbm [shape: f32[1,1], index: 9, kind: output, shape index: {0}]   ;;  %s9222_s10 = inlined_call_operand.hbm [shape: f32[16,128], index: 10, kind: output, shape index: {1}]  }
   0x1   :  { %v69_v0 = vld [vmem:[%s9215_s3 + $0xc0] sm:$0xff]  ;;  %v70_v1 = vld [vmem:[%s9215_s3 + $0xc8] sm:$0xff]  ;;  %v71_v2 = vld [vmem:[%s9215_s3 + $0xd0] sm:$0xff] }
   0x2   :  { %114 = vmatpush.msra.mxu0 %v69_v0  ;;  %137 = vmatpush.msra.mxu1 %v70_v1  ;;  %v72_v3 = vld [vmem:[%s9215_s3 + $0xd8] sm:$0xff]  ;;  %v61_v4 = vld [vmem:[%s9215_s3 + $0x80] sm:$0xff]  ;;  %v62_v5 = vld [vmem:[%s9215_s3 + $0x88] sm:$0xff] }
   0x3   :  { %160 = vmatpush.msra.mxu2 %v71_v2  ;;  %183 = vmatpush.msra.mxu3 %v72_v3  ;;  %v63_v6 = vld [vmem:[%s9215_s3 + $0x90] sm:$0xff]  ;;  %v64_v7 = vld [vmem:[%s9215_s3 + $0x98] sm:$0xff]  ;;  %v53_v8 = vld [vmem:[%s9215_s3 + $0x40] sm:$0xff] }
   0x4   :  { %115 = vmatpush.msra.mxu0 %v61_v4  ;;  %138 = vmatpush.msra.mxu1 %v62_v5  ;;  %v54_v9 = vld [vmem:[%s9215_s3 + $0x48] sm:$0xff]  ;;  %v55_v10 = vld [vmem:[%s9215_s3 + $0x50] sm:$0xff]  ;;  %v56_v11 = vld [vmem:[%s9215_s3 + $0x58] sm:$0xff] }
   0x5   :  { %161 = vmatpush.msra.mxu2 %v63_v6  ;;  %184 = vmatpush.msra.mxu3 %v64_v7  ;;  %v45_v12 = vld [vmem:[%s9215_s3] sm:$0xff]  ;;  %v46_v13 = vld [vmem:[%s9215_s3 + $0x8] sm:$0xff]  ;;  %v47_v14 = vld [vmem:[%s9215_s3 + $0x10] sm:$0xff] }
   0x6   :  { %116 = vmatpush.msra.mxu0 %v53_v8  ;;  %139 = vmatpush.msra.mxu1 %v54_v9  ;;  %v48_v15 = vld [vmem:[%s9215_s3 + $0x18] sm:$0xff]  ;;  %v73_v16 = vld [vmem:[%s9215_s3 + $0xe0] sm:$0xff]  ;;  %v74_v17 = vld [vmem:[%s9215_s3 + $0xe8] sm:$0xff] }
   0x7   :  { %162 = vmatpush.msra.mxu2 %v55_v10  ;;  %185 = vmatpush.msra.mxu3 %v56_v11  ;;  %v75_v18 = vld [vmem:[%s9215_s3 + $0xf0] sm:$0xff]  ;;  %v76_v19 = vld [vmem:[%s9215_s3 + $0xf8] sm:$0xff]  ;;  %v65_v20 = vld [vmem:[%s9215_s3 + $0xa0] sm:$0xff] }
   0x8   :  { %117 = vmatpush.msra.mxu0 %v45_v12  ;;  %140 = vmatpush.msra.mxu1 %v46_v13  ;;  %v66_v21 = vld [vmem:[%s9215_s3 + $0xa8] sm:$0xff]  ;;  %v67_v22 = vld [vmem:[%s9215_s3 + $0xb0] sm:$0xff]  ;;  %v68_v23 = vld [vmem:[%s9215_s3 + $0xb8] sm:$0xff] }
   0x9   :  { %163 = vmatpush.msra.mxu2 %v47_v14  ;;  %186 = vmatpush.msra.mxu3 %v48_v15  ;;  %v57_v24 = vld [vmem:[%s9215_s3 + $0x60] sm:$0xff]  ;;  %v58_v25 = vld [vmem:[%s9215_s3 + $0x68] sm:$0xff]  ;;  %v59_v26 = vld [vmem:[%s9215_s3 + $0x70] sm:$0xff] }
   0xa   :  { %206 = vmatpush.msrb.mxu0 %v73_v16  ;;  %229 = vmatpush.msrb.mxu1 %v74_v17  ;;  %v60_v27 = vld [vmem:[%s9215_s3 + $0x78] sm:$0xff]  ;;  %v5068_v28 = vld [vmem:[%s9214_s2] sm:$0xff]  ;;  %v50_v30 = vld [vmem:[%s9215_s3 + $0x28] sm:$0xff] }
   0xb   :  { %252 = vmatpush.msrb.mxu2 %v75_v18  ;;  %275 = vmatpush.msrb.mxu3 %v76_v19  ;;  %v49_v29 = vld [vmem:[%s9215_s3 + $0x20] sm:$0xff]  ;;  %v51_v31 = vld [vmem:[%s9215_s3 + $0x30] sm:$0xff]  ;;  %v52_v32 = vld [vmem:[%s9215_s3 + $0x38] sm:$0xff] }
   0xc   :  { %207 = vmatpush.msrb.mxu0 %v65_v20  ;;  %230 = vmatpush.msrb.mxu1 %v66_v21  ;;  %v5093_v33 = vld [vmem:[%s9217_s5 + $0x1e0] sm:$0xff]  ;;  %v5098_v34 = vld [vmem:[%s9217_s5 + $0x1e8] sm:$0xff]  ;;  %v5103_v35 = vld [vmem:[%s9217_s5 + $0x1f0] sm:$0xff] }
   0xd   :  { %253 = vmatpush.msrb.mxu2 %v67_v22  ;;  %276 = vmatpush.msrb.mxu3 %v68_v23  ;;  %v5108_v36 = vld [vmem:[%s9217_s5 + $0x1f8] sm:$0xff]  ;;  %v5113_v37 = vld [vmem:[%s9217_s5 + $0x1c0] sm:$0xff]  ;;  %v5118_v38 = vld [vmem:[%s9217_s5 + $0x1c8] sm:$0xff] }
   0xe   :  { %208 = vmatpush.msrb.mxu0 %v57_v24  ;;  %231 = vmatpush.msrb.mxu1 %v58_v25  ;;  %v5125_v39 = vld [vmem:[%s9217_s5 + $0x1d0] sm:$0xff]  ;;  %v5130_v40 = vld [vmem:[%s9217_s5 + $0x1d8] sm:$0xff]  ;;  %v5137_v41 = vld [vmem:[%s9217_s5 + $0x1a0] sm:$0xff] }
   0xf   :  { %254 = vmatpush.msrb.mxu2 %v59_v26  ;;  %277 = vmatpush.msrb.mxu3 %v60_v27  ;;  %v5142_v42 = vld [vmem:[%s9217_s5 + $0x1a8] sm:$0xff]  ;;  %v5149_v43 = vld [vmem:[%s9217_s5 + $0x1b0] sm:$0xff]  ;;  %v5154_v44 = vld [vmem:[%s9217_s5 + $0x1b8] sm:$0xff] }
  0x10   :  { %4432 = vmatmul.msk.f32.vlgmr.msra.gmra.mxu0 %vm95_vm0, %v5068_v28  ;;  %4434 = vmatmul.msk.f32.vlgmr.msra.gmra.mxu1 %vm95_vm0, %v5068_v28  ;;  %v5161_v45 = vld [vmem:[%s9217_s5 + $0x180] sm:$0xff]  ;;  %v5166_v46 = vld [vmem:[%s9217_s5 + $0x188] sm:$0xff]  ;;  %v5173_v47 = vld [vmem:[%s9217_s5 + $0x190] sm:$0xff] }
  0x11   :  { %4436 = vmatmul.msk.f32.vlgmr.msra.gmra.mxu2 %vm95_vm0, %v5068_v28  ;;  %4438 = vmatmul.msk.f32.vlgmr.msra.gmra.mxu3 %vm95_vm0, %v5068_v28  ;;  %v5178_v48 = vld [vmem:[%s9217_s5 + $0x198] sm:$0xff]  ;;  %v5185_v49 = vld [vmem:[%s9214_s2 + $0x8] sm:$0xff]  ;;  %v5194_v50 = vld [vmem:[%s9217_s5 + $0x160] sm:$0xff] }
  0x12   :  { %209 = vmatpush.msrb.mxu0 %v49_v29  ;;  %232 = vmatpush.msrb.mxu1 %v50_v30  ;;  %v5199_v51 = vld [vmem:[%s9217_s5 + $0x168] sm:$0xff]  ;;  %v5208_v52 = vld [vmem:[%s9217_s5 + $0x170] sm:$0xff]  ;;  %v5213_v53 = vld [vmem:[%s9217_s5 + $0x178] sm:$0xff] }
  0x13   :  { %255 = vmatpush.msrb.mxu2 %v51_v31  ;;  %278 = vmatpush.msrb.mxu3 %v52_v32  ;;  %v5222_v54 = vld [vmem:[%s9217_s5 + $0x140] sm:$0xff]  ;;  %v5227_v55 = vld [vmem:[%s9217_s5 + $0x148] sm:$0xff]  ;;  %v5234_v56 = vld [vmem:[%s9217_s5 + $0x150] sm:$0xff] }
  0x14   :  { %370 = vmatpush.msra.mxu0 %v5093_v33  ;;  %390 = vmatpush.msra.mxu1 %v5098_v34  ;;  %v5239_v57 = vld [vmem:[%s9217_s5 + $0x158] sm:$0xff]  ;;  %v5246_v58 = vld [vmem:[%s9217_s5 + $0x120] sm:$0xff]  ;;  %v5251_v59 = vld [vmem:[%s9217_s5 + $0x128] sm:$0xff] }
  0x15   :  { %410 = vmatpush.msra.mxu2 %v5103_v35  ;;  %430 = vmatpush.msra.mxu3 %v5108_v36  ;;  %v5258_v60 = vld [vmem:[%s9217_s5 + $0x130] sm:$0xff]  ;;  %v5263_v61 = vld [vmem:[%s9217_s5 + $0x138] sm:$0xff]  ;;  %v5270_v62 = vld [vmem:[%s9217_s5 + $0x100] sm:$0xff] }
  0x16   :  { %371 = vmatpush.msra.mxu0 %v5113_v37  ;;  %391 = vmatpush.msra.mxu1 %v5118_v38  ;;  %v5275_v63 = vld [vmem:[%s9217_s5 + $0x108] sm:$0xff]  ;;  %v5280_v0 = vld [vmem:[%s9217_s5 + $0x110] sm:$0xff]  ;;  %v5287_v1 = vld [vmem:[%s9217_s5 + $0x118] sm:$0xff] }
  0x17   :  { %411 = vmatpush.msra.mxu2 %v5125_v39  ;;  %431 = vmatpush.msra.mxu3 %v5130_v40 }
  0x18   :  { %372 = vmatpush.msra.mxu0 %v5137_v41  ;;  %392 = vmatpush.msra.mxu1 %v5142_v42 }
  0x19   :  { %412 = vmatpush.msra.mxu2 %v5149_v43  ;;  %432 = vmatpush.msra.mxu3 %v5154_v44 }
  0x1a   :  { %373 = vmatpush.msra.mxu0 %v5161_v45  ;;  %393 = vmatpush.msra.mxu1 %v5166_v46 }
  0x1b   :  { %413 = vmatpush.msra.mxu2 %v5173_v47  ;;  %433 = vmatpush.msra.mxu3 %v5178_v48 }
  0x1c   :  { %4433 = vmatmul.msk.f32.gmra.mxu0 %vm95_vm0, %v5185_v49  ;;  %4435 = vmatmul.msk.f32.gmra.mxu1 %vm95_vm0, %v5185_v49 }
  0x1d   :  { %4437 = vmatmul.msk.f32.gmra.mxu2 %vm95_vm0, %v5185_v49  ;;  %4439 = vmatmul.msk.f32.gmra.mxu3 %vm95_vm0, %v5185_v49 }
  0x1e   :  { %374 = vmatpush.msra.mxu0 %v5194_v50  ;;  %394 = vmatpush.msra.mxu1 %v5199_v51 }
  0x1f   :  { %414 = vmatpush.msra.mxu2 %v5208_v52  ;;  %434 = vmatpush.msra.mxu3 %v5213_v53 }
  0x20   :  { %375 = vmatpush.msra.mxu0 %v5222_v54  ;;  %395 = vmatpush.msra.mxu1 %v5227_v55 }
  0x21   :  { %415 = vmatpush.msra.mxu2 %v5234_v56  ;;  %435 = vmatpush.msra.mxu3 %v5239_v57 }
  0x22   :  { %376 = vmatpush.msra.mxu0 %v5246_v58  ;;  %396 = vmatpush.msra.mxu1 %v5251_v59 }
  0x23   :  { %17 = vsyncpa [#allocation6], 0  ;;  %416 = vmatpush.msra.mxu2 %v5258_v60  ;;  %436 = vmatpush.msra.mxu3 %v5263_v61  ;;  %v5298_v2 = vld [vmem:[%s9217_s5 + $0xe0] sm:$0xff]  ;;  %v5303_v3 = vld [vmem:[%s9217_s5 + $0xe8] sm:$0xff]  ;;  %s4922_s24 = smov [#allocation5]   ;;  %s4415_s26 = sshll.u32 %s9222_s10, 4  ;;  %s4416_s26 = int_to_ptr.hbm [resolvable:$true] %s4415_s26 }
  0x24   :  { %377 = vmatpush.msra.mxu0 %v5270_v62  ;;  %397 = vmatpush.msra.mxu1 %v5275_v63  ;;  %v5312_v4 = vld [vmem:[%s9217_s5 + $0xf0] sm:$0xff]  ;;  %v5317_v5 = vld [vmem:[%s9217_s5 + $0xf8] sm:$0xff]  ;;  %v5326_v6 = vld [vmem:[%s9217_s5 + $0xc0] sm:$0xff]  ;;  %s4923_s27 = smov 128   ;;  %s4924_s28 = smov 8  }
  0x25   :  { %417 = vmatpush.msra.mxu2 %v5280_v0  ;;  %437 = vmatpush.msra.mxu3 %v5287_v1  ;;  %v5331_v7 = vld [vmem:[%s9217_s5 + $0xc8] sm:$0xff]  ;;  %v5338_v8 = vld [vmem:[%s9217_s5 + $0xd0] sm:$0xff]  ;;  %v5343_v9 = vld [vmem:[%s9217_s5 + $0xd8] sm:$0xff]  ;;  %s4925_s10 = smov [#allocation3]   ;;  %s4405_s11 = sshll.u32 %s9221_s9, 4  ;;  %s4406_s11 = int_to_ptr.hbm [resolvable:$true] %s4405_s11 }
  0x26   :  { %4440 = vmatmul.msk.f32.vlgmr.msrb.gmra.mxu0 %vm95_vm0, %v5068_v28  ;;  %4442 = vmatmul.msk.f32.vlgmr.msrb.gmra.mxu1 %vm95_vm0, %v5068_v28  ;;  %9465 = vst [vmem:[#allocation9_spill] sm:$0xff] %v5338_v8  ;;  %v5350_v10 = vld [vmem:[%s9217_s5 + $0xa0] sm:$0xff]  ;;  %v5355_v11 = vld [vmem:[%s9217_s5 + $0xa8] sm:$0xff]  ;;  %v5362_v12 = vld [vmem:[%s9217_s5 + $0xb0] sm:$0xff]  ;;  %s4403_s29 = sshll.u32 %s4925_s10, 4  ;;  %s4404_s29 = int_to_ptr.vmem [resolvable:$true] %s4403_s29 }
  0x27   :  { %4444 = vmatmul.msk.f32.vlgmr.msrb.gmra.mxu2 %vm95_vm0, %v5068_v28  ;;  %4446 = vmatmul.msk.f32.vlgmr.msrb.gmra.mxu3 %vm95_vm0, %v5068_v28  ;;  %9466 = vst [vmem:[#allocation10_spill] sm:$0xff] %v5343_v9  ;;  %v5367_v13 = vld [vmem:[%s9217_s5 + $0xb8] sm:$0xff]  ;;  %v5374_v14 = vld [vmem:[%s9217_s5 + $0x80] sm:$0xff]  ;;  %v5379_v15 = vld [vmem:[%s9217_s5 + $0x88] sm:$0xff] }
  0x28   :  { %378 = vmatpush.msra.mxu0 %v5298_v2  ;;  %398 = vmatpush.msra.mxu1 %v5303_v3  ;;  %9467 = vst [vmem:[#allocation11_spill] sm:$0xff] %v5350_v10  ;;  %v5386_v16 = vld [vmem:[%s9217_s5 + $0x90] sm:$0xff]  ;;  %v5391_v17 = vld [vmem:[%s9217_s5 + $0x98] sm:$0xff]  ;;  %v5402_v18 = vld [vmem:[%s9217_s5 + $0x60] sm:$0xff] }
  0x29   :  { %418 = vmatpush.msra.mxu2 %v5312_v4  ;;  %438 = vmatpush.msra.mxu3 %v5317_v5  ;;  %9468 = vst [vmem:[#allocation12_spill] sm:$0xff] %v5355_v11  ;;  %v5407_v19 = vld [vmem:[%s9217_s5 + $0x68] sm:$0xff]  ;;  %v5416_v20 = vld [vmem:[%s9217_s5 + $0x70] sm:$0xff]  ;;  %v5421_v21 = vld [vmem:[%s9217_s5 + $0x78] sm:$0xff] }
  0x2a   :  { %379 = vmatpush.msra.mxu0 %v5326_v6  ;;  %399 = vmatpush.msra.mxu1 %v5331_v7  ;;  %9469 = vst [vmem:[#allocation13_spill] sm:$0xff] %v5362_v12  ;;  %v5430_v22 = vld [vmem:[%s9217_s5 + $0x40] sm:$0xff]  ;;  %v5435_v23 = vld [vmem:[%s9217_s5 + $0x48] sm:$0xff]  ;;  %v5442_v24 = vld [vmem:[%s9217_s5 + $0x50] sm:$0xff] }
  0x2b   :  { %9470 = vst [vmem:[#allocation14_spill] sm:$0xff] %v5367_v13  ;;  %419 = vmatpush.msra.mxu2 %v5338_v8  ;;  %439 = vmatpush.msra.mxu3 %v5343_v9  ;;  %v5447_v25 = vld [vmem:[%s9217_s5 + $0x58] sm:$0xff]  ;;  %v5454_v26 = vld [vmem:[%s9217_s5 + $0x20] sm:$0xff]  ;;  %v5459_v27 = vld [vmem:[%s9217_s5 + $0x28] sm:$0xff] }
  0x2c   :  { %9471 = vst [vmem:[#allocation15_spill] sm:$0xff] %v5374_v14  ;;  %380 = vmatpush.msra.mxu0 %v5350_v10  ;;  %400 = vmatpush.msra.mxu1 %v5355_v11  ;;  %v5466_v28 = vld [vmem:[%s9217_s5 + $0x30] sm:$0xff]  ;;  %v5471_v29 = vld [vmem:[%s9217_s5 + $0x38] sm:$0xff]  ;;  %v5478_v30 = vld [vmem:[%s9217_s5] sm:$0xff] }
  0x2d   :  { %9472 = vst [vmem:[#allocation16_spill] sm:$0xff] %v5379_v15  ;;  %420 = vmatpush.msra.mxu2 %v5362_v12  ;;  %440 = vmatpush.msra.mxu3 %v5367_v13  ;;  %v5483_v31 = vld [vmem:[%s9217_s5 + $0x8] sm:$0xff]  ;;  %v5490_v32 = vld [vmem:[%s9217_s5 + $0x10] sm:$0xff] }
  0x2e   :  { %9473 = vst [vmem:[#allocation17_spill] sm:$0xff] %v5386_v16  ;;  %381 = vmatpush.msra.mxu0 %v5374_v14  ;;  %401 = vmatpush.msra.mxu1 %v5379_v15 }
  0x2f   :  { %9474 = vst [vmem:[#allocation18_spill] sm:$0xff] %v5391_v17  ;;  %421 = vmatpush.msra.mxu2 %v5386_v16  ;;  %441 = vmatpush.msra.mxu3 %v5391_v17 }
  0x30   :  { %9475 = vst [vmem:[#allocation19_spill] sm:$0xff] %v5402_v18  ;;  %4441 = vmatmul.msk.f32.gmra.mxu0 %vm95_vm0, %v5185_v49  ;;  %4443 = vmatmul.msk.f32.gmra.mxu1 %vm95_vm0, %v5185_v49 }
  0x31   :  { %9476 = vst [vmem:[#allocation20_spill] sm:$0xff] %v5407_v19  ;;  %4445 = vmatmul.msk.f32.gmra.mxu2 %vm95_vm0, %v5185_v49  ;;  %4447 = vmatmul.msk.f32.gmra.mxu3 %vm95_vm0, %v5185_v49  ;;  %v5495_v49 = vld [vmem:[%s9217_s5 + $0x18] sm:$0xff] }
  0x32   :  { %9477 = vst [vmem:[#allocation21_spill] sm:$0xff] %v5416_v20  ;;  %382 = vmatpush.msra.mxu0 %v5402_v18  ;;  %402 = vmatpush.msra.mxu1 %v5407_v19 }
  0x33   :  { %9478 = vst [vmem:[#allocation22_spill] sm:$0xff] %v5421_v21  ;;  %422 = vmatpush.msra.mxu2 %v5416_v20  ;;  %442 = vmatpush.msra.mxu3 %v5421_v21 }
  0x34   :  { %9479 = vst [vmem:[#allocation23_spill] sm:$0xff] %v5430_v22  ;;  %383 = vmatpush.msra.mxu0 %v5430_v22  ;;  %403 = vmatpush.msra.mxu1 %v5435_v23 }
  0x35   :  { %9480 = vst [vmem:[#allocation24_spill] sm:$0xff] %v5435_v23  ;;  %423 = vmatpush.msra.mxu2 %v5442_v24  ;;  %443 = vmatpush.msra.mxu3 %v5447_v25 }
  0x36   :  { %9481 = vst [vmem:[#allocation25_spill] sm:$0xff] %v5442_v24  ;;  %384 = vmatpush.msra.mxu0 %v5454_v26  ;;  %404 = vmatpush.msra.mxu1 %v5459_v27 }
  0x37   :  { %9482 = vst [vmem:[#allocation26_spill] sm:$0xff] %v5447_v25  ;;  %424 = vmatpush.msra.mxu2 %v5466_v28  ;;  %444 = vmatpush.msra.mxu3 %v5471_v29 }
  0x38   :  { %9483 = vst [vmem:[#allocation27_spill] sm:$0xff] %v5454_v26  ;;  %385 = vmatpush.msra.mxu0 %v5478_v30  ;;  %405 = vmatpush.msra.mxu1 %v5483_v31 }
  0x39   :  { %9484 = vst [vmem:[#allocation28_spill] sm:$0xff] %v5459_v27  ;;  %425 = vmatpush.msra.mxu2 %v5490_v32  ;;  %445 = vmatpush.msra.mxu3 %v5495_v49  ;;  %v9225_v27 = vmov 0.0  }
  0x3a   :  { %9485 = vst [vmem:[#allocation29_spill] sm:$0xff] %v5466_v28  ;;  %386 = vmatmul.f32.vlgmr.msra.gmra.mxu0 %v9225_v27  ;;  %406 = vmatmul.f32.vlgmr.msra.gmra.mxu1 %v9225_v27 }
  0x3b   :  { %9486 = vst [vmem:[#allocation30_spill] sm:$0xff] %v5471_v29  ;;  %426 = vmatmul.f32.vlgmr.msra.gmra.mxu2 %v9225_v27  ;;  %446 = vmatmul.f32.vlgmr.msra.gmra.mxu3 %v9225_v27 }
  0x3c   :  { %9487 = vst [vmem:[#allocation31_spill] sm:$0xff] %v5478_v30  ;;  %521 = vmatpush.msrb.mxu0 %v5093_v33  ;;  %541 = vmatpush.msrb.mxu1 %v5098_v34 }
  0x3d   :  { %9488 = vst [vmem:[#allocation32_spill] sm:$0xff] %v5483_v31  ;;  %561 = vmatpush.msrb.mxu2 %v5103_v35  ;;  %581 = vmatpush.msrb.mxu3 %v5108_v36 }
  0x3e   :  { %9489 = vst [vmem:[#allocation33_spill] sm:$0xff] %v5490_v32  ;;  %522 = vmatpush.msrb.mxu0 %v5113_v37  ;;  %542 = vmatpush.msrb.mxu1 %v5118_v38 }
  0x3f   :  { %9490 = vst [vmem:[#allocation34_spill] sm:$0xff] %v5495_v49  ;;  %562 = vmatpush.msrb.mxu2 %v5125_v39  ;;  %582 = vmatpush.msrb.mxu3 %v5130_v40 }
  0x40   :  { %523 = vmatpush.msrb.mxu0 %v5137_v41  ;;  %543 = vmatpush.msrb.mxu1 %v5142_v42  ;;  %v9491_v27 = vld [vmem:[#allocation28_spill] sm:$0xff] }
  0x41   :  { %563 = vmatpush.msrb.mxu2 %v5149_v43  ;;  %583 = vmatpush.msrb.mxu3 %v5154_v44 }
  0x42   :  { %524 = vmatpush.msrb.mxu0 %v5161_v45  ;;  %544 = vmatpush.msrb.mxu1 %v5166_v46 }
  0x43   :  { %564 = vmatpush.msrb.mxu2 %v5173_v47  ;;  %584 = vmatpush.msrb.mxu3 %v5178_v48 }
  0x44   :  { %525 = vmatpush.msrb.mxu0 %v5194_v50  ;;  %545 = vmatpush.msrb.mxu1 %v5199_v51 }
  0x45   :  { %565 = vmatpush.msrb.mxu2 %v5208_v52  ;;  %585 = vmatpush.msrb.mxu3 %v5213_v53 }
  0x46   :  { %526 = vmatpush.msrb.mxu0 %v5222_v54  ;;  %546 = vmatpush.msrb.mxu1 %v5227_v55 }
  0x47   :  { %566 = vmatpush.msrb.mxu2 %v5234_v56  ;;  %586 = vmatpush.msrb.mxu3 %v5239_v57 }
  0x48   :  { %527 = vmatpush.msrb.mxu0 %v5246_v58  ;;  %547 = vmatpush.msrb.mxu1 %v5251_v59 }
  0x49   :  { %567 = vmatpush.msrb.mxu2 %v5258_v60  ;;  %587 = vmatpush.msrb.mxu3 %v5263_v61 }
  0x4a   :  { %528 = vmatpush.msrb.mxu0 %v5270_v62  ;;  %548 = vmatpush.msrb.mxu1 %v5275_v63 }
  0x4b   :  { %568 = vmatpush.msrb.mxu2 %v5280_v0  ;;  %588 = vmatpush.msrb.mxu3 %v5287_v1 }
  0x4c   :  { %529 = vmatpush.msrb.mxu0 %v5298_v2  ;;  %549 = vmatpush.msrb.mxu1 %v5303_v3 }
  0x4d   :  { %569 = vmatpush.msrb.mxu2 %v5312_v4  ;;  %589 = vmatpush.msrb.mxu3 %v5317_v5 }
  0x4e   :  { %530 = vmatpush.msrb.mxu0 %v5326_v6  ;;  %550 = vmatpush.msrb.mxu1 %v5331_v7 }
  0x4f   :  { %570 = vmatpush.msrb.mxu2 %v5338_v8  ;;  %590 = vmatpush.msrb.mxu3 %v5343_v9 }
  0x50   :  { %531 = vmatpush.msrb.mxu0 %v5350_v10  ;;  %551 = vmatpush.msrb.mxu1 %v5355_v11 }
  0x51   :  { %571 = vmatpush.msrb.mxu2 %v5362_v12  ;;  %591 = vmatpush.msrb.mxu3 %v5367_v13 }
  0x52   :  { %532 = vmatpush.msrb.mxu0 %v5374_v14  ;;  %552 = vmatpush.msrb.mxu1 %v5379_v15 }
  0x53   :  { %572 = vmatpush.msrb.mxu2 %v5386_v16  ;;  %592 = vmatpush.msrb.mxu3 %v5391_v17 }
  0x54   :  { %533 = vmatpush.msrb.mxu0 %v5402_v18  ;;  %553 = vmatpush.msrb.mxu1 %v5407_v19 }
  0x55   :  { %573 = vmatpush.msrb.mxu2 %v5416_v20  ;;  %593 = vmatpush.msrb.mxu3 %v5421_v21 }
  0x56   :  { %534 = vmatpush.msrb.mxu0 %v5430_v22  ;;  %554 = vmatpush.msrb.mxu1 %v5435_v23 }
  0x57   :  { %574 = vmatpush.msrb.mxu2 %v5442_v24  ;;  %594 = vmatpush.msrb.mxu3 %v5447_v25 }
  0x58   :  { %535 = vmatpush.msrb.mxu0 %v5454_v26  ;;  %555 = vmatpush.msrb.mxu1 %v9491_v27 }
  0x59   :  { %575 = vmatpush.msrb.mxu2 %v5466_v28  ;;  %595 = vmatpush.msrb.mxu3 %v5471_v29 }
  0x5a   :  { %536 = vmatpush.msrb.mxu0 %v5478_v30  ;;  %556 = vmatpush.msrb.mxu1 %v5483_v31 }
  0x5b   :  { %576 = vmatpush.msrb.mxu2 %v5490_v32  ;;  %596 = vmatpush.msrb.mxu3 %v5495_v49 }
  0x5c   :  { %690 = vmatpush.msra.mxu0 %v5093_v33  ;;  %710 = vmatpush.msra.mxu1 %v5098_v34 }
  0x5d   :  { %730 = vmatpush.msra.mxu2 %v5103_v35  ;;  %750 = vmatpush.msra.mxu3 %v5108_v36 }
  0x5e   :  { %691 = vmatpush.msra.mxu0 %v5113_v37  ;;  %711 = vmatpush.msra.mxu1 %v5118_v38 }
  0x5f   :  { %731 = vmatpush.msra.mxu2 %v5125_v39  ;;  %751 = vmatpush.msra.mxu3 %v5130_v40 }
  0x60   :  { %692 = vmatpush.msra.mxu0 %v5137_v41  ;;  %712 = vmatpush.msra.mxu1 %v5142_v42 }
  0x61   :  { %732 = vmatpush.msra.mxu2 %v5149_v43  ;;  %752 = vmatpush.msra.mxu3 %v5154_v44 }
  0x62   :  { %693 = vmatpush.msra.mxu0 %v5161_v45  ;;  %713 = vmatpush.msra.mxu1 %v5166_v46 }
  0x63   :  { %733 = vmatpush.msra.mxu2 %v5173_v47  ;;  %753 = vmatpush.msra.mxu3 %v5178_v48 }
  0x64   :  { %694 = vmatpush.msra.mxu0 %v5194_v50  ;;  %714 = vmatpush.msra.mxu1 %v5199_v51 }
  0x65   :  { %734 = vmatpush.msra.mxu2 %v5208_v52  ;;  %754 = vmatpush.msra.mxu3 %v5213_v53 }
  0x66   :  { %695 = vmatpush.msra.mxu0 %v5222_v54  ;;  %715 = vmatpush.msra.mxu1 %v5227_v55 }
  0x67   :  { %735 = vmatpush.msra.mxu2 %v5234_v56  ;;  %755 = vmatpush.msra.mxu3 %v5239_v57 }
  0x68   :  { %696 = vmatpush.msra.mxu0 %v5246_v58  ;;  %716 = vmatpush.msra.mxu1 %v5251_v59 }
  0x69   :  { %736 = vmatpush.msra.mxu2 %v5258_v60  ;;  %756 = vmatpush.msra.mxu3 %v5263_v61 }
  0x6a   :  { %697 = vmatpush.msra.mxu0 %v5270_v62  ;;  %717 = vmatpush.msra.mxu1 %v5275_v63 }
  0x6b   :  { %737 = vmatpush.msra.mxu2 %v5280_v0  ;;  %757 = vmatpush.msra.mxu3 %v5287_v1 }
  0x6c   :  { %698 = vmatpush.msra.mxu0 %v5298_v2  ;;  %718 = vmatpush.msra.mxu1 %v5303_v3 }
  0x6d   :  { %738 = vmatpush.msra.mxu2 %v5312_v4  ;;  %758 = vmatpush.msra.mxu3 %v5317_v5 }
  0x6e   :  { %699 = vmatpush.msra.mxu0 %v5326_v6  ;;  %719 = vmatpush.msra.mxu1 %v5331_v7 }
  0x6f   :  { %739 = vmatpush.msra.mxu2 %v5338_v8  ;;  %759 = vmatpush.msra.mxu3 %v5343_v9 }
  0x70   :  { %700 = vmatpush.msra.mxu0 %v5350_v10  ;;  %720 = vmatpush.msra.mxu1 %v5355_v11 }
  0x71   :  { %740 = vmatpush.msra.mxu2 %v5362_v12  ;;  %760 = vmatpush.msra.mxu3 %v5367_v13 }
  0x72   :  { %701 = vmatpush.msra.mxu0 %v5374_v14  ;;  %721 = vmatpush.msra.mxu1 %v5379_v15 }
  0x73   :  { %741 = vmatpush.msra.mxu2 %v5386_v16  ;;  %761 = vmatpush.msra.mxu3 %v5391_v17 }
  0x74   :  { %702 = vmatpush.msra.mxu0 %v5402_v18  ;;  %722 = vmatpush.msra.mxu1 %v5407_v19 }
  0x75   :  { %742 = vmatpush.msra.mxu2 %v5416_v20  ;;  %762 = vmatpush.msra.mxu3 %v5421_v21 }
  0x76   :  { %703 = vmatpush.msra.mxu0 %v5430_v22  ;;  %723 = vmatpush.msra.mxu1 %v5435_v23 }
  0x77   :  { %743 = vmatpush.msra.mxu2 %v5442_v24  ;;  %763 = vmatpush.msra.mxu3 %v5447_v25  ;;  %v77_v25 = vld [vmem:[%s9216_s4] sm:$0xff] }
  0x78   :  { %704 = vmatpush.msra.mxu0 %v5454_v26  ;;  %724 = vmatpush.msra.mxu1 %v9491_v27  ;;  %v79_v24 = vperm.slane %v77_v25, 0  ;;  %v80_v26 = vperm.slane %v77_v25, 1 }
  0x79   :  { %744 = vmatpush.msra.mxu2 %v5466_v28  ;;  %764 = vmatpush.msra.mxu3 %v5471_v29  ;;  %v81_v29 = vperm.slane %v77_v25, 2 }
  0x7a   :  { %705 = vmatpush.msra.mxu0 %v5478_v30  ;;  %725 = vmatpush.msra.mxu1 %v5483_v31  ;;  %v82_v30 = vperm.slane %v77_v25, 3 }
  0x7b   :  { %745 = vmatpush.msra.mxu2 %v5490_v32  ;;  %765 = vmatpush.msra.mxu3 %v5495_v49 }
  0x8d   :  { %v119_v23 = vpop.f32.mrf.mxu0  ;;  %v142_v27 = vpop.f32.mrf.mxu1 }
  0x8e   :  { %v120_v22 = vadd.f32 %v119_v23, %v79_v24  ;;  %v143_v28 = vadd.f32 %v142_v27, %v80_v26  ;;  %v83_v23 = vperm.slane %v77_v25, 4  ;;  %v84_v27 = vperm.slane %v77_v25, 5 }
  0x90   :  { %286 = vst [vmem:[#allocation2 + $0x30] sm:$0xff] %v120_v22 }
  0x91   :  { %287 = vst [vmem:[#allocation2] sm:$0xff] %v143_v28 }
  0x94   :  { %v165_v21 = vpop.f32.mrf.mxu2  ;;  %v188_v31 = vpop.f32.mrf.mxu3 }
  0x95   :  { %v166_v20 = vadd.f32 %v165_v21, %v81_v29  ;;  %v189_v32 = vadd.f32 %v188_v31, %v82_v30 }
  0x97   :  { %288 = vst [vmem:[#allocation2 + $0x58] sm:$0xff] %v166_v20  ;;  %v85_v20 = vperm.slane %v77_v25, 6 }
  0x98   :  { %289 = vst [vmem:[#allocation2 + $0x18] sm:$0xff] %v189_v32  ;;  %v86_v32 = vperm.slane %v77_v25, 7  ;;  %v303_v25 = vld [vmem:[#allocation2] sm:$0x3] }
  0x99   :  { %v122_v49 = vpop.f32.mrf.mxu0  ;;  %v145_v19 = vpop.f32.mrf.mxu1 }
  0x9a   :  { %v123_v18 = vadd.f32 %v122_v49, %v79_v24  ;;  %v146_v17 = vadd.f32 %v145_v19, %v80_v26 }
  0x9c   :  { %294 = vst [vmem:[#allocation2 + $0x40] sm:$0xff] %v123_v18 }
  0x9d   :  { %295 = vst [vmem:[#allocation2 + $0x20] sm:$0xff] %v146_v17 }
  0xa0   :  { %v168_v16 = vpop.f32.mrf.mxu2  ;;  %v191_v15 = vpop.f32.mrf.mxu3 }
  0xa1   :  { %v169_v22 = vadd.f32 %v168_v16, %v81_v29  ;;  %v192_v28 = vadd.f32 %v191_v15, %v82_v30 }
  0xa3   :  { %296 = vst [vmem:[#allocation2 + $0x10] sm:$0xff] %v169_v22  ;;  %v211_v14 = vpop.f32.mrf.mxu0  ;;  %v234_v13 = vpop.f32.mrf.mxu1  ;;  %v302_v22 = vld [vmem:[#allocation2 + $0x30] sm:$0x3] }
  0xa4   :  { %297 = vst [vmem:[#allocation2 + $0x38] sm:$0xff] %v192_v28  ;;  %v212_v21 = vadd.f32 %v211_v14, %v83_v23  ;;  %v235_v31 = vadd.f32 %v234_v13, %v84_v27 }
  0xa6   :  { %290 = vst [vmem:[#allocation2 + $0x50] sm:$0xff] %v212_v21 }
  0xa7   :  { %291 = vst [vmem:[#allocation2 + $0x68] sm:$0xff] %v235_v31 }
  0xaa   :  { %v257_v24 = vpop.f32.mrf.mxu2  ;;  %v280_v19 = vpop.f32.mrf.mxu3 }
  0xab   :  { %v258_v18 = vadd.f32 %v257_v24, %v85_v20  ;;  %v281_v17 = vadd.f32 %v280_v19, %v86_v32 }
  0xad   :  { %292 = vst [vmem:[#allocation2 + $0x8] sm:$0xff] %v258_v18  ;;  %v214_v26 = vpop.f32.mrf.mxu0  ;;  %v237_v49 = vpop.f32.mrf.mxu1 }
  0xae   :  { %293 = vst [vmem:[#allocation2 + $0x48] sm:$0xff] %v281_v17  ;;  %v215_v16 = vadd.f32 %v214_v26, %v83_v23  ;;  %v238_v15 = vadd.f32 %v237_v49, %v84_v27  ;;  %v305_v23 = vld [vmem:[#allocation2 + $0x18] sm:$0x3] }
  0xb0   :  { %298 = vst [vmem:[#allocation2 + $0x60] sm:$0xff] %v215_v16 }
  0xb1   :  { %299 = vst [vmem:[#allocation2 + $0x70] sm:$0xff] %v238_v15 }
  0xb4   :  { %v260_v29 = vpop.f32.mrf.mxu2  ;;  %v283_v30 = vpop.f32.mrf.mxu3 }
  0xb5   :  { %v261_v14 = vadd.f32 %v260_v29, %v85_v20  ;;  %v284_v13 = vadd.f32 %v283_v30, %v86_v32  ;;  %v304_v30 = vld [vmem:[#allocation2 + $0x58] sm:$0x3] }
  0xb7   :  { %300 = vst [vmem:[#allocation2 + $0x78] sm:$0xff] %v261_v14  ;;  %v387_v28 = vpop.f32.mrf.mxu0  ;;  %v407_v21 = vpop.f32.mrf.mxu1 }
  0xb8   :  { %301 = vst [vmem:[#allocation2 + $0x28] sm:$0xff] %v284_v13  ;;  %v450_v31 = vadd.f32 %v387_v28, %v302_v22  ;;  %v451_v24 = vadd.f32 %v407_v21, %v303_v25 }
  0xba   :  { %v4448_v19 = vmul.f32 -1.442695, %v450_v31  ;;  %v4449_v18 = vmul.f32 -1.442695, %v451_v24 }
  0xbc   :  { %4514 = vpow2.f32 %v4448_v19 }
  0xbd   :  { %4516 = vpow2.f32 %v4449_v18 }
  0xbe   :  { %v447_v27 = vpop.f32.mrf.mxu3  ;;  %v427_v15 = vpop.f32.mrf.mxu2 }
  0xbf   :  { %v453_v17 = vadd.f32 %v447_v27, %v305_v23  ;;  %v452_v22 = vadd.f32 %v427_v15, %v304_v30 }
  0xc1   :  { %v4450_v26 = vmul.f32 -1.442695, %v453_v17 }
  0xc2   :  { %v4515_v49 = vpop.eup %4514 }
  0xc3   :  { %v4517_v16 = vpop.eup %4516  ;;  %v457_v20 = vadd.f32 1.0, %v4515_v49  ;;  %4518 = vpow2.f32 %v4450_v26 }
  0xc4   :  { %v476_v32 = vadd.f32 1.0, %v4517_v16 }
  0xc5   :  { %4520 = vrcp.f32 %v457_v20  ;;  %v469_v19 = vand.u32 2147483648, %v457_v20  ;;  %v467_v27 = vand.u32 2147483647, %v457_v20  ;;  %vm463_vm3 = vweird.f32 %v457_v20 }
  0xc6   :  { %4522 = vrcp.f32 %v476_v32  ;;  %v488_v18 = vand.u32 2147483648, %v476_v32  ;;  %v486_v26 = vand.u32 2147483647, %v476_v32  ;;  %vm482_vm4 = vweird.f32 %v476_v32 }
  0xc7   :  { %v470_v15 = vor.u32 1.1754944e-38, %v469_v19  ;;  %vm468_vm6 = vcmp.eq.f32.partialorder %v467_v27, 8.507059e+37 }
  0xc8   :  { %v489_v12 = vor.u32 1.1754944e-38, %v488_v18  ;;  %vm487_vm8 = vcmp.eq.f32.partialorder %v486_v26, 8.507059e+37 }
  0xc9   :  { %v4519_v29 = vpop.eup %4518 }
  0xca   :  { %v496_v14 = vadd.f32 1.0, %v4519_v29 }
  0xcb   :  { %v4521_v13 = vpop.eup %4520 }
  0xcc   :  { %v4523_v28 = vpop.eup %4522  ;;  %v459_v25 = vmul.f32 %v4521_v13, %v457_v20  ;;  %4524 = vrcp.f32 %v496_v14  ;;  %vm464_vm1 = vweird.f32 %v4521_v13  ;;  %vm502_vm10 = vweird.f32 %v496_v14 }
  0xcd   :  { %v478_v21 = vmul.f32 %v4523_v28, %v476_v32  ;;  %4526 = vtanh.f32 %v452_v22  ;;  %vm483_vm2 = vweird.f32 %v4523_v28  ;;  %vm465_vm5 = vmor %vm463_vm3, %vm464_vm1  ;;  %v508_v32 = vand.u32 2147483648, %v496_v14 }
  0xce   :  { %v460_v31 = vsub.f32 1.0, %v459_v25  ;;  %vm484_vm7 = vmor %vm482_vm4, %vm483_vm2 }
  0xcf   :  { %v479_v24 = vsub.f32 1.0, %v478_v21  ;;  %v509_v18 = vor.u32 1.1754944e-38, %v508_v32 }
  0xd0   :  { %v461_v23 = vmul.f32 %v4521_v13, %v460_v31 }
  0xd1   :  { %v480_v17 = vmul.f32 %v4523_v28, %v479_v24 }
  0xd2   :  { %v4525_v49 = vpop.eup %4524  ;;  %v462_v16 = vadd.f32 %v4521_v13, %v461_v23 }
  0xd3   :  { %v481_v29 = vadd.f32 %v4523_v28, %v480_v17  ;;  %v498_v30 = vmul.f32 %v4525_v49, %v496_v14  ;;  %v4527_v22 = vpop.eup %4526  ;;  %vm503_vm9 = vweird.f32 %v4525_v49 }
  0xd4   :  { %v466_v25 = vsel %vm465_vm5, %v4521_v13, %v462_v16  ;;  %v506_v13 = vand.u32 2147483647, %v496_v14  ;;  %vm504_vm11 = vmor %vm502_vm10, %vm503_vm9 }
  0xd5   :  { %v471_v21 = vsel %vm468_vm6, %v470_v15, %v466_v25  ;;  %v485_v31 = vsel %vm484_vm7, %v4523_v28, %v481_v29  ;;  %v499_v11 = vsub.f32 1.0, %v498_v30  ;;  %v519_v29 = vld [vmem:[#allocation2 + $0x58] sm:$0xc] }
  0xd6   :  { %v490_v24 = vsel %vm487_vm8, %v489_v12, %v485_v31  ;;  %v513_v10 = vmul.f32 %v4527_v22, %v471_v21  ;;  %vm507_vm12 = vcmp.eq.f32.partialorder %v506_v13, 8.507059e+37 }
  0xd7   :  { %v512_v9 = vmul.f32 0.0, %v490_v24  ;;  %v500_v8 = vmul.f32 %v4525_v49, %v499_v11 }
  0xd9   :  { %v5638_v23 = vadd.f32 %v513_v10, %v512_v9  ;;  %v501_v20 = vadd.f32 %v4525_v49, %v500_v8  ;;  %v520_v8 = vld [vmem:[#allocation2 + $0x18] sm:$0xc] }
  0xdb   :  { %4528 = vtanh.f32 %v5638_v23  ;;  %v505_v19 = vsel %vm504_vm11, %v4525_v49, %v501_v20 }
  0xdc   :  { %v510_v27 = vsel %vm507_vm12, %v509_v18, %v505_v19 }
  0xe1   :  { %v4529_v28 = vpop.eup %4528 }
  0xe2   :  { %v5641_v17 = vmul.f32 %v4529_v28, %v510_v27 }
  0xe4   :  { %9492 = vst [vmem:[#allocation35_spill] sm:$0xff] %v5641_v17  ;;  %537 = vmatmul.f32.vlgmr.msrb.gmra.mxu0 %v5641_v17  ;;  %557 = vmatmul.f32.vlgmr.msrb.gmra.mxu1 %v5641_v17 }
  0xe5   :  { %577 = vmatmul.f32.vlgmr.msrb.gmra.mxu2 %v5641_v17  ;;  %597 = vmatmul.f32.vlgmr.msrb.gmra.mxu3 %v5641_v17  ;;  %v5994_v17 = vld [vmem:[%s9217_s5 + $0x88] sm:$0xff] }
  0xe6   :  { %859 = vmatpush.msrb.mxu0 %v5093_v33  ;;  %879 = vmatpush.msrb.mxu1 %v5098_v34  ;;  %v9493_v33 = vld [vmem:[#allocation9_spill] sm:$0xff]  ;;  %v9494_v34 = vld [vmem:[#allocation10_spill] sm:$0xff] }
  0xe7   :  { %899 = vmatpush.msrb.mxu2 %v5103_v35  ;;  %919 = vmatpush.msrb.mxu3 %v5108_v36  ;;  %v9495_v35 = vld [vmem:[#allocation11_spill] sm:$0xff]  ;;  %v9496_v36 = vld [vmem:[#allocation12_spill] sm:$0xff] }
  0xe8   :  { %860 = vmatpush.msrb.mxu0 %v5113_v37  ;;  %880 = vmatpush.msrb.mxu1 %v5118_v38  ;;  %v9497_v37 = vld [vmem:[#allocation13_spill] sm:$0xff]  ;;  %v9498_v38 = vld [vmem:[#allocation14_spill] sm:$0xff] }
  0xe9   :  { %900 = vmatpush.msrb.mxu2 %v5125_v39  ;;  %920 = vmatpush.msrb.mxu3 %v5130_v40  ;;  %v9499_v39 = vld [vmem:[#allocation15_spill] sm:$0xff]  ;;  %v9500_v40 = vld [vmem:[#allocation16_spill] sm:$0xff] }
  0xea   :  { %861 = vmatpush.msrb.mxu0 %v5137_v41  ;;  %881 = vmatpush.msrb.mxu1 %v5142_v42  ;;  %v9501_v41 = vld [vmem:[#allocation17_spill] sm:$0xff]  ;;  %v9502_v42 = vld [vmem:[#allocation18_spill] sm:$0xff] }
  0xeb   :  { %901 = vmatpush.msrb.mxu2 %v5149_v43  ;;  %921 = vmatpush.msrb.mxu3 %v5154_v44  ;;  %v9503_v43 = vld [vmem:[#allocation19_spill] sm:$0xff]  ;;  %v9504_v44 = vld [vmem:[#allocation20_spill] sm:$0xff]  ;;  %9527 = vst [vmem:[#allocation17_spill] sm:$0xff] %v5994_v17 }
  0xec   :  { %862 = vmatpush.msrb.mxu0 %v5161_v45  ;;  %882 = vmatpush.msrb.mxu1 %v5166_v46  ;;  %v9505_v45 = vld [vmem:[#allocation21_spill] sm:$0xff]  ;;  %v9506_v46 = vld [vmem:[#allocation22_spill] sm:$0xff] }
  0xed   :  { %902 = vmatpush.msrb.mxu2 %v5173_v47  ;;  %922 = vmatpush.msrb.mxu3 %v5178_v48  ;;  %v9507_v47 = vld [vmem:[#allocation23_spill] sm:$0xff]  ;;  %v9508_v48 = vld [vmem:[#allocation24_spill] sm:$0xff] }
  0xee   :  { %863 = vmatpush.msrb.mxu0 %v5194_v50  ;;  %883 = vmatpush.msrb.mxu1 %v5199_v51  ;;  %v9509_v50 = vld [vmem:[#allocation25_spill] sm:$0xff]  ;;  %v9510_v51 = vld [vmem:[#allocation26_spill] sm:$0xff] }
  0xef   :  { %903 = vmatpush.msrb.mxu2 %v5208_v52  ;;  %923 = vmatpush.msrb.mxu3 %v5213_v53  ;;  %v9511_v52 = vld [vmem:[#allocation27_spill] sm:$0xff]  ;;  %v9512_v53 = vld [vmem:[#allocation28_spill] sm:$0xff] }
  0xf0   :  { %864 = vmatpush.msrb.mxu0 %v5222_v54  ;;  %884 = vmatpush.msrb.mxu1 %v5227_v55  ;;  %v9513_v54 = vld [vmem:[#allocation29_spill] sm:$0xff]  ;;  %v9514_v55 = vld [vmem:[#allocation30_spill] sm:$0xff] }
  0xf1   :  { %904 = vmatpush.msrb.mxu2 %v5234_v56  ;;  %924 = vmatpush.msrb.mxu3 %v5239_v57  ;;  %v9515_v56 = vld [vmem:[#allocation31_spill] sm:$0xff]  ;;  %v9516_v57 = vld [vmem:[#allocation32_spill] sm:$0xff] }
  0xf2   :  { %865 = vmatpush.msrb.mxu0 %v5246_v58  ;;  %885 = vmatpush.msrb.mxu1 %v5251_v59  ;;  %v9517_v58 = vld [vmem:[#allocation33_spill] sm:$0xff]  ;;  %v9518_v59 = vld [vmem:[#allocation34_spill] sm:$0xff] }
  0xf3   :  { %905 = vmatpush.msrb.mxu2 %v5258_v60  ;;  %925 = vmatpush.msrb.mxu3 %v5263_v61 }
  0xf4   :  { %866 = vmatpush.msrb.mxu0 %v5270_v62  ;;  %886 = vmatpush.msrb.mxu1 %v5275_v63 }
  0xf5   :  { %906 = vmatpush.msrb.mxu2 %v5280_v0  ;;  %926 = vmatpush.msrb.mxu3 %v5287_v1  ;;  %v517_v0 = vld [vmem:[#allocation2 + $0x30] sm:$0xc]  ;;  %v518_v1 = vld [vmem:[#allocation2] sm:$0xc] }
  0xf6   :  { %867 = vmatpush.msrb.mxu0 %v5298_v2  ;;  %887 = vmatpush.msrb.mxu1 %v5303_v3 }
  0xf7   :  { %907 = vmatpush.msrb.mxu2 %v5312_v4  ;;  %927 = vmatpush.msrb.mxu3 %v5317_v5 }
  0xf8   :  { %868 = vmatpush.msrb.mxu0 %v5326_v6  ;;  %888 = vmatpush.msrb.mxu1 %v5331_v7 }
  0xf9   :  { %908 = vmatpush.msrb.mxu2 %v9493_v33  ;;  %928 = vmatpush.msrb.mxu3 %v9494_v34 }
  0xfa   :  { %869 = vmatpush.msrb.mxu0 %v9495_v35  ;;  %889 = vmatpush.msrb.mxu1 %v9496_v36 }
  0xfb   :  { %909 = vmatpush.msrb.mxu2 %v9497_v37  ;;  %929 = vmatpush.msrb.mxu3 %v9498_v38 }
  0xfc   :  { %870 = vmatpush.msrb.mxu0 %v9499_v39  ;;  %890 = vmatpush.msrb.mxu1 %v9500_v40  ;;  %v676_v39 = vrot.slane %v5638_v23, 6 }
  0xfd   :  { %910 = vmatpush.msrb.mxu2 %v9501_v41  ;;  %930 = vmatpush.msrb.mxu3 %v9502_v42 }
  0xfe   :  { %871 = vmatpush.msrb.mxu0 %v9503_v43  ;;  %891 = vmatpush.msrb.mxu1 %v9504_v44 }
  0xff   :  { %911 = vmatpush.msrb.mxu2 %v9505_v45  ;;  %931 = vmatpush.msrb.mxu3 %v9506_v46 }
 0x100   :  { %872 = vmatpush.msrb.mxu0 %v9507_v47  ;;  %892 = vmatpush.msrb.mxu1 %v9508_v48 }
 0x101   :  { %912 = vmatpush.msrb.mxu2 %v9509_v50  ;;  %932 = vmatpush.msrb.mxu3 %v9510_v51 }
 0x102   :  { %873 = vmatpush.msrb.mxu0 %v9511_v52  ;;  %893 = vmatpush.msrb.mxu1 %v9512_v53 }
 0x103   :  { %913 = vmatpush.msrb.mxu2 %v9513_v54  ;;  %933 = vmatpush.msrb.mxu3 %v9514_v55 }
 0x104   :  { %874 = vmatpush.msrb.mxu0 %v9515_v56  ;;  %894 = vmatpush.msrb.mxu1 %v9516_v57 }
 0x105   :  { %914 = vmatpush.msrb.mxu2 %v9517_v58  ;;  %934 = vmatpush.msrb.mxu3 %v9518_v59 }
 0x161   :  { %v538_v60 = vpop.f32.mrf.mxu0  ;;  %v558_v61 = vpop.f32.mrf.mxu1 }
 0x162   :  { %v605_v62 = vrot.slane %v538_v60, 6  ;;  %v606_v63 = vrot.slane %v558_v61, 6 }
 0x164   :  { %v613_v2 = vadd.f32 %v605_v62, %v517_v0  ;;  %v614_v3 = vadd.f32 %v606_v63, %v518_v1 }
 0x166   :  { %v4451_v4 = vmul.f32 -1.442695, %v613_v2  ;;  %v4452_v5 = vmul.f32 -1.442695, %v614_v3 }
 0x168   :  { %4530 = vpow2.f32 %v4451_v4  ;;  %v598_v6 = vpop.f32.mrf.mxu3  ;;  %v578_v49 = vpop.f32.mrf.mxu2 }
 0x169   :  { %4532 = vpow2.f32 %v4452_v5  ;;  %v608_v7 = vrot.slane %v598_v6, 6  ;;  %v607_v16 = vrot.slane %v578_v49, 6  ;;  %v5742_v49 = vld [vmem:[%s9217_s5 + $0x1f8] sm:$0xff] }
 0x16b   :  { %v616_v9 = vadd.f32 %v608_v7, %v520_v8  ;;  %v615_v22 = vadd.f32 %v607_v16, %v519_v29  ;;  %v5748_v16 = vld [vmem:[%s9217_s5 + $0x1c0] sm:$0xff]  ;;  %v5760_v29 = vld [vmem:[%s9217_s5 + $0x1d0] sm:$0xff] }
 0x16d   :  { %v4453_v10 = vmul.f32 -1.442695, %v616_v9 }
 0x16e   :  { %v4531_v11 = vpop.eup %4530 }
 0x16f   :  { %v4533_v12 = vpop.eup %4532  ;;  %v620_v14 = vadd.f32 1.0, %v4531_v11  ;;  %4534 = vpow2.f32 %v4453_v10 }
 0x170   :  { %v639_v26 = vadd.f32 1.0, %v4533_v12  ;;  %v5724_v12 = vld [vmem:[%s9217_s5 + $0x1e0] sm:$0xff] }
 0x171   :  { %4536 = vrcp.f32 %v620_v14  ;;  %v632_v13 = vand.u32 2147483648, %v620_v14  ;;  %v630_v28 = vand.u32 2147483647, %v620_v14  ;;  %vm626_vm15 = vweird.f32 %v620_v14 }
 0x172   :  { %4538 = vrcp.f32 %v639_v26  ;;  %v651_v19 = vand.u32 2147483648, %v639_v26  ;;  %v649_v33 = vand.u32 2147483647, %v639_v26  ;;  %vm645_vm0 = vweird.f32 %v639_v26 }
 0x173   :  { %v633_v36 = vor.u32 1.1754944e-38, %v632_v13  ;;  %vm631_vm3 = vcmp.eq.f32.partialorder %v630_v28, 8.507059e+37  ;;  %v5814_v13 = vld [vmem:[%s9217_s5 + $0x198] sm:$0xff]  ;;  %v5832_v28 = vld [vmem:[%s9217_s5 + $0x170] sm:$0xff] }
 0x174   :  { %v652_v40 = vor.u32 1.1754944e-38, %v651_v19  ;;  %vm650_vm4 = vcmp.eq.f32.partialorder %v649_v33, 8.507059e+37  ;;  %v5820_v19 = vld [vmem:[%s9217_s5 + $0x160] sm:$0xff] }
 0x175   :  { %v4535_v15 = vpop.eup %4534  ;;  %v5844_v33 = vld [vmem:[%s9217_s5 + $0x140] sm:$0xff] }
 0x176   :  { %v659_v30 = vadd.f32 1.0, %v4535_v15  ;;  %v5754_v15 = vld [vmem:[%s9217_s5 + $0x1c8] sm:$0xff] }
 0x177   :  { %v4537_v25 = vpop.eup %4536 }
 0x178   :  { %v4539_v21 = vpop.eup %4538  ;;  %v622_v31 = vmul.f32 %v4537_v25, %v620_v14  ;;  %4540 = vrcp.f32 %v659_v30  ;;  %vm627_vm13 = vweird.f32 %v4537_v25  ;;  %v671_v23 = vand.u32 2147483648, %v659_v30  ;;  %v5730_v14 = vld [vmem:[%s9217_s5 + $0x1e8] sm:$0xff] }
 0x179   :  { %v641_v24 = vmul.f32 %v4539_v21, %v639_v26  ;;  %4542 = vtanh.f32 %v615_v22  ;;  %vm646_vm14 = vweird.f32 %v4539_v21  ;;  %vm628_vm1 = vmor %vm626_vm15, %vm627_vm13  ;;  %vm665_vm6 = vweird.f32 %v659_v30  ;;  %v5736_v26 = vld [vmem:[%s9217_s5 + $0x1f0] sm:$0xff]  ;;  %v5778_v22 = vld [vmem:[%s9217_s5 + $0x1a8] sm:$0xff] }
 0x17a   :  { %v623_v20 = vsub.f32 1.0, %v622_v31  ;;  %vm647_vm2 = vmor %vm645_vm0, %vm646_vm14  ;;  %v669_v5 = vand.u32 2147483647, %v659_v30  ;;  %v672_v7 = vor.u32 1.1754944e-38, %v671_v23  ;;  %v5790_v31 = vld [vmem:[%s9217_s5 + $0x1b8] sm:$0xff]  ;;  %v5952_v23 = vld [vmem:[%s9217_s5 + $0xd0] sm:$0xff] }
 0x17b   :  { %v642_v32 = vsub.f32 1.0, %v641_v24  ;;  %v5796_v24 = vld [vmem:[%s9217_s5 + $0x180] sm:$0xff]  ;;  %9520 = vst [vmem:[#allocation10_spill] sm:$0xff] %v5952_v23 }
 0x17c   :  { %v624_v18 = vmul.f32 %v4537_v25, %v623_v20  ;;  %vm670_vm8 = vcmp.eq.f32.partialorder %v669_v5, 8.507059e+37  ;;  %v5802_v20 = vld [vmem:[%s9217_s5 + $0x188] sm:$0xff]  ;;  %v5958_v5 = vld [vmem:[%s9217_s5 + $0xd8] sm:$0xff] }
 0x17d   :  { %v643_v27 = vmul.f32 %v4539_v21, %v642_v32  ;;  %v5808_v32 = vld [vmem:[%s9217_s5 + $0x190] sm:$0xff]  ;;  %9521 = vst [vmem:[#allocation11_spill] sm:$0xff] %v5958_v5 }
 0x17e   :  { %v4541_v34 = vpop.eup %4540  ;;  %v625_v35 = vadd.f32 %v4537_v25, %v624_v18  ;;  %v5826_v18 = vld [vmem:[%s9217_s5 + $0x168] sm:$0xff] }
 0x17f   :  { %v644_v37 = vadd.f32 %v4539_v21, %v643_v27  ;;  %v661_v38 = vmul.f32 %v4541_v34, %v659_v30  ;;  %v4543_v42 = vpop.eup %4542  ;;  %vm666_vm5 = vweird.f32 %v4541_v34  ;;  %v5766_v30 = vld [vmem:[%s9217_s5 + $0x1d8] sm:$0xff] }
 0x180   :  { %v629_v41 = vsel %vm628_vm1, %v4537_v25, %v625_v35  ;;  %vm667_vm7 = vmor %vm665_vm6, %vm666_vm5  ;;  %v5772_v25 = vld [vmem:[%s9217_s5 + $0x1a0] sm:$0xff]  ;;  %v5838_v27 = vld [vmem:[%s9217_s5 + $0x178] sm:$0xff] }
 0x181   :  { %v634_v60 = vsel %vm631_vm3, %v633_v36, %v629_v41  ;;  %v648_v61 = vsel %vm647_vm2, %v4539_v21, %v644_v37  ;;  %v662_v62 = vsub.f32 1.0, %v661_v38  ;;  %v5784_v21 = vld [vmem:[%s9217_s5 + $0x1b0] sm:$0xff]  ;;  %v5862_v36 = vld [vmem:[%s9217_s5 + $0x158] sm:$0xff]  ;;  %v5868_v37 = vld [vmem:[%s9217_s5 + $0x120] sm:$0xff] }
 0x182   :  { %v653_v63 = vsel %vm650_vm4, %v652_v40, %v648_v61  ;;  %v679_v0 = vmul.f32 %v4543_v42, %v634_v60  ;;  %v5856_v35 = vld [vmem:[%s9217_s5 + $0x150] sm:$0xff]  ;;  %v5874_v38 = vld [vmem:[%s9217_s5 + $0x128] sm:$0xff]  ;;  %v5886_v40 = vld [vmem:[%s9217_s5 + $0x138] sm:$0xff] }
 0x183   :  { %v678_v1 = vmul.f32 %v676_v39, %v653_v63  ;;  %v663_v2 = vmul.f32 %v4541_v34, %v662_v62  ;;  %v5880_v39 = vld [vmem:[%s9217_s5 + $0x130] sm:$0xff]  ;;  %v5892_v41 = vld [vmem:[%s9217_s5 + $0x100] sm:$0xff]  ;;  %v5898_v42 = vld [vmem:[%s9217_s5 + $0x108] sm:$0xff] }
 0x184   :  { %v5904_v60 = vld [vmem:[%s9217_s5 + $0x110] sm:$0xff]  ;;  %v5910_v61 = vld [vmem:[%s9217_s5 + $0x118] sm:$0xff]  ;;  %v5916_v62 = vld [vmem:[%s9217_s5 + $0xe0] sm:$0xff] }
 0x185   :  { %v5712_v3 = vadd.f32 %v679_v0, %v678_v1  ;;  %v664_v4 = vadd.f32 %v4541_v34, %v663_v2  ;;  %v5922_v63 = vld [vmem:[%s9217_s5 + $0xe8] sm:$0xff]  ;;  %v5928_v0 = vld [vmem:[%s9217_s5 + $0xf0] sm:$0xff]  ;;  %v5934_v1 = vld [vmem:[%s9217_s5 + $0xf8] sm:$0xff] }
 0x186   :  { %v5940_v2 = vld [vmem:[%s9217_s5 + $0xc0] sm:$0xff] }
 0x187   :  { %4544 = vtanh.f32 %v5712_v3  ;;  %v668_v6 = vsel %vm667_vm7, %v4541_v34, %v664_v4  ;;  %v5850_v34 = vld [vmem:[%s9217_s5 + $0x148] sm:$0xff] }
 0x188   :  { %v673_v9 = vsel %vm670_vm8, %v672_v7, %v668_v6  ;;  %v5946_v4 = vld [vmem:[%s9217_s5 + $0xc8] sm:$0xff]  ;;  %v5964_v6 = vld [vmem:[%s9217_s5 + $0xa0] sm:$0xff] }
 0x189   :  { %9522 = vst [vmem:[#allocation12_spill] sm:$0xff] %v5964_v6  ;;  %v5970_v7 = vld [vmem:[%s9217_s5 + $0xa8] sm:$0xff] }
 0x18a   :  { %9523 = vst [vmem:[#allocation13_spill] sm:$0xff] %v5970_v7 }
 0x18d   :  { %v4545_v8 = vpop.eup %4544 }
 0x18e   :  { %v682_v10 = vmul.f32 %v4545_v8, %v673_v9  ;;  %v5976_v8 = vld [vmem:[%s9217_s5 + $0xb0] sm:$0xff]  ;;  %v5982_v9 = vld [vmem:[%s9217_s5 + $0xb8] sm:$0xff] }
 0x18f   :  { %9524 = vst [vmem:[#allocation14_spill] sm:$0xff] %v5976_v8 }
 0x190   :  { %v5715_v11 = vrot.slane %v682_v10, 2  ;;  %9525 = vst [vmem:[#allocation15_spill] sm:$0xff] %v5982_v9  ;;  %v5988_v10 = vld [vmem:[%s9217_s5 + $0x80] sm:$0xff] }
 0x191   :  { %9526 = vst [vmem:[#allocation16_spill] sm:$0xff] %v5988_v10 }
 0x192   :  { %9519 = vst [vmem:[#allocation9_spill] sm:$0xff] %v5715_v11  ;;  %706 = vmatmul.f32.vlgmr.msra.gmra.mxu0 %v5715_v11  ;;  %726 = vmatmul.f32.vlgmr.msra.gmra.mxu1 %v5715_v11 }
 0x193   :  { %746 = vmatmul.f32.vlgmr.msra.gmra.mxu2 %v5715_v11  ;;  %766 = vmatmul.f32.vlgmr.msra.gmra.mxu3 %v5715_v11  ;;  %v6000_v11 = vld [vmem:[%s9217_s5 + $0x90] sm:$0xff] }
 0x194   :  { %1028 = vmatpush.msra.mxu0 %v5724_v12  ;;  %1048 = vmatpush.msra.mxu1 %v5730_v14  ;;  %9528 = vst [vmem:[#allocation18_spill] sm:$0xff] %v6000_v11 }
 0x195   :  { %1068 = vmatpush.msra.mxu2 %v5736_v26  ;;  %1088 = vmatpush.msra.mxu3 %v5742_v49 }
 0x196   :  { %1029 = vmatpush.msra.mxu0 %v5748_v16  ;;  %1049 = vmatpush.msra.mxu1 %v5754_v15 }
 0x197   :  { %1069 = vmatpush.msra.mxu2 %v5760_v29  ;;  %1089 = vmatpush.msra.mxu3 %v5766_v30 }
 0x198   :  { %1030 = vmatpush.msra.mxu0 %v5772_v25  ;;  %1050 = vmatpush.msra.mxu1 %v5778_v22 }
 0x199   :  { %1070 = vmatpush.msra.mxu2 %v5784_v21  ;;  %1090 = vmatpush.msra.mxu3 %v5790_v31 }
 0x19a   :  { %1031 = vmatpush.msra.mxu0 %v5796_v24  ;;  %1051 = vmatpush.msra.mxu1 %v5802_v20 }
 0x19b   :  { %1071 = vmatpush.msra.mxu2 %v5808_v32  ;;  %1091 = vmatpush.msra.mxu3 %v5814_v13 }
 0x19c   :  { %1032 = vmatpush.msra.mxu0 %v5820_v19  ;;  %1052 = vmatpush.msra.mxu1 %v5826_v18 }
 0x19d   :  { %1072 = vmatpush.msra.mxu2 %v5832_v28  ;;  %1092 = vmatpush.msra.mxu3 %v5838_v27 }
 0x19e   :  { %1033 = vmatpush.msra.mxu0 %v5844_v33  ;;  %1053 = vmatpush.msra.mxu1 %v5850_v34 }
 0x19f   :  { %1073 = vmatpush.msra.mxu2 %v5856_v35  ;;  %1093 = vmatpush.msra.mxu3 %v5862_v36 }
 0x1a0   :  { %1034 = vmatpush.msra.mxu0 %v5868_v37  ;;  %1054 = vmatpush.msra.mxu1 %v5874_v38 }
 0x1a1   :  { %1074 = vmatpush.msra.mxu2 %v5880_v39  ;;  %1094 = vmatpush.msra.mxu3 %v5886_v40 }
 0x1a2   :  { %1035 = vmatpush.msra.mxu0 %v5892_v41  ;;  %1055 = vmatpush.msra.mxu1 %v5898_v42 }
 0x1a3   :  { %1075 = vmatpush.msra.mxu2 %v5904_v60  ;;  %1095 = vmatpush.msra.mxu3 %v5910_v61 }
 0x1a4   :  { %1036 = vmatpush.msra.mxu0 %v5916_v62  ;;  %1056 = vmatpush.msra.mxu1 %v5922_v63 }
 0x1a5   :  { %1076 = vmatpush.msra.mxu2 %v5928_v0  ;;  %1096 = vmatpush.msra.mxu3 %v5934_v1 }
 0x1a6   :  { %1037 = vmatpush.msra.mxu0 %v5940_v2  ;;  %1057 = vmatpush.msra.mxu1 %v5946_v4 }
 0x1a7   :  { %1077 = vmatpush.msra.mxu2 %v5952_v23  ;;  %1097 = vmatpush.msra.mxu3 %v5958_v5 }
 0x1a8   :  { %1038 = vmatpush.msra.mxu0 %v5964_v6  ;;  %1058 = vmatpush.msra.mxu1 %v5970_v7 }
 0x1a9   :  { %1078 = vmatpush.msra.mxu2 %v5976_v8  ;;  %1098 = vmatpush.msra.mxu3 %v5982_v9  ;;  %v6006_v9 = vld [vmem:[%s9217_s5 + $0x98] sm:$0xff] }
 0x1aa   :  { %1039 = vmatpush.msra.mxu0 %v5988_v10  ;;  %1059 = vmatpush.msra.mxu1 %v5994_v17  ;;  %9529 = vst [vmem:[#allocation19_spill] sm:$0xff] %v6006_v9 }
 0x1ab   :  { %1079 = vmatpush.msra.mxu2 %v6000_v11  ;;  %1099 = vmatpush.msra.mxu3 %v6006_v9 }
 0x1ac   :  { %1040 = vmatpush.msra.mxu0 %v9503_v43  ;;  %1060 = vmatpush.msra.mxu1 %v9504_v44 }
 0x1ad   :  { %1080 = vmatpush.msra.mxu2 %v9505_v45  ;;  %1100 = vmatpush.msra.mxu3 %v9506_v46 }
 0x1ae   :  { %1041 = vmatpush.msra.mxu0 %v9507_v47  ;;  %1061 = vmatpush.msra.mxu1 %v9508_v48  ;;  %v683_v47 = vld [vmem:[#allocation2 + $0x30] sm:$0x30]  ;;  %v684_v48 = vld [vmem:[#allocation2] sm:$0x30] }
 0x1af   :  { %1081 = vmatpush.msra.mxu2 %v9509_v50  ;;  %1101 = vmatpush.msra.mxu3 %v9510_v51 }
 0x1b0   :  { %1042 = vmatpush.msra.mxu0 %v9511_v52  ;;  %1062 = vmatpush.msra.mxu1 %v9512_v53 }
 0x1b1   :  { %1082 = vmatpush.msra.mxu2 %v9513_v54  ;;  %1102 = vmatpush.msra.mxu3 %v9514_v55 }
 0x1b2   :  { %1043 = vmatpush.msra.mxu0 %v9515_v56  ;;  %1063 = vmatpush.msra.mxu1 %v9516_v57  ;;  %v686_v56 = vld [vmem:[#allocation2 + $0x18] sm:$0x30] }
 0x1b3   :  { %1083 = vmatpush.msra.mxu2 %v9517_v58  ;;  %1103 = vmatpush.msra.mxu3 %v9518_v59 }
 0x20f   :  { %v707_v43 = vpop.f32.mrf.mxu0  ;;  %v727_v44 = vpop.f32.mrf.mxu1 }
 0x210   :  { %v774_v45 = vrot.slane %v707_v43, 4  ;;  %v775_v46 = vrot.slane %v727_v44, 4 }
 0x212   :  { %v782_v50 = vadd.f32 %v774_v45, %v683_v47  ;;  %v783_v51 = vadd.f32 %v775_v46, %v684_v48  ;;  %v685_v46 = vld [vmem:[#allocation2 + $0x58] sm:$0x30] }
 0x214   :  { %v4454_v52 = vmul.f32 -1.442695, %v782_v50  ;;  %v4455_v53 = vmul.f32 -1.442695, %v783_v51 }
 0x216   :  { %4546 = vpow2.f32 %v4454_v52  ;;  %v767_v54 = vpop.f32.mrf.mxu3  ;;  %v747_v43 = vpop.f32.mrf.mxu2 }
 0x217   :  { %4548 = vpow2.f32 %v4455_v53  ;;  %v777_v55 = vrot.slane %v767_v54, 4  ;;  %v776_v44 = vrot.slane %v747_v43, 4 }
 0x219   :  { %v785_v57 = vadd.f32 %v777_v55, %v686_v56  ;;  %v784_v50 = vadd.f32 %v776_v44, %v685_v46 }
 0x21b   :  { %v4456_v9 = vmul.f32 -1.442695, %v785_v57 }
 0x21c   :  { %v4547_v58 = vpop.eup %4546 }
 0x21d   :  { %v4549_v11 = vpop.eup %4548  ;;  %v789_v59 = vadd.f32 1.0, %v4547_v58  ;;  %4550 = vpow2.f32 %v4456_v9 }
 0x21e   :  { %v808_v17 = vadd.f32 1.0, %v4549_v11 }
 0x21f   :  { %4552 = vrcp.f32 %v789_v59  ;;  %v801_v56 = vand.u32 2147483648, %v789_v59  ;;  %v799_v11 = vand.u32 2147483647, %v789_v59  ;;  %vm795_vm11 = vweird.f32 %v789_v59 }
 0x220   :  { %4554 = vrcp.f32 %v808_v17  ;;  %v820_v57 = vand.u32 2147483648, %v808_v17  ;;  %v818_v43 = vand.u32 2147483647, %v808_v17  ;;  %vm814_vm12 = vweird.f32 %v808_v17 }
 0x221   :  { %v802_v44 = vor.u32 1.1754944e-38, %v801_v56  ;;  %vm800_vm15 = vcmp.eq.f32.partialorder %v799_v11, 8.507059e+37 }
 0x222   :  { %vm819_vm0 = vcmp.eq.f32.partialorder %v818_v43, 8.507059e+37  ;;  %v9536_v43 = vld [vmem:[#allocation15_spill] sm:$0xff] }
 0x223   :  { %v4551_v45 = vpop.eup %4550 }
 0x224   :  { %v828_v47 = vadd.f32 1.0, %v4551_v45 }
 0x225   :  { %v4553_v48 = vpop.eup %4552 }
 0x226   :  { %v4555_v51 = vpop.eup %4554  ;;  %v791_v52 = vmul.f32 %v4553_v48, %v789_v59  ;;  %4556 = vrcp.f32 %v828_v47  ;;  %vm796_vm9 = vweird.f32 %v4553_v48  ;;  %vm834_vm2 = vweird.f32 %v828_v47 }
 0x227   :  { %v810_v53 = vmul.f32 %v4555_v51, %v808_v17  ;;  %4558 = vtanh.f32 %v784_v50  ;;  %vm815_vm10 = vweird.f32 %v4555_v51  ;;  %vm797_vm13 = vmor %vm795_vm11, %vm796_vm9 }
 0x228   :  { %v792_v54 = vsub.f32 1.0, %v791_v52  ;;  %v845_v52 = vrot.slane %v5712_v3, 6  ;;  %vm816_vm14 = vmor %vm814_vm12, %vm815_vm10  ;;  %v840_v3 = vand.u32 2147483648, %v828_v47 }
 0x229   :  { %v811_v55 = vsub.f32 1.0, %v810_v53  ;;  %v821_v53 = vor.u32 1.1754944e-38, %v820_v57  ;;  %v838_v57 = vand.u32 2147483647, %v828_v47 }
 0x22a   :  { %v793_v9 = vmul.f32 %v4553_v48, %v792_v54 }
 0x22b   :  { %v812_v58 = vmul.f32 %v4555_v51, %v811_v55  ;;  %vm839_vm4 = vcmp.eq.f32.partialorder %v838_v57, 8.507059e+37  ;;  %v6134_v57 = vld [vmem:[%s9217_s5 + $0x20] sm:$0xff] }
 0x22c   :  { %v4557_v10 = vpop.eup %4556  ;;  %v794_v8 = vadd.f32 %v4553_v48, %v793_v9  ;;  %9549 = vst [vmem:[#allocation29_spill] sm:$0xff] %v6134_v57 }
 0x22d   :  { %v813_v45 = vadd.f32 %v4555_v51, %v812_v58  ;;  %v830_v46 = vmul.f32 %v4557_v10, %v828_v47  ;;  %v4559_v54 = vpop.eup %4558  ;;  %vm835_vm1 = vweird.f32 %v4557_v10  ;;  %v9535_v47 = vld [vmem:[#allocation14_spill] sm:$0xff] }
 0x22e   :  { %v798_v50 = vsel %vm797_vm13, %v4553_v48, %v794_v8  ;;  %vm836_vm3 = vmor %vm834_vm2, %vm835_vm1  ;;  %v841_v48 = vor.u32 1.1754944e-38, %v840_v3  ;;  %v6128_v3 = vld [vmem:[%s9217_s5 + $0x58] sm:$0xff] }
 0x22f   :  { %v803_v7 = vsel %vm800_vm15, %v802_v44, %v798_v50  ;;  %v817_v6 = vsel %vm816_vm14, %v4555_v51, %v813_v45  ;;  %v831_v55 = vsub.f32 1.0, %v830_v46  ;;  %v9537_v44 = vld [vmem:[#allocation16_spill] sm:$0xff]  ;;  %v9538_v45 = vld [vmem:[#allocation17_spill] sm:$0xff]  ;;  %v9539_v46 = vld [vmem:[#allocation18_spill] sm:$0xff]  ;;  %9548 = vst [vmem:[#allocation28_spill] sm:$0xff] %v6128_v3 }
 0x230   :  { %v822_v5 = vsel %vm819_vm0, %v821_v53, %v817_v6  ;;  %v848_v23 = vmul.f32 %v4559_v54, %v803_v7  ;;  %v9533_v7 = vld [vmem:[#allocation12_spill] sm:$0xff]  ;;  %v6086_v53 = vld [vmem:[%s9217_s5 + $0x60] sm:$0xff] }
 0x231   :  { %v847_v9 = vmul.f32 %v845_v52, %v822_v5  ;;  %v832_v59 = vmul.f32 %v4557_v10, %v831_v55  ;;  %v9532_v5 = vld [vmem:[#allocation11_spill] sm:$0xff]  ;;  %9541 = vst [vmem:[#allocation21_spill] sm:$0xff] %v6086_v53  ;;  %v6098_v54 = vld [vmem:[%s9217_s5 + $0x70] sm:$0xff]  ;;  %v6104_v55 = vld [vmem:[%s9217_s5 + $0x78] sm:$0xff] }
 0x232   :  { %v9540_v52 = vld [vmem:[#allocation19_spill] sm:$0xff]  ;;  %9543 = vst [vmem:[#allocation23_spill] sm:$0xff] %v6098_v54 }
 0x233   :  { %v6026_v17 = vadd.f32 %v848_v23, %v847_v9  ;;  %v833_v56 = vadd.f32 %v4557_v10, %v832_v59  ;;  %v9531_v23 = vld [vmem:[#allocation10_spill] sm:$0xff]  ;;  %v6092_v50 = vld [vmem:[%s9217_s5 + $0x68] sm:$0xff]  ;;  %9544 = vst [vmem:[#allocation24_spill] sm:$0xff] %v6104_v55 }
 0x234   :  { %9542 = vst [vmem:[#allocation22_spill] sm:$0xff] %v6092_v50  ;;  %v6110_v9 = vld [vmem:[%s9217_s5 + $0x40] sm:$0xff]  ;;  %v6116_v59 = vld [vmem:[%s9217_s5 + $0x48] sm:$0xff] }
 0x235   :  { %4560 = vtanh.f32 %v6026_v17  ;;  %v837_v8 = vsel %vm836_vm3, %v4557_v10, %v833_v56  ;;  %v9534_v10 = vld [vmem:[#allocation13_spill] sm:$0xff]  ;;  %9545 = vst [vmem:[#allocation25_spill] sm:$0xff] %v6110_v9 }
 0x236   :  { %v842_v11 = vsel %vm839_vm4, %v841_v48, %v837_v8  ;;  %9546 = vst [vmem:[#allocation26_spill] sm:$0xff] %v6116_v59  ;;  %v6122_v56 = vld [vmem:[%s9217_s5 + $0x50] sm:$0xff]  ;;  %v6140_v8 = vld [vmem:[%s9217_s5 + $0x28] sm:$0xff] }
 0x237   :  { %9547 = vst [vmem:[#allocation27_spill] sm:$0xff] %v6122_v56  ;;  %v6146_v48 = vld [vmem:[%s9217_s5 + $0x30] sm:$0xff] }
 0x238   :  { %9550 = vst [vmem:[#allocation30_spill] sm:$0xff] %v6140_v8 }
 0x239   :  { %9551 = vst [vmem:[#allocation31_spill] sm:$0xff] %v6146_v48 }
 0x23b   :  { %v4561_v51 = vpop.eup %4560 }
 0x23c   :  { %v851_v58 = vmul.f32 %v4561_v51, %v842_v11  ;;  %v6152_v51 = vld [vmem:[%s9217_s5 + $0x38] sm:$0xff]  ;;  %v6158_v11 = vld [vmem:[%s9217_s5] sm:$0xff] }
 0x23d   :  { %9552 = vst [vmem:[#allocation32_spill] sm:$0xff] %v6152_v51 }
 0x23e   :  { %v6029_v6 = vrot.slane %v851_v58, 4  ;;  %9553 = vst [vmem:[#allocation33_spill] sm:$0xff] %v6158_v11  ;;  %v6164_v58 = vld [vmem:[%s9217_s5 + $0x8] sm:$0xff] }
 0x23f   :  { %9554 = vst [vmem:[#allocation34_spill] sm:$0xff] %v6164_v58 }
 0x240   :  { %9530 = vst [vmem:[#allocation20_spill] sm:$0xff] %v6029_v6  ;;  %875 = vmatmul.f32.vlgmr.msrb.gmra.mxu0 %v6029_v6  ;;  %895 = vmatmul.f32.vlgmr.msrb.gmra.mxu1 %v6029_v6 }
 0x241   :  { %915 = vmatmul.f32.vlgmr.msrb.gmra.mxu2 %v6029_v6  ;;  %935 = vmatmul.f32.vlgmr.msrb.gmra.mxu3 %v6029_v6  ;;  %v6170_v6 = vld [vmem:[%s9217_s5 + $0x10] sm:$0xff] }
 0x242   :  { %1182 = vmatpush.msrb.mxu0 %v5724_v12  ;;  %1202 = vmatpush.msrb.mxu1 %v5730_v14  ;;  %9555 = vst [vmem:[#allocation36_spill] sm:$0xff] %v6170_v6 }
 0x243   :  { %1222 = vmatpush.msrb.mxu2 %v5736_v26  ;;  %1242 = vmatpush.msrb.mxu3 %v5742_v49 }
 0x244   :  { %1183 = vmatpush.msrb.mxu0 %v5748_v16  ;;  %1203 = vmatpush.msrb.mxu1 %v5754_v15 }
 0x245   :  { %1223 = vmatpush.msrb.mxu2 %v5760_v29  ;;  %1243 = vmatpush.msrb.mxu3 %v5766_v30 }
 0x246   :  { %1184 = vmatpush.msrb.mxu0 %v5772_v25  ;;  %1204 = vmatpush.msrb.mxu1 %v5778_v22 }
 0x247   :  { %1224 = vmatpush.msrb.mxu2 %v5784_v21  ;;  %1244 = vmatpush.msrb.mxu3 %v5790_v31 }
 0x248   :  { %1185 = vmatpush.msrb.mxu0 %v5796_v24  ;;  %1205 = vmatpush.msrb.mxu1 %v5802_v20 }
 0x249   :  { %1225 = vmatpush.msrb.mxu2 %v5808_v32  ;;  %1245 = vmatpush.msrb.mxu3 %v5814_v13 }
 0x24a   :  { %1186 = vmatpush.msrb.mxu0 %v5820_v19  ;;  %1206 = vmatpush.msrb.mxu1 %v5826_v18 }
 0x24b   :  { %1226 = vmatpush.msrb.mxu2 %v5832_v28  ;;  %1246 = vmatpush.msrb.mxu3 %v5838_v27 }
 0x24c   :  { %1187 = vmatpush.msrb.mxu0 %v5844_v33  ;;  %1207 = vmatpush.msrb.mxu1 %v5850_v34 }
 0x24d   :  { %1227 = vmatpush.msrb.mxu2 %v5856_v35  ;;  %1247 = vmatpush.msrb.mxu3 %v5862_v36 }
 0x24e   :  { %1188 = vmatpush.msrb.mxu0 %v5868_v37  ;;  %1208 = vmatpush.msrb.mxu1 %v5874_v38 }
 0x24f   :  { %1228 = vmatpush.msrb.mxu2 %v5880_v39  ;;  %1248 = vmatpush.msrb.mxu3 %v5886_v40 }
 0x250   :  { %1189 = vmatpush.msrb.mxu0 %v5892_v41  ;;  %1209 = vmatpush.msrb.mxu1 %v5898_v42 }
 0x251   :  { %1229 = vmatpush.msrb.mxu2 %v5904_v60  ;;  %1249 = vmatpush.msrb.mxu3 %v5910_v61 }
 0x252   :  { %1190 = vmatpush.msrb.mxu0 %v5916_v62  ;;  %1210 = vmatpush.msrb.mxu1 %v5922_v63 }
 0x253   :  { %1230 = vmatpush.msrb.mxu2 %v5928_v0  ;;  %1250 = vmatpush.msrb.mxu3 %v5934_v1 }
 0x254   :  { %1191 = vmatpush.msrb.mxu0 %v5940_v2  ;;  %1211 = vmatpush.msrb.mxu1 %v5946_v4 }
 0x255   :  { %1231 = vmatpush.msrb.mxu2 %v9531_v23  ;;  %1251 = vmatpush.msrb.mxu3 %v9532_v5 }
 0x256   :  { %1192 = vmatpush.msrb.mxu0 %v9533_v7  ;;  %1212 = vmatpush.msrb.mxu1 %v9534_v10 }
 0x257   :  { %1232 = vmatpush.msrb.mxu2 %v9535_v47  ;;  %1252 = vmatpush.msrb.mxu3 %v9536_v43 }
 0x258   :  { %1193 = vmatpush.msrb.mxu0 %v9537_v44  ;;  %1213 = vmatpush.msrb.mxu1 %v9538_v45 }
 0x259   :  { %1233 = vmatpush.msrb.mxu2 %v9539_v46  ;;  %1253 = vmatpush.msrb.mxu3 %v9540_v52 }
 0x25a   :  { %1194 = vmatpush.msrb.mxu0 %v6086_v53  ;;  %1214 = vmatpush.msrb.mxu1 %v6092_v50  ;;  %v855_v50 = vld [vmem:[#allocation2 + $0x18] sm:$0xc0] }
 0x25b   :  { %1234 = vmatpush.msrb.mxu2 %v6098_v54  ;;  %1254 = vmatpush.msrb.mxu3 %v6104_v55 }
 0x25c   :  { %1195 = vmatpush.msrb.mxu0 %v6110_v9  ;;  %1215 = vmatpush.msrb.mxu1 %v6116_v59 }
 0x25d   :  { %1235 = vmatpush.msrb.mxu2 %v6122_v56  ;;  %1255 = vmatpush.msrb.mxu3 %v6128_v3  ;;  %v852_v3 = vld [vmem:[#allocation2 + $0x30] sm:$0xc0] }
 0x25e   :  { %1196 = vmatpush.msrb.mxu0 %v6134_v57  ;;  %1216 = vmatpush.msrb.mxu1 %v6140_v8 }
 0x25f   :  { %1236 = vmatpush.msrb.mxu2 %v6146_v48  ;;  %1256 = vmatpush.msrb.mxu3 %v6152_v51  ;;  %v6176_v51 = vld [vmem:[%s9217_s5 + $0x18] sm:$0xff] }
 0x260   :  { %1197 = vmatpush.msrb.mxu0 %v6158_v11  ;;  %1217 = vmatpush.msrb.mxu1 %v6164_v58  ;;  %9556 = vst [vmem:[#allocation37_spill] sm:$0xff] %v6176_v51  ;;  %v853_v58 = vld [vmem:[#allocation2] sm:$0xc0] }
 0x261   :  { %1237 = vmatpush.msrb.mxu2 %v6170_v6  ;;  %1257 = vmatpush.msrb.mxu3 %v6176_v51 }
 0x2bd   :  { %v876_v11 = vpop.f32.mrf.mxu0  ;;  %v896_v48 = vpop.f32.mrf.mxu1 }
 0x2be   :  { %v943_v8 = vrot.slane %v876_v11, 2  ;;  %v944_v57 = vrot.slane %v896_v48, 2 }
 0x2c0   :  { %v951_v56 = vadd.f32 %v943_v8, %v852_v3  ;;  %v952_v59 = vadd.f32 %v944_v57, %v853_v58  ;;  %v854_v57 = vld [vmem:[#allocation2 + $0x58] sm:$0xc0] }
 0x2c2   :  { %v4457_v9 = vmul.f32 -1.442695, %v951_v56  ;;  %v4458_v55 = vmul.f32 -1.442695, %v952_v59 }
 0x2c4   :  { %4562 = vpow2.f32 %v4457_v9  ;;  %v936_v54 = vpop.f32.mrf.mxu3  ;;  %v916_v11 = vpop.f32.mrf.mxu2 }
 0x2c5   :  { %4564 = vpow2.f32 %v4458_v55  ;;  %v946_v6 = vrot.slane %v936_v54, 2  ;;  %v945_v48 = vrot.slane %v916_v11, 2 }
 0x2c7   :  { %v954_v53 = vadd.f32 %v946_v6, %v855_v50  ;;  %v953_v9 = vadd.f32 %v945_v48, %v854_v57 }
 0x2c9   :  { %v4459_v52 = vmul.f32 -1.442695, %v954_v53 }
 0x2ca   :  { %v4563_v46 = vpop.eup %4562 }
 0x2cb   :  { %v4565_v45 = vpop.eup %4564  ;;  %v958_v51 = vadd.f32 1.0, %v4563_v46  ;;  %4566 = vpow2.f32 %v4459_v52 }
 0x2cc   :  { %v977_v44 = vadd.f32 1.0, %v4565_v45 }
 0x2cd   :  { %4568 = vrcp.f32 %v958_v51  ;;  %v970_v50 = vand.u32 2147483648, %v958_v51  ;;  %v968_v45 = vand.u32 2147483647, %v958_v51  ;;  %vm964_vm7 = vweird.f32 %v958_v51 }
 0x2ce   :  { %4570 = vrcp.f32 %v977_v44  ;;  %v989_v46 = vand.u32 2147483648, %v977_v44  ;;  %v987_v11 = vand.u32 2147483647, %v977_v44  ;;  %vm983_vm8 = vweird.f32 %v977_v44 }
 0x2cf   :  { %v971_v48 = vor.u32 1.1754944e-38, %v970_v50  ;;  %vm969_vm11 = vcmp.eq.f32.partialorder %v968_v45, 8.507059e+37 }
 0x2d0   :  { %vm988_vm12 = vcmp.eq.f32.partialorder %v987_v11, 8.507059e+37  ;;  %v9563_v11 = vld [vmem:[#allocation15_spill] sm:$0xff] }
 0x2d1   :  { %v4567_v3 = vpop.eup %4566 }
 0x2d2   :  { %v997_v56 = vadd.f32 1.0, %v4567_v3 }
 0x2d3   :  { %v4569_v59 = vpop.eup %4568 }
 0x2d4   :  { %v4571_v8 = vpop.eup %4570  ;;  %v960_v55 = vmul.f32 %v4569_v59, %v958_v51  ;;  %4572 = vrcp.f32 %v997_v56  ;;  %vm965_vm5 = vweird.f32 %v4569_v59  ;;  %vm1003_vm14 = vweird.f32 %v997_v56 }
 0x2d5   :  { %v979_v54 = vmul.f32 %v4571_v8, %v977_v44  ;;  %4574 = vtanh.f32 %v953_v9  ;;  %vm984_vm6 = vweird.f32 %v4571_v8  ;;  %vm966_vm9 = vmor %vm964_vm7, %vm965_vm5 }
 0x2d6   :  { %v961_v6 = vsub.f32 1.0, %v960_v55  ;;  %v1014_v55 = vrot.slane %v6026_v17, 6  ;;  %vm985_vm10 = vmor %vm983_vm8, %vm984_vm6  ;;  %v1009_v17 = vand.u32 2147483648, %v997_v56 }
 0x2d7   :  { %v980_v53 = vsub.f32 1.0, %v979_v54  ;;  %v990_v54 = vor.u32 1.1754944e-38, %v989_v46  ;;  %v1007_v46 = vand.u32 2147483647, %v997_v56 }
 0x2d8   :  { %v962_v52 = vmul.f32 %v4569_v59, %v961_v6 }
 0x2d9   :  { %v981_v58 = vmul.f32 %v4571_v8, %v980_v53  ;;  %vm1008_vm0 = vcmp.eq.f32.partialorder %v1007_v46, 8.507059e+37  ;;  %v9576_v46 = vld [vmem:[#allocation29_spill] sm:$0xff] }
 0x2da   :  { %v4573_v43 = vpop.eup %4572  ;;  %v963_v47 = vadd.f32 %v4569_v59, %v962_v52 }
 0x2db   :  { %v982_v3 = vadd.f32 %v4571_v8, %v981_v58  ;;  %v999_v57 = vmul.f32 %v4573_v43, %v997_v56  ;;  %v4575_v6 = vpop.eup %4574  ;;  %vm1004_vm13 = vweird.f32 %v4573_v43  ;;  %v9562_v56 = vld [vmem:[#allocation14_spill] sm:$0xff] }
 0x2dc   :  { %v967_v9 = vsel %vm966_vm9, %v4569_v59, %v963_v47  ;;  %vm1005_vm15 = vmor %vm1003_vm14, %vm1004_vm13  ;;  %v1010_v59 = vor.u32 1.1754944e-38, %v1009_v17  ;;  %v9575_v17 = vld [vmem:[#allocation28_spill] sm:$0xff] }
 0x2dd   :  { %v972_v10 = vsel %vm969_vm11, %v971_v48, %v967_v9  ;;  %v986_v7 = vsel %vm985_vm10, %v4571_v8, %v982_v3  ;;  %v1000_v53 = vsub.f32 1.0, %v999_v57  ;;  %v9564_v48 = vld [vmem:[#allocation16_spill] sm:$0xff]  ;;  %v9565_v3 = vld [vmem:[#allocation17_spill] sm:$0xff]  ;;  %v9566_v57 = vld [vmem:[#allocation18_spill] sm:$0xff] }
 0x2de   :  { %v991_v5 = vsel %vm988_vm12, %v990_v54, %v986_v7  ;;  %v1017_v23 = vmul.f32 %v4575_v6, %v972_v10  ;;  %v9560_v10 = vld [vmem:[#allocation12_spill] sm:$0xff]  ;;  %v9568_v54 = vld [vmem:[#allocation21_spill] sm:$0xff]  ;;  %v9569_v9 = vld [vmem:[#allocation22_spill] sm:$0xff] }
 0x2df   :  { %v1016_v52 = vmul.f32 %v1014_v55, %v991_v5  ;;  %v1001_v51 = vmul.f32 %v4573_v43, %v1000_v53  ;;  %v9559_v5 = vld [vmem:[#allocation11_spill] sm:$0xff]  ;;  %v9571_v53 = vld [vmem:[#allocation24_spill] sm:$0xff] }
 0x2e0   :  { %v9567_v55 = vld [vmem:[#allocation19_spill] sm:$0xff] }
 0x2e1   :  { %v6180_v44 = vadd.f32 %v1017_v23, %v1016_v52  ;;  %v1002_v50 = vadd.f32 %v4573_v43, %v1001_v51  ;;  %v9558_v23 = vld [vmem:[#allocation10_spill] sm:$0xff]  ;;  %v9570_v6 = vld [vmem:[#allocation23_spill] sm:$0xff]  ;;  %v9572_v52 = vld [vmem:[#allocation25_spill] sm:$0xff] }
 0x2e2   :  { %v9573_v51 = vld [vmem:[#allocation26_spill] sm:$0xff] }
 0x2e3   :  { %4576 = vtanh.f32 %v6180_v44  ;;  %v1006_v47 = vsel %vm1005_vm15, %v4573_v43, %v1002_v50  ;;  %v9561_v43 = vld [vmem:[#allocation13_spill] sm:$0xff]  ;;  %v9574_v50 = vld [vmem:[#allocation27_spill] sm:$0xff] }
 0x2e4   :  { %v1011_v45 = vsel %vm1008_vm0, %v1010_v59, %v1006_v47  ;;  %v9577_v47 = vld [vmem:[#allocation30_spill] sm:$0xff]  ;;  %v9578_v59 = vld [vmem:[#allocation31_spill] sm:$0xff] }
 0x2e9   :  { %v4577_v8 = vpop.eup %4576 }
 0x2ea   :  { %v1020_v58 = vmul.f32 %v4577_v8, %v1011_v45  ;;  %v9579_v8 = vld [vmem:[#allocation32_spill] sm:$0xff]  ;;  %v9580_v45 = vld [vmem:[#allocation33_spill] sm:$0xff] }
 0x2ec   :  { %v6183_v7 = vrot.slane %v1020_v58, 6  ;;  %v9581_v58 = vld [vmem:[#allocation34_spill] sm:$0xff] }
 0x2ee   :  { %9557 = vst [vmem:[#allocation38_spill] sm:$0xff] %v6183_v7  ;;  %1044 = vmatmul.f32.vlgmr.msra.gmra.mxu0 %v6183_v7  ;;  %1064 = vmatmul.f32.vlgmr.msra.gmra.mxu1 %v6183_v7 }
 0x2ef   :  { %1084 = vmatmul.f32.vlgmr.msra.gmra.mxu2 %v6183_v7  ;;  %1104 = vmatmul.f32.vlgmr.msra.gmra.mxu3 %v6183_v7  ;;  %v9582_v7 = vld [vmem:[#allocation36_spill] sm:$0xff] }
 0x2f0   :  { %1351 = vmatpush.msra.mxu0 %v5724_v12  ;;  %1371 = vmatpush.msra.mxu1 %v5730_v14 }
 0x2f1   :  { %1391 = vmatpush.msra.mxu2 %v5736_v26  ;;  %1411 = vmatpush.msra.mxu3 %v5742_v49 }
 0x2f2   :  { %1352 = vmatpush.msra.mxu0 %v5748_v16  ;;  %1372 = vmatpush.msra.mxu1 %v5754_v15 }
 0x2f3   :  { %1392 = vmatpush.msra.mxu2 %v5760_v29  ;;  %1412 = vmatpush.msra.mxu3 %v5766_v30 }
 0x2f4   :  { %1353 = vmatpush.msra.mxu0 %v5772_v25  ;;  %1373 = vmatpush.msra.mxu1 %v5778_v22 }
 0x2f5   :  { %1393 = vmatpush.msra.mxu2 %v5784_v21  ;;  %1413 = vmatpush.msra.mxu3 %v5790_v31 }
 0x2f6   :  { %1354 = vmatpush.msra.mxu0 %v5796_v24  ;;  %1374 = vmatpush.msra.mxu1 %v5802_v20 }
 0x2f7   :  { %1394 = vmatpush.msra.mxu2 %v5808_v32  ;;  %1414 = vmatpush.msra.mxu3 %v5814_v13 }
 0x2f8   :  { %1355 = vmatpush.msra.mxu0 %v5820_v19  ;;  %1375 = vmatpush.msra.mxu1 %v5826_v18 }
 0x2f9   :  { %1395 = vmatpush.msra.mxu2 %v5832_v28  ;;  %1415 = vmatpush.msra.mxu3 %v5838_v27 }
 0x2fa   :  { %1356 = vmatpush.msra.mxu0 %v5844_v33  ;;  %1376 = vmatpush.msra.mxu1 %v5850_v34 }
 0x2fb   :  { %1396 = vmatpush.msra.mxu2 %v5856_v35  ;;  %1416 = vmatpush.msra.mxu3 %v5862_v36 }
 0x2fc   :  { %1357 = vmatpush.msra.mxu0 %v5868_v37  ;;  %1377 = vmatpush.msra.mxu1 %v5874_v38 }
 0x2fd   :  { %1397 = vmatpush.msra.mxu2 %v5880_v39  ;;  %1417 = vmatpush.msra.mxu3 %v5886_v40 }
 0x2fe   :  { %1358 = vmatpush.msra.mxu0 %v5892_v41  ;;  %1378 = vmatpush.msra.mxu1 %v5898_v42 }
 0x2ff   :  { %1398 = vmatpush.msra.mxu2 %v5904_v60  ;;  %1418 = vmatpush.msra.mxu3 %v5910_v61 }
 0x300   :  { %1359 = vmatpush.msra.mxu0 %v5916_v62  ;;  %1379 = vmatpush.msra.mxu1 %v5922_v63 }
 0x301   :  { %1399 = vmatpush.msra.mxu2 %v5928_v0  ;;  %1419 = vmatpush.msra.mxu3 %v5934_v1 }
 0x302   :  { %1360 = vmatpush.msra.mxu0 %v5940_v2  ;;  %1380 = vmatpush.msra.mxu1 %v5946_v4 }
 0x303   :  { %1400 = vmatpush.msra.mxu2 %v9558_v23  ;;  %1420 = vmatpush.msra.mxu3 %v9559_v5 }
 0x304   :  { %1361 = vmatpush.msra.mxu0 %v9560_v10  ;;  %1381 = vmatpush.msra.mxu1 %v9561_v43 }
 0x305   :  { %1401 = vmatpush.msra.mxu2 %v9562_v56  ;;  %1421 = vmatpush.msra.mxu3 %v9563_v11 }
 0x306   :  { %1362 = vmatpush.msra.mxu0 %v9564_v48  ;;  %1382 = vmatpush.msra.mxu1 %v9565_v3  ;;  %v1023_v48 = vld [vmem:[#allocation2 + $0x10] sm:$0x3] }
 0x307   :  { %1402 = vmatpush.msra.mxu2 %v9566_v57  ;;  %1422 = vmatpush.msra.mxu3 %v9567_v55 }
 0x308   :  { %1363 = vmatpush.msra.mxu0 %v9568_v54  ;;  %1383 = vmatpush.msra.mxu1 %v9569_v9 }
 0x309   :  { %1403 = vmatpush.msra.mxu2 %v9570_v6  ;;  %1423 = vmatpush.msra.mxu3 %v9571_v53  ;;  %v1022_v53 = vld [vmem:[#allocation2 + $0x20] sm:$0x3] }
 0x30a   :  { %1364 = vmatpush.msra.mxu0 %v9572_v52  ;;  %1384 = vmatpush.msra.mxu1 %v9573_v51  ;;  %v9583_v52 = vld [vmem:[#allocation37_spill] sm:$0xff]  ;;  %v1021_v51 = vld [vmem:[#allocation2 + $0x40] sm:$0x3] }
 0x30b   :  { %1404 = vmatpush.msra.mxu2 %v9574_v50  ;;  %1424 = vmatpush.msra.mxu3 %v9575_v17 }
 0x30c   :  { %1365 = vmatpush.msra.mxu0 %v9576_v46  ;;  %1385 = vmatpush.msra.mxu1 %v9577_v47 }
 0x30d   :  { %1405 = vmatpush.msra.mxu2 %v9578_v59  ;;  %1425 = vmatpush.msra.mxu3 %v9579_v8  ;;  %v1024_v59 = vld [vmem:[#allocation2 + $0x38] sm:$0x3] }
 0x30e   :  { %1366 = vmatpush.msra.mxu0 %v9580_v45  ;;  %1386 = vmatpush.msra.mxu1 %v9581_v58 }
 0x30f   :  { %1406 = vmatpush.msra.mxu2 %v9582_v7  ;;  %1426 = vmatpush.msra.mxu3 %v9583_v52 }
 0x36b   :  { %v1045_v50 = vpop.f32.mrf.mxu0  ;;  %v1065_v17 = vpop.f32.mrf.mxu1 }
 0x36c   :  { %v1108_v6 = vadd.f32 %v1045_v50, %v1021_v51  ;;  %v1109_v46 = vadd.f32 %v1065_v17, %v1022_v53 }
 0x36e   :  { %v4460_v9 = vmul.f32 -1.442695, %v1108_v6  ;;  %v4461_v47 = vmul.f32 -1.442695, %v1109_v46 }
 0x370   :  { %4578 = vpow2.f32 %v4460_v9 }
 0x371   :  { %4580 = vpow2.f32 %v4461_v47 }
 0x372   :  { %v1105_v8 = vpop.f32.mrf.mxu3  ;;  %v1085_v52 = vpop.f32.mrf.mxu2 }
 0x373   :  { %v1111_v54 = vadd.f32 %v1105_v8, %v1024_v59  ;;  %v1110_v6 = vadd.f32 %v1085_v52, %v1023_v48 }
 0x375   :  { %v4462_v45 = vmul.f32 -1.442695, %v1111_v54 }
 0x376   :  { %v4579_v55 = vpop.eup %4578 }
 0x377   :  { %v4581_v58 = vpop.eup %4580  ;;  %v1115_v57 = vadd.f32 1.0, %v4579_v55  ;;  %4582 = vpow2.f32 %v4462_v45 }
 0x378   :  { %v1134_v7 = vadd.f32 1.0, %v4581_v58 }
 0x379   :  { %4584 = vrcp.f32 %v1115_v57  ;;  %v1127_v54 = vand.u32 2147483648, %v1115_v57  ;;  %v1125_v8 = vand.u32 2147483647, %v1115_v57  ;;  %vm1121_vm3 = vweird.f32 %v1115_v57 }
 0x37a   :  { %4586 = vrcp.f32 %v1134_v7  ;;  %v1146_v59 = vand.u32 2147483648, %v1134_v7  ;;  %v1144_v58 = vand.u32 2147483647, %v1134_v7  ;;  %vm1140_vm4 = vweird.f32 %v1134_v7 }
 0x37b   :  { %v1128_v48 = vor.u32 1.1754944e-38, %v1127_v54  ;;  %vm1126_vm7 = vcmp.eq.f32.partialorder %v1125_v8, 8.507059e+37 }
 0x37c   :  { %vm1145_vm8 = vcmp.eq.f32.partialorder %v1144_v58, 8.507059e+37 }
 0x37d   :  { %v4583_v3 = vpop.eup %4582 }
 0x37e   :  { %v1154_v51 = vadd.f32 1.0, %v4583_v3 }
 0x37f   :  { %v4585_v53 = vpop.eup %4584 }
 0x380   :  { %v4587_v50 = vpop.eup %4586  ;;  %v1117_v9 = vmul.f32 %v4585_v53, %v1115_v57  ;;  %4588 = vrcp.f32 %v1154_v51  ;;  %vm1122_vm1 = vweird.f32 %v4585_v53  ;;  %vm1160_vm10 = vweird.f32 %v1154_v51 }
 0x381   :  { %v1136_v17 = vmul.f32 %v4587_v50, %v1134_v7  ;;  %4590 = vtanh.f32 %v1110_v6  ;;  %vm1141_vm2 = vweird.f32 %v4587_v50  ;;  %vm1123_vm5 = vmor %vm1121_vm3, %vm1122_vm1  ;;  %v1171_v6 = vrot.slane %v6180_v44, 6 }
 0x382   :  { %v1118_v46 = vsub.f32 1.0, %v1117_v9  ;;  %vm1142_vm6 = vmor %vm1140_vm4, %vm1141_vm2  ;;  %v1147_v9 = vor.u32 1.1754944e-38, %v1146_v59  ;;  %v1166_v59 = vand.u32 2147483648, %v1154_v51 }
 0x383   :  { %v1137_v47 = vsub.f32 1.0, %v1136_v17 }
 0x384   :  { %v1119_v55 = vmul.f32 %v4585_v53, %v1118_v46 }
 0x385   :  { %v1138_v45 = vmul.f32 %v4587_v50, %v1137_v47 }
 0x386   :  { %v4589_v11 = vpop.eup %4588  ;;  %v1120_v56 = vadd.f32 %v4585_v53, %v1119_v55 }
 0x387   :  { %v1139_v3 = vadd.f32 %v4587_v50, %v1138_v45  ;;  %v1156_v52 = vmul.f32 %v4589_v11, %v1154_v51  ;;  %v4591_v46 = vpop.eup %4590  ;;  %vm1161_vm9 = vweird.f32 %v4589_v11 }
 0x388   :  { %v1124_v17 = vsel %vm1123_vm5, %v4585_v53, %v1120_v56  ;;  %v1164_v56 = vand.u32 2147483647, %v1154_v51  ;;  %vm1162_vm11 = vmor %vm1160_vm10, %vm1161_vm9  ;;  %v1167_v53 = vor.u32 1.1754944e-38, %v1166_v59 }
 0x389   :  { %v1129_v43 = vsel %vm1126_vm7, %v1128_v48, %v1124_v17  ;;  %v1143_v10 = vsel %vm1142_vm6, %v4587_v50, %v1139_v3  ;;  %v1157_v47 = vsub.f32 1.0, %v1156_v52 }
 0x38a   :  { %v1148_v5 = vsel %vm1145_vm8, %v1147_v9, %v1143_v10  ;;  %v1174_v23 = vmul.f32 %v4591_v46, %v1129_v43  ;;  %vm1165_vm12 = vcmp.eq.f32.partialorder %v1164_v56, 8.507059e+37  ;;  %v1180_v9 = vld [vmem:[#allocation2 + $0x10] sm:$0xc] }
 0x38b   :  { %v1173_v55 = vmul.f32 %v1171_v6, %v1148_v5  ;;  %v1158_v57 = vmul.f32 %v4589_v11, %v1157_v47 }
 0x38d   :  { %v6254_v7 = vadd.f32 %v1174_v23, %v1173_v55  ;;  %v1159_v54 = vadd.f32 %v4589_v11, %v1158_v57  ;;  %v1181_v23 = vld [vmem:[#allocation2 + $0x38] sm:$0xc] }
 0x38f   :  { %4592 = vtanh.f32 %v6254_v7  ;;  %v1163_v44 = vsel %vm1162_vm11, %v4589_v11, %v1159_v54 }
 0x390   :  { %v1168_v8 = vsel %vm1165_vm12, %v1167_v53, %v1163_v44 }
 0x395   :  { %v4593_v50 = vpop.eup %4592 }
 0x396   :  { %v6257_v45 = vmul.f32 %v4593_v50, %v1168_v8 }
 0x398   :  { %9584 = vst [vmem:[#allocation39_spill] sm:$0xff] %v6257_v45  ;;  %1198 = vmatmul.f32.vlgmr.msrb.gmra.mxu0 %v6257_v45  ;;  %1218 = vmatmul.f32.vlgmr.msrb.gmra.mxu1 %v6257_v45 }
 0x399   :  { %1238 = vmatmul.f32.vlgmr.msrb.gmra.mxu2 %v6257_v45  ;;  %1258 = vmatmul.f32.vlgmr.msrb.gmra.mxu3 %v6257_v45  ;;  %v6678_v45 = vld [vmem:[%s9218_s6 + $0x20] sm:$0xff] }
 0x39a   :  { %1520 = vmatpush.msrb.mxu0 %v5724_v12  ;;  %1540 = vmatpush.msrb.mxu1 %v5730_v14  ;;  %v9585_v12 = vld [vmem:[#allocation10_spill] sm:$0xff]  ;;  %v9586_v14 = vld [vmem:[#allocation11_spill] sm:$0xff] }
 0x39b   :  { %1560 = vmatpush.msrb.mxu2 %v5736_v26  ;;  %1580 = vmatpush.msrb.mxu3 %v5742_v49  ;;  %v9587_v26 = vld [vmem:[#allocation12_spill] sm:$0xff]  ;;  %v9588_v49 = vld [vmem:[#allocation13_spill] sm:$0xff] }
 0x39c   :  { %1521 = vmatpush.msrb.mxu0 %v5748_v16  ;;  %1541 = vmatpush.msrb.mxu1 %v5754_v15  ;;  %v9589_v16 = vld [vmem:[#allocation14_spill] sm:$0xff]  ;;  %v9590_v15 = vld [vmem:[#allocation15_spill] sm:$0xff] }
 0x39d   :  { %1561 = vmatpush.msrb.mxu2 %v5760_v29  ;;  %1581 = vmatpush.msrb.mxu3 %v5766_v30  ;;  %v9591_v29 = vld [vmem:[#allocation16_spill] sm:$0xff]  ;;  %v9592_v30 = vld [vmem:[#allocation17_spill] sm:$0xff] }
 0x39e   :  { %1522 = vmatpush.msrb.mxu0 %v5772_v25  ;;  %1542 = vmatpush.msrb.mxu1 %v5778_v22  ;;  %v9593_v25 = vld [vmem:[#allocation18_spill] sm:$0xff]  ;;  %v9594_v22 = vld [vmem:[#allocation19_spill] sm:$0xff] }
 0x39f   :  { %1562 = vmatpush.msrb.mxu2 %v5784_v21  ;;  %1582 = vmatpush.msrb.mxu3 %v5790_v31  ;;  %v9595_v21 = vld [vmem:[#allocation21_spill] sm:$0xff]  ;;  %v9596_v31 = vld [vmem:[#allocation22_spill] sm:$0xff] }
 0x3a0   :  { %1523 = vmatpush.msrb.mxu0 %v5796_v24  ;;  %1543 = vmatpush.msrb.mxu1 %v5802_v20  ;;  %v9597_v24 = vld [vmem:[#allocation23_spill] sm:$0xff]  ;;  %v9598_v20 = vld [vmem:[#allocation24_spill] sm:$0xff] }
 0x3a1   :  { %1563 = vmatpush.msrb.mxu2 %v5808_v32  ;;  %1583 = vmatpush.msrb.mxu3 %v5814_v13  ;;  %v9599_v32 = vld [vmem:[#allocation25_spill] sm:$0xff]  ;;  %v9600_v13 = vld [vmem:[#allocation26_spill] sm:$0xff] }
 0x3a2   :  { %1524 = vmatpush.msrb.mxu0 %v5820_v19  ;;  %1544 = vmatpush.msrb.mxu1 %v5826_v18  ;;  %v9601_v19 = vld [vmem:[#allocation27_spill] sm:$0xff]  ;;  %v9602_v18 = vld [vmem:[#allocation28_spill] sm:$0xff] }
 0x3a3   :  { %1564 = vmatpush.msrb.mxu2 %v5832_v28  ;;  %1584 = vmatpush.msrb.mxu3 %v5838_v27  ;;  %v9603_v28 = vld [vmem:[#allocation29_spill] sm:$0xff]  ;;  %v9604_v27 = vld [vmem:[#allocation30_spill] sm:$0xff] }
 0x3a4   :  { %1525 = vmatpush.msrb.mxu0 %v5844_v33  ;;  %1545 = vmatpush.msrb.mxu1 %v5850_v34  ;;  %v9605_v33 = vld [vmem:[#allocation31_spill] sm:$0xff]  ;;  %v9606_v34 = vld [vmem:[#allocation32_spill] sm:$0xff] }
 0x3a5   :  { %1565 = vmatpush.msrb.mxu2 %v5856_v35  ;;  %1585 = vmatpush.msrb.mxu3 %v5862_v36  ;;  %v9607_v35 = vld [vmem:[#allocation33_spill] sm:$0xff]  ;;  %v9608_v36 = vld [vmem:[#allocation34_spill] sm:$0xff] }
 0x3a6   :  { %1526 = vmatpush.msrb.mxu0 %v5868_v37  ;;  %1546 = vmatpush.msrb.mxu1 %v5874_v38  ;;  %v9609_v37 = vld [vmem:[#allocation36_spill] sm:$0xff]  ;;  %v9610_v38 = vld [vmem:[#allocation37_spill] sm:$0xff] }
 0x3a7   :  { %1566 = vmatpush.msrb.mxu2 %v5880_v39  ;;  %1586 = vmatpush.msrb.mxu3 %v5886_v40 }
 0x3a8   :  { %1527 = vmatpush.msrb.mxu0 %v5892_v41  ;;  %1547 = vmatpush.msrb.mxu1 %v5898_v42 }
 0x3a9   :  { %1567 = vmatpush.msrb.mxu2 %v5904_v60  ;;  %1587 = vmatpush.msrb.mxu3 %v5910_v61  ;;  %v1178_v60 = vld [vmem:[#allocation2 + $0x40] sm:$0xc] }
 0x3aa   :  { %1528 = vmatpush.msrb.mxu0 %v5916_v62  ;;  %1548 = vmatpush.msrb.mxu1 %v5922_v63  ;;  %v1179_v61 = vld [vmem:[#allocation2 + $0x20] sm:$0xc] }
 0x3ab   :  { %1568 = vmatpush.msrb.mxu2 %v5928_v0  ;;  %1588 = vmatpush.msrb.mxu3 %v5934_v1 }
 0x3ac   :  { %1529 = vmatpush.msrb.mxu0 %v5940_v2  ;;  %1549 = vmatpush.msrb.mxu1 %v5946_v4 }
 0x3ad   :  { %1569 = vmatpush.msrb.mxu2 %v9585_v12  ;;  %1589 = vmatpush.msrb.mxu3 %v9586_v14 }
 0x3ae   :  { %1530 = vmatpush.msrb.mxu0 %v9587_v26  ;;  %1550 = vmatpush.msrb.mxu1 %v9588_v49 }
 0x3af   :  { %1570 = vmatpush.msrb.mxu2 %v9589_v16  ;;  %1590 = vmatpush.msrb.mxu3 %v9590_v15 }
 0x3b0   :  { %1531 = vmatpush.msrb.mxu0 %v9591_v29  ;;  %1551 = vmatpush.msrb.mxu1 %v9592_v30  ;;  %v1337_v29 = vrot.slane %v6254_v7, 6 }
 0x3b1   :  { %1571 = vmatpush.msrb.mxu2 %v9593_v25  ;;  %1591 = vmatpush.msrb.mxu3 %v9594_v22 }
 0x3b2   :  { %1532 = vmatpush.msrb.mxu0 %v9595_v21  ;;  %1552 = vmatpush.msrb.mxu1 %v9596_v31 }
 0x3b3   :  { %1572 = vmatpush.msrb.mxu2 %v9597_v24  ;;  %1592 = vmatpush.msrb.mxu3 %v9598_v20 }
 0x3b4   :  { %1533 = vmatpush.msrb.mxu0 %v9599_v32  ;;  %1553 = vmatpush.msrb.mxu1 %v9600_v13 }
 0x3b5   :  { %1573 = vmatpush.msrb.mxu2 %v9601_v19  ;;  %1593 = vmatpush.msrb.mxu3 %v9602_v18 }
 0x3b6   :  { %1534 = vmatpush.msrb.mxu0 %v9603_v28  ;;  %1554 = vmatpush.msrb.mxu1 %v9604_v27 }
 0x3b7   :  { %1574 = vmatpush.msrb.mxu2 %v9605_v33  ;;  %1594 = vmatpush.msrb.mxu3 %v9606_v34 }
 0x3b8   :  { %1535 = vmatpush.msrb.mxu0 %v9607_v35  ;;  %1555 = vmatpush.msrb.mxu1 %v9608_v36 }
 0x3b9   :  { %1575 = vmatpush.msrb.mxu2 %v9609_v37  ;;  %1595 = vmatpush.msrb.mxu3 %v9610_v38 }
 0x415   :  { %v1199_v39 = vpop.f32.mrf.mxu0  ;;  %v1219_v40 = vpop.f32.mrf.mxu1 }
 0x416   :  { %v1266_v41 = vrot.slane %v1199_v39, 6  ;;  %v1267_v42 = vrot.slane %v1219_v40, 6  ;;  %v6340_v39 = vld [vmem:[%s9218_s6 + $0x1e0] sm:$0xff]  ;;  %v6345_v40 = vld [vmem:[%s9218_s6 + $0x1e8] sm:$0xff] }
 0x418   :  { %v1274_v62 = vadd.f32 %v1266_v41, %v1178_v60  ;;  %v1275_v63 = vadd.f32 %v1267_v42, %v1179_v61  ;;  %v6350_v41 = vld [vmem:[%s9218_s6 + $0x1f0] sm:$0xff]  ;;  %v6357_v42 = vld [vmem:[%s9218_s6 + $0x1f8] sm:$0xff]  ;;  %v6364_v60 = vld [vmem:[%s9218_s6 + $0x1c0] sm:$0xff] }
 0x419   :  { %v6369_v61 = vld [vmem:[%s9218_s6 + $0x1c8] sm:$0xff] }
 0x41a   :  { %v4463_v0 = vmul.f32 -1.442695, %v1274_v62  ;;  %v4464_v1 = vmul.f32 -1.442695, %v1275_v63  ;;  %v6374_v62 = vld [vmem:[%s9218_s6 + $0x1d0] sm:$0xff]  ;;  %v6381_v63 = vld [vmem:[%s9218_s6 + $0x1d8] sm:$0xff] }
 0x41b   :  { %9612 = vst [vmem:[#allocation11_spill] sm:$0xff] %v6374_v62 }
 0x41c   :  { %4594 = vpow2.f32 %v4463_v0  ;;  %v1259_v2 = vpop.f32.mrf.mxu3  ;;  %v1239_v48 = vpop.f32.mrf.mxu2  ;;  %v6388_v0 = vld [vmem:[%s9218_s6 + $0x1a0] sm:$0xff] }
 0x41d   :  { %4596 = vpow2.f32 %v4464_v1  ;;  %v1269_v4 = vrot.slane %v1259_v2, 6  ;;  %v1268_v3 = vrot.slane %v1239_v48, 6  ;;  %v6393_v1 = vld [vmem:[%s9218_s6 + $0x1a8] sm:$0xff]  ;;  %v6398_v2 = vld [vmem:[%s9218_s6 + $0x1b0] sm:$0xff]  ;;  %v1345_v48 = vld [vmem:[#allocation2 + $0x20] sm:$0x30] }
 0x41e   :  { %9613 = vst [vmem:[#allocation12_spill] sm:$0xff] %v6398_v2 }
 0x41f   :  { %v1277_v5 = vadd.f32 %v1269_v4, %v1181_v23  ;;  %v1276_v46 = vadd.f32 %v1268_v3, %v1180_v9  ;;  %v6405_v4 = vld [vmem:[%s9218_s6 + $0x1b8] sm:$0xff]  ;;  %v1344_v23 = vld [vmem:[#allocation2 + $0x40] sm:$0x30] }
 0x420   :  { %v6436_v9 = vld [vmem:[%s9218_s6 + $0x160] sm:$0xff] }
 0x421   :  { %v4465_v10 = vmul.f32 -1.442695, %v1277_v5 }
 0x422   :  { %v4595_v43 = vpop.eup %4594 }
 0x423   :  { %v4597_v11 = vpop.eup %4596  ;;  %v1281_v51 = vadd.f32 1.0, %v4595_v43  ;;  %4598 = vpow2.f32 %v4465_v10  ;;  %v6412_v43 = vld [vmem:[%s9218_s6 + $0x180] sm:$0xff] }
 0x424   :  { %v1300_v58 = vadd.f32 1.0, %v4597_v11  ;;  %v6417_v11 = vld [vmem:[%s9218_s6 + $0x188] sm:$0xff] }
 0x425   :  { %4600 = vrcp.f32 %v1281_v51  ;;  %v1293_v56 = vand.u32 2147483648, %v1281_v51  ;;  %v1291_v50 = vand.u32 2147483647, %v1281_v51  ;;  %vm1287_vm15 = vweird.f32 %v1281_v51 }
 0x426   :  { %4602 = vrcp.f32 %v1300_v58  ;;  %v1312_v44 = vand.u32 2147483648, %v1300_v58  ;;  %v1310_v12 = vand.u32 2147483647, %v1300_v58  ;;  %vm1306_vm0 = vweird.f32 %v1300_v58 }
 0x427   :  { %v1294_v49 = vor.u32 1.1754944e-38, %v1293_v56  ;;  %vm1292_vm3 = vcmp.eq.f32.partialorder %v1291_v50, 8.507059e+37  ;;  %v6484_v50 = vld [vmem:[%s9218_s6 + $0x120] sm:$0xff] }
 0x428   :  { %v1313_v30 = vor.u32 1.1754944e-38, %v1312_v44  ;;  %vm1311_vm4 = vcmp.eq.f32.partialorder %v1310_v12, 8.507059e+37  ;;  %v6494_v12 = vld [vmem:[%s9218_s6 + $0x130] sm:$0xff] }
 0x429   :  { %v4599_v52 = vpop.eup %4598  ;;  %9618 = vst [vmem:[#allocation17_spill] sm:$0xff] %v6494_v12 }
 0x42a   :  { %v1320_v17 = vadd.f32 1.0, %v4599_v52  ;;  %v6429_v52 = vld [vmem:[%s9218_s6 + $0x198] sm:$0xff] }
 0x42b   :  { %v4601_v6 = vpop.eup %4600 }
 0x42c   :  { %v4603_v47 = vpop.eup %4602  ;;  %v1283_v55 = vmul.f32 %v4601_v6, %v1281_v51  ;;  %4604 = vrcp.f32 %v1320_v17  ;;  %vm1288_vm13 = vweird.f32 %v4601_v6  ;;  %v1332_v7 = vand.u32 2147483648, %v1320_v17  ;;  %v6422_v51 = vld [vmem:[%s9218_s6 + $0x190] sm:$0xff] }
 0x42d   :  { %v1302_v57 = vmul.f32 %v4603_v47, %v1300_v58  ;;  %4606 = vtanh.f32 %v1276_v46  ;;  %vm1307_vm14 = vweird.f32 %v4603_v47  ;;  %vm1289_vm1 = vmor %vm1287_vm15, %vm1288_vm13  ;;  %vm1326_vm6 = vweird.f32 %v1320_v17  ;;  %9614 = vst [vmem:[#allocation13_spill] sm:$0xff] %v6422_v51 }
 0x42e   :  { %v1284_v54 = vsub.f32 1.0, %v1283_v55  ;;  %vm1308_vm2 = vmor %vm1306_vm0, %vm1307_vm14  ;;  %v1330_v27 = vand.u32 2147483647, %v1320_v17  ;;  %v1333_v34 = vor.u32 1.1754944e-38, %v1332_v7  ;;  %v6453_v55 = vld [vmem:[%s9218_s6 + $0x178] sm:$0xff] }
 0x42f   :  { %v1303_v59 = vsub.f32 1.0, %v1302_v57  ;;  %v6460_v57 = vld [vmem:[%s9218_s6 + $0x140] sm:$0xff] }
 0x430   :  { %v1285_v53 = vmul.f32 %v4601_v6, %v1284_v54  ;;  %vm1331_vm8 = vcmp.eq.f32.partialorder %v1330_v27, 8.507059e+37  ;;  %v6465_v54 = vld [vmem:[%s9218_s6 + $0x148] sm:$0xff]  ;;  %v6576_v27 = vld [vmem:[%s9218_s6 + $0xa0] sm:$0xff] }
 0x431   :  { %v1304_v8 = vmul.f32 %v4603_v47, %v1303_v59  ;;  %v6470_v59 = vld [vmem:[%s9218_s6 + $0x150] sm:$0xff] }
 0x432   :  { %v4605_v14 = vpop.eup %4604  ;;  %v1286_v26 = vadd.f32 %v4601_v6, %v1285_v53  ;;  %9616 = vst [vmem:[#allocation15_spill] sm:$0xff] %v6470_v59  ;;  %v6477_v53 = vld [vmem:[%s9218_s6 + $0x158] sm:$0xff] }
 0x433   :  { %v1305_v16 = vadd.f32 %v4603_v47, %v1304_v8  ;;  %v1322_v15 = vmul.f32 %v4605_v14, %v1320_v17  ;;  %v4607_v22 = vpop.eup %4606  ;;  %vm1327_vm5 = vweird.f32 %v4605_v14  ;;  %v6441_v17 = vld [vmem:[%s9218_s6 + $0x168] sm:$0xff]  ;;  %9617 = vst [vmem:[#allocation16_spill] sm:$0xff] %v6477_v53 }
 0x434   :  { %v1290_v25 = vsel %vm1289_vm1, %v4601_v6, %v1286_v26  ;;  %vm1328_vm7 = vmor %vm1326_vm6, %vm1327_vm5  ;;  %v6446_v6 = vld [vmem:[%s9218_s6 + $0x170] sm:$0xff]  ;;  %v6489_v8 = vld [vmem:[%s9218_s6 + $0x128] sm:$0xff] }
 0x435   :  { %v1295_v21 = vsel %vm1292_vm3, %v1294_v49, %v1290_v25  ;;  %v1309_v31 = vsel %vm1308_vm2, %v4603_v47, %v1305_v16  ;;  %v1323_v24 = vsub.f32 1.0, %v1322_v15  ;;  %9615 = vst [vmem:[#allocation14_spill] sm:$0xff] %v6446_v6  ;;  %v6501_v49 = vld [vmem:[%s9218_s6 + $0x138] sm:$0xff]  ;;  %v6506_v16 = vld [vmem:[%s9218_s6 + $0x100] sm:$0xff]  ;;  %v6511_v15 = vld [vmem:[%s9218_s6 + $0x108] sm:$0xff] }
 0x436   :  { %v1314_v20 = vsel %vm1311_vm4, %v1313_v30, %v1309_v31  ;;  %v1340_v32 = vmul.f32 %v4607_v22, %v1295_v21  ;;  %9619 = vst [vmem:[#allocation18_spill] sm:$0xff] %v6501_v49  ;;  %v6518_v30 = vld [vmem:[%s9218_s6 + $0x110] sm:$0xff]  ;;  %v6523_v25 = vld [vmem:[%s9218_s6 + $0x118] sm:$0xff]  ;;  %v6528_v22 = vld [vmem:[%s9218_s6 + $0xe0] sm:$0xff] }
 0x437   :  { %v1339_v13 = vmul.f32 %v1337_v29, %v1314_v20  ;;  %v1324_v19 = vmul.f32 %v4605_v14, %v1323_v24  ;;  %9620 = vst [vmem:[#allocation19_spill] sm:$0xff] %v6518_v30  ;;  %v6535_v21 = vld [vmem:[%s9218_s6 + $0xe8] sm:$0xff]  ;;  %v6540_v31 = vld [vmem:[%s9218_s6 + $0xf0] sm:$0xff]  ;;  %v6545_v24 = vld [vmem:[%s9218_s6 + $0xf8] sm:$0xff] }
 0x438   :  { %9621 = vst [vmem:[#allocation21_spill] sm:$0xff] %v6523_v25 }
 0x439   :  { %v6328_v18 = vadd.f32 %v1340_v32, %v1339_v13  ;;  %v1325_v28 = vadd.f32 %v4605_v14, %v1324_v19  ;;  %9622 = vst [vmem:[#allocation22_spill] sm:$0xff] %v6540_v31  ;;  %v6552_v32 = vld [vmem:[%s9218_s6 + $0xc0] sm:$0xff]  ;;  %v6557_v13 = vld [vmem:[%s9218_s6 + $0xc8] sm:$0xff]  ;;  %v6564_v19 = vld [vmem:[%s9218_s6 + $0xd0] sm:$0xff] }
 0x43a   :  { %9623 = vst [vmem:[#allocation23_spill] sm:$0xff] %v6545_v24 }
 0x43b   :  { %4608 = vtanh.f32 %v6328_v18  ;;  %v1329_v33 = vsel %vm1328_vm7, %v4605_v14, %v1325_v28  ;;  %v1347_v14 = vld [vmem:[#allocation2 + $0x38] sm:$0x30]  ;;  %9624 = vst [vmem:[#allocation24_spill] sm:$0xff] %v6564_v19 }
 0x43c   :  { %v1334_v36 = vsel %vm1331_vm8, %v1333_v34, %v1329_v33  ;;  %v6569_v28 = vld [vmem:[%s9218_s6 + $0xd8] sm:$0xff]  ;;  %v6581_v33 = vld [vmem:[%s9218_s6 + $0xa8] sm:$0xff] }
 0x43d   :  { %9625 = vst [vmem:[#allocation25_spill] sm:$0xff] %v6569_v28 }
 0x441   :  { %v4609_v35 = vpop.eup %4608 }
 0x442   :  { %v1343_v37 = vmul.f32 %v4609_v35, %v1334_v36  ;;  %v6588_v35 = vld [vmem:[%s9218_s6 + $0xb0] sm:$0xff]  ;;  %v6593_v36 = vld [vmem:[%s9218_s6 + $0xb8] sm:$0xff] }
 0x443   :  { %9626 = vst [vmem:[#allocation26_spill] sm:$0xff] %v6588_v35 }
 0x444   :  { %v6331_v38 = vrot.slane %v1343_v37, 2  ;;  %9627 = vst [vmem:[#allocation27_spill] sm:$0xff] %v6593_v36 }
 0x446   :  { %9611 = vst [vmem:[#allocation10_spill] sm:$0xff] %v6331_v38  ;;  %1367 = vmatmul.f32.vlgmr.msra.gmra.mxu0 %v6331_v38  ;;  %1387 = vmatmul.f32.vlgmr.msra.gmra.mxu1 %v6331_v38 }
 0x447   :  { %1407 = vmatmul.f32.vlgmr.msra.gmra.mxu2 %v6331_v38  ;;  %1427 = vmatmul.f32.vlgmr.msra.gmra.mxu3 %v6331_v38 }
 0x448   :  { %1750 = vmatpush.msra.mxu0 %v6340_v39  ;;  %1770 = vmatpush.msra.mxu1 %v6345_v40 }
 0x449   :  { %1790 = vmatpush.msra.mxu2 %v6350_v41  ;;  %1810 = vmatpush.msra.mxu3 %v6357_v42 }
 0x44a   :  { %1751 = vmatpush.msra.mxu0 %v6364_v60  ;;  %1771 = vmatpush.msra.mxu1 %v6369_v61 }
 0x44b   :  { %1791 = vmatpush.msra.mxu2 %v6374_v62  ;;  %1811 = vmatpush.msra.mxu3 %v6381_v63 }
 0x44c   :  { %1752 = vmatpush.msra.mxu0 %v6388_v0  ;;  %1772 = vmatpush.msra.mxu1 %v6393_v1 }
 0x44d   :  { %1792 = vmatpush.msra.mxu2 %v6398_v2  ;;  %1812 = vmatpush.msra.mxu3 %v6405_v4 }
 0x44e   :  { %1753 = vmatpush.msra.mxu0 %v6412_v43  ;;  %1773 = vmatpush.msra.mxu1 %v6417_v11 }
 0x44f   :  { %1793 = vmatpush.msra.mxu2 %v6422_v51  ;;  %1813 = vmatpush.msra.mxu3 %v6429_v52 }
 0x450   :  { %1754 = vmatpush.msra.mxu0 %v6436_v9  ;;  %1774 = vmatpush.msra.mxu1 %v6441_v17 }
 0x451   :  { %1794 = vmatpush.msra.mxu2 %v6446_v6  ;;  %1814 = vmatpush.msra.mxu3 %v6453_v55 }
 0x452   :  { %1755 = vmatpush.msra.mxu0 %v6460_v57  ;;  %1775 = vmatpush.msra.mxu1 %v6465_v54 }
 0x453   :  { %1795 = vmatpush.msra.mxu2 %v6470_v59  ;;  %1815 = vmatpush.msra.mxu3 %v6477_v53 }
 0x454   :  { %1756 = vmatpush.msra.mxu0 %v6484_v50  ;;  %1776 = vmatpush.msra.mxu1 %v6489_v8 }
 0x455   :  { %1796 = vmatpush.msra.mxu2 %v6494_v12  ;;  %1816 = vmatpush.msra.mxu3 %v6501_v49 }
 0x456   :  { %1757 = vmatpush.msra.mxu0 %v6506_v16  ;;  %1777 = vmatpush.msra.mxu1 %v6511_v15 }
 0x457   :  { %1797 = vmatpush.msra.mxu2 %v6518_v30  ;;  %1817 = vmatpush.msra.mxu3 %v6523_v25 }
 0x458   :  { %1758 = vmatpush.msra.mxu0 %v6528_v22  ;;  %1778 = vmatpush.msra.mxu1 %v6535_v21 }
 0x459   :  { %1798 = vmatpush.msra.mxu2 %v6540_v31  ;;  %1818 = vmatpush.msra.mxu3 %v6545_v24  ;;  %v6709_v31 = vld [vmem:[%s9218_s6 + $0x8] sm:$0xff] }
 0x45a   :  { %1759 = vmatpush.msra.mxu0 %v6552_v32  ;;  %1779 = vmatpush.msra.mxu1 %v6557_v13 }
 0x45b   :  { %1799 = vmatpush.msra.mxu2 %v6564_v19  ;;  %1819 = vmatpush.msra.mxu3 %v6569_v28 }
 0x45c   :  { %1760 = vmatpush.msra.mxu0 %v6576_v27  ;;  %1780 = vmatpush.msra.mxu1 %v6581_v33 }
 0x45d   :  { %1800 = vmatpush.msra.mxu2 %v6588_v35  ;;  %1820 = vmatpush.msra.mxu3 %v6593_v36  ;;  %v6697_v35 = vld [vmem:[%s9218_s6 + $0x38] sm:$0xff] }
 0x45e   :  { %9635 = vst [vmem:[#allocation36_spill] sm:$0xff] %v6697_v35 }
 0x4c3   :  { %v1368_v5 = vpop.f32.mrf.mxu0  ;;  %v1388_v10 = vpop.f32.mrf.mxu1 }
 0x4c4   :  { %v1435_v58 = vrot.slane %v1368_v5, 4  ;;  %v1436_v3 = vrot.slane %v1388_v10, 4  ;;  %v6602_v5 = vld [vmem:[%s9218_s6 + $0x80] sm:$0xff]  ;;  %v6607_v10 = vld [vmem:[%s9218_s6 + $0x88] sm:$0xff] }
 0x4c5   :  { %1761 = vmatpush.msra.mxu0 %v6602_v5  ;;  %1781 = vmatpush.msra.mxu1 %v6607_v10 }
 0x4c6   :  { %v1443_v46 = vadd.f32 %v1435_v58, %v1344_v23  ;;  %v1444_v47 = vadd.f32 %v1436_v3, %v1345_v48  ;;  %v6616_v3 = vld [vmem:[%s9218_s6 + $0x90] sm:$0xff] }
 0x4c7   :  { %9628 = vst [vmem:[#allocation28_spill] sm:$0xff] %v6616_v3  ;;  %1801 = vmatpush.msra.mxu2 %v6616_v3  ;;  %v6692_v3 = vld [vmem:[%s9218_s6 + $0x30] sm:$0xff] }
 0x4c8   :  { %v4466_v56 = vmul.f32 -1.442695, %v1443_v46  ;;  %v4467_v44 = vmul.f32 -1.442695, %v1444_v47  ;;  %v6621_v46 = vld [vmem:[%s9218_s6 + $0x98] sm:$0xff]  ;;  %9634 = vst [vmem:[#allocation34_spill] sm:$0xff] %v6692_v3 }
 0x4c9   :  { %9629 = vst [vmem:[#allocation29_spill] sm:$0xff] %v6621_v46  ;;  %1821 = vmatpush.msra.mxu3 %v6621_v46 }
 0x4ca   :  { %4610 = vpow2.f32 %v4466_v56  ;;  %v1428_v26 = vpop.f32.mrf.mxu3  ;;  %v1408_v48 = vpop.f32.mrf.mxu2  ;;  %v6634_v56 = vld [vmem:[%s9218_s6 + $0x60] sm:$0xff] }
 0x4cb   :  { %4612 = vpow2.f32 %v4467_v44  ;;  %v1438_v29 = vrot.slane %v1428_v26, 4  ;;  %v1437_v47 = vrot.slane %v1408_v48, 4  ;;  %v6639_v44 = vld [vmem:[%s9218_s6 + $0x68] sm:$0xff]  ;;  %v1346_v26 = vld [vmem:[#allocation2 + $0x10] sm:$0x30]  ;;  %1762 = vmatpush.msra.mxu0 %v6634_v56  ;;  %v6673_v48 = vld [vmem:[%s9218_s6 + $0x58] sm:$0xff] }
 0x4cc   :  { %1782 = vmatpush.msra.mxu1 %v6639_v44  ;;  %9633 = vst [vmem:[#allocation33_spill] sm:$0xff] %v6673_v48 }
 0x4cd   :  { %v1446_v20 = vadd.f32 %v1438_v29, %v1347_v14  ;;  %v6644_v14 = vld [vmem:[%s9218_s6 + $0x70] sm:$0xff]  ;;  %v6651_v29 = vld [vmem:[%s9218_s6 + $0x78] sm:$0xff]  ;;  %v1445_v19 = vadd.f32 %v1437_v47, %v1346_v26 }
 0x4ce   :  { %9630 = vst [vmem:[#allocation30_spill] sm:$0xff] %v6644_v14  ;;  %1802 = vmatpush.msra.mxu2 %v6644_v14  ;;  %1822 = vmatpush.msra.mxu3 %v6651_v29  ;;  %v6687_v14 = vld [vmem:[%s9218_s6 + $0x28] sm:$0xff]  ;;  %v6718_v47 = vld [vmem:[%s9218_s6 + $0x10] sm:$0xff]  ;;  %v6723_v26 = vld [vmem:[%s9218_s6 + $0x18] sm:$0xff] }
 0x4cf   :  { %v4468_v7 = vmul.f32 -1.442695, %v1446_v20  ;;  %9631 = vst [vmem:[#allocation31_spill] sm:$0xff] %v6651_v29  ;;  %v6656_v20 = vld [vmem:[%s9218_s6 + $0x40] sm:$0xff] }
 0x4d0   :  { %v4611_v34 = vpop.eup %4610  ;;  %1763 = vmatpush.msra.mxu0 %v6656_v20  ;;  %1823 = vmatpush.msra.mxu3 %v6673_v48  ;;  %v6704_v29 = vld [vmem:[%s9218_s6] sm:$0xff]  ;;  %9636 = vst [vmem:[#allocation37_spill] sm:$0xff] %v6718_v47 }
 0x4d1   :  { %v4613_v37 = vpop.eup %4612  ;;  %v6595_v23 = vadd.f32 1.0, %v4611_v34  ;;  %4614 = vpow2.f32 %v4468_v7  ;;  %v6661_v7 = vld [vmem:[%s9218_s6 + $0x48] sm:$0xff]  ;;  %9637 = vst [vmem:[#allocation40_spill] sm:$0xff] %v6723_v26 }
 0x4d2   :  { %v6609_v58 = vadd.f32 1.0, %v4613_v37  ;;  %v6668_v37 = vld [vmem:[%s9218_s6 + $0x50] sm:$0xff]  ;;  %1783 = vmatpush.msra.mxu1 %v6661_v7  ;;  %1764 = vmatpush.msra.mxu0 %v6678_v45 }
 0x4d3   :  { %4616 = vrcp.f32 %v6595_v23  ;;  %9632 = vst [vmem:[#allocation32_spill] sm:$0xff] %v6668_v37  ;;  %1803 = vmatpush.msra.mxu2 %v6668_v37  ;;  %1824 = vmatpush.msra.mxu3 %v6697_v35  ;;  %v1462_v12 = vand.u32 2147483648, %v6595_v23  ;;  %vm1456_vm11 = vweird.f32 %v6595_v23 }
 0x4d4   :  { %4618 = vrcp.f32 %v6609_v58  ;;  %1784 = vmatpush.msra.mxu1 %v6687_v14  ;;  %1765 = vmatpush.msra.mxu0 %v6704_v29  ;;  %v1481_v28 = vand.u32 2147483648, %v6609_v58  ;;  %vm1475_vm12 = vweird.f32 %v6609_v58 }
 0x4d5   :  { %1804 = vmatpush.msra.mxu2 %v6692_v3  ;;  %1825 = vmatpush.msra.mxu3 %v6723_v26  ;;  %v1460_v3 = vand.u32 2147483647, %v6595_v23 }
 0x4d6   :  { %1785 = vmatpush.msra.mxu1 %v6709_v31  ;;  %v1482_v26 = vor.u32 1.1754944e-38, %v1481_v28 }
 0x4d7   :  { %v4615_v34 = vpop.eup %4614  ;;  %1805 = vmatpush.msra.mxu2 %v6718_v47  ;;  %vm1461_vm15 = vcmp.eq.f32.partialorder %v1460_v3, 8.507059e+37  ;;  %v9638_v3 = vmov 0.0  }
 0x4d8   :  { %v6680_v38 = vadd.f32 1.0, %v4615_v34 }
 0x4d9   :  { %v4617_v34 = vpop.eup %4616 }
 0x4da   :  { %v4619_v46 = vpop.eup %4618  ;;  %v1452_v30 = vmul.f32 %v4617_v34, %v6595_v23  ;;  %4620 = vrcp.f32 %v6680_v38  ;;  %vm1457_vm9 = vweird.f32 %v4617_v34  ;;  %vm1495_vm2 = vweird.f32 %v6680_v38 }
 0x4db   :  { %v1471_v37 = vmul.f32 %v4619_v46, %v6609_v58  ;;  %4622 = vtanh.f32 %v1445_v19  ;;  %vm1476_vm10 = vweird.f32 %v4619_v46  ;;  %vm1458_vm13 = vmor %vm1456_vm11, %vm1457_vm9  ;;  %v1463_v19 = vor.u32 1.1754944e-38, %v1462_v12 }
 0x4dc   :  { %v1453_v48 = vsub.f32 1.0, %v1452_v30  ;;  %v1479_v30 = vand.u32 2147483647, %v6609_v58  ;;  %vm1477_vm14 = vmor %vm1475_vm12, %vm1476_vm10 }
 0x4dd   :  { %v1472_v36 = vsub.f32 1.0, %v1471_v37 }
 0x4de   :  { %v1454_v59 = vmul.f32 %v4617_v34, %v1453_v48  ;;  %v1506_v48 = vrot.slane %v6328_v18, 6  ;;  %vm1480_vm0 = vcmp.eq.f32.partialorder %v1479_v30, 8.507059e+37  ;;  %v1501_v18 = vand.u32 2147483648, %v6680_v38 }
 0x4df   :  { %v1473_v35 = vmul.f32 %v4619_v46, %v1472_v36 }
 0x4e0   :  { %v4621_v24 = vpop.eup %4620  ;;  %v1455_v6 = vadd.f32 %v4617_v34, %v1454_v59  ;;  %v1502_v28 = vor.u32 1.1754944e-38, %v1501_v18 }
 0x4e1   :  { %v1474_v37 = vadd.f32 %v4619_v46, %v1473_v35  ;;  %v1491_v47 = vmul.f32 %v4621_v24, %v6680_v38  ;;  %v4623_v36 = vpop.eup %4622  ;;  %vm1496_vm1 = vweird.f32 %v4621_v24 }
 0x4e2   :  { %v1459_v25 = vsel %vm1458_vm13, %v4617_v34, %v1455_v6  ;;  %v1499_v6 = vand.u32 2147483647, %v6680_v38  ;;  %vm1497_vm3 = vmor %vm1495_vm2, %vm1496_vm1  ;;  %v1923_v38 = vld [vmem:[%s9219_s7 + $0x70] sm:$0xff] }
 0x4e3   :  { %v1464_v51 = vsel %vm1461_vm15, %v1463_v19, %v1459_v25  ;;  %v1478_v49 = vsel %vm1477_vm14, %v4619_v46, %v1474_v37  ;;  %v1492_v59 = vsub.f32 1.0, %v1491_v47 }
 0x4e4   :  { %v1483_v2 = vsel %vm1480_vm0, %v1482_v26, %v1478_v49  ;;  %v1509_v23 = vmul.f32 %v4623_v36, %v1464_v51  ;;  %vm1500_vm4 = vcmp.eq.f32.partialorder %v1499_v6, 8.507059e+37  ;;  %v9639_v36 = vld [vmem:[#allocation11_spill] sm:$0xff] }
 0x4e5   :  { %v1508_v53 = vmul.f32 %v1506_v48, %v1483_v2  ;;  %v1493_v58 = vmul.f32 %v4621_v24, %v1492_v59  ;;  %v9640_v59 = vld [vmem:[#allocation16_spill] sm:$0xff]  ;;  %v1682_v6 = vld [vmem:[#allocation2 + $0x60] sm:$0xc0] }
 0x4e7   :  { %v6740_v62 = vadd.f32 %v1509_v23, %v1508_v53  ;;  %v1494_v12 = vadd.f32 %v4621_v24, %v1493_v58  ;;  %v1924_v53 = vld [vmem:[%s9219_s7 + $0x78] sm:$0xff] }
 0x4e8   :  { %v1516_v23 = vld [vmem:[#allocation2 + $0x38] sm:$0xc0] }
 0x4e9   :  { %4624 = vtanh.f32 %v6740_v62  ;;  %v1498_v25 = vsel %vm1497_vm3, %v4621_v24, %v1494_v12  ;;  %v1922_v24 = vld [vmem:[%s9219_s7 + $0x68] sm:$0xff] }
 0x4ea   :  { %v1503_v51 = vsel %vm1500_vm4, %v1502_v28, %v1498_v25  ;;  %v9641_v25 = vld [vmem:[#allocation12_spill] sm:$0xff] }
 0x4ef   :  { %v4625_v49 = vpop.eup %4624 }
 0x4f0   :  { %v1512_v2 = vmul.f32 %v4625_v49, %v1503_v51 }
 0x4f2   :  { %v6746_v35 = vrot.slane %v1512_v2, 4  ;;  %v9643_v2 = vld [vmem:[#allocation13_spill] sm:$0xff] }
 0x4f4   :  { %1536 = vmatmul.f32.vlgmr.msrb.gmra.mxu0 %v6746_v35  ;;  %1556 = vmatmul.f32.vlgmr.msrb.gmra.mxu1 %v6746_v35 }
 0x4f5   :  { %1576 = vmatmul.f32.vlgmr.msrb.gmra.mxu2 %v6746_v35  ;;  %1596 = vmatmul.f32.vlgmr.msrb.gmra.mxu3 %v6746_v35 }
 0x4f6   :  { %1967 = vmatpush.msrb.mxu1 %v1924_v53  ;;  %2113 = vmatpush.msrb.mxu3 %v6345_v40  ;;  %v1940_v40 = vld [vmem:[%s9219_s7 + $0xf8] sm:$0xff] }
 0x4f7   :  { %2093 = vmatpush.msrb.mxu2 %v6340_v39  ;;  %v1921_v39 = vld [vmem:[%s9219_s7 + $0x60] sm:$0xff]  ;;  %1944 = vmatpush.msrb.mxu0 %v1940_v40 }
 0x4f8   :  { %1968 = vmatpush.msrb.mxu1 %v1923_v38  ;;  %2114 = vmatpush.msrb.mxu3 %v6369_v61  ;;  %v1919_v61 = vld [vmem:[%s9219_s7 + $0x50] sm:$0xff] }
 0x4f9   :  { %2094 = vmatpush.msrb.mxu2 %v6364_v60  ;;  %v1939_v60 = vld [vmem:[%s9219_s7 + $0xf0] sm:$0xff] }
 0x4fa   :  { %1969 = vmatpush.msrb.mxu1 %v1922_v24  ;;  %2115 = vmatpush.msrb.mxu3 %v6393_v1  ;;  %v1918_v1 = vld [vmem:[%s9219_s7 + $0x48] sm:$0xff] }
 0x4fb   :  { %2095 = vmatpush.msrb.mxu2 %v6388_v0  ;;  %1945 = vmatpush.msrb.mxu0 %v1939_v60  ;;  %v1938_v0 = vld [vmem:[%s9219_s7 + $0xe8] sm:$0xff] }
 0x4fc   :  { %1766 = vmatmul.f32.vlgmr.msra.gmra.mxu0 %v9638_v3  ;;  %1786 = vmatmul.f32.vlgmr.msra.gmra.mxu1 %v9638_v3 }
 0x4fd   :  { %1806 = vmatmul.f32.vlgmr.msra.gmra.mxu2 %v9638_v3  ;;  %1826 = vmatmul.f32.vlgmr.msra.gmra.mxu3 %v9638_v3 }
 0x4fe   :  { %2116 = vmatpush.msrb.mxu3 %v6417_v11  ;;  %2096 = vmatpush.msrb.mxu2 %v6412_v43  ;;  %v1937_v43 = vld [vmem:[%s9219_s7 + $0xe0] sm:$0xff] }
 0x4ff   :  { %1970 = vmatpush.msrb.mxu1 %v1921_v39  ;;  %1946 = vmatpush.msrb.mxu0 %v1938_v0  ;;  %v1917_v11 = vld [vmem:[%s9219_s7 + $0x40] sm:$0xff] }
 0x500   :  { %2117 = vmatpush.msrb.mxu3 %v6441_v17  ;;  %2097 = vmatpush.msrb.mxu2 %v6436_v9  ;;  %v1936_v9 = vld [vmem:[%s9219_s7 + $0xd8] sm:$0xff] }
 0x501   :  { %1947 = vmatpush.msrb.mxu0 %v1937_v43  ;;  %v1916_v17 = vld [vmem:[%s9219_s7 + $0x38] sm:$0xff] }
 0x502   :  { %2118 = vmatpush.msrb.mxu3 %v6465_v54  ;;  %2098 = vmatpush.msrb.mxu2 %v6460_v57  ;;  %v1935_v57 = vld [vmem:[%s9219_s7 + $0xd0] sm:$0xff] }
 0x503   :  { %1948 = vmatpush.msrb.mxu0 %v1936_v9  ;;  %v1915_v54 = vld [vmem:[%s9219_s7 + $0x30] sm:$0xff] }
 0x504   :  { %2119 = vmatpush.msrb.mxu3 %v6489_v8  ;;  %2099 = vmatpush.msrb.mxu2 %v6484_v50  ;;  %v1934_v50 = vld [vmem:[%s9219_s7 + $0xc8] sm:$0xff] }
 0x505   :  { %1949 = vmatpush.msrb.mxu0 %v1935_v57  ;;  %v6842_v8 = vld [vmem:[%s9219_s7 + $0x28] sm:$0xff] }
 0x506   :  { %2120 = vmatpush.msrb.mxu3 %v6511_v15  ;;  %2100 = vmatpush.msrb.mxu2 %v6506_v16  ;;  %v1933_v16 = vld [vmem:[%s9219_s7 + $0xc0] sm:$0xff] }
 0x507   :  { %1950 = vmatpush.msrb.mxu0 %v1934_v50  ;;  %v6851_v15 = vld [vmem:[%s9219_s7 + $0x20] sm:$0xff] }
 0x508   :  { %2121 = vmatpush.msrb.mxu3 %v6535_v21  ;;  %2101 = vmatpush.msrb.mxu2 %v6528_v22  ;;  %v1932_v22 = vld [vmem:[%s9219_s7 + $0xb8] sm:$0xff] }
 0x509   :  { %1951 = vmatpush.msrb.mxu0 %v1933_v16  ;;  %v1912_v21 = vld [vmem:[%s9219_s7 + $0x18] sm:$0xff] }
 0x50a   :  { %2122 = vmatpush.msrb.mxu3 %v6557_v13  ;;  %2102 = vmatpush.msrb.mxu2 %v6552_v32  ;;  %v1911_v32 = vld [vmem:[%s9219_s7 + $0x10] sm:$0xff]  ;;  %v1930_v13 = vld [vmem:[%s9219_s7 + $0xa8] sm:$0xff] }
 0x50b   :  { %1952 = vmatpush.msrb.mxu0 %v1932_v22 }
 0x50c   :  { %2123 = vmatpush.msrb.mxu3 %v6581_v33  ;;  %2103 = vmatpush.msrb.mxu2 %v6576_v27  ;;  %v1910_v27 = vld [vmem:[%s9219_s7 + $0x8] sm:$0xff]  ;;  %v1929_v33 = vld [vmem:[%s9219_s7 + $0xa0] sm:$0xff] }
 0x50e   :  { %2124 = vmatpush.msrb.mxu3 %v6607_v10  ;;  %2104 = vmatpush.msrb.mxu2 %v6602_v5  ;;  %v1909_v5 = vld [vmem:[%s9219_s7] sm:$0xff]  ;;  %v1928_v10 = vld [vmem:[%s9219_s7 + $0x98] sm:$0xff] }
 0x510   :  { %2125 = vmatpush.msrb.mxu3 %v6639_v44  ;;  %2105 = vmatpush.msrb.mxu2 %v6634_v56  ;;  %v1927_v44 = vld [vmem:[%s9219_s7 + $0x90] sm:$0xff] }
 0x512   :  { %2126 = vmatpush.msrb.mxu3 %v6661_v7  ;;  %2106 = vmatpush.msrb.mxu2 %v6656_v20  ;;  %v1514_v20 = vld [vmem:[#allocation2 + $0x20] sm:$0xc0]  ;;  %v1926_v7 = vld [vmem:[%s9219_s7 + $0x88] sm:$0xff] }
 0x514   :  { %2127 = vmatpush.msrb.mxu3 %v6687_v14  ;;  %2107 = vmatpush.msrb.mxu2 %v6678_v45  ;;  %v1920_v45 = vld [vmem:[%s9219_s7 + $0x58] sm:$0xff] }
 0x515   :  { %1971 = vmatpush.msrb.mxu1 %v1920_v45 }
 0x516   :  { %2128 = vmatpush.msrb.mxu3 %v6709_v31  ;;  %2108 = vmatpush.msrb.mxu2 %v6704_v29  ;;  %v1931_v31 = vld [vmem:[%s9219_s7 + $0xb0] sm:$0xff] }
 0x517   :  { %1972 = vmatpush.msrb.mxu1 %v1919_v61  ;;  %1953 = vmatpush.msrb.mxu0 %v1931_v31 }
 0x518   :  { %2310 = vmatpush.msra.mxu3 %v1924_v53  ;;  %2290 = vmatpush.msra.mxu2 %v1940_v40  ;;  %v9644_v53 = vld [vmem:[#allocation21_spill] sm:$0xff] }
 0x519   :  { %1973 = vmatpush.msrb.mxu1 %v1918_v1  ;;  %1954 = vmatpush.msrb.mxu0 %v1930_v13 }
 0x51a   :  { %2311 = vmatpush.msra.mxu3 %v1923_v38  ;;  %2291 = vmatpush.msra.mxu2 %v1939_v60 }
 0x51b   :  { %1974 = vmatpush.msrb.mxu1 %v1917_v11  ;;  %1955 = vmatpush.msrb.mxu0 %v1929_v33 }
 0x51c   :  { %2312 = vmatpush.msra.mxu3 %v1922_v24  ;;  %2292 = vmatpush.msra.mxu2 %v1938_v0  ;;  %v9646_v0 = vld [vmem:[#allocation23_spill] sm:$0xff] }
 0x51d   :  { %1975 = vmatpush.msrb.mxu1 %v1916_v17  ;;  %1956 = vmatpush.msrb.mxu0 %v1928_v10 }
 0x51e   :  { %2313 = vmatpush.msra.mxu3 %v1921_v39  ;;  %2293 = vmatpush.msra.mxu2 %v1937_v43 }
 0x51f   :  { %1976 = vmatpush.msrb.mxu1 %v1915_v54  ;;  %1957 = vmatpush.msrb.mxu0 %v1927_v44 }
 0x520   :  { %2314 = vmatpush.msra.mxu3 %v1920_v45  ;;  %2294 = vmatpush.msra.mxu2 %v1936_v9  ;;  %v9648_v9 = vld [vmem:[#allocation25_spill] sm:$0xff] }
 0x521   :  { %1977 = vmatpush.msrb.mxu1 %v6842_v8  ;;  %1958 = vmatpush.msrb.mxu0 %v1926_v7 }
 0x522   :  { %2315 = vmatpush.msra.mxu3 %v1919_v61  ;;  %2295 = vmatpush.msra.mxu2 %v1935_v57  ;;  %v9645_v61 = vld [vmem:[#allocation14_spill] sm:$0xff] }
 0x523   :  { %1978 = vmatpush.msrb.mxu1 %v6851_v15 }
 0x524   :  { %2316 = vmatpush.msra.mxu3 %v1918_v1  ;;  %2296 = vmatpush.msra.mxu2 %v1934_v50  ;;  %v9649_v50 = vld [vmem:[#allocation17_spill] sm:$0xff] }
 0x525   :  { %1979 = vmatpush.msrb.mxu1 %v1912_v21 }
 0x526   :  { %2317 = vmatpush.msra.mxu3 %v1917_v11  ;;  %2297 = vmatpush.msra.mxu2 %v1933_v16  ;;  %v9647_v11 = vld [vmem:[#allocation15_spill] sm:$0xff] }
 0x527   :  { %1980 = vmatpush.msrb.mxu1 %v1911_v32  ;;  %v9650_v16 = vld [vmem:[#allocation27_spill] sm:$0xff] }
 0x528   :  { %2318 = vmatpush.msra.mxu3 %v1916_v17  ;;  %2298 = vmatpush.msra.mxu2 %v1932_v22  ;;  %v1515_v17 = vld [vmem:[#allocation2 + $0x10] sm:$0xc0] }
 0x529   :  { %1981 = vmatpush.msrb.mxu1 %v1910_v27 }
 0x52a   :  { %2319 = vmatpush.msra.mxu3 %v1915_v54  ;;  %2299 = vmatpush.msra.mxu2 %v1931_v31  ;;  %v1685_v31 = vld [vmem:[#allocation2 + $0x28] sm:$0xc0] }
 0x52b   :  { %1982 = vmatpush.msrb.mxu1 %v1909_v5 }
 0x52c   :  { %2320 = vmatpush.msra.mxu3 %v6842_v8  ;;  %2300 = vmatpush.msra.mxu2 %v1930_v13  ;;  %v9652_v13 = vld [vmem:[#allocation29_spill] sm:$0xff] }
 0x52d   :  { %2153 = vmatpush.msra.mxu1 %v6357_v42  ;;  %v1513_v42 = vld [vmem:[#allocation2 + $0x40] sm:$0xc0] }
 0x52e   :  { %2321 = vmatpush.msra.mxu3 %v6851_v15  ;;  %2301 = vmatpush.msra.mxu2 %v1929_v33 }
 0x52f   :  { %2154 = vmatpush.msra.mxu1 %v6381_v63  ;;  %v1925_v63 = vld [vmem:[%s9219_s7 + $0x80] sm:$0xff] }
 0x530   :  { %2322 = vmatpush.msra.mxu3 %v1912_v21  ;;  %2302 = vmatpush.msra.mxu2 %v1928_v10 }
 0x531   :  { %2155 = vmatpush.msra.mxu1 %v6405_v4  ;;  %1959 = vmatpush.msrb.mxu0 %v1925_v63 }
 0x532   :  { %2323 = vmatpush.msra.mxu3 %v1911_v32  ;;  %2303 = vmatpush.msra.mxu2 %v1927_v44  ;;  %v9651_v32 = vld [vmem:[#allocation19_spill] sm:$0xff] }
 0x533   :  { %2156 = vmatpush.msra.mxu1 %v6429_v52  ;;  %2133 = vmatpush.msra.mxu0 %v6350_v41  ;;  %v1683_v41 = vld [vmem:[#allocation2 + $0x70] sm:$0xc0] }
 0x534   :  { %2324 = vmatpush.msra.mxu3 %v1910_v27  ;;  %2304 = vmatpush.msra.mxu2 %v1926_v7 }
 0x535   :  { %2157 = vmatpush.msra.mxu1 %v6453_v55  ;;  %2134 = vmatpush.msra.mxu0 %v9639_v36  ;;  %v9642_v55 = vld [vmem:[#allocation18_spill] sm:$0xff] }
 0x536   :  { %2325 = vmatpush.msra.mxu3 %v1909_v5  ;;  %2305 = vmatpush.msra.mxu2 %v1925_v63 }
 0x537   :  { %2158 = vmatpush.msra.mxu1 %v9640_v59  ;;  %2135 = vmatpush.msra.mxu0 %v9641_v25 }
 0x539   :  { %2159 = vmatpush.msra.mxu1 %v9642_v55  ;;  %2136 = vmatpush.msra.mxu0 %v9643_v2 }
 0x53b   :  { %2160 = vmatpush.msra.mxu1 %v9644_v53  ;;  %2137 = vmatpush.msra.mxu0 %v9645_v61 }
 0x53d   :  { %2161 = vmatpush.msra.mxu1 %v9646_v0  ;;  %2138 = vmatpush.msra.mxu0 %v9647_v11  ;;  %v9665_v0 = vld [vmem:[#allocation30_spill] sm:$0xff] }
 0x53f   :  { %2162 = vmatpush.msra.mxu1 %v9648_v9  ;;  %2139 = vmatpush.msra.mxu0 %v9649_v50 }
 0x541   :  { %2163 = vmatpush.msra.mxu1 %v9650_v16  ;;  %2140 = vmatpush.msra.mxu0 %v9651_v32  ;;  %v9666_v16 = vld [vmem:[#allocation32_spill] sm:$0xff] }
 0x543   :  { %2164 = vmatpush.msra.mxu1 %v9652_v13 }
 0x571   :  { %v1537_v46 = vpop.f32.mrf.mxu0  ;;  %v1557_v56 = vpop.f32.mrf.mxu1 }
 0x572   :  { %v1604_v14 = vrot.slane %v1537_v46, 2  ;;  %v1605_v29 = vrot.slane %v1557_v56, 2  ;;  %v1675_v56 = vrot.slane %v6740_v62, 6 }
 0x574   :  { %v1612_v34 = vadd.f32 %v1604_v14, %v1513_v42  ;;  %v1613_v47 = vadd.f32 %v1605_v29, %v1514_v20  ;;  %v9653_v14 = vld [vmem:[#allocation22_spill] sm:$0xff]  ;;  %v9654_v29 = vld [vmem:[#allocation31_spill] sm:$0xff] }
 0x575   :  { %2141 = vmatpush.msra.mxu0 %v9653_v14  ;;  %2165 = vmatpush.msra.mxu1 %v9654_v29 }
 0x576   :  { %v4469_v26 = vmul.f32 -1.442695, %v1612_v34  ;;  %v4470_v30 = vmul.f32 -1.442695, %v1613_v47 }
 0x578   :  { %4626 = vpow2.f32 %v4469_v26  ;;  %v1577_v4 = vpop.f32.mrf.mxu2  ;;  %v1597_v19 = vpop.f32.mrf.mxu3 }
 0x579   :  { %4628 = vpow2.f32 %v4470_v30  ;;  %v1607_v37 = vrot.slane %v1597_v19, 2  ;;  %v1767_v48 = vpop.f32.mrf.mxu0  ;;  %v1787_v52 = vpop.f32.mrf.mxu1  ;;  %v1606_v45 = vrot.slane %v1577_v4, 2  ;;  %v1684_v4 = vld [vmem:[#allocation2 + $0x78] sm:$0xc0]  ;;  %v9655_v19 = vld [vmem:[#allocation24_spill] sm:$0xff] }
 0x57a   :  { %v1834_v58 = vrot.slane %v1767_v48, 2  ;;  %v1835_v12 = vrot.slane %v1787_v52, 2  ;;  %2142 = vmatpush.msra.mxu0 %v9655_v19  ;;  %v4921_v19 = vmov 0  }
 0x57b   :  { %v1615_v18 = vadd.f32 %v1607_v37, %v1516_v23  ;;  %v1614_v57 = vadd.f32 %v1606_v45, %v1515_v17  ;;  %v9656_v37 = vld [vmem:[#allocation33_spill] sm:$0xff]  ;;  %4511 = vset.pattern.permute.xlu0 %v4921_v19  ;;  %4510 = vset.pattern.permute.xlu1 %v4921_v19 }
 0x57c   :  { %v1842_v28 = vadd.f32 %v1834_v58, %v1682_v6  ;;  %v1843_v49 = vadd.f32 %v1835_v12, %v1683_v41  ;;  %2166 = vmatpush.msra.mxu1 %v9656_v37  ;;  %v9657_v58 = vld [vmem:[#allocation26_spill] sm:$0xff]  ;;  %v9658_v12 = vld [vmem:[#allocation36_spill] sm:$0xff]  ;;  %4512 = vset.pattern.permute.xlu2 %v4921_v19 }
 0x57d   :  { %v4471_v51 = vmul.f32 -1.442695, %v1615_v18  ;;  %2143 = vmatpush.msra.mxu0 %v9657_v58  ;;  %v2331_v37 = vld [vmem:[%s9212_s0 + $0xc] sm:$0x3] }
 0x57e   :  { %v4627_v38 = vpop.eup %4626  ;;  %v4472_v24 = vmul.f32 -1.442695, %v1842_v28  ;;  %v4473_v60 = vmul.f32 -1.442695, %v1843_v49  ;;  %2167 = vmatpush.msra.mxu1 %v9658_v12  ;;  %v9661_v49 = vld [vmem:[#allocation28_spill] sm:$0xff]  ;;  %v7145_v12 = vld [vmem:[%s9218_s6 + $0x1f8] sm:$0xff] }
 0x57f   :  { %v4629_v39 = vpop.eup %4628  ;;  %v6904_v40 = vadd.f32 1.0, %v4627_v38  ;;  %4630 = vpow2.f32 %v4471_v51  ;;  %2144 = vmatpush.msra.mxu0 %v9661_v49  ;;  %v9662_v51 = vld [vmem:[#allocation40_spill] sm:$0xff] }
 0x580   :  { %v6908_v1 = vadd.f32 1.0, %v4629_v39  ;;  %4632 = vpow2.f32 %v4472_v24  ;;  %v1827_v43 = vpop.f32.mrf.mxu3  ;;  %v1807_v54 = vpop.f32.mrf.mxu2  ;;  %2168 = vmatpush.msra.mxu1 %v9662_v51  ;;  %v7110_v19 = vld [vmem:[%s9218_s6 + $0x108] sm:$0xff] }
 0x581   :  { %4634 = vrcp.f32 %v6904_v40  ;;  %v1837_v22 = vrot.slane %v1827_v43, 2  ;;  %v1836_v5 = vrot.slane %v1807_v54, 2  ;;  %v1629_v7 = vand.u32 2147483647, %v6904_v40  ;;  %2145 = vmatpush.msra.mxu0 %v9665_v0 }
 0x582   :  { %4636 = vrcp.f32 %v6908_v1  ;;  %v1650_v26 = vand.u32 2147483648, %v6908_v1  ;;  %v1631_v30 = vand.u32 2147483648, %v6904_v40  ;;  %v1648_v52 = vand.u32 2147483647, %v6908_v1 }
 0x583   :  { %4638 = vpow2.f32 %v4473_v60  ;;  %v1845_v10 = vadd.f32 %v1837_v22, %v1685_v31  ;;  %v1844_v59 = vadd.f32 %v1836_v5, %v1684_v4  ;;  %vm1644_vm5 = vweird.f32 %v6908_v1  ;;  %2146 = vmatpush.msra.mxu0 %v9666_v16  ;;  %v4026_v5 = vld [vmem:[%s9212_s0 + $0x2] sm:$0x3] }
 0x584   :  { %4640 = vtanh.f32 %v1614_v57  ;;  %vm1625_vm6 = vweird.f32 %v6904_v40  ;;  %vm6941_vm8 = vcmp.eq.f32.partialorder %v1629_v7, 8.507059e+37  ;;  %v1651_v55 = vor.u32 1.1754944e-38, %v1650_v26  ;;  %v2001_v26 = vld [vmem:[%s9213_s1 + $0xe] sm:$0x3] }
 0x585   :  { %v4631_v21 = vpop.eup %4630  ;;  %v4474_v34 = vmul.f32 -1.442695, %v1845_v10  ;;  %v1632_v28 = vor.u32 1.1754944e-38, %v1631_v30  ;;  %vm6950_vm10 = vcmp.eq.f32.partialorder %v1648_v52, 8.507059e+37  ;;  %2016 = vperm.xlu1 %4510, %v2001_v26   ;;  %v7092_v26 = vld [vmem:[%s9218_s6 + $0x168] sm:$0xff] }
 0x586   :  { %v4633_v27 = vpop.eup %4632  ;;  %v6918_v33 = vadd.f32 1.0, %v4631_v21 }
 0x587   :  { %v4635_v46 = vpop.eup %4634  ;;  %v6921_v44 = vadd.f32 1.0, %v4633_v27 }
 0x588   :  { %v4637_v42 = vpop.eup %4636  ;;  %v1621_v20 = vmul.f32 %v4635_v46, %v6904_v40  ;;  %4642 = vrcp.f32 %v6918_v33  ;;  %vm1626_vm7 = vweird.f32 %v4635_v46  ;;  %vm1664_vm14 = vweird.f32 %v6918_v33 }
 0x589   :  { %v4639_v47 = vpop.eup %4638  ;;  %v1640_v63 = vmul.f32 %v4637_v42, %v6908_v1  ;;  %4644 = vrcp.f32 %v6921_v44  ;;  %vm1645_vm9 = vweird.f32 %v4637_v42  ;;  %vm1855_vm11 = vweird.f32 %v6921_v44  ;;  %vm1627_vm12 = vmor %vm1625_vm6, %vm1626_vm7 }
 0x58a   :  { %v1622_v48 = vsub.f32 1.0, %v1621_v20  ;;  %v6935_v36 = vadd.f32 1.0, %v4639_v47  ;;  %4646 = vpow2.f32 %v4474_v34  ;;  %v4641_v41 = vpop.eup %4640  ;;  %v1859_v60 = vand.u32 2147483647, %v6921_v44  ;;  %vm1646_vm13 = vmor %vm1644_vm5, %vm1645_vm9  ;;  %v1988_v34 = vld [vmem:[%s9212_s0 + $0xe] sm:$0x3] }
 0x58b   :  { %v1641_v23 = vsub.f32 1.0, %v1640_v63  ;;  %v1861_v61 = vand.u32 2147483648, %v6921_v44  ;;  %v1668_v40 = vand.u32 2147483647, %v6918_v33  ;;  %vm1989_vm3 = vcmp.eq.s32.totalorder %v1988_v34, 0  ;;  %v7074_v34 = vld [vmem:[%s9218_s6 + $0x1c8] sm:$0xff] }
 0x58c   :  { %v1623_v18 = vmul.f32 %v4635_v46, %v1622_v48  ;;  %4648 = vrcp.f32 %v6935_v36  ;;  %vm1874_vm15 = vweird.f32 %v6935_v36  ;;  %v1880_v50 = vand.u32 2147483648, %v6935_v36 }
 0x58d   :  { %v1642_v25 = vmul.f32 %v4637_v42, %v1641_v23  ;;  %4650 = vtanh.f32 %v1844_v59  ;;  %vm6981_vm0 = vcmp.eq.f32.partialorder %v1859_v60, 8.507059e+37  ;;  %v1878_v62 = vand.u32 2147483647, %v6935_v36 }
 0x58e   :  { %v6948_v2 = vpop.eup %4642  ;;  %v1624_v53 = vadd.f32 %v4635_v46, %v1623_v18  ;;  %v1670_v4 = vand.u32 2147483648, %v6918_v33  ;;  %v1881_v48 = vor.u32 1.1754944e-38, %v1880_v50  ;;  %v4475_v59 = vsel %vm1989_vm3, 1.0, %v9638_v3 }
 0x58f   :  { %v4645_v24 = vpop.eup %4644  ;;  %v1643_v39 = vadd.f32 %v4637_v42, %v1642_v25  ;;  %v1660_v45 = vmul.f32 %v6948_v2, %v6918_v33  ;;  %vm1665_vm2 = vweird.f32 %v6948_v2  ;;  %vm2332_vm6 = vcmp.eq.s32.totalorder %v2331_v37, 0  ;;  %v2344_v33 = vld [vmem:[%s9213_s1 + $0xc] sm:$0x3] }
 0x590   :  { %v1628_v43 = vsel %vm1627_vm12, %v4635_v46, %v1624_v53  ;;  %v1851_v11 = vmul.f32 %v4645_v24, %v6921_v44  ;;  %v4647_v9 = vpop.eup %4646  ;;  %v9669_v46 = vld [vmem:[#allocation34_spill] sm:$0xff]  ;;  %vm1856_vm1 = vweird.f32 %v4645_v24  ;;  %v2673_v44 = vld [vmem:[%s9212_s0 + $0xa] sm:$0x3]  ;;  %vm7015_vm7 = vmor %vm1664_vm14, %vm1665_vm2  ;;  %v1992_v18 = vmul.f32 10000.0, %v4475_v59 }
 0x591   :  { %v1633_v17 = vsel %vm6941_vm8, %v1632_v28, %v1628_v43  ;;  %v1647_v57 = vsel %vm1646_vm13, %v4637_v42, %v1643_v39  ;;  %v1661_v54 = vsub.f32 1.0, %v1660_v45  ;;  %v6976_v32 = vadd.f32 1.0, %v4647_v9  ;;  %2147 = vmatpush.msra.mxu0 %v9669_v46  ;;  %vm1857_vm4 = vmor %vm1855_vm11, %vm1856_vm1  ;;  %v3355_v46 = vld [vmem:[%s9213_s1 + $0x6] sm:$0x3]  ;;  %v7116_v37 = vld [vmem:[%s9218_s6 + $0xe8] sm:$0xff] }
 0x592   :  { %v4649_v1 = vpop.eup %4648  ;;  %v1652_v22 = vsel %vm6950_vm10, %v1651_v55, %v1647_v57  ;;  %v1678_v21 = vmul.f32 %v4641_v41, %v1633_v17  ;;  %v1852_v31 = vsub.f32 1.0, %v1851_v11  ;;  %v1862_v42 = vor.u32 1.1754944e-38, %v1861_v61  ;;  %1995 = vperm.xlu0 %4511, %v1992_v18   ;;  %v3000_v61 = vld [vmem:[%s9212_s0 + $0x8] sm:$0x3] }
 0x593   :  { %v1677_v13 = vmul.f32 %v1675_v56, %v1652_v22  ;;  %v1870_v27 = vmul.f32 %v4649_v1, %v6935_v36  ;;  %v1662_v10 = vmul.f32 %v6948_v2, %v1661_v54  ;;  %v4651_v14 = vpop.eup %4650  ;;  %4652 = vrcp.f32 %v6976_v32  ;;  %v9670_v56 = vld [vmem:[#allocation37_spill] sm:$0xff] }
 0x594   :  { %v1853_v29 = vmul.f32 %v4645_v24, %v1852_v31  ;;  %2148 = vmatpush.msra.mxu0 %v9670_v56  ;;  %vm1875_vm5 = vweird.f32 %v4649_v1  ;;  %v4479_v6 = vsel %vm2332_vm6, 1.0, %v9638_v3  ;;  %vm1879_vm9 = vcmp.eq.f32.partialorder %v1878_v62, 8.507059e+37 }
 0x595   :  { %v1679_v20 = vadd.f32 %v1678_v21, %v1677_v13  ;;  %v1871_v7 = vsub.f32 1.0, %v1870_v27  ;;  %v1663_v63 = vadd.f32 %v6948_v2, %v1662_v10  ;;  %vm1876_vm8 = vmor %vm1874_vm15, %vm1875_vm5  ;;  %v2335_v55 = vmul.f32 10000.0, %v4479_v6  ;;  %v3342_v13 = vld [vmem:[%s9212_s0 + $0x6] sm:$0x3]  ;;  %v7154_v6 = vld [vmem:[%s9218_s6 + $0x68] sm:$0xff] }
 0x596   :  { %v1854_v47 = vadd.f32 %v4645_v24, %v1853_v29  ;;  %vm2674_vm10 = vcmp.eq.s32.totalorder %v2673_v44, 0  ;;  %v1671_v53 = vor.u32 1.1754944e-38, %v1670_v4  ;;  %vm1669_vm11 = vcmp.eq.f32.partialorder %v1668_v40, 8.507059e+37  ;;  %v7104_v4 = vld [vmem:[%s9218_s6 + $0x128] sm:$0xff] }
 0x597   :  { %4654 = vtanh.f32 %v1679_v20  ;;  %v1872_v30 = vmul.f32 %v4649_v1, %v1871_v7  ;;  %v1667_v25 = vsel %vm7015_vm7, %v6948_v2, %v1663_v63  ;;  %2338 = vperm.xlu2 %4512, %v2335_v55   ;;  %v4483_v60 = vsel %vm2674_vm10, 1.0, %v9638_v3  ;;  %v3697_v7 = vld [vmem:[%s9213_s1 + $0x4] sm:$0x3]  ;;  %v7086_v63 = vld [vmem:[%s9218_s6 + $0x188] sm:$0xff] }
 0x598   :  { %v1858_v52 = vsel %vm1857_vm4, %v4645_v24, %v1854_v47  ;;  %v1672_v45 = vsel %vm1669_vm11, %v1671_v53, %v1667_v25  ;;  %v2677_v40 = vmul.f32 10000.0, %v4483_v60  ;;  %v1900_v9 = vand.u32 2147483648, %v6976_v32  ;;  %v7080_v47 = vld [vmem:[%s9218_s6 + $0x1a8] sm:$0xff]  ;;  %v7165_v25 = vld [vmem:[%s9218_s6 + $0x1d8] sm:$0xff] }
 0x599   :  { %v1863_v23 = vsel %vm6981_vm0, %v1862_v42, %v1858_v52  ;;  %v1873_v58 = vadd.f32 %v4649_v1, %v1872_v30  ;;  %v4653_v41 = vpop.eup %4652  ;;  %vm3001_vm13 = vcmp.eq.s32.totalorder %v3000_v61, 0  ;;  %vm1894_vm14 = vweird.f32 %v6976_v32  ;;  %v4353_v42 = vld [vmem:[%s9212_s0] sm:$0x3]  ;;  %v7098_v30 = vld [vmem:[%s9218_s6 + $0x148] sm:$0xff] }
 0x59a   :  { %v1905_v49 = vmul.f32 %v4651_v14, %v1863_v23  ;;  %v1890_v51 = vmul.f32 %v4653_v41, %v6976_v32  ;;  %vm1895_vm12 = vweird.f32 %v4653_v41  ;;  %v1898_v57 = vand.u32 2147483647, %v6976_v32  ;;  %2358 = vperm.xlu0 %4511, %v2344_v33   ;;  %v3013_v32 = vld [vmem:[%s9213_s1 + $0x8] sm:$0x3]  ;;  %v7222_v33 = vld [vmem:[%s9218_s6 + $0x160] sm:$0xff] }
 0x59b   :  { %v1877_v28 = vsel %vm1876_vm8, %v4649_v1, %v1873_v58  ;;  %vm1896_vm15 = vmor %vm1894_vm14, %vm1895_vm12  ;;  %v4487_v50 = vsel %vm3001_vm13, 1.0, %v9638_v3  ;;  %v1901_v16 = vor.u32 1.1754944e-38, %v1900_v9  ;;  %vm3343_vm1 = vcmp.eq.s32.totalorder %v3342_v13, 0  ;;  %v7128_v44 = vld [vmem:[%s9218_s6 + $0xa8] sm:$0xff]  ;;  %v7140_v58 = vld [vmem:[%s9218_s6 + $0x1e0] sm:$0xff] }
 0x59c   :  { %v1882_v38 = vsel %vm1879_vm9, %v1881_v48, %v1877_v28  ;;  %v1891_v39 = vsub.f32 1.0, %v1890_v51  ;;  %vm1899_vm0 = vcmp.eq.f32.partialorder %v1898_v57, 8.507059e+37  ;;  %v3004_v21 = vmul.f32 10000.0, %v4487_v50  ;;  %v7122_v48 = vld [vmem:[%s9218_s6 + $0xc8] sm:$0xff]  ;;  %v7178_v28 = vld [vmem:[%s9218_s6 + $0x1a0] sm:$0xff]  ;;  %v7232_v9 = vld [vmem:[%s9218_s6 + $0x178] sm:$0xff] }
 0x59d   :  { %v4655_v36 = vpop.eup %4654  ;;  %v1904_v24 = vmul.f32 0.0, %v1882_v38  ;;  %v4491_v10 = vsel %vm3343_vm1, 1.0, %v9638_v3  ;;  %vm4027_vm2 = vcmp.eq.s32.totalorder %v4026_v5, 0  ;;  %vm4354_vm3 = vcmp.eq.s32.totalorder %v4353_v42, 0  ;;  %v7134_v23 = vld [vmem:[%s9218_s6 + $0x88] sm:$0xff]  ;;  %v7274_v5 = vld [vmem:[%s9218_s6 + $0x120] sm:$0xff] }
 0x59e   :  { %v1681_v2 = vmul.f32 %v4655_v36, %v1672_v45  ;;  %v1892_v43 = vmul.f32 %v4653_v41, %v1891_v39  ;;  %v3346_v14 = vmul.f32 10000.0, %v4491_v10  ;;  %v4499_v29 = vsel %vm4027_vm2, 1.0, %v9638_v3  ;;  %v7172_v55 = vld [vmem:[%s9218_s6 + $0x48] sm:$0xff]  ;;  %v7188_v51 = vld [vmem:[%s9220_s8] ss:$0 sm:$0xff]  ;;  %v7207_v39 = vld [vmem:[%s9218_s6 + $0x198] sm:$0xff] }
 0x59f   :  { %v7033_v0 = vadd.f32 %v1905_v49, %v1904_v24  ;;  %2680 = vperm.xlu2 %4512, %v2677_v40   ;;  %v4030_v20 = vmul.f32 10000.0, %v4499_v29  ;;  %v4503_v62 = vsel %vm4354_vm3, 1.0, %v9638_v3  ;;  %v36_v59 = vlaneseq  ;;  %v7183_v49 = vld [vmem:[%s9218_s6 + $0x1b8] sm:$0xff]  ;;  %9674 = vst [vmem:[#allocation16_spill] sm:$0xff] %v7188_v51  ;;  %v7196_v38 = vld [vmem:[%s9218_s6 + $0x28] sm:$0xff]  ;;  %v7202_v24 = vld [vmem:[%s9218_s6 + $0x180] sm:$0xff] }
 0x5a0   :  { %v1965_v11 = vrot.slane %v1681_v2, 6  ;;  %v1893_v17 = vadd.f32 %v4653_v41, %v1892_v43  ;;  %v4357_v56 = vmul.f32 10000.0, %v4503_v62  ;;  %v7214_v61 = vld [vmem:[%s9218_s6 + $0x8] sm:$0xff]  ;;  %v7227_v40 = vld [vmem:[%s9218_s6 + $0x1f0] sm:$0xff]  ;;  %vm2002_vm6 = vcmask 1041408  }
 0x5a1   :  { %4656 = vtanh.f32 %v7033_v0  ;;  %v7147_v18 = vand.u32 127, %v36_v59  ;;  %9675 = vst [vmem:[#allocation12_spill] sm:$0xff] %v7227_v40  ;;  %v2028_v57 = vld [vmem:[#allocation2 + $0x28] sm:$0x30]  ;;  %v7279_v10 = vld [vmem:[%s9218_s6 + $0x1b0] sm:$0xff] }
 0x5a2   :  { %1983 = vmatmul.f32.vlgmr.msrb.gmra.mxu1 %v1965_v11  ;;  %v1897_v54 = vsel %vm1896_vm15, %v4653_v41, %v1893_v17  ;;  %3007 = vperm.xlu0 %4511, %v3004_v21   ;;  %v7160_v41 = vld [vmem:[%s9218_s6 + $0x1c0] sm:$0xff]  ;;  %9678 = vst [vmem:[#allocation21_spill] sm:$0xff] %v7279_v10  ;;  %v7309_v59 = vld [vmem:[%s9218_s6 + $0x190] sm:$0xff] }
 0x5a3   :  { %v1902_v22 = vsel %vm1899_vm0, %v1901_v16, %v1897_v54  ;;  %9673 = vst [vmem:[#allocation11_spill] sm:$0xff] %v7147_v18  ;;  %vm38_vm4 = vcmp.eq.s32.totalorder %v7147_v18, 0  ;;  %v7240_v54 = vld [vmem:[%s9219_s7 + $0x78] sm:$0xff]  ;;  %v7248_v16 = vld [vmem:[%s9218_s6 + $0x140] sm:$0xff] }
 0x5a4   :  { %9679 = vst [vmem:[#allocation14_spill] sm:$0xff] %v7309_v59 }
 0x5a7   :  { %v4657_v1 = vpop.eup %4656  ;;  %3027 = vperm.xlu2 %4512, %v3013_v32  }
 0x5a8   :  { %v1908_v31 = vmul.f32 %v4657_v1, %v1902_v22  ;;  %v7253_v1 = vld [vmem:[%s9218_s6 + $0x1d0] sm:$0xff]  ;;  %v7258_v22 = vld [vmem:[%s9218_s6 + $0x158] sm:$0xff] }
 0x5a9   :  { %9676 = vst [vmem:[#allocation18_spill] sm:$0xff] %v7253_v1 }
 0x5aa   :  { %v1942_v27 = vrot.slane %v1908_v31, 6  ;;  %3369 = vperm.xlu0 %4511, %v3355_v46   ;;  %v7267_v31 = vld [vmem:[%s9219_s7 + $0x70] sm:$0xff]  ;;  %v7284_v46 = vld [vmem:[%s9218_s6 + $0x138] sm:$0xff] }
 0x5ac   :  { %1960 = vmatmul.f32.vlgmr.msrb.gmra.mxu0 %v1942_v27  ;;  %2109 = vmatmul.f32.vlgmr.msrb.gmra.mxu2 %v1942_v27 }
 0x5ad   :  { %2129 = vmatmul.f32.vlgmr.msrb.gmra.mxu3 %v1942_v27  ;;  %2169 = vmatmul.f32.vlgmr.msra.gmra.mxu1 %v1942_v27 }
 0x5ae   :  { %2435 = vmatpush.msrb.mxu0 %v7140_v58  ;;  %2495 = vmatpush.msrb.mxu3 %v7145_v12 }
 0x5af   :  { %3349 = vperm.xlu2 %4512, %v3346_v14   ;;  %2475 = vmatpush.msrb.mxu2 %v7227_v40  ;;  %v7461_v40 = vld [vmem:[%s9218_s6 + $0x58] sm:$0xff] }
 0x5b0   :  { %2436 = vmatpush.msrb.mxu0 %v7160_v41  ;;  %2496 = vmatpush.msrb.mxu3 %v7165_v25  ;;  %9695 = vst [vmem:[#allocation30_spill] sm:$0xff] %v7461_v40 }
 0x5b1   :  { %2476 = vmatpush.msrb.mxu2 %v7253_v1 }
 0x5b2   :  { %4033 = vperm.xlu0 %4511, %v4030_v20   ;;  %2437 = vmatpush.msrb.mxu0 %v7178_v28 }
 0x5b3   :  { %2497 = vmatpush.msrb.mxu3 %v7183_v49  ;;  %2477 = vmatpush.msrb.mxu2 %v7279_v10 }
 0x5b4   :  { %2149 = vmatmul.f32.vlgmr.msra.gmra.mxu0 %v1942_v27  ;;  %v2025_v27 = vld [vmem:[#allocation2 + $0x60] sm:$0x30] }
 0x5b5   :  { %2326 = vmatmul.f32.vlgmr.msra.gmra.mxu3 %v6746_v35  ;;  %v7068_v35 = vld [vmem:[%s9218_s6 + $0x1e8] sm:$0xff]  ;;  %2438 = vmatpush.msrb.mxu0 %v7202_v24 }
 0x5b6   :  { %2455 = vmatpush.msrb.mxu1 %v7068_v35  ;;  %2498 = vmatpush.msrb.mxu3 %v7207_v39 }
 0x5b7   :  { %3711 = vperm.xlu2 %4512, %v3697_v7   ;;  %2439 = vmatpush.msrb.mxu0 %v7222_v33  ;;  %v7297_v7 = vld [vmem:[%s9219_s7 + $0x68] sm:$0xff] }
 0x5b8   :  { %2456 = vmatpush.msrb.mxu1 %v7074_v34  ;;  %2499 = vmatpush.msrb.mxu3 %v7232_v9 }
 0x5b9   :  { %2440 = vmatpush.msrb.mxu0 %v7248_v16  ;;  %2478 = vmatpush.msrb.mxu2 %v7309_v59  ;;  %v7447_v59 = vld [vmem:[%s9218_s6 + $0x40] sm:$0xff] }
 0x5ba   :  { %4360 = vperm.xlu0 %4511, %v4357_v56   ;;  %2457 = vmatpush.msrb.mxu1 %v7080_v47  ;;  %9693 = vst [vmem:[#allocation28_spill] sm:$0xff] %v7447_v59 }
 0x5bb   :  { %2500 = vmatpush.msrb.mxu3 %v7258_v22  ;;  %2441 = vmatpush.msrb.mxu0 %v7274_v5 }
 0x5bc   :  { %2458 = vmatpush.msrb.mxu1 %v7086_v63 }
 0x5bd   :  { %2501 = vmatpush.msrb.mxu3 %v7284_v46 }
 0x5be   :  { %2459 = vmatpush.msrb.mxu1 %v7092_v26 }
 0x5c0   :  { %2460 = vmatpush.msrb.mxu1 %v7098_v30 }
 0x5c2   :  { %2461 = vmatpush.msrb.mxu1 %v7104_v4 }
 0x5c4   :  { %2462 = vmatpush.msrb.mxu1 %v7110_v19 }
 0x5c6   :  { %2463 = vmatpush.msrb.mxu1 %v7116_v37 }
 0x5c8   :  { %2464 = vmatpush.msrb.mxu1 %v7122_v48 }
 0x5ca   :  { %2465 = vmatpush.msrb.mxu1 %v7128_v44 }
 0x5cc   :  { %2466 = vmatpush.msrb.mxu1 %v7134_v23 }
 0x5ce   :  { %2467 = vmatpush.msrb.mxu1 %v7154_v6 }
 0x5d0   :  { %2468 = vmatpush.msrb.mxu1 %v7172_v55 }
 0x5d2   :  { %2469 = vmatpush.msrb.mxu1 %v7196_v38 }
 0x5d4   :  { %2470 = vmatpush.msrb.mxu1 %v7214_v61 }
 0x5d6   :  { %2652 = vmatpush.msra.mxu1 %v7240_v54 }
 0x5d8   :  { %2653 = vmatpush.msra.mxu1 %v7267_v31 }
 0x5da   :  { %2654 = vmatpush.msra.mxu1 %v7297_v7 }
 0x5f7   :  { %v2017_v2 = vpop.permute.xlu1 %2016 }
 0x5f8   :  { %vm2018_vm5 = vcmp.eq.s32.totalorder %v7147_v18, %v2017_v2  ;;  %v7428_v18 = vld [vmem:[%s9218_s6 + $0xf0] sm:$0xff] }
 0x5f9   :  { %9690 = vst [vmem:[#allocation33_spill] sm:$0xff] %v7428_v18 }
 0x604   :  { %v1996_v53 = vpop.permute.xlu0 %1995 }
 0x605   :  { %v1998_v11 = vsel %vm38_vm4, %v1996_v53, 0.0  ;;  %v7314_v53 = vld [vmem:[%s9218_s6 + $0x118] sm:$0xff] }
 0x606   :  { %2502 = vmatpush.msrb.mxu3 %v7314_v53 }
 0x61f   :  { %v1984_v52 = vpop.f32.mrf.mxu1 }
 0x629   :  { %v1961_v36 = vpop.f32.mrf.mxu0 }
 0x62a   :  { %v1985_v45 = vadd.f32 %v1984_v52, %v1961_v36  ;;  %v2170_v60 = vpop.f32.mrf.mxu1  ;;  %v7304_v52 = vld [vmem:[%s9218_s6 + $0x100] sm:$0xff] }
 0x62b   :  { %v2180_v43 = vrot.slane %v2170_v60, 4  ;;  %v7320_v60 = vld [vmem:[%s9219_s7 + $0x60] sm:$0xff]  ;;  %2442 = vmatpush.msrb.mxu0 %v7304_v52 }
 0x62c   :  { %v1987_v17 = vadd.f32 %v7188_v51, %v1985_v45  ;;  %v2026_v45 = vld [vmem:[#allocation2 + $0x70] sm:$0x30]  ;;  %2655 = vmatpush.msra.mxu1 %v7320_v60 }
 0x62d   :  { %v2188_v50 = vadd.f32 %v2180_v43, %v2028_v57  ;;  %v7327_v43 = vld [vmem:[%s9218_s6 + $0xe0] sm:$0xff] }
 0x62e   :  { %v7260_v21 = vadd.f32 %v1998_v11, %v1987_v17  ;;  %v7332_v11 = vld [vmem:[%s9218_s6 + $0x170] sm:$0xff]  ;;  %v7337_v17 = vld [vmem:[%s9218_s6 + $0xf8] sm:$0xff]  ;;  %2443 = vmatpush.msrb.mxu0 %v7327_v43 }
 0x62f   :  { %v4478_v13 = vmul.f32 -1.442695, %v2188_v50  ;;  %v2110_v32 = vpop.f32.mrf.mxu2  ;;  %9680 = vst [vmem:[#allocation23_spill] sm:$0xff] %v7332_v11  ;;  %v7344_v50 = vld [vmem:[%s9219_s7 + $0x58] sm:$0xff]  ;;  %2479 = vmatpush.msrb.mxu2 %v7332_v11  ;;  %2503 = vmatpush.msrb.mxu3 %v7337_v17 }
 0x630   :  { %9677 = vst [vmem:[#allocation13_spill] sm:$0xff] %v7260_v21  ;;  %v2177_v14 = vrot.slane %v2110_v32, 4  ;;  %v2130_v29 = vpop.f32.mrf.mxu3  ;;  %v2003_v42 = vsel %vm2002_vm6, %v7260_v21, -inf  ;;  %v2019_v20 = vsel %vm2018_vm5, %v7260_v21, 0.0  ;;  %v7356_v32 = vld [vmem:[%s9218_s6 + $0x150] sm:$0xff]  ;;  %2656 = vmatpush.msra.mxu1 %v7344_v50 }
 0x631   :  { %2000 = vst [vmem:[#allocation5 + $0xe] sm:$0x3] %v7260_v21  ;;  %4658 = vpow2.f32 %v4478_v13  ;;  %v2178_v62 = vrot.slane %v2130_v29, 4  ;;  %2004 = vmax.xlane.f32.xlu0 %v2003_v42  ;;  %v2020_v56 = vsel %vm2002_vm6, %v2019_v20, 0.0  ;;  %v7368_v29 = vld [vmem:[%s9219_s7 + $0x50] sm:$0xff]  ;;  %v7373_v42 = vld [vmem:[%s9218_s6 + $0xa0] sm:$0xff]  ;;  %2480 = vmatpush.msrb.mxu2 %v7356_v32 }
 0x632   :  { %v2185_v36 = vadd.f32 %v2177_v14, %v2025_v27  ;;  %2021 = vadd.xlane.f32.xlu2 %v2020_v56  ;;  %v7351_v27 = vld [vmem:[%s9218_s6 + $0xc0] sm:$0xff]  ;;  %9681 = vst [vmem:[#allocation15_spill] sm:$0xff] %v7356_v32  ;;  %v7361_v14 = vld [vmem:[%s9218_s6 + $0xd8] sm:$0xff]  ;;  %v7378_v20 = vld [vmem:[%s9218_s6 + $0x130] sm:$0xff]  ;;  %2657 = vmatpush.msra.mxu1 %v7368_v29 }
 0x633   :  { %v2186_v2 = vadd.f32 %v2178_v62, %v2026_v45  ;;  %9682 = vst [vmem:[#allocation25_spill] sm:$0xff] %v7373_v42  ;;  %2444 = vmatpush.msrb.mxu0 %v7351_v27  ;;  %v7385_v56 = vld [vmem:[%s9218_s6 + $0xb8] sm:$0xff]  ;;  %2504 = vmatpush.msrb.mxu3 %v7361_v14  ;;  %v7397_v45 = vld [vmem:[%s9218_s6 + $0x80] sm:$0xff]  ;;  %v7466_v21 = vld [vmem:[%s9219_s7 + $0x30] sm:$0xff] }
 0x634   :  { %v4476_v57 = vmul.f32 -1.442695, %v2185_v36  ;;  %9683 = vst [vmem:[#allocation17_spill] sm:$0xff] %v7378_v20  ;;  %v7390_v36 = vld [vmem:[%s9219_s7 + $0x48] sm:$0xff]  ;;  %2481 = vmatpush.msrb.mxu2 %v7378_v20  ;;  %v7423_v20 = vld [vmem:[%s9218_s6 + $0x60] sm:$0xff]  ;;  %v7440_v32 = vld [vmem:[%s9219_s7 + $0x38] sm:$0xff] }
 0x635   :  { %v4477_v13 = vmul.f32 -1.442695, %v2186_v2  ;;  %9684 = vst [vmem:[#allocation27_spill] sm:$0xff] %v7385_v56  ;;  %v7402_v2 = vld [vmem:[%s9218_s6 + $0x110] sm:$0xff]  ;;  %2445 = vmatpush.msrb.mxu0 %v7373_v42  ;;  %2505 = vmatpush.msrb.mxu3 %v7385_v56 }
 0x636   :  { %4660 = vpow2.f32 %v4476_v57  ;;  %9685 = vst [vmem:[#allocation19_spill] sm:$0xff] %v7397_v45  ;;  %v7409_v57 = vld [vmem:[%s9218_s6 + $0x98] sm:$0xff]  ;;  %2658 = vmatpush.msra.mxu1 %v7390_v36  ;;  %2482 = vmatpush.msrb.mxu2 %v7402_v2 }
 0x637   :  { %v4659_v62 = vpop.eup %4658  ;;  %4662 = vpow2.f32 %v4477_v13  ;;  %9686 = vst [vmem:[#allocation29_spill] sm:$0xff] %v7402_v2  ;;  %v7414_v13 = vld [vmem:[%s9219_s7 + $0x40] sm:$0xff]  ;;  %2446 = vmatpush.msrb.mxu0 %v7397_v45  ;;  %2506 = vmatpush.msrb.mxu3 %v7409_v57  ;;  %v7452_v2 = vld [vmem:[%s9218_s6 + $0xd0] sm:$0xff] }
 0x638   :  { %9687 = vst [vmem:[#allocation22_spill] sm:$0xff] %v7409_v57  ;;  %v7416_v51 = vadd.f32 1.0, %v4659_v62  ;;  %v7435_v62 = vld [vmem:[%s9218_s6 + $0x78] sm:$0xff]  ;;  %2659 = vmatpush.msra.mxu1 %v7414_v13  ;;  %2483 = vmatpush.msrb.mxu2 %v7428_v18  ;;  %v7476_v18 = vld [vmem:[%s9218_s6 + $0x20] sm:$0xff]  ;;  %v7563_v57 = vld [vmem:[%s9218_s6 + $0x10] sm:$0xff] }
 0x639   :  { %9688 = vst [vmem:[#allocation31_spill] sm:$0xff] %v7414_v13  ;;  %2447 = vmatpush.msrb.mxu0 %v7423_v20  ;;  %2507 = vmatpush.msrb.mxu3 %v7435_v62 }
 0x63a   :  { %9689 = vst [vmem:[#allocation24_spill] sm:$0xff] %v7423_v20  ;;  %4664 = vrcp.f32 %v7416_v51  ;;  %2660 = vmatpush.msra.mxu1 %v7440_v32  ;;  %v7481_v20 = vld [vmem:[%s9218_s6 + $0xb0] sm:$0xff]  ;;  %2484 = vmatpush.msrb.mxu2 %v7452_v2  ;;  %vm2237_vm1 = vweird.f32 %v7416_v51 }
 0x63b   :  { %9691 = vst [vmem:[#allocation26_spill] sm:$0xff] %v7435_v62  ;;  %2448 = vmatpush.msrb.mxu0 %v7447_v59  ;;  %2508 = vmatpush.msrb.mxu3 %v7461_v40  ;;  %v7497_v62 = vld [vmem:[%s9218_s6] sm:$0xff]  ;;  %v7509_v40 = vld [vmem:[%s9218_s6 + $0x18] sm:$0xff] }
 0x63c   :  { %9692 = vst [vmem:[#allocation36_spill] sm:$0xff] %v7440_v32  ;;  %v4661_v11 = vpop.eup %4660  ;;  %2661 = vmatpush.msra.mxu1 %v7466_v21  ;;  %2485 = vmatpush.msrb.mxu2 %v7481_v20 }
 0x63d   :  { %9694 = vst [vmem:[#allocation40_spill] sm:$0xff] %v7452_v2  ;;  %v4663_v10 = vpop.eup %4662  ;;  %v7454_v1 = vadd.f32 1.0, %v4661_v11  ;;  %v2150_v11 = vpop.f32.mrf.mxu0  ;;  %v7502_v2 = vld [vmem:[%s9218_s6 + $0x90] sm:$0xff]  ;;  %2449 = vmatpush.msrb.mxu0 %v7476_v18 }
 0x63e   :  { %9696 = vst [vmem:[#allocation32_spill] sm:$0xff] %v7466_v21  ;;  %v7469_v45 = vadd.f32 1.0, %v4663_v10  ;;  %v7489_v10 = vld [vmem:[%s9218_s6 + $0x38] sm:$0xff]  ;;  %v2179_v59 = vrot.slane %v2150_v11, 4  ;;  %2662 = vmatpush.msra.mxu1 %v6842_v8  ;;  %v7516_v21 = vld [vmem:[%s9218_s6 + $0x70] sm:$0xff]  ;;  %2486 = vmatpush.msrb.mxu2 %v7502_v2 }
 0x63f   :  { %9697 = vst [vmem:[#allocation34_spill] sm:$0xff] %v7476_v18  ;;  %4666 = vrcp.f32 %v7454_v1  ;;  %2509 = vmatpush.msrb.mxu3 %v7489_v10  ;;  %2450 = vmatpush.msrb.mxu0 %v7497_v62  ;;  %v7523_v11 = vld [vmem:[%s9219_s7 + $0x18] sm:$0xff]  ;;  %v7532_v8 = vld [vmem:[%s9218_s6 + $0x50] sm:$0xff]  ;;  %vm2198_vm10 = vweird.f32 %v7454_v1 }
 0x640   :  { %9698 = vst [vmem:[#allocation37_spill] sm:$0xff] %v7481_v20  ;;  %4668 = vrcp.f32 %v7469_v45  ;;  %v7525_v20 = vpop.eup %4664  ;;  %v2027_v18 = vld [vmem:[#allocation2 + $0x78] sm:$0x30]  ;;  %2663 = vmatpush.msra.mxu1 %v6851_v15  ;;  %2487 = vmatpush.msrb.mxu2 %v7516_v21  ;;  %v7546_v15 = vld [vmem:[%s9218_s6 + $0x30] sm:$0xff]  ;;  %v2221_v13 = vand.u32 2147483647, %v7469_v45  ;;  %vm2217_vm11 = vweird.f32 %v7469_v45 }
 0x641   :  { %9699 = vst [vmem:[#allocation41_spill] sm:$0xff] %v7489_v10  ;;  %2510 = vmatpush.msrb.mxu3 %v7509_v40  ;;  %v2187_v10 = vadd.f32 %v2179_v59, %v2027_v18  ;;  %v7553_v59 = vld [vmem:[%s9219_s7 + $0x8] sm:$0xff]  ;;  %vm2238_vm0 = vweird.f32 %v7525_v20 }
 0x642   :  { %9700 = vst [vmem:[#allocation42_spill] sm:$0xff] %v7497_v62  ;;  %2664 = vmatpush.msra.mxu1 %v7523_v11  ;;  %2488 = vmatpush.msrb.mxu2 %v7532_v8  ;;  %vm2222_vm15 = vcmp.eq.f32.partialorder %v2221_v13, 8.507059e+37  ;;  %vm2239_vm2 = vmor %vm2237_vm1, %vm2238_vm0  ;;  %v2619_v13 = vld [vmem:[%s9219_s7 + $0xb0] sm:$0xff] }
 0x643   :  { %9701 = vst [vmem:[#allocation43_spill] sm:$0xff] %v7502_v2  ;;  %v7538_v2 = vld [vmem:[%s9219_s7 + $0x10] sm:$0xff]  ;;  %2797 = vmatpush.msra.mxu3 %v7068_v35  ;;  %v2233_v35 = vmul.f32 %v7525_v20, %v7416_v51  ;;  %4670 = vtanh.f32 %v2187_v10 }
 0x644   :  { %9702 = vst [vmem:[#allocation44_spill] sm:$0xff] %v7509_v40  ;;  %2665 = vmatpush.msra.mxu1 %v7538_v2  ;;  %2489 = vmatpush.msrb.mxu2 %v7546_v15 }
 0x645   :  { %9703 = vst [vmem:[#allocation45_spill] sm:$0xff] %v7516_v21  ;;  %v4667_v62 = vpop.eup %4666  ;;  %2798 = vmatpush.msra.mxu3 %v7074_v34  ;;  %v7569_v34 = vld [vmem:[%s9219_s7] sm:$0xff]  ;;  %v2234_v56 = vsub.f32 1.0, %v2233_v35 }
 0x646   :  { %9704 = vst [vmem:[#allocation46_spill] sm:$0xff] %v7523_v11  ;;  %v4669_v32 = vpop.eup %4668  ;;  %v2194_v40 = vmul.f32 %v4667_v62, %v7454_v1  ;;  %v2204_v11 = vand.u32 2147483648, %v7454_v1  ;;  %vm2199_vm7 = vweird.f32 %v4667_v62  ;;  %2666 = vmatpush.msra.mxu1 %v7553_v59  ;;  %2490 = vmatpush.msrb.mxu2 %v7563_v57 }
 0x647   :  { %9705 = vst [vmem:[#allocation47_spill] sm:$0xff] %v7532_v8  ;;  %v2213_v18 = vmul.f32 %v4669_v32, %v7469_v45  ;;  %2799 = vmatpush.msra.mxu3 %v7080_v47  ;;  %vm2218_vm8 = vweird.f32 %v4669_v32  ;;  %vm2200_vm12 = vmor %vm2198_vm10, %vm2199_vm7 }
 0x648   :  { %9706 = vst [vmem:[#allocation48_spill] sm:$0xff] %v7538_v2  ;;  %v2195_v21 = vsub.f32 1.0, %v2194_v40  ;;  %v2686_v40 = vld [vmem:[%s9213_s1 + $0xa] sm:$0x3]  ;;  %v3684_v2 = vld [vmem:[%s9212_s0 + $0x4] sm:$0x3]  ;;  %2667 = vmatpush.msra.mxu1 %v7569_v34  ;;  %vm2219_vm13 = vmor %vm2217_vm11, %vm2218_vm8 }
 0x649   :  { %9707 = vst [vmem:[#allocation49_spill] sm:$0xff] %v7546_v15  ;;  %v2214_v8 = vsub.f32 1.0, %v2213_v18  ;;  %v2223_v18 = vand.u32 2147483648, %v7469_v45  ;;  %v2202_v15 = vand.u32 2147483647, %v7454_v1  ;;  %2700 = vperm.xlu1 %4510, %v2686_v40   ;;  %vm3685_vm9 = vcmp.eq.s32.totalorder %v3684_v2, 0  ;;  %2800 = vmatpush.msra.mxu3 %v7086_v63 }
 0x64a   :  { %9708 = vst [vmem:[#allocation50_spill] sm:$0xff] %v7563_v57  ;;  %v2196_v10 = vmul.f32 %v4667_v62, %v2195_v21  ;;  %v4495_v21 = vsel %vm3685_vm9, 1.0, %v9638_v3  ;;  %v2248_v1 = vrot.slane %v7033_v0, 2  ;;  %v2235_v3 = vmul.f32 %v7525_v20, %v2234_v56  ;;  %s4413_s0 = sshll.u32 %s4922_s24, 4  ;;  %s4414_s0 = int_to_ptr.vmem [resolvable:$true] %s4413_s0 }
 0x64b   :  { %9709 = vst [vmem:[#allocation51_spill] sm:$0xff] %v7569_v34  ;;  %v2215_v42 = vmul.f32 %v4669_v32, %v2214_v8  ;;  %v2205_v8 = vor.u32 1.1754944e-38, %v2204_v11  ;;  %2801 = vmatpush.msra.mxu3 %v7092_v26  ;;  %v2224_v2 = vor.u32 1.1754944e-38, %v2223_v18  ;;  %vm2203_vm14 = vcmp.eq.f32.partialorder %v2202_v15, 8.507059e+37  ;;  %v2618_v15 = vld [vmem:[%s9219_s7 + $0xa8] sm:$0xff]  ;;  %v2616_v18 = vld [vmem:[%s9219_s7 + $0x98] sm:$0xff] }
 0x64c   :  { %v2197_v47 = vadd.f32 %v4667_v62, %v2196_v10  ;;  %v3688_v35 = vmul.f32 10000.0, %v4495_v21  ;;  %v4671_v10 = vpop.eup %4670  ;;  %v2243_v0 = vand.u32 2147483648, %v7416_v51  ;;  %v2614_v21 = vld [vmem:[%s9219_s7 + $0x88] sm:$0xff] }
 0x64d   :  { %v2216_v40 = vadd.f32 %v4669_v32, %v2215_v42  ;;  %2802 = vmatpush.msra.mxu3 %v7098_v30  ;;  %v2241_v30 = vand.u32 2147483647, %v7416_v51 }
 0x64e   :  { %v2201_v63 = vsel %vm2200_vm12, %v4667_v62, %v2197_v47  ;;  %v2236_v62 = vadd.f32 %v7525_v20, %v2235_v3  ;;  %v2615_v47 = vld [vmem:[%s9219_s7 + $0x90] sm:$0xff] }
 0x64f   :  { %v2206_v57 = vsel %vm2203_vm14, %v2205_v8, %v2201_v63  ;;  %v2220_v34 = vsel %vm2219_vm13, %v4669_v32, %v2216_v40  ;;  %2803 = vmatpush.msra.mxu3 %v7104_v4  ;;  %vm2242_vm3 = vcmp.eq.f32.partialorder %v2241_v30, 8.507059e+37  ;;  %v2613_v8 = vld [vmem:[%s9219_s7 + $0x80] sm:$0xff]  ;;  %v9732_v40 = vld [vmem:[#allocation12_spill] sm:$0xff]  ;;  %v2327_v63 = vpop.f32.mrf.mxu3 }
 0x650   :  { %v2225_v45 = vsel %vm2222_vm15, %v2224_v2, %v2220_v34  ;;  %v2251_v42 = vmul.f32 %v4671_v10, %v2206_v57  ;;  %v2240_v4 = vsel %vm2239_vm2, %v7525_v20, %v2236_v62  ;;  %v2621_v20 = vld [vmem:[%s9219_s7 + $0xc0] sm:$0xff]  ;;  %v9734_v10 = vld [vmem:[#allocation21_spill] sm:$0xff] }
 0x651   :  { %v2250_v11 = vmul.f32 %v2248_v1, %v2225_v45  ;;  %3691 = vperm.xlu1 %4510, %v3688_v35   ;;  %2804 = vmatpush.msra.mxu3 %v7110_v19  ;;  %v2244_v19 = vor.u32 1.1754944e-38, %v2243_v0  ;;  %v2617_v34 = vld [vmem:[%s9219_s7 + $0xa0] sm:$0xff]  ;;  %v2368_v0 = vld [vmem:[#allocation2 + $0x70] sm:$0xc] }
 0x652   :  { %v9733_v2 = vld [vmem:[#allocation18_spill] sm:$0xff]  ;;  %v2367_v45 = vld [vmem:[#allocation2 + $0x60] sm:$0xc] }
 0x653   :  { %v7595_v26 = vadd.f32 %v2251_v42, %v2250_v11  ;;  %2805 = vmatpush.msra.mxu3 %v7116_v37  ;;  %v2245_v56 = vsel %vm2242_vm3, %v2244_v19, %v2240_v4  ;;  %v9735_v11 = vld [vmem:[#allocation14_spill] sm:$0xff]  ;;  %v9736_v4 = vld [vmem:[#allocation23_spill] sm:$0xff] }
 0x655   :  { %4672 = vtanh.f32 %v7595_v26  ;;  %2806 = vmatpush.msra.mxu3 %v7122_v48  ;;  %v9710_v48 = vld [vmem:[#allocation10_spill] sm:$0xff] }
 0x657   :  { %2807 = vmatpush.msra.mxu3 %v7128_v44  ;;  %v7635_v44 = vpop.permute.xlu0 %2358 }
 0x659   :  { %2808 = vmatpush.msra.mxu3 %v7134_v23  ;;  %v9711_v23 = vld [vmem:[#allocation27_spill] sm:$0xff] }
 0x65b   :  { %v4673_v32 = vpop.eup %4672  ;;  %2809 = vmatpush.msra.mxu3 %v7154_v6  ;;  %v9714_v6 = vld [vmem:[#allocation22_spill] sm:$0xff] }
 0x65c   :  { %v2254_v57 = vmul.f32 %v4673_v32, %v2245_v56 }
 0x65d   :  { %2810 = vmatpush.msra.mxu3 %v7172_v55  ;;  %v9717_v55 = vld [vmem:[#allocation26_spill] sm:$0xff] }
 0x65e   :  { %v2288_v37 = vrot.slane %v2254_v57, 4  ;;  %v9737_v57 = vld [vmem:[#allocation15_spill] sm:$0xff] }
 0x65f   :  { %2811 = vmatpush.msra.mxu3 %v7196_v38  ;;  %v7652_v51 = vpop.permute.xlu0 %3007  ;;  %v9721_v38 = vld [vmem:[#allocation30_spill] sm:$0xff] }
 0x660   :  { %2306 = vmatmul.f32.vlgmr.msra.gmra.mxu2 %v2288_v37  ;;  %2451 = vmatmul.f32.vlgmr.msrb.gmra.mxu0 %v2288_v37  ;;  %9720 = vst [vmem:[#allocation10_spill] sm:$0xff] %v7652_v51  ;;  %v8085_v51 = vld [vmem:[%s9219_s7 + $0x50] sm:$0xff] }
 0x661   :  { %2471 = vmatmul.f32.vlgmr.msrb.gmra.mxu1 %v2288_v37  ;;  %2511 = vmatmul.f32.vlgmr.msrb.gmra.mxu3 %v2288_v37 }
 0x662   :  { %2777 = vmatpush.msra.mxu2 %v7140_v58  ;;  %2837 = vmatpush.msrb.mxu1 %v7145_v12  ;;  %v9712_v58 = vld [vmem:[#allocation31_spill] sm:$0xff]  ;;  %v9713_v12 = vld [vmem:[#allocation25_spill] sm:$0xff] }
 0x663   :  { %2812 = vmatpush.msra.mxu3 %v7214_v61  ;;  %v9724_v61 = vld [vmem:[#allocation34_spill] sm:$0xff] }
 0x664   :  { %2778 = vmatpush.msra.mxu2 %v7160_v41  ;;  %2838 = vmatpush.msrb.mxu1 %v7165_v25  ;;  %v9715_v41 = vld [vmem:[#allocation36_spill] sm:$0xff]  ;;  %v9716_v25 = vld [vmem:[#allocation19_spill] sm:$0xff] }
 0x665   :  { %2979 = vmatpush.msrb.mxu3 %v7240_v54 }
 0x666   :  { %2779 = vmatpush.msra.mxu2 %v7178_v28  ;;  %2839 = vmatpush.msrb.mxu1 %v7183_v49  ;;  %v9718_v28 = vld [vmem:[#allocation32_spill] sm:$0xff] }
 0x667   :  { %2980 = vmatpush.msrb.mxu3 %v7267_v31  ;;  %v9719_v49 = vld [vmem:[#allocation24_spill] sm:$0xff]  ;;  %v7660_v54 = vpop.permute.xlu0 %3369 }
 0x668   :  { %2491 = vmatmul.f32.vlgmr.msrb.gmra.mxu2 %v2288_v37  ;;  %2840 = vmatpush.msrb.mxu1 %v7207_v39  ;;  %v9723_v39 = vld [vmem:[#allocation41_spill] sm:$0xff]  ;;  %9727 = vst [vmem:[#allocation27_spill] sm:$0xff] %v7660_v54  ;;  %v7728_v37 = vld [vmem:[%s9219_s7 + $0x28] sm:$0xff] }
 0x669   :  { %2668 = vmatmul.f32.vlgmr.msra.gmra.mxu1 %v9710_v48  ;;  %2780 = vmatpush.msra.mxu2 %v7202_v24  ;;  %v9722_v24 = vld [vmem:[#allocation28_spill] sm:$0xff]  ;;  %v7733_v48 = vld [vmem:[%s9219_s7 + $0x20] sm:$0xff]  ;;  %v8072_v54 = vld [vmem:[%s9218_s6 + $0xd8] sm:$0xff] }
 0x66a   :  { %2841 = vmatpush.msrb.mxu1 %v7232_v9  ;;  %2981 = vmatpush.msrb.mxu3 %v7297_v7  ;;  %v9726_v9 = vld [vmem:[#allocation42_spill] sm:$0xff]  ;;  %v2627_v31 = vld [vmem:[%s9219_s7 + $0xf0] sm:$0xff] }
 0x66b   :  { %2781 = vmatpush.msra.mxu2 %v7222_v33  ;;  %v9725_v33 = vld [vmem:[#allocation44_spill] sm:$0xff] }
 0x66c   :  { %2842 = vmatpush.msrb.mxu1 %v7258_v22  ;;  %2982 = vmatpush.msrb.mxu3 %v7320_v60  ;;  %v2628_v22 = vld [vmem:[%s9219_s7 + $0xf8] sm:$0xff] }
 0x66d   :  { %2782 = vmatpush.msra.mxu2 %v7248_v16  ;;  %2632 = vmatpush.msra.mxu0 %v2628_v22 }
 0x66e   :  { %2843 = vmatpush.msrb.mxu1 %v7284_v46  ;;  %2983 = vmatpush.msrb.mxu3 %v7344_v50  ;;  %v2625_v50 = vld [vmem:[%s9219_s7 + $0xe0] sm:$0xff] }
 0x66f   :  { %2783 = vmatpush.msra.mxu2 %v7274_v5  ;;  %v7662_v16 = vpop.permute.xlu0 %4033  ;;  %v2626_v5 = vld [vmem:[%s9219_s7 + $0xe8] sm:$0xff]  ;;  %2633 = vmatpush.msra.mxu0 %v2627_v31 }
 0x670   :  { %2844 = vmatpush.msrb.mxu1 %v7314_v53  ;;  %2984 = vmatpush.msrb.mxu3 %v7368_v29  ;;  %9728 = vst [vmem:[#allocation31_spill] sm:$0xff] %v7662_v16  ;;  %v2622_v29 = vld [vmem:[%s9219_s7 + $0xc8] sm:$0xff]  ;;  %v8055_v16 = vld [vmem:[%s9219_s7 + $0x58] sm:$0xff] }
 0x671   :  { %2784 = vmatpush.msra.mxu2 %v7304_v52  ;;  %2634 = vmatpush.msra.mxu0 %v2626_v5  ;;  %v9731_v52 = vld [vmem:[#allocation13_spill] sm:$0xff] }
 0x672   :  { %2845 = vmatpush.msrb.mxu1 %v7337_v17  ;;  %2985 = vmatpush.msrb.mxu3 %v7390_v36  ;;  %v2620_v36 = vld [vmem:[%s9219_s7 + $0xb8] sm:$0xff] }
 0x673   :  { %2785 = vmatpush.msra.mxu2 %v7327_v43  ;;  %2635 = vmatpush.msra.mxu0 %v2625_v50 }
 0x674   :  { %2846 = vmatpush.msrb.mxu1 %v7361_v14  ;;  %2986 = vmatpush.msrb.mxu3 %v9712_v58  ;;  %v2623_v14 = vld [vmem:[%s9219_s7 + $0xd0] sm:$0xff] }
 0x675   :  { %2786 = vmatpush.msra.mxu2 %v7351_v27  ;;  %v2624_v27 = vld [vmem:[%s9219_s7 + $0xd8] sm:$0xff] }
 0x676   :  { %2847 = vmatpush.msrb.mxu1 %v9711_v23  ;;  %2987 = vmatpush.msrb.mxu3 %v9715_v41  ;;  %v2339_v23 = vpop.permute.xlu2 %2338 }
 0x677   :  { %2787 = vmatpush.msra.mxu2 %v9713_v12  ;;  %v7673_v46 = vpop.permute.xlu0 %4360  ;;  %2636 = vmatpush.msra.mxu0 %v2624_v27  ;;  %v2341_v41 = vsel %vm38_vm4, %v2339_v23, 0.0 }
 0x678   :  { %2848 = vmatpush.msrb.mxu1 %v9714_v6  ;;  %2988 = vmatpush.msrb.mxu3 %v9718_v28  ;;  %9729 = vst [vmem:[#allocation25_spill] sm:$0xff] %v7673_v46  ;;  %v9738_v6 = vld [vmem:[#allocation11_spill] sm:$0xff]  ;;  %v9740_v28 = vld [vmem:[#allocation16_spill] sm:$0xff] }
 0x679   :  { %2788 = vmatpush.msra.mxu2 %v9716_v25  ;;  %2637 = vmatpush.msra.mxu0 %v2623_v14  ;;  %vm2360_vm5 = vcmp.eq.s32.totalorder %v9738_v6, %v7635_v44  ;;  %v2710_v46 = vld [vmem:[#allocation2 + $0x70] sm:$0x3] }
 0x67a   :  { %2849 = vmatpush.msrb.mxu1 %v9717_v55  ;;  %2989 = vmatpush.msrb.mxu3 %v7728_v37  ;;  %v9739_v55 = vld [vmem:[#allocation17_spill] sm:$0xff] }
 0x67b   :  { %2789 = vmatpush.msra.mxu2 %v9719_v49  ;;  %2638 = vmatpush.msra.mxu0 %v2622_v29 }
 0x67c   :  { %2850 = vmatpush.msrb.mxu1 %v9721_v38  ;;  %v2370_v38 = vld [vmem:[#allocation2 + $0x28] sm:$0xc]  ;;  %2990 = vmatpush.msrb.mxu3 %v7733_v48 }
 0x67d   :  { %2790 = vmatpush.msra.mxu2 %v9722_v24  ;;  %2639 = vmatpush.msra.mxu0 %v2621_v20 }
 0x67e   :  { %2851 = vmatpush.msrb.mxu1 %v9723_v39  ;;  %v9741_v39 = vld [vmem:[#allocation29_spill] sm:$0xff] }
 0x67f   :  { %2791 = vmatpush.msra.mxu2 %v9724_v61  ;;  %2640 = vmatpush.msra.mxu0 %v2620_v36 }
 0x680   :  { %2852 = vmatpush.msrb.mxu1 %v9725_v33  ;;  %v9742_v33 = vld [vmem:[#allocation46_spill] sm:$0xff] }
 0x681   :  { %2792 = vmatpush.msra.mxu2 %v9726_v9  ;;  %2641 = vmatpush.msra.mxu0 %v2619_v13 }
 0x682   :  { %2991 = vmatpush.msrb.mxu3 %v9742_v33 }
 0x683   :  { %2959 = vmatpush.msrb.mxu2 %v2628_v22  ;;  %2642 = vmatpush.msra.mxu0 %v2618_v15  ;;  %v9743_v22 = vld [vmem:[#allocation33_spill] sm:$0xff] }
 0x685   :  { %2960 = vmatpush.msrb.mxu2 %v2627_v31  ;;  %2643 = vmatpush.msra.mxu0 %v2617_v34 }
 0x687   :  { %2961 = vmatpush.msrb.mxu2 %v2626_v5  ;;  %2644 = vmatpush.msra.mxu0 %v2616_v18 }
 0x689   :  { %2962 = vmatpush.msrb.mxu2 %v2625_v50  ;;  %2645 = vmatpush.msra.mxu0 %v2615_v47 }
 0x68b   :  { %2963 = vmatpush.msrb.mxu2 %v2624_v27  ;;  %2646 = vmatpush.msra.mxu0 %v2614_v21 }
 0x68d   :  { %2964 = vmatpush.msrb.mxu2 %v2623_v14  ;;  %2647 = vmatpush.msra.mxu0 %v2613_v8  ;;  %v9746_v14 = vld [vmem:[#allocation37_spill] sm:$0xff] }
 0x68f   :  { %2965 = vmatpush.msrb.mxu2 %v2622_v29  ;;  %2817 = vmatpush.msrb.mxu0 %v9732_v40  ;;  %v9747_v29 = vld [vmem:[#allocation51_spill] sm:$0xff] }
 0x691   :  { %2966 = vmatpush.msrb.mxu2 %v2621_v20  ;;  %2818 = vmatpush.msrb.mxu0 %v9733_v2 }
 0x693   :  { %2967 = vmatpush.msrb.mxu2 %v2620_v36  ;;  %2819 = vmatpush.msrb.mxu0 %v9734_v10  ;;  %v9748_v36 = vld [vmem:[#allocation43_spill] sm:$0xff] }
 0x695   :  { %2968 = vmatpush.msrb.mxu2 %v2619_v13  ;;  %2820 = vmatpush.msrb.mxu0 %v9735_v11 }
 0x697   :  { %2969 = vmatpush.msrb.mxu2 %v2618_v15  ;;  %2821 = vmatpush.msrb.mxu0 %v9736_v4  ;;  %v9749_v15 = vld [vmem:[#allocation45_spill] sm:$0xff] }
 0x699   :  { %2970 = vmatpush.msrb.mxu2 %v2617_v34  ;;  %2822 = vmatpush.msrb.mxu0 %v9737_v57  ;;  %v2590_v57 = vrot.slane %v7595_v26, 2 }
 0x69b   :  { %2971 = vmatpush.msrb.mxu2 %v2616_v18  ;;  %2823 = vmatpush.msrb.mxu0 %v9739_v55  ;;  %v2369_v18 = vld [vmem:[#allocation2 + $0x78] sm:$0xc] }
 0x69d   :  { %2972 = vmatpush.msrb.mxu2 %v2615_v47  ;;  %2824 = vmatpush.msrb.mxu0 %v9741_v39 }
 0x69f   :  { %2973 = vmatpush.msrb.mxu2 %v2614_v21  ;;  %2825 = vmatpush.msrb.mxu0 %v9743_v22 }
 0x6a1   :  { %2974 = vmatpush.msrb.mxu2 %v2613_v8  ;;  %v9750_v8 = vld [vmem:[#allocation47_spill] sm:$0xff] }
 0x6a4   :  { %v7675_v7 = vpop.xlane.xlu0 %2004 }
 0x6a5   :  { %9730 = vst [vmem:[#allocation22_spill] sm:$0xff] %v7675_v7  ;;  %v2006_v53 = vsub.f32 %v9731_v52, %v7675_v7  ;;  %v8206_v7 = vld [vmem:[%s9218_s6] sm:$0xff] }
 0x6a6   :  { %9782 = vst [vmem:[#allocation45_spill] sm:$0xff] %v8206_v7 }
 0x6a7   :  { %v2007_v60 = vmul.f32 1.442695, %v2006_v53  ;;  %v9744_v53 = vld [vmem:[#allocation48_spill] sm:$0xff] }
 0x6a8   :  { %2992 = vmatpush.msrb.mxu3 %v9744_v53 }
 0x6a9   :  { %4674 = vpow2.f32 %v2007_v60 }
 0x6aa   :  { %2993 = vmatpush.msrb.mxu3 %v7553_v59 }
 0x6ac   :  { %2994 = vmatpush.msrb.mxu3 %v9747_v29 }
 0x6af   :  { %v4675_v43 = vpop.eup %4674 }
 0x6b0   :  { %v2009_v17 = vsel %vm2002_vm6, %v4675_v43, 0.0 }
 0x6b1   :  { %2010 = vadd.xlane.f32.xlu1 %v2009_v17  ;;  %v9745_v17 = vld [vmem:[#allocation40_spill] sm:$0xff] }
 0x6b2   :  { %2826 = vmatpush.msrb.mxu0 %v9745_v17 }
 0x6b4   :  { %2827 = vmatpush.msrb.mxu0 %v9746_v14  ;;  %v7782_v14 = vld [vmem:[%s9218_s6 + $0x1c8] sm:$0xff] }
 0x6b6   :  { %2828 = vmatpush.msrb.mxu0 %v9748_v36 }
 0x6b8   :  { %2829 = vmatpush.msrb.mxu0 %v9749_v15 }
 0x6ba   :  { %2830 = vmatpush.msrb.mxu0 %v9750_v8  ;;  %v7816_v8 = vld [vmem:[%s9218_s6 + $0x148] sm:$0xff] }
 0x6dd   :  { %v2452_v35 = vpop.f32.mrf.mxu0 }
 0x6de   :  { %v2519_v1 = vrot.slane %v2452_v35, 6  ;;  %v2472_v3 = vpop.f32.mrf.mxu1 }
 0x6df   :  { %v2520_v42 = vrot.slane %v2472_v3, 6  ;;  %v9752_v3 = vld [vmem:[#allocation50_spill] sm:$0xff] }
 0x6e0   :  { %v2527_v62 = vadd.f32 %v2519_v1, %v2367_v45 }
 0x6e1   :  { %v2528_v30 = vadd.f32 %v2520_v42, %v2368_v0 }
 0x6e2   :  { %v4480_v19 = vmul.f32 -1.442695, %v2527_v62 }
 0x6e3   :  { %v4481_v32 = vmul.f32 -1.442695, %v2528_v30  ;;  %v2307_v56 = vpop.f32.mrf.mxu2 }
 0x6e4   :  { %4676 = vpow2.f32 %v4480_v19  ;;  %v2328_v58 = vadd.f32 %v2327_v63, %v2307_v56  ;;  %v2512_v12 = vpop.f32.mrf.mxu3  ;;  %v9751_v63 = vld [vmem:[#allocation49_spill] sm:$0xff] }
 0x6e5   :  { %4678 = vpow2.f32 %v4481_v32  ;;  %v2522_v25 = vrot.slane %v2512_v12, 6  ;;  %2831 = vmatpush.msrb.mxu0 %v9751_v63  ;;  %v7840_v63 = vld [vmem:[%s9218_s6 + $0xc8] sm:$0xff] }
 0x6e6   :  { %v2330_v49 = vadd.f32 %v9740_v28, %v2328_v58 }
 0x6e7   :  { %v2530_v24 = vadd.f32 %v2522_v25, %v2370_v38  ;;  %2832 = vmatpush.msrb.mxu0 %v9752_v3  ;;  %v7863_v3 = vld [vmem:[%s9218_s6 + $0x1f8] sm:$0xff] }
 0x6e8   :  { %v7744_v61 = vadd.f32 %v2341_v41, %v2330_v49 }
 0x6e9   :  { %v4482_v9 = vmul.f32 -1.442695, %v2530_v24 }
 0x6ea   :  { %v4677_v31 = vpop.eup %4676  ;;  %2343 = vst [vmem:[#allocation5 + $0xc] sm:$0x3] %v7744_v61  ;;  %v2345_v5 = vsel %vm2002_vm6, %v7744_v61, -inf  ;;  %v2361_v52 = vsel %vm2360_vm5, %v7744_v61, 0.0 }
 0x6eb   :  { %v4679_v44 = vpop.eup %4678  ;;  %v2534_v60 = vadd.f32 1.0, %v4677_v31  ;;  %4680 = vpow2.f32 %v4482_v9  ;;  %2346 = vmax.xlane.f32.xlu2 %v2345_v5  ;;  %v2362_v43 = vsel %vm2002_vm6, %v2361_v52, 0.0  ;;  %v2492_v27 = vpop.f32.mrf.mxu2 }
 0x6ec   :  { %v2553_v50 = vadd.f32 1.0, %v4679_v44  ;;  %2363 = vadd.xlane.f32.xlu0 %v2362_v43  ;;  %v2521_v20 = vrot.slane %v2492_v27, 6  ;;  %v7768_v43 = vpop.permute.xlu2 %2680  ;;  %v7777_v27 = vld [vmem:[%s9218_s6 + $0x1e8] sm:$0xff] }
 0x6ed   :  { %4682 = vrcp.f32 %v2534_v60  ;;  %v2546_v1 = vand.u32 2147483648, %v2534_v60  ;;  %v2544_v11 = vand.u32 2147483647, %v2534_v60  ;;  %vm2540_vm9 = vweird.f32 %v2534_v60  ;;  %3124 = vmatpush.msra.mxu1 %v7777_v27 }
 0x6ee   :  { %4684 = vrcp.f32 %v2553_v50  ;;  %v2529_v21 = vadd.f32 %v2521_v20, %v2369_v18  ;;  %v2565_v45 = vand.u32 2147483648, %v2553_v50  ;;  %v2563_v0 = vand.u32 2147483647, %v2553_v50 }
 0x6ef   :  { %vm2559_vm10 = vweird.f32 %v2553_v50  ;;  %v2547_v32 = vor.u32 1.1754944e-38, %v2546_v1  ;;  %vm2545_vm13 = vcmp.eq.f32.partialorder %v2544_v11, 8.507059e+37  ;;  %3125 = vmatpush.msra.mxu1 %v7782_v14  ;;  %v7858_v1 = vld [vmem:[%s9218_s6 + $0x1e0] sm:$0xff]  ;;  %v7881_v11 = vld [vmem:[%s9218_s6 + $0x1d8] sm:$0xff] }
 0x6f0   :  { %v2566_v23 = vor.u32 1.1754944e-38, %v2565_v45  ;;  %vm2564_vm14 = vcmp.eq.f32.partialorder %v2563_v0, 8.507059e+37  ;;  %v7870_v45 = vld [vmem:[%s9218_s6 + $0x68] sm:$0xff]  ;;  %v7894_v0 = vld [vmem:[%s9218_s6 + $0x1a0] sm:$0xff] }
 0x6f1   :  { %v4681_v13 = vpop.eup %4680 }
 0x6f2   :  { %v2573_v34 = vadd.f32 1.0, %v4681_v13 }
 0x6f3   :  { %v4683_v47 = vpop.eup %4682 }
 0x6f4   :  { %v4685_v40 = vpop.eup %4684  ;;  %v2536_v59 = vmul.f32 %v4683_v47, %v2534_v60  ;;  %4686 = vrcp.f32 %v2573_v34  ;;  %vm2541_vm7 = vweird.f32 %v4683_v47  ;;  %v2585_v9 = vand.u32 2147483648, %v2573_v34  ;;  %v9753_v60 = vld [vmem:[#allocation39_spill] sm:$0xff]  ;;  %v7770_v17 = vpop.permute.xlu2 %3027 }
 0x6f5   :  { %v2555_v2 = vmul.f32 %v4685_v40, %v2553_v50  ;;  %4688 = vtanh.f32 %v2529_v21  ;;  %vm2560_vm8 = vweird.f32 %v4685_v40  ;;  %vm2542_vm11 = vmor %vm2540_vm9, %vm2541_vm7  ;;  %vm2579_vm0 = vweird.f32 %v2573_v34  ;;  %9754 = vst [vmem:[#allocation36_spill] sm:$0xff] %v7770_v17  ;;  %v7804_v21 = vld [vmem:[%s9218_s6 + $0x188] sm:$0xff] }
 0x6f6   :  { %v2537_v35 = vsub.f32 1.0, %v2536_v59  ;;  %vm2561_vm12 = vmor %vm2559_vm10, %vm2560_vm8  ;;  %v2583_v26 = vand.u32 2147483647, %v2573_v34  ;;  %v2586_v31 = vor.u32 1.1754944e-38, %v2585_v9  ;;  %v7828_v59 = vld [vmem:[%s9218_s6 + $0x108] sm:$0xff]  ;;  %v7988_v9 = vld [vmem:[%s9218_s6 + $0x138] sm:$0xff] }
 0x6f7   :  { %v2556_v10 = vsub.f32 1.0, %v2555_v2  ;;  %v7834_v2 = vld [vmem:[%s9218_s6 + $0xe8] sm:$0xff] }
 0x6f8   :  { %v2538_v42 = vmul.f32 %v4683_v47, %v2537_v35  ;;  %vm2584_vm2 = vcmp.eq.f32.partialorder %v2583_v26, 8.507059e+37  ;;  %v7846_v35 = vld [vmem:[%s9218_s6 + $0xa8] sm:$0xff] }
 0x6f9   :  { %v2557_v62 = vmul.f32 %v4685_v40, %v2556_v10  ;;  %v7852_v10 = vld [vmem:[%s9218_s6 + $0x88] sm:$0xff] }
 0x6fa   :  { %v4687_v30 = vpop.eup %4686  ;;  %v2539_v4 = vadd.f32 %v4683_v47, %v2538_v42  ;;  %v7876_v42 = vld [vmem:[%s9218_s6 + $0x1c0] sm:$0xff] }
 0x6fb   :  { %v2575_v19 = vmul.f32 %v4687_v30, %v2573_v34  ;;  %v2558_v56 = vadd.f32 %v4685_v40, %v2557_v62  ;;  %v4689_v12 = vpop.eup %4688  ;;  %vm2580_vm15 = vweird.f32 %v4687_v30  ;;  %v7888_v62 = vld [vmem:[%s9218_s6 + $0x48] sm:$0xff] }
 0x6fc   :  { %v2543_v58 = vsel %vm2542_vm11, %v4683_v47, %v2539_v4  ;;  %vm2581_vm1 = vmor %vm2579_vm0, %vm2580_vm15  ;;  %v7772_v50 = vpop.permute.xlu2 %3349  ;;  %v7798_v47 = vld [vmem:[%s9218_s6 + $0x1a8] sm:$0xff]  ;;  %v2669_v4 = vpop.f32.mrf.mxu1 }
 0x6fd   :  { %v2576_v41 = vsub.f32 1.0, %v2575_v19  ;;  %v2548_v25 = vsel %vm2545_vm13, %v2547_v32, %v2543_v58  ;;  %v2562_v55 = vsel %vm2561_vm12, %v4685_v40, %v2558_v56  ;;  %9755 = vst [vmem:[#allocation19_spill] sm:$0xff] %v7772_v50  ;;  %3126 = vmatpush.msra.mxu1 %v7798_v47  ;;  %v7822_v40 = vld [vmem:[%s9218_s6 + $0x128] sm:$0xff]  ;;  %v7912_v32 = vld [vmem:[%s9218_s6 + $0x180] sm:$0xff]  ;;  %v7917_v56 = vld [vmem:[%s9218_s6 + $0x198] sm:$0xff] }
 0x6fe   :  { %v2567_v28 = vsel %vm2564_vm14, %v2566_v23, %v2562_v55  ;;  %v2593_v49 = vmul.f32 %v4689_v12, %v2548_v25  ;;  %v7906_v19 = vld [vmem:[%s9218_s6 + $0x28] sm:$0xff]  ;;  %v7930_v23 = vld [vmem:[%s9218_s6 + $0x160] sm:$0xff]  ;;  %v7935_v58 = vld [vmem:[%s9218_s6 + $0x1f0] sm:$0xff] }
 0x6ff   :  { %v2577_v38 = vmul.f32 %v4687_v30, %v2576_v41  ;;  %v2592_v24 = vmul.f32 %v2590_v57, %v2567_v28  ;;  %3127 = vmatpush.msra.mxu1 %v7804_v21  ;;  %v7924_v57 = vld [vmem:[%s9218_s6 + $0x8] sm:$0xff]  ;;  %9759 = vst [vmem:[#allocation30_spill] sm:$0xff] %v7935_v58  ;;  %v7940_v12 = vld [vmem:[%s9218_s6 + $0x178] sm:$0xff]  ;;  %v7954_v25 = vld [vmem:[%s9218_s6 + $0x140] sm:$0xff] }
 0x700   :  { %v7947_v41 = vld [vmem:[%s9219_s7 + $0x78] sm:$0xff]  ;;  %v7959_v55 = vld [vmem:[%s9218_s6 + $0x1d0] sm:$0xff] }
 0x701   :  { %v7764_v39 = vadd.f32 %v2593_v49, %v2592_v24  ;;  %v2578_v33 = vadd.f32 %v4687_v30, %v2577_v38  ;;  %9760 = vst [vmem:[#allocation28_spill] sm:$0xff] %v7959_v55  ;;  %v7964_v28 = vld [vmem:[%s9218_s6 + $0x158] sm:$0xff]  ;;  %v7971_v49 = vld [vmem:[%s9219_s7 + $0x70] sm:$0xff]  ;;  %v7978_v24 = vld [vmem:[%s9218_s6 + $0x120] sm:$0xff] }
 0x703   :  { %4690 = vtanh.f32 %v7764_v39  ;;  %v2582_v22 = vsel %vm2581_vm1, %v4687_v30, %v2578_v33  ;;  %v7899_v30 = vld [vmem:[%s9218_s6 + $0x1b8] sm:$0xff]  ;;  %v7983_v33 = vld [vmem:[%s9218_s6 + $0x1b0] sm:$0xff] }
 0x704   :  { %v2587_v52 = vsel %vm2584_vm2, %v2586_v31, %v2582_v22  ;;  %v7784_v29 = vpop.permute.xlu2 %3711  ;;  %9761 = vst [vmem:[#allocation41_spill] sm:$0xff] %v7983_v33  ;;  %v2712_v22 = vld [vmem:[#allocation2 + $0x28] sm:$0x3] }
 0x705   :  { %9756 = vst [vmem:[#allocation26_spill] sm:$0xff] %v7784_v29 }
 0x709   :  { %v4691_v5 = vpop.eup %4690 }
 0x70a   :  { %v2596_v53 = vmul.f32 %v4691_v5, %v2587_v52  ;;  %v7995_v5 = vld [vmem:[%s9219_s7 + $0x68] sm:$0xff]  ;;  %v2683_v52 = vsel %vm38_vm4, %v7768_v43, 0.0  ;;  %v2701_v43 = vpop.permute.xlu1 %2700 }
 0x70b   :  { %vm2702_vm3 = vcmp.eq.s32.totalorder %v9738_v6, %v2701_v43  ;;  %v8092_v43 = vld [vmem:[%s9218_s6 + $0xa0] sm:$0xff]  ;;  %v8102_v6 = vld [vmem:[%s9218_s6 + $0xb8] sm:$0xff] }
 0x70c   :  { %v2630_v44 = vrot.slane %v2596_v53, 2  ;;  %v7788_v20 = vpop.xlane.xlu2 %2021  ;;  %9767 = vst [vmem:[#allocation18_spill] sm:$0xff] %v8092_v43 }
 0x70d   :  { %9757 = vst [vmem:[#allocation32_spill] sm:$0xff] %v7788_v20  ;;  %v8192_v20 = vld [vmem:[%s9218_s6 + $0xb0] sm:$0xff] }
 0x70e   :  { %2648 = vmatmul.f32.vlgmr.msra.gmra.mxu0 %v2630_v44  ;;  %2793 = vmatmul.f32.vlgmr.msra.gmra.mxu2 %v2630_v44  ;;  %9780 = vst [vmem:[#allocation51_spill] sm:$0xff] %v8192_v20 }
 0x70f   :  { %2813 = vmatmul.f32.vlgmr.msra.gmra.mxu3 %v2630_v44  ;;  %2853 = vmatmul.f32.vlgmr.msrb.gmra.mxu1 %v2630_v44 }
 0x710   :  { %3104 = vmatpush.msra.mxu0 %v7858_v1  ;;  %3164 = vmatpush.msra.mxu3 %v7863_v3 }
 0x711   :  { %3144 = vmatpush.msra.mxu2 %v7935_v58  ;;  %v8178_v58 = vld [vmem:[%s9219_s7 + $0x30] sm:$0xff] }
 0x712   :  { %3105 = vmatpush.msra.mxu0 %v7876_v42  ;;  %3165 = vmatpush.msra.mxu3 %v7881_v11  ;;  %9778 = vst [vmem:[#allocation40_spill] sm:$0xff] %v8178_v58 }
 0x713   :  { %3145 = vmatpush.msra.mxu2 %v7959_v55  ;;  %v8173_v55 = vld [vmem:[%s9218_s6 + $0x58] sm:$0xff] }
 0x714   :  { %3106 = vmatpush.msra.mxu0 %v7894_v0  ;;  %3166 = vmatpush.msra.mxu3 %v7899_v30  ;;  %9777 = vst [vmem:[#allocation48_spill] sm:$0xff] %v8173_v55 }
 0x715   :  { %3146 = vmatpush.msra.mxu2 %v7983_v33  ;;  %v8154_v33 = vld [vmem:[%s9219_s7 + $0x38] sm:$0xff] }
 0x716   :  { %2833 = vmatmul.f32.vlgmr.msrb.gmra.mxu0 %v2630_v44  ;;  %3167 = vmatpush.msra.mxu3 %v7917_v56  ;;  %v8005_v44 = vld [vmem:[%s9218_s6 + $0x100] sm:$0xff] }
 0x717   :  { %2995 = vmatmul.f32.vlgmr.msrb.gmra.mxu3 %v9753_v60  ;;  %3107 = vmatpush.msra.mxu0 %v7912_v32  ;;  %v8010_v60 = vld [vmem:[%s9218_s6 + $0x190] sm:$0xff] }
 0x718   :  { %3168 = vmatpush.msra.mxu3 %v7940_v12  ;;  %9762 = vst [vmem:[#allocation34_spill] sm:$0xff] %v8010_v60  ;;  %3147 = vmatpush.msra.mxu2 %v8010_v60  ;;  %v8149_v60 = vld [vmem:[%s9218_s6 + $0x78] sm:$0xff] }
 0x719   :  { %3108 = vmatpush.msra.mxu0 %v7930_v23  ;;  %9774 = vst [vmem:[#allocation29_spill] sm:$0xff] %v8149_v60 }
 0x71a   :  { %3169 = vmatpush.msra.mxu3 %v7964_v28 }
 0x71b   :  { %3109 = vmatpush.msra.mxu0 %v7954_v25 }
 0x71c   :  { %3170 = vmatpush.msra.mxu3 %v7988_v9 }
 0x71d   :  { %3110 = vmatpush.msra.mxu0 %v7978_v24 }
 0x71f   :  { %3111 = vmatpush.msra.mxu0 %v8005_v44 }
 0x75e   :  { %v7790_v36 = vpop.xlane.xlu2 %2346 }
 0x75f   :  { %9758 = vst [vmem:[#allocation24_spill] sm:$0xff] %v7790_v36  ;;  %v2348_v13 = vsub.f32 %v7744_v61, %v7790_v36  ;;  %v7810_v61 = vld [vmem:[%s9218_s6 + $0x168] sm:$0xff] }
 0x760   :  { %3128 = vmatpush.msra.mxu1 %v7810_v61 }
 0x761   :  { %v2349_v15 = vmul.f32 1.442695, %v2348_v13  ;;  %v8015_v13 = vld [vmem:[%s9218_s6 + $0x118] sm:$0xff] }
 0x762   :  { %3129 = vmatpush.msra.mxu1 %v7816_v8  ;;  %3171 = vmatpush.msra.mxu3 %v8015_v13 }
 0x763   :  { %4692 = vpow2.f32 %v2349_v15  ;;  %v8020_v15 = vld [vmem:[%s9220_s8] ss:$0 sm:$0xff] }
 0x764   :  { %3130 = vmatpush.msra.mxu1 %v7822_v40  ;;  %9763 = vst [vmem:[#allocation44_spill] sm:$0xff] %v8020_v15 }
 0x766   :  { %3131 = vmatpush.msra.mxu1 %v7828_v59 }
 0x768   :  { %3132 = vmatpush.msra.mxu1 %v7834_v2 }
 0x769   :  { %v4693_v34 = vpop.eup %4692 }
 0x76a   :  { %v2351_v18 = vsel %vm2002_vm6, %v4693_v34, 0.0  ;;  %3133 = vmatpush.msra.mxu1 %v7840_v63 }
 0x76b   :  { %2352 = vadd.xlane.f32.xlu1 %v2351_v18  ;;  %v8028_v18 = vld [vmem:[%s9219_s7 + $0x60] sm:$0xff] }
 0x76c   :  { %3134 = vmatpush.msra.mxu1 %v7846_v35 }
 0x76e   :  { %3135 = vmatpush.msra.mxu1 %v7852_v10 }
 0x770   :  { %3136 = vmatpush.msra.mxu1 %v7870_v45 }
 0x772   :  { %3137 = vmatpush.msra.mxu1 %v7888_v62 }
 0x774   :  { %3138 = vmatpush.msra.mxu1 %v7906_v19 }
 0x776   :  { %3139 = vmatpush.msra.mxu1 %v7924_v57 }
 0x778   :  { %3321 = vmatpush.msrb.mxu1 %v7947_v41 }
 0x77a   :  { %3322 = vmatpush.msrb.mxu1 %v7971_v49 }
 0x77c   :  { %3323 = vmatpush.msrb.mxu1 %v7995_v5 }
 0x77e   :  { %3324 = vmatpush.msrb.mxu1 %v8028_v18 }
 0x780   :  { %3325 = vmatpush.msrb.mxu1 %v8055_v16 }
 0x782   :  { %3326 = vmatpush.msrb.mxu1 %v8085_v51 }
 0x78b   :  { %v2649_v38 = vpop.f32.mrf.mxu0 }
 0x78c   :  { %v2670_v26 = vadd.f32 %v2669_v4, %v2649_v38  ;;  %v2854_v31 = vpop.f32.mrf.mxu1  ;;  %v8036_v38 = vld [vmem:[%s9218_s6 + $0xe0] sm:$0xff] }
 0x78d   :  { %v2860_v53 = vadd.f32 %v2854_v31, %v2712_v22  ;;  %v8046_v22 = vld [vmem:[%s9218_s6 + $0xf8] sm:$0xff]  ;;  %3112 = vmatpush.msra.mxu0 %v8036_v38 }
 0x78e   :  { %v2672_v34 = vadd.f32 %v8020_v15, %v2670_v26  ;;  %v8041_v26 = vld [vmem:[%s9218_s6 + $0x170] sm:$0xff]  ;;  %3172 = vmatpush.msra.mxu3 %v8046_v22 }
 0x78f   :  { %v4486_v4 = vmul.f32 -1.442695, %v2860_v53  ;;  %9764 = vst [vmem:[#allocation42_spill] sm:$0xff] %v8041_v26  ;;  %v2709_v53 = vld [vmem:[#allocation2 + $0x60] sm:$0x3]  ;;  %3148 = vmatpush.msra.mxu2 %v8041_v26 }
 0x790   :  { %v8048_v31 = vadd.f32 %v2683_v52, %v2672_v34  ;;  %v8062_v52 = vld [vmem:[%s9218_s6 + $0xc0] sm:$0xff]  ;;  %v8067_v34 = vld [vmem:[%s9218_s6 + $0x150] sm:$0xff]  ;;  %3173 = vmatpush.msra.mxu3 %v8072_v54 }
 0x791   :  { %4694 = vpow2.f32 %v4486_v4  ;;  %v2794_v29 = vpop.f32.mrf.mxu2  ;;  %9766 = vst [vmem:[#allocation12_spill] sm:$0xff] %v8067_v34  ;;  %3113 = vmatpush.msra.mxu0 %v8062_v52  ;;  %3149 = vmatpush.msra.mxu2 %v8067_v34  ;;  %v8142_v34 = vld [vmem:[%s9218_s6 + $0xf0] sm:$0xff] }
 0x792   :  { %9765 = vst [vmem:[#allocation13_spill] sm:$0xff] %v8048_v31  ;;  %v2857_v4 = vadd.f32 %v2794_v29, %v2709_v53  ;;  %v2814_v50 = vpop.f32.mrf.mxu3  ;;  %v2687_v17 = vsel %vm2002_vm6, %v8048_v31, -inf  ;;  %v2703_v15 = vsel %vm2702_vm3, %v8048_v31, 0.0  ;;  %v8097_v53 = vld [vmem:[%s9218_s6 + $0x130] sm:$0xff]  ;;  %3174 = vmatpush.msra.mxu3 %v8102_v6 }
 0x793   :  { %2685 = vst [vmem:[#allocation5 + $0xa] sm:$0x3] %v8048_v31  ;;  %v2858_v26 = vadd.f32 %v2814_v50, %v2710_v46  ;;  %2688 = vmax.xlane.f32.xlu1 %v2687_v17  ;;  %v2704_v29 = vsel %vm2002_vm6, %v2703_v15, 0.0  ;;  %v8108_v17 = vld [vmem:[%s9219_s7 + $0x48] sm:$0xff]  ;;  %3114 = vmatpush.msra.mxu0 %v8092_v43  ;;  %v8115_v15 = vld [vmem:[%s9218_s6 + $0x80] sm:$0xff] }
 0x794   :  { %9768 = vst [vmem:[#allocation21_spill] sm:$0xff] %v8097_v53  ;;  %v4484_v46 = vmul.f32 -1.442695, %v2857_v4  ;;  %2705 = vadd.xlane.f32.xlu2 %v2704_v29  ;;  %3150 = vmatpush.msra.mxu2 %v8097_v53  ;;  %v8120_v4 = vld [vmem:[%s9218_s6 + $0x110] sm:$0xff]  ;;  %v8125_v29 = vld [vmem:[%s9218_s6 + $0x98] sm:$0xff]  ;;  %v8137_v53 = vld [vmem:[%s9218_s6 + $0x60] sm:$0xff] }
 0x795   :  { %v4485_v50 = vmul.f32 -1.442695, %v2858_v26  ;;  %9769 = vst [vmem:[#allocation14_spill] sm:$0xff] %v8115_v15  ;;  %3327 = vmatpush.msrb.mxu1 %v8108_v17  ;;  %v8132_v26 = vld [vmem:[%s9219_s7 + $0x40] sm:$0xff]  ;;  %3115 = vmatpush.msra.mxu0 %v8115_v15 }
 0x796   :  { %9770 = vst [vmem:[#allocation23_spill] sm:$0xff] %v8120_v4  ;;  %4696 = vpow2.f32 %v4484_v46  ;;  %3151 = vmatpush.msra.mxu2 %v8120_v4  ;;  %3175 = vmatpush.msra.mxu3 %v8125_v29  ;;  %v8166_v4 = vld [vmem:[%s9218_s6 + $0xd0] sm:$0xff] }
 0x797   :  { %9771 = vst [vmem:[#allocation15_spill] sm:$0xff] %v8125_v29  ;;  %v4695_v46 = vpop.eup %4694  ;;  %4698 = vpow2.f32 %v4485_v50  ;;  %3328 = vmatpush.msrb.mxu1 %v8132_v26  ;;  %v8161_v50 = vld [vmem:[%s9218_s6 + $0x40] sm:$0xff]  ;;  %3116 = vmatpush.msra.mxu0 %v8137_v53 }
 0x798   :  { %9772 = vst [vmem:[#allocation17_spill] sm:$0xff] %v8137_v53  ;;  %3152 = vmatpush.msra.mxu2 %v8142_v34  ;;  %v8180_v31 = vadd.f32 1.0, %v4695_v46  ;;  %3176 = vmatpush.msra.mxu3 %v8149_v60  ;;  %v8199_v46 = vld [vmem:[%s9218_s6 + $0x38] sm:$0xff] }
 0x799   :  { %9773 = vst [vmem:[#allocation16_spill] sm:$0xff] %v8142_v34  ;;  %3329 = vmatpush.msrb.mxu1 %v8154_v33  ;;  %v8187_v34 = vld [vmem:[%s9218_s6 + $0x20] sm:$0xff]  ;;  %3117 = vmatpush.msra.mxu0 %v8161_v50 }
 0x79a   :  { %9775 = vst [vmem:[#allocation46_spill] sm:$0xff] %v8161_v50  ;;  %3153 = vmatpush.msra.mxu2 %v8166_v4  ;;  %3177 = vmatpush.msra.mxu3 %v8173_v55  ;;  %v8211_v50 = vld [vmem:[%s9218_s6 + $0x90] sm:$0xff]  ;;  %v8220_v55 = vld [vmem:[%s9218_s6 + $0x18] sm:$0xff]  ;;  %4700 = vrcp.f32 %v8180_v31  ;;  %vm2909_vm15 = vweird.f32 %v8180_v31 }
 0x79b   :  { %9776 = vst [vmem:[#allocation33_spill] sm:$0xff] %v8166_v4  ;;  %3330 = vmatpush.msrb.mxu1 %v8178_v58  ;;  %3118 = vmatpush.msra.mxu0 %v8187_v34 }
 0x79c   :  { %9779 = vst [vmem:[#allocation37_spill] sm:$0xff] %v8187_v34  ;;  %v4697_v36 = vpop.eup %4696  ;;  %3154 = vmatpush.msra.mxu2 %v8192_v20  ;;  %3178 = vmatpush.msra.mxu3 %v8199_v46  ;;  %v2834_v20 = vpop.f32.mrf.mxu0 }
 0x79d   :  { %9781 = vst [vmem:[#allocation43_spill] sm:$0xff] %v8199_v46  ;;  %v4699_v4 = vpop.eup %4698  ;;  %v8213_v53 = vadd.f32 1.0, %v4697_v36  ;;  %3331 = vmatpush.msrb.mxu1 %v7728_v37  ;;  %3119 = vmatpush.msra.mxu0 %v8206_v7  ;;  %v8233_v36 = vld [vmem:[%s9218_s6 + $0x70] sm:$0xff] }
 0x79e   :  { %9783 = vst [vmem:[#allocation47_spill] sm:$0xff] %v8211_v50  ;;  %v8223_v60 = vadd.f32 1.0, %v4699_v4  ;;  %3155 = vmatpush.msra.mxu2 %v8211_v50  ;;  %v8238_v4 = vld [vmem:[%s9219_s7 + $0x18] sm:$0xff]  ;;  %3179 = vmatpush.msra.mxu3 %v8220_v55  ;;  %v8246_v37 = vld [vmem:[%s9218_s6 + $0x50] sm:$0xff] }
 0x79f   :  { %9784 = vst [vmem:[#allocation49_spill] sm:$0xff] %v8220_v55  ;;  %4702 = vrcp.f32 %v8213_v53  ;;  %3332 = vmatpush.msrb.mxu1 %v7733_v48  ;;  %v8252_v50 = vld [vmem:[%s9219_s7 + $0x10] sm:$0xff]  ;;  %vm2870_vm8 = vweird.f32 %v8213_v53 }
 0x7a0   :  { %9785 = vst [vmem:[#allocation50_spill] sm:$0xff] %v8233_v36  ;;  %4704 = vrcp.f32 %v8223_v60  ;;  %3156 = vmatpush.msra.mxu2 %v8233_v36  ;;  %3466 = vmatpush.msrb.mxu3 %v7777_v27  ;;  %v8259_v48 = vld [vmem:[%s9218_s6 + $0x30] sm:$0xff]  ;;  %v8265_v36 = vld [vmem:[%s9219_s7 + $0x8] sm:$0xff]  ;;  %v8268_v7 = vpop.eup %4700  ;;  %v2711_v27 = vld [vmem:[#allocation2 + $0x78] sm:$0x3]  ;;  %vm2889_vm9 = vweird.f32 %v8223_v60 }
 0x7a1   :  { %9786 = vst [vmem:[#allocation39_spill] sm:$0xff] %v8238_v4  ;;  %3333 = vmatpush.msrb.mxu1 %v8238_v4  ;;  %v8274_v4 = vld [vmem:[%s9218_s6 + $0x10] sm:$0xff]  ;;  %v2859_v34 = vadd.f32 %v2834_v20, %v2711_v27  ;;  %v2905_v20 = vmul.f32 %v8268_v7, %v8180_v31  ;;  %vm2910_vm14 = vweird.f32 %v8268_v7 }
 0x7a2   :  { %9787 = vst [vmem:[#allocation52_spill] sm:$0xff] %v8246_v37  ;;  %3157 = vmatpush.msra.mxu2 %v8246_v37  ;;  %3467 = vmatpush.msrb.mxu3 %v7782_v14  ;;  %v8280_v37 = vld [vmem:[%s9219_s7] sm:$0xff]  ;;  %vm2911_vm0 = vmor %vm2909_vm15, %vm2910_vm14 }
 0x7a3   :  { %9788 = vst [vmem:[#allocation53_spill] sm:$0xff] %v8252_v50  ;;  %3334 = vmatpush.msrb.mxu1 %v8252_v50  ;;  %4706 = vtanh.f32 %v2859_v34 }
 0x7a4   :  { %9789 = vst [vmem:[#allocation54_spill] sm:$0xff] %v8259_v48  ;;  %3158 = vmatpush.msra.mxu2 %v8259_v48  ;;  %3468 = vmatpush.msrb.mxu3 %v7798_v47  ;;  %v2876_v47 = vand.u32 2147483648, %v8213_v53 }
 0x7a5   :  { %9790 = vst [vmem:[#allocation55_spill] sm:$0xff] %v8265_v36  ;;  %v4703_v55 = vpop.eup %4702  ;;  %3335 = vmatpush.msrb.mxu1 %v8265_v36  ;;  %v2895_v36 = vand.u32 2147483648, %v8223_v60 }
 0x7a6   :  { %9791 = vst [vmem:[#allocation56_spill] sm:$0xff] %v8274_v4  ;;  %v4705_v14 = vpop.eup %4704  ;;  %v2866_v46 = vmul.f32 %v4703_v55, %v8213_v53  ;;  %3159 = vmatpush.msra.mxu2 %v8274_v4  ;;  %3469 = vmatpush.msrb.mxu3 %v7804_v21  ;;  %vm2871_vm5 = vweird.f32 %v4703_v55  ;;  %v2874_v4 = vand.u32 2147483647, %v8213_v53  ;;  %v2893_v21 = vand.u32 2147483647, %v8223_v60 }
 0x7a7   :  { %9792 = vst [vmem:[#allocation57_spill] sm:$0xff] %v8280_v37  ;;  %v2885_v50 = vmul.f32 %v4705_v14, %v8223_v60  ;;  %3336 = vmatpush.msrb.mxu1 %v8280_v37  ;;  %vm2890_vm7 = vweird.f32 %v4705_v14  ;;  %vm2872_vm10 = vmor %vm2870_vm8, %vm2871_vm5 }
 0x7a8   :  { %v2867_v27 = vsub.f32 1.0, %v2866_v46  ;;  %3470 = vmatpush.msrb.mxu3 %v7810_v61  ;;  %v2906_v46 = vsub.f32 1.0, %v2905_v20  ;;  %v2877_v61 = vor.u32 1.1754944e-38, %v2876_v47  ;;  %vm2891_vm11 = vmor %vm2889_vm9, %vm2890_vm7  ;;  %vm2875_vm12 = vcmp.eq.f32.partialorder %v2874_v4, 8.507059e+37  ;;  %v3293_v4 = vld [vmem:[%s9219_s7 + $0xd8] sm:$0xff]  ;;  %v3290_v47 = vld [vmem:[%s9219_s7 + $0xc0] sm:$0xff] }
 0x7a9   :  { %v2886_v48 = vsub.f32 1.0, %v2885_v50  ;;  %v2896_v50 = vor.u32 1.1754944e-38, %v2895_v36  ;;  %vm2894_vm13 = vcmp.eq.f32.partialorder %v2893_v21, 8.507059e+37  ;;  %v3294_v36 = vld [vmem:[%s9219_s7 + $0xe0] sm:$0xff]  ;;  %v3289_v21 = vld [vmem:[%s9219_s7 + $0xb8] sm:$0xff] }
 0x7aa   :  { %v2868_v15 = vmul.f32 %v4703_v55, %v2867_v27  ;;  %3471 = vmatpush.msrb.mxu3 %v7816_v8  ;;  %v2920_v8 = vrot.slane %v7764_v39, 2  ;;  %v2907_v53 = vmul.f32 %v8268_v7, %v2906_v46  ;;  %v2913_v39 = vand.u32 2147483647, %v8180_v31  ;;  %v3288_v46 = vld [vmem:[%s9219_s7 + $0xb0] sm:$0xff] }
 0x7ab   :  { %v2887_v58 = vmul.f32 %v4705_v14, %v2886_v48  ;;  %v4707_v48 = vpop.eup %4706 }
 0x7ac   :  { %v2869_v37 = vadd.f32 %v4703_v55, %v2868_v15  ;;  %3472 = vmatpush.msrb.mxu3 %v7822_v40  ;;  %vm2914_vm1 = vcmp.eq.f32.partialorder %v2913_v39, 8.507059e+37 }
 0x7ad   :  { %v2888_v34 = vadd.f32 %v4705_v14, %v2887_v58  ;;  %v2908_v58 = vadd.f32 %v8268_v7, %v2907_v53  ;;  %v9811_v53 = vld [vmem:[#allocation30_spill] sm:$0xff] }
 0x7ae   :  { %v2873_v27 = vsel %vm2872_vm10, %v4703_v55, %v2869_v37  ;;  %3473 = vmatpush.msrb.mxu3 %v7828_v59  ;;  %v2915_v55 = vand.u32 2147483648, %v8180_v31  ;;  %v3292_v37 = vld [vmem:[%s9219_s7 + $0xd0] sm:$0xff] }
 0x7af   :  { %v2878_v29 = vsel %vm2875_vm12, %v2877_v61, %v2873_v27  ;;  %v2892_v43 = vsel %vm2891_vm11, %v4705_v14, %v2888_v34  ;;  %v2912_v59 = vsel %vm2911_vm0, %v8268_v7, %v2908_v58  ;;  %v9793_v7 = vld [vmem:[#allocation38_spill] sm:$0xff]  ;;  %v3291_v14 = vld [vmem:[%s9219_s7 + $0xc8] sm:$0xff]  ;;  %v3284_v27 = vld [vmem:[%s9219_s7 + $0x90] sm:$0xff] }
 0x7b0   :  { %v2897_v60 = vsel %vm2894_vm13, %v2896_v50, %v2892_v43  ;;  %v2923_v15 = vmul.f32 %v4707_v48, %v2878_v29  ;;  %3474 = vmatpush.msrb.mxu3 %v7834_v2  ;;  %v2916_v2 = vor.u32 1.1754944e-38, %v2915_v55  ;;  %v3287_v61 = vld [vmem:[%s9219_s7 + $0xa8] sm:$0xff]  ;;  %v3286_v34 = vld [vmem:[%s9219_s7 + $0xa0] sm:$0xff]  ;;  %v3285_v50 = vld [vmem:[%s9219_s7 + $0x98] sm:$0xff] }
 0x7b1   :  { %v2922_v20 = vmul.f32 %v2920_v8, %v2897_v60  ;;  %v3283_v48 = vld [vmem:[%s9219_s7 + $0x88] sm:$0xff]  ;;  %v3282_v8 = vld [vmem:[%s9219_s7 + $0x80] sm:$0xff] }
 0x7b2   :  { %3475 = vmatpush.msrb.mxu3 %v7840_v63  ;;  %v2917_v43 = vsel %vm2914_vm1, %v2916_v2, %v2912_v59  ;;  %v9812_v60 = vld [vmem:[#allocation28_spill] sm:$0xff]  ;;  %v9814_v59 = vld [vmem:[#allocation34_spill] sm:$0xff]  ;;  %v3036_v2 = vld [vmem:[#allocation2 + $0x50] sm:$0xc0] }
 0x7b3   :  { %v8304_v40 = vadd.f32 %v2923_v15, %v2922_v20  ;;  %v2996_v15 = vpop.f32.mrf.mxu3  ;;  %v9813_v20 = vld [vmem:[#allocation41_spill] sm:$0xff] }
 0x7b4   :  { %3476 = vmatpush.msrb.mxu3 %v7846_v35  ;;  %v8337_v35 = vpop.permute.xlu1 %3691 }
 0x7b5   :  { %4708 = vtanh.f32 %v8304_v40  ;;  %9794 = vst [vmem:[#allocation38_spill] sm:$0xff] %v8337_v35  ;;  %v8821_v35 = vld [vmem:[%s9218_s6 + $0x98] sm:$0xff] }
 0x7b6   :  { %3477 = vmatpush.msrb.mxu3 %v7852_v10  ;;  %v9796_v10 = vld [vmem:[#allocation15_spill] sm:$0xff] }
 0x7b8   :  { %3478 = vmatpush.msrb.mxu3 %v7870_v45  ;;  %v9799_v45 = vld [vmem:[#allocation29_spill] sm:$0xff] }
 0x7ba   :  { %3479 = vmatpush.msrb.mxu3 %v7888_v62  ;;  %v9804_v62 = vld [vmem:[#allocation37_spill] sm:$0xff] }
 0x7bb   :  { %v4709_v63 = vpop.eup %4708 }
 0x7bc   :  { %v2926_v29 = vmul.f32 %v4709_v63, %v2917_v43  ;;  %3480 = vmatpush.msrb.mxu3 %v7906_v19 }
 0x7be   :  { %2975 = vmatmul.f32.vlgmr.msrb.gmra.mxu2 %v2926_v29  ;;  %3120 = vmatmul.f32.vlgmr.msra.gmra.mxu0 %v2926_v29 }
 0x7bf   :  { %3140 = vmatmul.f32.vlgmr.msra.gmra.mxu1 %v2926_v29  ;;  %3180 = vmatmul.f32.vlgmr.msra.gmra.mxu3 %v2926_v29 }
 0x7c0   :  { %3446 = vmatpush.msrb.mxu2 %v7858_v1  ;;  %3506 = vmatpush.msra.mxu1 %v7863_v3  ;;  %v9797_v1 = vld [vmem:[#allocation40_spill] sm:$0xff]  ;;  %v9798_v3 = vld [vmem:[#allocation14_spill] sm:$0xff] }
 0x7c1   :  { %3481 = vmatpush.msrb.mxu3 %v7924_v57 }
 0x7c2   :  { %3447 = vmatpush.msrb.mxu2 %v7876_v42  ;;  %3507 = vmatpush.msra.mxu1 %v7881_v11  ;;  %v9801_v42 = vld [vmem:[#allocation48_spill] sm:$0xff]  ;;  %v9802_v11 = vld [vmem:[#allocation46_spill] sm:$0xff] }
 0x7c3   :  { %3663 = vmatpush.msra.mxu3 %v7947_v41 }
 0x7c4   :  { %3448 = vmatpush.msrb.mxu2 %v7894_v0  ;;  %3508 = vmatpush.msra.mxu1 %v7899_v30  ;;  %v9805_v30 = vld [vmem:[#allocation49_spill] sm:$0xff] }
 0x7c5   :  { %3664 = vmatpush.msra.mxu3 %v7971_v49  ;;  %v2364_v49 = vpop.xlane.xlu0 %2363 }
 0x7c6   :  { %3160 = vmatmul.f32.vlgmr.msra.gmra.mxu2 %v2926_v29  ;;  %3509 = vmatpush.msra.mxu1 %v7917_v56  ;;  %v3037_v29 = vld [vmem:[#allocation2 + $0x68] sm:$0xc0] }
 0x7c7   :  { %3337 = vmatmul.f32.vlgmr.msrb.gmra.mxu1 %v9793_v7  ;;  %3449 = vmatpush.msrb.mxu2 %v7912_v32  ;;  %v9806_v32 = vld [vmem:[#allocation45_spill] sm:$0xff]  ;;  %v9815_v7 = vld [vmem:[#allocation42_spill] sm:$0xff] }
 0x7c8   :  { %3510 = vmatpush.msra.mxu1 %v7940_v12  ;;  %3665 = vmatpush.msra.mxu3 %v7995_v5 }
 0x7c9   :  { %3450 = vmatpush.msrb.mxu2 %v7930_v23  ;;  %v9807_v23 = vld [vmem:[#allocation22_spill] sm:$0xff] }
 0x7ca   :  { %3511 = vmatpush.msra.mxu1 %v7964_v28  ;;  %3666 = vmatpush.msra.mxu3 %v8028_v18  ;;  %v3295_v18 = vld [vmem:[%s9219_s7 + $0xe8] sm:$0xff] }
 0x7cb   :  { %3451 = vmatpush.msrb.mxu2 %v7954_v25  ;;  %v9808_v25 = vld [vmem:[#allocation24_spill] sm:$0xff] }
 0x7cc   :  { %3512 = vmatpush.msra.mxu1 %v7988_v9  ;;  %3667 = vmatpush.msra.mxu3 %v8055_v16  ;;  %v9795_v16 = vld [vmem:[#allocation18_spill] sm:$0xff]  ;;  %9851 = vst [vmem:[#allocation24_spill] sm:$0xff] %v8821_v35 }
 0x7cd   :  { %3452 = vmatpush.msrb.mxu2 %v7978_v24  ;;  %v9809_v24 = vld [vmem:[#allocation32_spill] sm:$0xff] }
 0x7ce   :  { %3513 = vmatpush.msra.mxu1 %v8015_v13  ;;  %3668 = vmatpush.msra.mxu3 %v8085_v51  ;;  %v2011_v51 = vpop.xlane.xlu1 %2010  ;;  %v3296_v13 = vld [vmem:[%s9219_s7 + $0xf0] sm:$0xff] }
 0x7cf   :  { %3453 = vmatpush.msrb.mxu2 %v8005_v44  ;;  %4710 = vlog2.f32 %v2011_v51  ;;  %v3297_v44 = vld [vmem:[%s9219_s7 + $0xf8] sm:$0xff] }
 0x7d0   :  { %3514 = vmatpush.msra.mxu1 %v8046_v22  ;;  %3669 = vmatpush.msra.mxu3 %v8108_v17  ;;  %v9810_v22 = vld [vmem:[#allocation13_spill] sm:$0xff] }
 0x7d1   :  { %3454 = vmatpush.msrb.mxu2 %v8036_v38  ;;  %3301 = vmatpush.msrb.mxu0 %v3297_v44 }
 0x7d2   :  { %3515 = vmatpush.msra.mxu1 %v8072_v54  ;;  %3670 = vmatpush.msra.mxu3 %v8132_v26  ;;  %v9800_v54 = vld [vmem:[#allocation17_spill] sm:$0xff] }
 0x7d3   :  { %3455 = vmatpush.msrb.mxu2 %v8062_v52  ;;  %3302 = vmatpush.msrb.mxu0 %v3296_v13 }
 0x7d4   :  { %3516 = vmatpush.msra.mxu1 %v8102_v6  ;;  %3671 = vmatpush.msra.mxu3 %v8154_v33  ;;  %v9803_v6 = vld [vmem:[#allocation43_spill] sm:$0xff] }
 0x7d5   :  { %3456 = vmatpush.msrb.mxu2 %v9795_v16  ;;  %v4711_v19 = vpop.eup %4710  ;;  %3303 = vmatpush.msrb.mxu0 %v3295_v18 }
 0x7d6   :  { %3517 = vmatpush.msra.mxu1 %v9796_v10  ;;  %3672 = vmatpush.msra.mxu3 %v9797_v1  ;;  %v2013_v56 = vmul.f32 0.6931472, %v4711_v19  ;;  %v9816_v10 = vld [vmem:[#allocation12_spill] sm:$0xff] }
 0x7d7   :  { %3457 = vmatpush.msrb.mxu2 %v9798_v3  ;;  %3304 = vmatpush.msrb.mxu0 %v3294_v36 }
 0x7d8   :  { %3518 = vmatpush.msra.mxu1 %v9799_v45  ;;  %v2014_v12 = vadd.f32 %v2013_v56, %v9807_v23  ;;  %v8432_v45 = vld [vmem:[%s9219_s7 + $0x28] sm:$0xff] }
 0x7d9   :  { %3458 = vmatpush.msrb.mxu2 %v9800_v54  ;;  %3305 = vmatpush.msrb.mxu0 %v3293_v4  ;;  %v8437_v54 = vld [vmem:[%s9219_s7 + $0x20] sm:$0xff] }
 0x7da   :  { %3519 = vmatpush.msra.mxu1 %v9801_v42  ;;  %v2023_v33 = vsub.f32 %v2014_v12, %v9809_v24  ;;  %3673 = vmatpush.msra.mxu3 %v8432_v45  ;;  %v9821_v23 = vld [vmem:[#allocation23_spill] sm:$0xff] }
 0x7db   :  { %3459 = vmatpush.msrb.mxu2 %v9802_v11  ;;  %3306 = vmatpush.msrb.mxu0 %v3292_v37 }
 0x7dc   :  { %3520 = vmatpush.msra.mxu1 %v9803_v6  ;;  %v9817_v6 = vld [vmem:[#allocation21_spill] sm:$0xff]  ;;  %3674 = vmatpush.msra.mxu3 %v8437_v54 }
 0x7dd   :  { %3460 = vmatpush.msrb.mxu2 %v9804_v62  ;;  %3307 = vmatpush.msrb.mxu0 %v3291_v14  ;;  %v9818_v62 = vld [vmem:[#allocation10_spill] sm:$0xff] }
 0x7de   :  { %v2353_v0 = vpop.xlane.xlu1 %2352  ;;  %3521 = vmatpush.msra.mxu1 %v9805_v30  ;;  %v3010_v30 = vsel %vm38_vm4, %v9818_v62, 0.0 }
 0x7df   :  { %4712 = vlog2.f32 %v2353_v0  ;;  %3461 = vmatpush.msrb.mxu2 %v9806_v32  ;;  %3308 = vmatpush.msrb.mxu0 %v3290_v47  ;;  %v9819_v0 = vld [vmem:[#allocation11_spill] sm:$0xff]  ;;  %v9820_v32 = vld [vmem:[#allocation44_spill] sm:$0xff] }
 0x7e1   :  { %3643 = vmatpush.msra.mxu2 %v3297_v44  ;;  %3309 = vmatpush.msrb.mxu0 %v3289_v21  ;;  %v9825_v44 = vld [vmem:[#allocation53_spill] sm:$0xff] }
 0x7e3   :  { %3644 = vmatpush.msra.mxu2 %v3296_v13  ;;  %3310 = vmatpush.msrb.mxu0 %v3288_v46 }
 0x7e5   :  { %v4713_v57 = vpop.eup %4712  ;;  %3645 = vmatpush.msra.mxu2 %v3295_v18  ;;  %3311 = vmatpush.msrb.mxu0 %v3287_v61 }
 0x7e6   :  { %v2355_v41 = vmul.f32 0.6931472, %v4713_v57  ;;  %v3039_v57 = vld [vmem:[#allocation2 + $0x48] sm:$0xc0] }
 0x7e7   :  { %3646 = vmatpush.msra.mxu2 %v3294_v36  ;;  %3312 = vmatpush.msrb.mxu0 %v3286_v34  ;;  %v9829_v36 = vld [vmem:[#allocation47_spill] sm:$0xff] }
 0x7e8   :  { %v2356_v28 = vadd.f32 %v2355_v41, %v9808_v25  ;;  %v9822_v25 = vld [vmem:[#allocation16_spill] sm:$0xff] }
 0x7e9   :  { %3647 = vmatpush.msra.mxu2 %v3293_v4  ;;  %3313 = vmatpush.msrb.mxu0 %v3285_v50  ;;  %v9830_v4 = vld [vmem:[#allocation57_spill] sm:$0xff] }
 0x7ea   :  { %v2365_v9 = vsub.f32 %v2356_v28, %v2364_v49  ;;  %v9823_v28 = vld [vmem:[#allocation39_spill] sm:$0xff] }
 0x7eb   :  { %3648 = vmatpush.msra.mxu2 %v3292_v37  ;;  %3314 = vmatpush.msrb.mxu0 %v3284_v27 }
 0x7ec   :  { %v8368_v5 = vadd.f32 %v2365_v9, %v2023_v33  ;;  %3675 = vmatpush.msra.mxu3 %v9823_v28  ;;  %v9824_v9 = vld [vmem:[#allocation33_spill] sm:$0xff] }
 0x7ed   :  { %3649 = vmatpush.msra.mxu2 %v3291_v14  ;;  %3315 = vmatpush.msrb.mxu0 %v3283_v48 }
 0x7ee   :  { %3676 = vmatpush.msra.mxu3 %v9825_v44 }
 0x7ef   :  { %3650 = vmatpush.msra.mxu2 %v3290_v47  ;;  %3316 = vmatpush.msrb.mxu0 %v3282_v8  ;;  %v9831_v47 = vld [vmem:[#allocation50_spill] sm:$0xff] }
 0x7f1   :  { %3651 = vmatpush.msra.mxu2 %v3289_v21  ;;  %3486 = vmatpush.msra.mxu0 %v9811_v53 }
 0x7f3   :  { %3652 = vmatpush.msra.mxu2 %v3288_v46  ;;  %3487 = vmatpush.msra.mxu0 %v9812_v60  ;;  %v9833_v60 = vld [vmem:[#allocation54_spill] sm:$0xff] }
 0x7f5   :  { %3653 = vmatpush.msra.mxu2 %v3287_v61  ;;  %3488 = vmatpush.msra.mxu0 %v9813_v20  ;;  %v3038_v61 = vld [vmem:[#allocation2 + $0x8] sm:$0xc0] }
 0x7f7   :  { %3654 = vmatpush.msra.mxu2 %v3286_v34  ;;  %3489 = vmatpush.msra.mxu0 %v9814_v59 }
 0x7f9   :  { %3655 = vmatpush.msra.mxu2 %v3285_v50  ;;  %3490 = vmatpush.msra.mxu0 %v9815_v7  ;;  %v9832_v50 = vld [vmem:[#allocation52_spill] sm:$0xff] }
 0x7fb   :  { %3656 = vmatpush.msra.mxu2 %v3284_v27  ;;  %3491 = vmatpush.msra.mxu0 %v9816_v10 }
 0x7fd   :  { %3657 = vmatpush.msra.mxu2 %v3283_v48  ;;  %3492 = vmatpush.msra.mxu0 %v9817_v6 }
 0x7ff   :  { %3658 = vmatpush.msra.mxu2 %v3282_v8  ;;  %3493 = vmatpush.msra.mxu0 %v9821_v23 }
 0x801   :  { %3494 = vmatpush.msra.mxu0 %v9822_v25 }
 0x803   :  { %3495 = vmatpush.msra.mxu0 %v9824_v9 }
 0x806   :  { %v8379_v38 = vpop.xlane.xlu1 %2688 }
 0x807   :  { %v2690_v31 = vsub.f32 %v9810_v22, %v8379_v38  ;;  %v9826_v22 = vld [vmem:[#allocation36_spill] sm:$0xff] }
 0x808   :  { %vm3029_vm2 = vcmp.eq.s32.totalorder %v9819_v0, %v9826_v22  ;;  %v9835_v22 = vld [vmem:[#allocation20_spill] sm:$0xff] }
 0x809   :  { %v2691_v52 = vmul.f32 1.442695, %v2690_v31 }
 0x80b   :  { %4714 = vpow2.f32 %v2691_v52 }
 0x811   :  { %v4715_v17 = vpop.eup %4714 }
 0x812   :  { %v2693_v26 = vsel %vm2002_vm6, %v4715_v17, 0.0  ;;  %v9827_v17 = vld [vmem:[#allocation51_spill] sm:$0xff] }
 0x813   :  { %2694 = vadd.xlane.f32.xlu1 %v2693_v26  ;;  %3496 = vmatpush.msra.mxu0 %v9827_v17  ;;  %v9828_v26 = vld [vmem:[#allocation55_spill] sm:$0xff] }
 0x814   :  { %3677 = vmatpush.msra.mxu3 %v9828_v26 }
 0x815   :  { %3497 = vmatpush.msra.mxu0 %v9829_v36  ;;  %v2706_v36 = vpop.xlane.xlu2 %2705 }
 0x816   :  { %3678 = vmatpush.msra.mxu3 %v9830_v4 }
 0x817   :  { %3498 = vmatpush.msra.mxu0 %v9831_v47 }
 0x819   :  { %3499 = vmatpush.msra.mxu0 %v9832_v50  ;;  %v8509_v50 = vld [vmem:[%s9218_s6 + $0x168] sm:$0xff] }
 0x81b   :  { %3500 = vmatpush.msra.mxu0 %v9833_v60  ;;  %v8539_v60 = vld [vmem:[%s9218_s6 + $0xc8] sm:$0xff] }
 0x83b   :  { %v3121_v58 = vpop.f32.mrf.mxu0 }
 0x83c   :  { %v3188_v55 = vrot.slane %v3121_v58, 2  ;;  %v3141_v39 = vpop.f32.mrf.mxu1  ;;  %v9834_v58 = vld [vmem:[#allocation56_spill] sm:$0xff] }
 0x83d   :  { %v3189_v63 = vrot.slane %v3141_v39, 2  ;;  %3501 = vmatpush.msra.mxu0 %v9834_v58  ;;  %v8557_v58 = vld [vmem:[%s9218_s6 + $0x1e0] sm:$0xff] }
 0x83e   :  { %v3196_v43 = vadd.f32 %v3188_v55, %v3036_v2 }
 0x83f   :  { %v3197_v16 = vadd.f32 %v3189_v63, %v3037_v29 }
 0x840   :  { %v4488_v51 = vmul.f32 -1.442695, %v3196_v43 }
 0x841   :  { %v4489_v1 = vmul.f32 -1.442695, %v3197_v16  ;;  %v2976_v3 = vpop.f32.mrf.mxu2 }
 0x842   :  { %4716 = vpow2.f32 %v4488_v51  ;;  %v2997_v42 = vadd.f32 %v2996_v15, %v2976_v3  ;;  %v3181_v11 = vpop.f32.mrf.mxu3  ;;  %v3259_v3 = vrot.slane %v8304_v40, 2 }
 0x843   :  { %4718 = vpow2.f32 %v4489_v1  ;;  %v3191_v19 = vrot.slane %v3181_v11, 2 }
 0x844   :  { %v2999_v56 = vadd.f32 %v9820_v32, %v2997_v42 }
 0x845   :  { %v3199_v12 = vadd.f32 %v3191_v19, %v3039_v57 }
 0x846   :  { %v8447_v41 = vadd.f32 %v3010_v30, %v2999_v56 }
 0x847   :  { %v4490_v49 = vmul.f32 -1.442695, %v3199_v12 }
 0x848   :  { %v4717_v24 = vpop.eup %4716  ;;  %3012 = vst [vmem:[#allocation5 + $0x8] sm:$0x3] %v8447_v41  ;;  %v3014_v33 = vsel %vm2002_vm6, %v8447_v41, -inf  ;;  %v3030_v14 = vsel %vm3029_vm2, %v8447_v41, 0.0 }
 0x849   :  { %v4719_v13 = vpop.eup %4718  ;;  %v3203_v18 = vadd.f32 1.0, %v4717_v24  ;;  %4720 = vpow2.f32 %v4490_v49  ;;  %3015 = vmax.xlane.f32.xlu1 %v3014_v33  ;;  %v3161_v52 = vpop.f32.mrf.mxu2  ;;  %v3031_v34 = vsel %vm2002_vm6, %v3030_v14, 0.0 }
 0x84a   :  { %v3222_v31 = vadd.f32 1.0, %v4719_v13  ;;  %v3190_v37 = vrot.slane %v3161_v52, 2 }
 0x84b   :  { %4722 = vrcp.f32 %v3203_v18  ;;  %v3215_v39 = vand.u32 2147483648, %v3203_v18  ;;  %v3213_v63 = vand.u32 2147483647, %v3203_v18  ;;  %vm3209_vm7 = vweird.f32 %v3203_v18 }
 0x84c   :  { %4724 = vrcp.f32 %v3222_v31  ;;  %v3198_v48 = vadd.f32 %v3190_v37, %v3038_v61  ;;  %v3234_v59 = vand.u32 2147483648, %v3222_v31  ;;  %v3232_v29 = vand.u32 2147483647, %v3222_v31 }
 0x84d   :  { %vm3228_vm8 = vweird.f32 %v3222_v31  ;;  %v3216_v10 = vor.u32 1.1754944e-38, %v3215_v39  ;;  %vm3214_vm11 = vcmp.eq.f32.partialorder %v3213_v63, 8.507059e+37  ;;  %v3338_v39 = vpop.f32.mrf.mxu1  ;;  %v8580_v63 = vld [vmem:[%s9218_s6 + $0x1d8] sm:$0xff] }
 0x84e   :  { %v3235_v42 = vor.u32 1.1754944e-38, %v3234_v59  ;;  %vm3233_vm12 = vcmp.eq.f32.partialorder %v3232_v29, 8.507059e+37  ;;  %v8569_v59 = vld [vmem:[%s9218_s6 + $0x68] sm:$0xff]  ;;  %v8593_v29 = vld [vmem:[%s9218_s6 + $0x1a0] sm:$0xff] }
 0x84f   :  { %v4721_v21 = vpop.eup %4720 }
 0x850   :  { %v3242_v46 = vadd.f32 1.0, %v4721_v21 }
 0x851   :  { %v4723_v27 = vpop.eup %4722  ;;  %3032 = vadd.xlane.f32.xlu1 %v3031_v34  ;;  %v8503_v34 = vld [vmem:[%s9218_s6 + $0x188] sm:$0xff] }
 0x852   :  { %v4725_v8 = vpop.eup %4724  ;;  %v3205_v53 = vmul.f32 %v4723_v27, %v3203_v18  ;;  %4726 = vrcp.f32 %v3242_v46  ;;  %vm3210_vm3 = vweird.f32 %v4723_v27  ;;  %v3254_v49 = vand.u32 2147483648, %v3242_v46 }
 0x853   :  { %v3224_v15 = vmul.f32 %v4725_v8, %v3222_v31  ;;  %4728 = vtanh.f32 %v3198_v48  ;;  %vm3229_vm5 = vweird.f32 %v4725_v8  ;;  %vm3211_vm9 = vmor %vm3209_vm7, %vm3210_vm3  ;;  %vm3248_vm14 = vweird.f32 %v3242_v46  ;;  %v8521_v48 = vld [vmem:[%s9218_s6 + $0x128] sm:$0xff] }
 0x854   :  { %v3206_v20 = vsub.f32 1.0, %v3205_v53  ;;  %vm3230_vm10 = vmor %vm3228_vm8, %vm3229_vm5  ;;  %v3252_v40 = vand.u32 2147483647, %v3242_v46  ;;  %v3255_v33 = vor.u32 1.1754944e-38, %v3254_v49  ;;  %v8533_v53 = vld [vmem:[%s9218_s6 + $0xe8] sm:$0xff]  ;;  %v8666_v49 = vld [vmem:[%s9218_s6 + $0x158] sm:$0xff] }
 0x855   :  { %v3225_v55 = vsub.f32 1.0, %v3224_v15  ;;  %v8545_v15 = vld [vmem:[%s9218_s6 + $0xa8] sm:$0xff] }
 0x856   :  { %v3207_v2 = vmul.f32 %v4723_v27, %v3206_v20  ;;  %vm3253_vm0 = vcmp.eq.f32.partialorder %v3252_v40, 8.507059e+37  ;;  %v8551_v20 = vld [vmem:[%s9218_s6 + $0x88] sm:$0xff] }
 0x857   :  { %v3226_v43 = vmul.f32 %v4725_v8, %v3225_v55  ;;  %v8562_v55 = vld [vmem:[%s9218_s6 + $0x1f8] sm:$0xff] }
 0x858   :  { %v4727_v7 = vpop.eup %4726  ;;  %v3208_v16 = vadd.f32 %v4723_v27, %v3207_v2  ;;  %v8575_v2 = vld [vmem:[%s9218_s6 + $0x1c0] sm:$0xff] }
 0x859   :  { %v3244_v51 = vmul.f32 %v4727_v7, %v3242_v46  ;;  %v3227_v1 = vadd.f32 %v4725_v8, %v3226_v43  ;;  %v4729_v6 = vpop.eup %4728  ;;  %vm3249_vm13 = vweird.f32 %v4727_v7  ;;  %v8587_v43 = vld [vmem:[%s9218_s6 + $0x48] sm:$0xff] }
 0x85a   :  { %v3212_v11 = vsel %vm3211_vm9, %v4723_v27, %v3208_v16  ;;  %vm3250_vm15 = vmor %vm3248_vm14, %vm3249_vm13  ;;  %v8515_v27 = vld [vmem:[%s9218_s6 + $0x148] sm:$0xff] }
 0x85b   :  { %v3245_v62 = vsub.f32 1.0, %v3244_v51  ;;  %v3217_v30 = vsel %vm3214_vm11, %v3216_v10, %v3212_v11  ;;  %v3231_v19 = vsel %vm3230_vm10, %v4725_v8, %v3227_v1  ;;  %v8527_v8 = vld [vmem:[%s9218_s6 + $0x108] sm:$0xff]  ;;  %v8611_v51 = vld [vmem:[%s9218_s6 + $0x180] sm:$0xff]  ;;  %v8616_v10 = vld [vmem:[%s9218_s6 + $0x198] sm:$0xff] }
 0x85c   :  { %v3236_v56 = vsel %vm3233_vm12, %v3235_v42, %v3231_v19  ;;  %v3262_v57 = vmul.f32 %v4729_v6, %v3217_v30  ;;  %v8605_v16 = vld [vmem:[%s9218_s6 + $0x28] sm:$0xff]  ;;  %v8629_v42 = vld [vmem:[%s9218_s6 + $0x160] sm:$0xff]  ;;  %v8634_v11 = vld [vmem:[%s9218_s6 + $0x1f0] sm:$0xff] }
 0x85d   :  { %v3246_v23 = vmul.f32 %v4727_v7, %v3245_v62  ;;  %v3261_v12 = vmul.f32 %v3259_v3, %v3236_v56  ;;  %v8623_v1 = vld [vmem:[%s9218_s6 + $0x8] sm:$0xff]  ;;  %9838 = vst [vmem:[#allocation40_spill] sm:$0xff] %v8634_v11  ;;  %v8639_v6 = vld [vmem:[%s9218_s6 + $0x178] sm:$0xff] }
 0x85e   :  { %v8646_v19 = vld [vmem:[%s9219_s7 + $0x78] sm:$0xff]  ;;  %v9839_v56 = vld [vmem:[#allocation19_spill] sm:$0xff] }
 0x85f   :  { %v8469_v25 = vadd.f32 %v3262_v57, %v3261_v12  ;;  %v3247_v28 = vadd.f32 %v4727_v7, %v3246_v23  ;;  %v3352_v57 = vsel %vm38_vm4, %v9839_v56, 0.0  ;;  %v8656_v12 = vld [vmem:[%s9218_s6 + $0x140] sm:$0xff] }
 0x860   :  { %v9845_v56 = vld [vmem:[#allocation27_spill] sm:$0xff] }
 0x861   :  { %4730 = vtanh.f32 %v8469_v25  ;;  %v3251_v24 = vsel %vm3250_vm15, %v4727_v7, %v3247_v28  ;;  %v8598_v7 = vld [vmem:[%s9218_s6 + $0x1b8] sm:$0xff]  ;;  %v8661_v28 = vld [vmem:[%s9218_s6 + $0x1d0] sm:$0xff]  ;;  %vm3371_vm1 = vcmp.eq.s32.totalorder %v9819_v0, %v9845_v56  ;;  %v8804_v56 = vld [vmem:[%s9219_s7 + $0x48] sm:$0xff] }
 0x862   :  { %v3256_v44 = vsel %vm3253_vm0, %v3255_v33, %v3251_v24  ;;  %9840 = vst [vmem:[#allocation14_spill] sm:$0xff] %v8661_v28  ;;  %v3381_v24 = vld [vmem:[#allocation2 + $0x48] sm:$0x30]  ;;  %v8674_v33 = vld [vmem:[%s9219_s7 + $0x70] sm:$0xff] }
 0x863   :  { %v8814_v0 = vld [vmem:[%s9218_s6 + $0x110] sm:$0xff] }
 0x864   :  { %9850 = vst [vmem:[#allocation22_spill] sm:$0xff] %v8814_v0 }
 0x867   :  { %v4731_v9 = vpop.eup %4730 }
 0x868   :  { %v3265_v13 = vmul.f32 %v4731_v9, %v3256_v44  ;;  %v8681_v44 = vld [vmem:[%s9218_s6 + $0x120] sm:$0xff] }
 0x86a   :  { %v3299_v18 = vrot.slane %v3265_v13, 6  ;;  %v8691_v13 = vld [vmem:[%s9218_s6 + $0x138] sm:$0xff] }
 0x86c   :  { %3317 = vmatmul.f32.vlgmr.msrb.gmra.mxu0 %v3299_v18  ;;  %3462 = vmatmul.f32.vlgmr.msrb.gmra.mxu2 %v3299_v18 }
 0x86d   :  { %3482 = vmatmul.f32.vlgmr.msrb.gmra.mxu3 %v3299_v18  ;;  %3522 = vmatmul.f32.vlgmr.msra.gmra.mxu1 %v3299_v18 }
 0x86e   :  { %3788 = vmatpush.msrb.mxu0 %v8557_v58  ;;  %3848 = vmatpush.msrb.mxu3 %v8562_v55 }
 0x86f   :  { %3828 = vmatpush.msrb.mxu2 %v8634_v11 }
 0x870   :  { %3789 = vmatpush.msrb.mxu0 %v8575_v2  ;;  %3849 = vmatpush.msrb.mxu3 %v8580_v63 }
 0x871   :  { %3829 = vmatpush.msrb.mxu2 %v8661_v28  ;;  %v8876_v28 = vld [vmem:[%s9219_s7 + $0x30] sm:$0xff] }
 0x872   :  { %3790 = vmatpush.msrb.mxu0 %v8593_v29  ;;  %3850 = vmatpush.msrb.mxu3 %v8598_v7  ;;  %9859 = vst [vmem:[#allocation12_spill] sm:$0xff] %v8876_v28 }
 0x874   :  { %3502 = vmatmul.f32.vlgmr.msra.gmra.mxu0 %v3299_v18  ;;  %3851 = vmatpush.msrb.mxu3 %v8616_v10 }
 0x875   :  { %3679 = vmatmul.f32.vlgmr.msra.gmra.mxu3 %v9835_v22  ;;  %3791 = vmatpush.msrb.mxu0 %v8611_v51  ;;  %v8700_v22 = vld [vmem:[%s9219_s7 + $0x68] sm:$0xff] }
 0x876   :  { %3852 = vmatpush.msrb.mxu3 %v8639_v6 }
 0x877   :  { %3792 = vmatpush.msrb.mxu0 %v8629_v42 }
 0x878   :  { %3853 = vmatpush.msrb.mxu3 %v8666_v49 }
 0x879   :  { %3793 = vmatpush.msrb.mxu0 %v8656_v12 }
 0x87a   :  { %3854 = vmatpush.msrb.mxu3 %v8691_v13 }
 0x87b   :  { %3794 = vmatpush.msrb.mxu0 %v8681_v44 }
 0x886   :  { %v2695_v31 = vpop.xlane.xlu1 %2694 }
 0x887   :  { %4732 = vlog2.f32 %v2695_v31 }
 0x88d   :  { %v4733_v52 = vpop.eup %4732 }
 0x88e   :  { %v2697_v17 = vmul.f32 0.6931472, %v4733_v52  ;;  %v3378_v52 = vld [vmem:[#allocation2 + $0x50] sm:$0x30] }
 0x890   :  { %v2698_v26 = vadd.f32 %v2697_v17, %v8379_v38  ;;  %v8485_v38 = vld [vmem:[%s9218_s6 + $0x1e8] sm:$0xff] }
 0x891   :  { %3808 = vmatpush.msrb.mxu1 %v8485_v38 }
 0x892   :  { %v2707_v4 = vsub.f32 %v2698_v26, %v2706_v36  ;;  %v8707_v26 = vld [vmem:[%s9218_s6 + $0x100] sm:$0xff]  ;;  %v8712_v36 = vld [vmem:[%s9218_s6 + $0x190] sm:$0xff] }
 0x893   :  { %9843 = vst [vmem:[#allocation48_spill] sm:$0xff] %v8712_v36  ;;  %3795 = vmatpush.msrb.mxu0 %v8707_v26 }
 0x894   :  { %v8475_v37 = vadd.f32 %v2707_v4, %v8368_v5  ;;  %v8491_v5 = vld [vmem:[%s9218_s6 + $0x1c8] sm:$0xff]  ;;  %v8717_v4 = vld [vmem:[%s9218_s6 + $0x118] sm:$0xff] }
 0x895   :  { %3809 = vmatpush.msrb.mxu1 %v8491_v5  ;;  %3855 = vmatpush.msrb.mxu3 %v8717_v4 }
 0x896   :  { %9836 = vst [vmem:[#allocation18_spill] sm:$0xff] %v8475_v37 }
 0x8bc   :  { %v8477_v14 = vpop.xlane.xlu1 %3015 }
 0x8bd   :  { %9837 = vst [vmem:[#allocation15_spill] sm:$0xff] %v8477_v14  ;;  %v3017_v47 = vsub.f32 %v8447_v41, %v8477_v14  ;;  %v8497_v41 = vld [vmem:[%s9218_s6 + $0x1a8] sm:$0xff] }
 0x8be   :  { %3810 = vmatpush.msrb.mxu1 %v8497_v41 }
 0x8bf   :  { %v3018_v21 = vmul.f32 1.442695, %v3017_v47 }
 0x8c0   :  { %3811 = vmatpush.msrb.mxu1 %v8503_v34 }
 0x8c1   :  { %4734 = vpow2.f32 %v3018_v21 }
 0x8c2   :  { %3812 = vmatpush.msrb.mxu1 %v8509_v50 }
 0x8c4   :  { %3813 = vmatpush.msrb.mxu1 %v8515_v27 }
 0x8c6   :  { %3814 = vmatpush.msrb.mxu1 %v8521_v48 }
 0x8c7   :  { %v4735_v46 = vpop.eup %4734 }
 0x8c8   :  { %v3020_v61 = vsel %vm2002_vm6, %v4735_v46, 0.0  ;;  %3815 = vmatpush.msrb.mxu1 %v8527_v8 }
 0x8c9   :  { %3021 = vadd.xlane.f32.xlu0 %v3020_v61  ;;  %v8727_v61 = vld [vmem:[%s9219_s7 + $0x60] sm:$0xff] }
 0x8ca   :  { %3816 = vmatpush.msrb.mxu1 %v8533_v53 }
 0x8cc   :  { %3817 = vmatpush.msrb.mxu1 %v8539_v60 }
 0x8ce   :  { %3818 = vmatpush.msrb.mxu1 %v8545_v15 }
 0x8d0   :  { %3819 = vmatpush.msrb.mxu1 %v8551_v20 }
 0x8d2   :  { %3820 = vmatpush.msrb.mxu1 %v8569_v59 }
 0x8d4   :  { %3821 = vmatpush.msrb.mxu1 %v8587_v43 }
 0x8d6   :  { %3822 = vmatpush.msrb.mxu1 %v8605_v16 }
 0x8d8   :  { %3823 = vmatpush.msrb.mxu1 %v8623_v1 }
 0x8da   :  { %4005 = vmatpush.msra.mxu1 %v8646_v19 }
 0x8dc   :  { %4006 = vmatpush.msra.mxu1 %v8674_v33 }
 0x8de   :  { %4007 = vmatpush.msra.mxu1 %v8700_v22 }
 0x8e0   :  { %4008 = vmatpush.msra.mxu1 %v8727_v61 }
 0x8e9   :  { %v3318_v3 = vpop.f32.mrf.mxu0 }
 0x8ea   :  { %v3339_v62 = vadd.f32 %v3338_v39, %v3318_v3  ;;  %v3523_v30 = vpop.f32.mrf.mxu1  ;;  %v8733_v3 = vld [vmem:[%s9218_s6 + $0xe0] sm:$0xff] }
 0x8eb   :  { %v3533_v23 = vrot.slane %v3523_v30, 4  ;;  %v8743_v30 = vld [vmem:[%s9218_s6 + $0xf8] sm:$0xff]  ;;  %3796 = vmatpush.msrb.mxu0 %v8733_v3 }
 0x8ec   :  { %v3341_v40 = vadd.f32 %v9820_v32, %v3339_v62  ;;  %v8686_v32 = vld [vmem:[%s9218_s6 + $0x1b0] sm:$0xff]  ;;  %3856 = vmatpush.msrb.mxu3 %v8743_v30 }
 0x8ed   :  { %v3541_v9 = vadd.f32 %v3533_v23, %v3381_v24  ;;  %9841 = vst [vmem:[#allocation29_spill] sm:$0xff] %v8686_v32  ;;  %3830 = vmatpush.msrb.mxu2 %v8686_v32  ;;  %v8738_v62 = vld [vmem:[%s9218_s6 + $0x170] sm:$0xff]  ;;  %v3379_v23 = vld [vmem:[#allocation2 + $0x68] sm:$0x30] }
 0x8ee   :  { %v8693_v18 = vadd.f32 %v3352_v57, %v3341_v40  ;;  %9844 = vst [vmem:[#allocation46_spill] sm:$0xff] %v8738_v62  ;;  %v8752_v40 = vld [vmem:[%s9219_s7 + $0x58] sm:$0xff] }
 0x8ef   :  { %v4494_v31 = vmul.f32 -1.442695, %v3541_v9  ;;  %v3463_v17 = vpop.f32.mrf.mxu2  ;;  %3831 = vmatpush.msrb.mxu2 %v8712_v36  ;;  %v8759_v9 = vld [vmem:[%s9218_s6 + $0xc0] sm:$0xff]  ;;  %4009 = vmatpush.msra.mxu1 %v8752_v40  ;;  %v8850_v36 = vld [vmem:[%s9219_s7 + $0x38] sm:$0xff] }
 0x8f0   :  { %9842 = vst [vmem:[#allocation17_spill] sm:$0xff] %v8693_v18  ;;  %v3530_v47 = vrot.slane %v3463_v17, 4  ;;  %v3483_v21 = vpop.f32.mrf.mxu3  ;;  %v3356_v46 = vsel %vm2002_vm6, %v8693_v18, -inf  ;;  %3797 = vmatpush.msrb.mxu0 %v8759_v9 }
 0x8f1   :  { %3354 = vst [vmem:[#allocation5 + $0x6] sm:$0x3] %v8693_v18  ;;  %4736 = vpow2.f32 %v4494_v31  ;;  %v3531_v39 = vrot.slane %v3483_v21, 4  ;;  %3357 = vmax.xlane.f32.xlu1 %v3356_v46  ;;  %3832 = vmatpush.msrb.mxu2 %v8738_v62  ;;  %v8764_v31 = vld [vmem:[%s9218_s6 + $0x150] sm:$0xff]  ;;  %v3372_v46 = vsel %vm3371_vm1, %v8693_v18, 0.0  ;;  %v8883_v18 = vld [vmem:[%s9218_s6 + $0x20] sm:$0xff] }
 0x8f2   :  { %v3538_v57 = vadd.f32 %v3530_v47, %v3378_v52  ;;  %9846 = vst [vmem:[#allocation43_spill] sm:$0xff] %v8764_v31  ;;  %v8769_v52 = vld [vmem:[%s9218_s6 + $0xd8] sm:$0xff]  ;;  %v8776_v47 = vld [vmem:[%s9219_s7 + $0x50] sm:$0xff]  ;;  %v3373_v62 = vsel %vm2002_vm6, %v3372_v46, 0.0 }
 0x8f3   :  { %v3539_v24 = vadd.f32 %v3531_v39, %v3379_v23  ;;  %3833 = vmatpush.msrb.mxu2 %v8764_v31  ;;  %3857 = vmatpush.msrb.mxu3 %v8769_v52  ;;  %v8787_v39 = vld [vmem:[%s9218_s6 + $0xa0] sm:$0xff]  ;;  %v8797_v23 = vld [vmem:[%s9218_s6 + $0xb8] sm:$0xff]  ;;  %9855 = vst [vmem:[#allocation28_spill] sm:$0xff] %v8850_v36 }
 0x8f4   :  { %v4492_v17 = vmul.f32 -1.442695, %v3538_v57  ;;  %9847 = vst [vmem:[#allocation37_spill] sm:$0xff] %v8787_v39  ;;  %v8792_v57 = vld [vmem:[%s9218_s6 + $0x130] sm:$0xff]  ;;  %4010 = vmatpush.msra.mxu1 %v8776_v47  ;;  %3798 = vmatpush.msrb.mxu0 %v8787_v39  ;;  %v8826_v31 = vld [vmem:[%s9219_s7 + $0x40] sm:$0xff]  ;;  %v8845_v46 = vld [vmem:[%s9218_s6 + $0x78] sm:$0xff] }
 0x8f5   :  { %v4493_v21 = vmul.f32 -1.442695, %v3539_v24  ;;  %9848 = vst [vmem:[#allocation49_spill] sm:$0xff] %v8792_v57  ;;  %v8809_v24 = vld [vmem:[%s9218_s6 + $0x80] sm:$0xff]  ;;  %3834 = vmatpush.msrb.mxu2 %v8792_v57  ;;  %3858 = vmatpush.msrb.mxu3 %v8797_v23  ;;  %v8839_v57 = vld [vmem:[%s9218_s6 + $0xf0] sm:$0xff] }
 0x8f6   :  { %4738 = vpow2.f32 %v4492_v17  ;;  %9849 = vst [vmem:[#allocation45_spill] sm:$0xff] %v8809_v24  ;;  %4011 = vmatpush.msra.mxu1 %v8804_v56  ;;  %3799 = vmatpush.msrb.mxu0 %v8809_v24  ;;  %v3503_v24 = vpop.f32.mrf.mxu0 }
 0x8f7   :  { %v4737_v17 = vpop.eup %4736  ;;  %4740 = vpow2.f32 %v4493_v21  ;;  %v8834_v21 = vld [vmem:[%s9218_s6 + $0x60] sm:$0xff]  ;;  %9853 = vst [vmem:[#allocation13_spill] sm:$0xff] %v8839_v57  ;;  %3835 = vmatpush.msrb.mxu2 %v8814_v0  ;;  %3859 = vmatpush.msrb.mxu3 %v8821_v35  ;;  %v8864_v0 = vld [vmem:[%s9218_s6 + $0xd0] sm:$0xff] }
 0x8f8   :  { %9852 = vst [vmem:[#allocation32_spill] sm:$0xff] %v8834_v21  ;;  %v8852_v32 = vadd.f32 1.0, %v4737_v17  ;;  %4012 = vmatpush.msra.mxu1 %v8826_v31  ;;  %3800 = vmatpush.msrb.mxu0 %v8834_v21  ;;  %v8871_v17 = vld [vmem:[%s9218_s6 + $0x58] sm:$0xff] }
 0x8f9   :  { %3374 = vadd.xlane.f32.xlu1 %v3373_v62  ;;  %9854 = vst [vmem:[#allocation30_spill] sm:$0xff] %v8845_v46  ;;  %v8859_v62 = vld [vmem:[%s9218_s6 + $0x40] sm:$0xff]  ;;  %3836 = vmatpush.msrb.mxu2 %v8839_v57  ;;  %v8888_v57 = vld [vmem:[%s9218_s6 + $0xb0] sm:$0xff]  ;;  %v8897_v21 = vld [vmem:[%s9218_s6 + $0x38] sm:$0xff] }
 0x8fa   :  { %9856 = vst [vmem:[#allocation41_spill] sm:$0xff] %v8859_v62  ;;  %3860 = vmatpush.msrb.mxu3 %v8845_v46  ;;  %4013 = vmatpush.msra.mxu1 %v8850_v36  ;;  %4742 = vrcp.f32 %v8852_v32  ;;  %vm3590_vm13 = vweird.f32 %v8852_v32 }
 0x8fb   :  { %9857 = vst [vmem:[#allocation34_spill] sm:$0xff] %v8864_v0  ;;  %3801 = vmatpush.msrb.mxu0 %v8859_v62  ;;  %3837 = vmatpush.msrb.mxu2 %v8864_v0  ;;  %v8912_v0 = vld [vmem:[%s9218_s6 + $0x90] sm:$0xff]  ;;  %v3532_v62 = vrot.slane %v3503_v24, 4 }
 0x8fc   :  { %9858 = vst [vmem:[#allocation42_spill] sm:$0xff] %v8871_v17  ;;  %v4739_v11 = vpop.eup %4738  ;;  %3861 = vmatpush.msrb.mxu3 %v8871_v17  ;;  %4014 = vmatpush.msra.mxu1 %v8876_v28  ;;  %v8948_v24 = vld [vmem:[%s9219_s7 + $0x10] sm:$0xff] }
 0x8fd   :  { %9860 = vst [vmem:[#allocation21_spill] sm:$0xff] %v8883_v18  ;;  %v4741_v37 = vpop.eup %4740  ;;  %v8890_v14 = vadd.f32 1.0, %v4739_v11  ;;  %v8907_v11 = vld [vmem:[%s9218_s6] sm:$0xff]  ;;  %3802 = vmatpush.msrb.mxu0 %v8883_v18  ;;  %3838 = vmatpush.msrb.mxu2 %v8888_v57  ;;  %v8935_v18 = vld [vmem:[%s9219_s7 + $0x18] sm:$0xff] }
 0x8fe   :  { %9861 = vst [vmem:[#allocation10_spill] sm:$0xff] %v8888_v57  ;;  %v8900_v46 = vadd.f32 1.0, %v4741_v37  ;;  %v8920_v37 = vld [vmem:[%s9218_s6 + $0x18] sm:$0xff]  ;;  %3862 = vmatpush.msrb.mxu3 %v8897_v21  ;;  %4015 = vmatpush.msra.mxu1 %v8432_v45  ;;  %v8930_v57 = vld [vmem:[%s9218_s6 + $0x70] sm:$0xff] }
 0x8ff   :  { %9862 = vst [vmem:[#allocation44_spill] sm:$0xff] %v8897_v21  ;;  %4744 = vrcp.f32 %v8890_v14  ;;  %3803 = vmatpush.msrb.mxu0 %v8907_v11  ;;  %3839 = vmatpush.msrb.mxu2 %v8912_v0  ;;  %v8942_v45 = vld [vmem:[%s9218_s6 + $0x50] sm:$0xff]  ;;  %v3557_v28 = vand.u32 2147483648, %v8890_v14  ;;  %vm3551_vm5 = vweird.f32 %v8890_v14 }
 0x900   :  { %9863 = vst [vmem:[#allocation23_spill] sm:$0xff] %v8907_v11  ;;  %4746 = vrcp.f32 %v8900_v46  ;;  %3863 = vmatpush.msrb.mxu3 %v8920_v37  ;;  %4016 = vmatpush.msra.mxu1 %v8437_v54  ;;  %v3380_v11 = vld [vmem:[#allocation2 + $0x8] sm:$0x30]  ;;  %v8957_v54 = vld [vmem:[%s9218_s6 + $0x30] sm:$0xff]  ;;  %vm3570_vm7 = vweird.f32 %v8900_v46 }
 0x901   :  { %9864 = vst [vmem:[#allocation16_spill] sm:$0xff] %v8912_v0  ;;  %3840 = vmatpush.msrb.mxu2 %v8930_v57  ;;  %v8951_v0 = vpop.eup %4742  ;;  %v3540_v21 = vadd.f32 %v3532_v62, %v3380_v11  ;;  %v8978_v11 = vld [vmem:[%s9219_s7] sm:$0xff] }
 0x902   :  { %9865 = vst [vmem:[#allocation39_spill] sm:$0xff] %v8920_v37  ;;  %4150 = vmatpush.msra.mxu3 %v8485_v38  ;;  %4017 = vmatpush.msra.mxu1 %v8935_v18  ;;  %vm3591_vm12 = vweird.f32 %v8951_v0 }
 0x903   :  { %9866 = vst [vmem:[#allocation33_spill] sm:$0xff] %v8930_v57  ;;  %3841 = vmatpush.msrb.mxu2 %v8942_v45  ;;  %v8963_v57 = vld [vmem:[%s9219_s7 + $0x8] sm:$0xff]  ;;  %4748 = vtanh.f32 %v3540_v21  ;;  %vm3592_vm14 = vmor %vm3590_vm13, %vm3591_vm12 }
 0x904   :  { %9867 = vst [vmem:[#allocation53_spill] sm:$0xff] %v8935_v18  ;;  %4151 = vmatpush.msra.mxu3 %v8491_v5  ;;  %4018 = vmatpush.msra.mxu1 %v8948_v24  ;;  %v8971_v18 = vld [vmem:[%s9218_s6 + $0x10] sm:$0xff]  ;;  %v3586_v5 = vmul.f32 %v8951_v0, %v8852_v32 }
 0x905   :  { %9868 = vst [vmem:[#allocation36_spill] sm:$0xff] %v8942_v45  ;;  %v4745_v37 = vpop.eup %4744  ;;  %3842 = vmatpush.msrb.mxu2 %v8957_v54 }
 0x906   :  { %9869 = vst [vmem:[#allocation51_spill] sm:$0xff] %v8948_v24  ;;  %v4747_v38 = vpop.eup %4746  ;;  %v3547_v17 = vmul.f32 %v4745_v37, %v8890_v14  ;;  %4152 = vmatpush.msra.mxu3 %v8497_v41  ;;  %4019 = vmatpush.msra.mxu1 %v8963_v57  ;;  %vm3552_vm2 = vweird.f32 %v4745_v37  ;;  %v3555_v41 = vand.u32 2147483647, %v8890_v14 }
 0x907   :  { %9870 = vst [vmem:[#allocation55_spill] sm:$0xff] %v8957_v54  ;;  %v3566_v62 = vmul.f32 %v4747_v38, %v8900_v46  ;;  %3843 = vmatpush.msrb.mxu2 %v8971_v18  ;;  %v3576_v54 = vand.u32 2147483648, %v8900_v46  ;;  %vm3571_vm3 = vweird.f32 %v4747_v38  ;;  %vm3553_vm8 = vmor %vm3551_vm5, %vm3552_vm2 }
 0x908   :  { %9871 = vst [vmem:[#allocation47_spill] sm:$0xff] %v8963_v57  ;;  %v3548_v45 = vsub.f32 1.0, %v3547_v17  ;;  %4153 = vmatpush.msra.mxu3 %v8503_v34  ;;  %4020 = vmatpush.msra.mxu1 %v8978_v11  ;;  %v3574_v17 = vand.u32 2147483647, %v8900_v46  ;;  %v3558_v34 = vor.u32 1.1754944e-38, %v3557_v28  ;;  %vm3572_vm9 = vmor %vm3570_vm7, %vm3571_vm3  ;;  %vm3556_vm10 = vcmp.eq.f32.partialorder %v3555_v41, 8.507059e+37 }
 0x909   :  { %9872 = vst [vmem:[#allocation57_spill] sm:$0xff] %v8971_v18  ;;  %v3567_v24 = vsub.f32 1.0, %v3566_v62  ;;  %v3587_v62 = vsub.f32 1.0, %v3586_v5  ;;  %v3577_v18 = vor.u32 1.1754944e-38, %v3576_v54  ;;  %v3601_v57 = vrot.slane %v8469_v25, 2  ;;  %v3972_v54 = vld [vmem:[%s9219_s7 + $0xb0] sm:$0xff] }
 0x90a   :  { %9873 = vst [vmem:[#allocation50_spill] sm:$0xff] %v8978_v11  ;;  %v3549_v35 = vmul.f32 %v4745_v37, %v3548_v45  ;;  %4154 = vmatpush.msra.mxu3 %v8509_v50  ;;  %vm3575_vm11 = vcmp.eq.f32.partialorder %v3574_v17, 8.507059e+37  ;;  %v3596_v25 = vand.u32 2147483648, %v8852_v32  ;;  %v3969_v5 = vld [vmem:[%s9219_s7 + $0x98] sm:$0xff]  ;;  %v3968_v41 = vld [vmem:[%s9219_s7 + $0x90] sm:$0xff]  ;;  %v3967_v17 = vld [vmem:[%s9219_s7 + $0x88] sm:$0xff] }
 0x90b   :  { %v3568_v39 = vmul.f32 %v4747_v38, %v3567_v24  ;;  %v4749_v24 = vpop.eup %4748 }
 0x90c   :  { %v3550_v21 = vadd.f32 %v4745_v37, %v3549_v35  ;;  %4155 = vmatpush.msra.mxu3 %v8515_v27  ;;  %v3588_v35 = vmul.f32 %v8951_v0, %v3587_v62  ;;  %v3966_v62 = vld [vmem:[%s9219_s7 + $0x80] sm:$0xff] }
 0x90d   :  { %v3569_v45 = vadd.f32 %v4747_v38, %v3568_v39 }
 0x90e   :  { %v3554_v11 = vsel %vm3553_vm8, %v4745_v37, %v3550_v21  ;;  %4156 = vmatpush.msra.mxu3 %v8521_v48  ;;  %v3589_v39 = vadd.f32 %v8951_v0, %v3588_v35  ;;  %v3594_v48 = vand.u32 2147483647, %v8852_v32  ;;  %v3973_v37 = vld [vmem:[%s9219_s7 + $0xb8] sm:$0xff]  ;;  %v9891_v21 = vld [vmem:[#allocation40_spill] sm:$0xff] }
 0x90f   :  { %v3559_v36 = vsel %vm3556_vm10, %v3558_v34, %v3554_v11  ;;  %v3573_v50 = vsel %vm3572_vm9, %v4747_v38, %v3569_v45  ;;  %v3971_v38 = vld [vmem:[%s9219_s7 + $0xa8] sm:$0xff]  ;;  %v3970_v11 = vld [vmem:[%s9219_s7 + $0xa0] sm:$0xff]  ;;  %v3680_v45 = vpop.f32.mrf.mxu3 }
 0x910   :  { %v3578_v14 = vsel %vm3575_vm11, %v3577_v18, %v3573_v50  ;;  %v3604_v46 = vmul.f32 %v4749_v24, %v3559_v36  ;;  %4157 = vmatpush.msra.mxu3 %v8527_v8  ;;  %v3593_v8 = vsel %vm3592_vm14, %v8951_v0, %v3589_v39  ;;  %vm3595_vm15 = vcmp.eq.f32.partialorder %v3594_v48, 8.507059e+37  ;;  %v9874_v0 = vld [vmem:[#allocation9_spill] sm:$0xff]  ;;  %v9892_v34 = vld [vmem:[#allocation14_spill] sm:$0xff]  ;;  %v3721_v48 = vld [vmem:[#allocation2 + $0x68] sm:$0xc] }
 0x911   :  { %v3603_v28 = vmul.f32 %v3601_v57, %v3578_v14  ;;  %v9893_v24 = vld [vmem:[#allocation29_spill] sm:$0xff] }
 0x912   :  { %4158 = vmatpush.msra.mxu3 %v8533_v53  ;;  %v3597_v53 = vor.u32 1.1754944e-38, %v3596_v25 }
 0x913   :  { %v8999_v27 = vadd.f32 %v3604_v46, %v3603_v28  ;;  %v9894_v46 = vld [vmem:[#allocation48_spill] sm:$0xff]  ;;  %v3720_v28 = vld [vmem:[#allocation2 + $0x50] sm:$0xc] }
 0x914   :  { %4159 = vmatpush.msra.mxu3 %v8539_v60  ;;  %v3598_v36 = vsel %vm3595_vm15, %v3597_v53, %v3593_v8  ;;  %v9895_v8 = vld [vmem:[#allocation46_spill] sm:$0xff] }
 0x915   :  { %4750 = vtanh.f32 %v8999_v27 }
 0x916   :  { %4160 = vmatpush.msra.mxu3 %v8545_v15  ;;  %v9875_v15 = vld [vmem:[#allocation28_spill] sm:$0xff] }
 0x918   :  { %4161 = vmatpush.msra.mxu3 %v8551_v20  ;;  %v9876_v20 = vld [vmem:[#allocation37_spill] sm:$0xff] }
 0x91a   :  { %4162 = vmatpush.msra.mxu3 %v8569_v59  ;;  %v9879_v59 = vld [vmem:[#allocation45_spill] sm:$0xff] }
 0x91b   :  { %v4751_v18 = vpop.eup %4750 }
 0x91c   :  { %v3607_v57 = vmul.f32 %v4751_v18, %v3598_v36  ;;  %4163 = vmatpush.msra.mxu3 %v8587_v43  ;;  %v9896_v36 = vld [vmem:[#allocation43_spill] sm:$0xff] }
 0x91e   :  { %v3641_v60 = vrot.slane %v3607_v57, 4  ;;  %4164 = vmatpush.msra.mxu3 %v8605_v16  ;;  %v9884_v16 = vld [vmem:[#allocation44_spill] sm:$0xff] }
 0x920   :  { %3659 = vmatmul.f32.vlgmr.msra.gmra.mxu2 %v3641_v60  ;;  %3804 = vmatmul.f32.vlgmr.msrb.gmra.mxu0 %v3641_v60 }
 0x921   :  { %3824 = vmatmul.f32.vlgmr.msrb.gmra.mxu1 %v3641_v60  ;;  %3864 = vmatmul.f32.vlgmr.msrb.gmra.mxu3 %v3641_v60 }
 0x922   :  { %4130 = vmatpush.msra.mxu2 %v8557_v58  ;;  %4190 = vmatpush.msrb.mxu1 %v8562_v55  ;;  %v9877_v58 = vld [vmem:[#allocation24_spill] sm:$0xff] }
 0x923   :  { %4165 = vmatpush.msra.mxu3 %v8623_v1  ;;  %v9878_v55 = vld [vmem:[#allocation12_spill] sm:$0xff]  ;;  %v9887_v1 = vld [vmem:[#allocation23_spill] sm:$0xff] }
 0x924   :  { %4131 = vmatpush.msra.mxu2 %v8575_v2  ;;  %4191 = vmatpush.msrb.mxu1 %v8580_v63  ;;  %v9880_v2 = vld [vmem:[#allocation30_spill] sm:$0xff]  ;;  %v9881_v63 = vld [vmem:[#allocation32_spill] sm:$0xff] }
 0x925   :  { %4332 = vmatpush.msrb.mxu3 %v8646_v19  ;;  %v9888_v19 = vld [vmem:[#allocation15_spill] sm:$0xff] }
 0x926   :  { %4132 = vmatpush.msra.mxu2 %v8593_v29  ;;  %4192 = vmatpush.msrb.mxu1 %v8598_v7  ;;  %v9882_v29 = vld [vmem:[#allocation42_spill] sm:$0xff]  ;;  %v9883_v7 = vld [vmem:[#allocation41_spill] sm:$0xff] }
 0x927   :  { %4333 = vmatpush.msrb.mxu3 %v8674_v33 }
 0x928   :  { %3844 = vmatmul.f32.vlgmr.msrb.gmra.mxu2 %v3641_v60  ;;  %4193 = vmatpush.msrb.mxu1 %v8616_v10  ;;  %v9886_v10 = vld [vmem:[#allocation39_spill] sm:$0xff] }
 0x929   :  { %4021 = vmatmul.f32.vlgmr.msra.gmra.mxu1 %v9874_v0  ;;  %4133 = vmatpush.msra.mxu2 %v8611_v51  ;;  %v9885_v51 = vld [vmem:[#allocation21_spill] sm:$0xff]  ;;  %v4285_v0 = vld [vmem:[%s9219_s7 + $0x28] sm:$0xff] }
 0x92a   :  { %4194 = vmatpush.msrb.mxu1 %v8639_v6  ;;  %4334 = vmatpush.msrb.mxu3 %v8700_v22  ;;  %v3980_v22 = vld [vmem:[%s9219_s7 + $0xf0] sm:$0xff] }
 0x92b   :  { %4134 = vmatpush.msra.mxu2 %v8629_v42 }
 0x92c   :  { %4195 = vmatpush.msrb.mxu1 %v8666_v49  ;;  %4335 = vmatpush.msrb.mxu3 %v8727_v61  ;;  %v3033_v49 = vpop.xlane.xlu1 %3032  ;;  %v9890_v61 = vld [vmem:[#allocation17_spill] sm:$0xff] }
 0x92d   :  { %4135 = vmatpush.msra.mxu2 %v8656_v12 }
 0x92e   :  { %4196 = vmatpush.msrb.mxu1 %v8691_v13  ;;  %4336 = vmatpush.msrb.mxu3 %v8752_v40  ;;  %v3981_v13 = vld [vmem:[%s9219_s7 + $0xf8] sm:$0xff] }
 0x92f   :  { %4136 = vmatpush.msra.mxu2 %v8681_v44  ;;  %v9889_v44 = vld [vmem:[#allocation18_spill] sm:$0xff]  ;;  %3985 = vmatpush.msra.mxu0 %v3981_v13 }
 0x930   :  { %4197 = vmatpush.msrb.mxu1 %v8717_v4  ;;  %4337 = vmatpush.msrb.mxu3 %v8776_v47  ;;  %v3976_v47 = vld [vmem:[%s9219_s7 + $0xd0] sm:$0xff] }
 0x931   :  { %4137 = vmatpush.msra.mxu2 %v8707_v26  ;;  %v3979_v26 = vld [vmem:[%s9219_s7 + $0xe8] sm:$0xff]  ;;  %3986 = vmatpush.msra.mxu0 %v3980_v22 }
 0x932   :  { %4198 = vmatpush.msrb.mxu1 %v8743_v30  ;;  %4338 = vmatpush.msrb.mxu3 %v8804_v56  ;;  %v3974_v56 = vld [vmem:[%s9219_s7 + $0xc0] sm:$0xff] }
 0x933   :  { %4138 = vmatpush.msra.mxu2 %v8733_v3  ;;  %3987 = vmatpush.msra.mxu0 %v3979_v26 }
 0x934   :  { %4199 = vmatpush.msrb.mxu1 %v8769_v52  ;;  %4339 = vmatpush.msrb.mxu3 %v8826_v31  ;;  %v3978_v31 = vld [vmem:[%s9219_s7 + $0xe0] sm:$0xff]  ;;  %v3977_v52 = vld [vmem:[%s9219_s7 + $0xd8] sm:$0xff] }
 0x935   :  { %4139 = vmatpush.msra.mxu2 %v8759_v9  ;;  %3988 = vmatpush.msra.mxu0 %v3978_v31 }
 0x936   :  { %4200 = vmatpush.msrb.mxu1 %v8797_v23  ;;  %4340 = vmatpush.msrb.mxu3 %v9875_v15  ;;  %v3975_v23 = vld [vmem:[%s9219_s7 + $0xc8] sm:$0xff]  ;;  %v4284_v15 = vld [vmem:[%s9219_s7 + $0x20] sm:$0xff] }
 0x937   :  { %4140 = vmatpush.msra.mxu2 %v9876_v20  ;;  %3989 = vmatpush.msra.mxu0 %v3977_v52 }
 0x938   :  { %4201 = vmatpush.msrb.mxu1 %v9877_v58  ;;  %4341 = vmatpush.msrb.mxu3 %v9878_v55  ;;  %v9897_v55 = vld [vmem:[#allocation49_spill] sm:$0xff] }
 0x939   :  { %4141 = vmatpush.msra.mxu2 %v9879_v59  ;;  %3990 = vmatpush.msra.mxu0 %v3976_v47 }
 0x93a   :  { %4202 = vmatpush.msrb.mxu1 %v9880_v2  ;;  %4342 = vmatpush.msrb.mxu3 %v4285_v0  ;;  %v9132_v2 = vld [vmem:[%s9220_s8] ss:$0 sm:$0xff] }
 0x93b   :  { %4142 = vmatpush.msra.mxu2 %v9881_v63  ;;  %3991 = vmatpush.msra.mxu0 %v3975_v23 }
 0x93c   :  { %v3022_v43 = vpop.xlane.xlu0 %3021  ;;  %4203 = vmatpush.msrb.mxu1 %v9882_v29  ;;  %v9898_v29 = vld [vmem:[#allocation22_spill] sm:$0xff]  ;;  %4343 = vmatpush.msrb.mxu3 %v4284_v15 }
 0x93d   :  { %4752 = vlog2.f32 %v3022_v43  ;;  %4143 = vmatpush.msra.mxu2 %v9883_v7  ;;  %3992 = vmatpush.msra.mxu0 %v3974_v56  ;;  %v3723_v43 = vld [vmem:[#allocation2 + $0x48] sm:$0xc]  ;;  %v9899_v7 = vld [vmem:[#allocation38_spill] sm:$0xff] }
 0x93e   :  { %4204 = vmatpush.msrb.mxu1 %v9884_v16  ;;  %v9900_v16 = vld [vmem:[#allocation11_spill] sm:$0xff] }
 0x93f   :  { %4144 = vmatpush.msra.mxu2 %v9885_v51  ;;  %3993 = vmatpush.msra.mxu0 %v3973_v37  ;;  %v3694_v51 = vsel %vm38_vm4, %v9899_v7, 0.0 }
 0x940   :  { %4205 = vmatpush.msrb.mxu1 %v9886_v10 }
 0x941   :  { %4145 = vmatpush.msra.mxu2 %v9887_v1  ;;  %3994 = vmatpush.msra.mxu0 %v3972_v54 }
 0x943   :  { %v4753_v42 = vpop.eup %4752  ;;  %4312 = vmatpush.msrb.mxu2 %v3981_v13  ;;  %3995 = vmatpush.msra.mxu0 %v3971_v38 }
 0x944   :  { %v3024_v6 = vmul.f32 0.6931472, %v4753_v42  ;;  %v9901_v42 = vld [vmem:[#allocation13_spill] sm:$0xff] }
 0x945   :  { %4313 = vmatpush.msrb.mxu2 %v3980_v22  ;;  %3996 = vmatpush.msra.mxu0 %v3970_v11 }
 0x946   :  { %v3025_v12 = vadd.f32 %v3024_v6, %v9888_v19  ;;  %v9902_v6 = vld [vmem:[#allocation53_spill] sm:$0xff] }
 0x947   :  { %4314 = vmatpush.msrb.mxu2 %v3979_v26  ;;  %3997 = vmatpush.msra.mxu0 %v3969_v5 }
 0x948   :  { %v3034_v33 = vsub.f32 %v3025_v12, %v3033_v49  ;;  %4344 = vmatpush.msrb.mxu3 %v9902_v6 }
 0x949   :  { %4315 = vmatpush.msrb.mxu2 %v3978_v31  ;;  %3998 = vmatpush.msra.mxu0 %v3968_v41 }
 0x94a   :  { %v9061_v32 = vadd.f32 %v3034_v33, %v9889_v44  ;;  %v9903_v33 = vld [vmem:[#allocation34_spill] sm:$0xff]  ;;  %v9904_v44 = vld [vmem:[#allocation51_spill] sm:$0xff] }
 0x94b   :  { %4316 = vmatpush.msrb.mxu2 %v3977_v52  ;;  %3999 = vmatpush.msra.mxu0 %v3967_v17  ;;  %v9909_v52 = vld [vmem:[#allocation33_spill] sm:$0xff] }
 0x94c   :  { %4345 = vmatpush.msrb.mxu3 %v9904_v44 }
 0x94d   :  { %4317 = vmatpush.msrb.mxu2 %v3976_v47  ;;  %4000 = vmatpush.msra.mxu0 %v3966_v62 }
 0x94f   :  { %4318 = vmatpush.msrb.mxu2 %v3975_v23  ;;  %4170 = vmatpush.msrb.mxu0 %v9891_v21  ;;  %v9912_v21 = vld [vmem:[#allocation57_spill] sm:$0xff] }
 0x951   :  { %4319 = vmatpush.msrb.mxu2 %v3974_v56  ;;  %4171 = vmatpush.msrb.mxu0 %v9892_v34  ;;  %v3722_v56 = vld [vmem:[#allocation2 + $0x8] sm:$0xc] }
 0x953   :  { %4320 = vmatpush.msrb.mxu2 %v3973_v37  ;;  %4172 = vmatpush.msrb.mxu0 %v9893_v24  ;;  %v9910_v37 = vld [vmem:[#allocation36_spill] sm:$0xff] }
 0x955   :  { %4321 = vmatpush.msrb.mxu2 %v3972_v54  ;;  %4173 = vmatpush.msrb.mxu0 %v9894_v46 }
 0x957   :  { %4322 = vmatpush.msrb.mxu2 %v3971_v38  ;;  %4174 = vmatpush.msrb.mxu0 %v9895_v8 }
 0x959   :  { %4323 = vmatpush.msrb.mxu2 %v3970_v11  ;;  %4175 = vmatpush.msrb.mxu0 %v9896_v36 }
 0x95b   :  { %4324 = vmatpush.msrb.mxu2 %v3969_v5  ;;  %4176 = vmatpush.msrb.mxu0 %v9897_v55 }
 0x95d   :  { %4325 = vmatpush.msrb.mxu2 %v3968_v41  ;;  %4177 = vmatpush.msrb.mxu0 %v9898_v29  ;;  %v9911_v41 = vld [vmem:[#allocation55_spill] sm:$0xff] }
 0x95f   :  { %4326 = vmatpush.msrb.mxu2 %v3967_v17  ;;  %4178 = vmatpush.msrb.mxu0 %v9901_v42 }
 0x961   :  { %4327 = vmatpush.msrb.mxu2 %v3966_v62  ;;  %4179 = vmatpush.msrb.mxu0 %v9903_v33 }
 0x964   :  { %v9072_v4 = vpop.xlane.xlu1 %3357 }
 0x965   :  { %v3359_v3 = vsub.f32 %v9890_v61, %v9072_v4 }
 0x967   :  { %v3360_v30 = vmul.f32 1.442695, %v3359_v3  ;;  %v9905_v3 = vld [vmem:[#allocation10_spill] sm:$0xff] }
 0x968   :  { %4180 = vmatpush.msrb.mxu0 %v9905_v3 }
 0x969   :  { %4754 = vpow2.f32 %v3360_v30  ;;  %v9906_v30 = vld [vmem:[#allocation47_spill] sm:$0xff] }
 0x96a   :  { %4346 = vmatpush.msrb.mxu3 %v9906_v30 }
 0x96f   :  { %v4755_v40 = vpop.eup %4754 }
 0x970   :  { %v3362_v9 = vsel %vm2002_vm6, %v4755_v40, 0.0  ;;  %v9907_v40 = vld [vmem:[#allocation16_spill] sm:$0xff] }
 0x971   :  { %3363 = vadd.xlane.f32.xlu2 %v3362_v9  ;;  %4181 = vmatpush.msrb.mxu0 %v9907_v40  ;;  %v9908_v9 = vld [vmem:[#allocation50_spill] sm:$0xff] }
 0x972   :  { %4347 = vmatpush.msrb.mxu3 %v9908_v9 }
 0x973   :  { %4182 = vmatpush.msrb.mxu0 %v9909_v52  ;;  %v9914_v52 = vld [vmem:[#allocation26_spill] sm:$0xff] }
 0x974   :  { %vm3713_vm14 = vcmp.eq.s32.totalorder %v9900_v16, %v9914_v52 }
 0x975   :  { %4183 = vmatpush.msrb.mxu0 %v9910_v37 }
 0x977   :  { %4184 = vmatpush.msrb.mxu0 %v9911_v41  ;;  %v9915_v41 = vld [vmem:[#allocation31_spill] sm:$0xff] }
 0x979   :  { %4185 = vmatpush.msrb.mxu0 %v9912_v21  ;;  %v4062_v21 = vld [vmem:[#allocation2 + $0x50] sm:$0x3] }
 0x99d   :  { %v3805_v50 = vpop.f32.mrf.mxu0 }
 0x99e   :  { %v3872_v35 = vrot.slane %v3805_v50, 6  ;;  %v3825_v14 = vpop.f32.mrf.mxu1 }
 0x99f   :  { %v3873_v39 = vrot.slane %v3825_v14, 6 }
 0x9a0   :  { %v3880_v25 = vadd.f32 %v3872_v35, %v3720_v28 }
 0x9a1   :  { %v3881_v53 = vadd.f32 %v3873_v39, %v3721_v48 }
 0x9a2   :  { %v4496_v18 = vmul.f32 -1.442695, %v3880_v25 }
 0x9a3   :  { %v4497_v57 = vmul.f32 -1.442695, %v3881_v53  ;;  %v3660_v60 = vpop.f32.mrf.mxu2  ;;  %v3943_v53 = vrot.slane %v8999_v27, 2 }
 0x9a4   :  { %4756 = vpow2.f32 %v4496_v18  ;;  %v3681_v20 = vadd.f32 %v3680_v45, %v3660_v60  ;;  %v3865_v58 = vpop.f32.mrf.mxu3 }
 0x9a5   :  { %4758 = vpow2.f32 %v4497_v57  ;;  %v3875_v59 = vrot.slane %v3865_v58, 6 }
 0x9a6   :  { %v3683_v63 = vadd.f32 %v9132_v2, %v3681_v20 }
 0x9a7   :  { %v3883_v10 = vadd.f32 %v3875_v59, %v3723_v43 }
 0x9a8   :  { %v9139_v1 = vadd.f32 %v3694_v51, %v3683_v63 }
 0x9a9   :  { %v4498_v19 = vmul.f32 -1.442695, %v3883_v10 }
 0x9aa   :  { %v4757_v12 = vpop.eup %4756  ;;  %3696 = vst [vmem:[#allocation5 + $0x4] sm:$0x3] %v9139_v1  ;;  %v3698_v49 = vsel %vm2002_vm6, %v9139_v1, -inf }
 0x9ab   :  { %v4759_v13 = vpop.eup %4758  ;;  %v3887_v22 = vadd.f32 1.0, %v4757_v12  ;;  %4760 = vpow2.f32 %v4498_v19  ;;  %3699 = vmax.xlane.f32.xlu1 %v3698_v49  ;;  %v3845_v61 = vpop.f32.mrf.mxu2  ;;  %v9913_v12 = vld [vmem:[#allocation35_spill] sm:$0xff] }
 0x9ac   :  { %v3906_v26 = vadd.f32 1.0, %v4759_v13  ;;  %v3874_v31 = vrot.slane %v3845_v61, 6 }
 0x9ad   :  { %4762 = vrcp.f32 %v3887_v22  ;;  %v3899_v45 = vand.u32 2147483648, %v3887_v22  ;;  %v3897_v35 = vand.u32 2147483647, %v3887_v22  ;;  %vm3893_vm2 = vweird.f32 %v3887_v22 }
 0x9ae   :  { %4764 = vrcp.f32 %v3906_v26  ;;  %v3882_v38 = vadd.f32 %v3874_v31, %v3722_v56  ;;  %v3918_v24 = vand.u32 2147483648, %v3906_v26  ;;  %v3916_v46 = vand.u32 2147483647, %v3906_v26 }
 0x9af   :  { %vm3912_vm3 = vweird.f32 %v3906_v26  ;;  %v3900_v48 = vor.u32 1.1754944e-38, %v3899_v45  ;;  %vm3898_vm8 = vcmp.eq.f32.partialorder %v3897_v35, 8.507059e+37 }
 0x9b0   :  { %v3919_v18 = vor.u32 1.1754944e-38, %v3918_v24  ;;  %vm3917_vm9 = vcmp.eq.f32.partialorder %v3916_v46, 8.507059e+37  ;;  %v4063_v24 = vld [vmem:[#allocation2 + $0x68] sm:$0x3] }
 0x9b1   :  { %v4761_v47 = vpop.eup %4760 }
 0x9b2   :  { %v3926_v23 = vadd.f32 1.0, %v4761_v47 }
 0x9b3   :  { %v4763_v54 = vpop.eup %4762 }
 0x9b4   :  { %v4765_v11 = vpop.eup %4764  ;;  %v3889_v5 = vmul.f32 %v4763_v54, %v3887_v22  ;;  %4766 = vrcp.f32 %v3926_v23  ;;  %vm3894_vm0 = vweird.f32 %v4763_v54  ;;  %v3938_v29 = vand.u32 2147483648, %v3926_v23  ;;  %v3375_v22 = vpop.xlane.xlu1 %3374 }
 0x9b5   :  { %v3908_v17 = vmul.f32 %v4765_v11, %v3906_v26  ;;  %4768 = vtanh.f32 %v3882_v38  ;;  %vm3913_vm1 = vweird.f32 %v4765_v11  ;;  %vm3895_vm5 = vmor %vm3893_vm2, %vm3894_vm0  ;;  %vm3932_vm11 = vweird.f32 %v3926_v23 }
 0x9b6   :  { %v3890_v62 = vsub.f32 1.0, %v3889_v5  ;;  %vm3914_vm7 = vmor %vm3912_vm3, %vm3913_vm1  ;;  %v3936_v27 = vand.u32 2147483647, %v3926_v23  ;;  %v3939_v51 = vor.u32 1.1754944e-38, %v3938_v29 }
 0x9b7   :  { %v3909_v34 = vsub.f32 1.0, %v3908_v17 }
 0x9b8   :  { %v3891_v50 = vmul.f32 %v4763_v54, %v3890_v62  ;;  %vm3937_vm13 = vcmp.eq.f32.partialorder %v3936_v27, 8.507059e+37 }
 0x9b9   :  { %v3910_v14 = vmul.f32 %v4765_v11, %v3909_v34 }
 0x9ba   :  { %v4767_v28 = vpop.eup %4766  ;;  %v3892_v39 = vadd.f32 %v4763_v54, %v3891_v50 }
 0x9bb   :  { %v3928_v25 = vmul.f32 %v4767_v28, %v3926_v23  ;;  %v3911_v8 = vadd.f32 %v4765_v11, %v3910_v14  ;;  %v4769_v57 = vpop.eup %4768  ;;  %vm3933_vm10 = vweird.f32 %v4767_v28  ;;  %v4366_v23 = vld [vmem:[%s9213_s1] sm:$0x3] }
 0x9bc   :  { %v3896_v36 = vsel %vm3895_vm5, %v4763_v54, %v3892_v39  ;;  %vm3934_vm12 = vmor %vm3932_vm11, %vm3933_vm10  ;;  %v4065_v54 = vld [vmem:[#allocation2 + $0x48] sm:$0x3] }
 0x9bd   :  { %v3929_v60 = vsub.f32 1.0, %v3928_v25  ;;  %v3901_v0 = vsel %vm3898_vm8, %v3900_v48, %v3896_v36  ;;  %v3915_v15 = vsel %vm3914_vm7, %v4765_v11, %v3911_v8 }
 0x9be   :  { %v3920_v20 = vsel %vm3917_vm9, %v3919_v18, %v3915_v15  ;;  %v3946_v58 = vmul.f32 %v4769_v57, %v3901_v0 }
 0x9bf   :  { %v3930_v55 = vmul.f32 %v4767_v28, %v3929_v60  ;;  %v3945_v59 = vmul.f32 %v3943_v53, %v3920_v20  ;;  %v4064_v60 = vld [vmem:[#allocation2 + $0x8] sm:$0x3] }
 0x9c1   :  { %v9157_v63 = vadd.f32 %v3946_v58, %v3945_v59  ;;  %v3931_v43 = vadd.f32 %v4767_v28, %v3930_v55 }
 0x9c3   :  { %4770 = vtanh.f32 %v9157_v63  ;;  %v3935_v7 = vsel %vm3934_vm12, %v4767_v28, %v3931_v43 }
 0x9c4   :  { %v3940_v42 = vsel %vm3937_vm13, %v3939_v51, %v3935_v7 }
 0x9c9   :  { %v4771_v10 = vpop.eup %4770 }
 0x9ca   :  { %v3949_v6 = vmul.f32 %v4771_v10, %v3940_v42 }
 0x9cc   :  { %v3983_v19 = vrot.slane %v3949_v6, 2 }
 0x9ce   :  { %4001 = vmatmul.f32.vlgmr.msra.gmra.mxu0 %v3983_v19  ;;  %4146 = vmatmul.f32.vlgmr.msra.gmra.mxu2 %v3983_v19 }
 0x9cf   :  { %4166 = vmatmul.f32.vlgmr.msra.gmra.mxu3 %v3983_v19  ;;  %4206 = vmatmul.f32.vlgmr.msrb.gmra.mxu1 %v3983_v19 }
 0x9d6   :  { %4186 = vmatmul.f32.vlgmr.msrb.gmra.mxu0 %v3983_v19 }
 0x9d7   :  { %4348 = vmatmul.f32.vlgmr.msrb.gmra.mxu3 %v9913_v12 }
 0x9e4   :  { %v3364_v49 = vpop.xlane.xlu2 %3363 }
 0x9e5   :  { %4772 = vlog2.f32 %v3364_v49 }
 0x9eb   :  { %v4773_v33 = vpop.eup %4772 }
 0x9ec   :  { %v3366_v44 = vmul.f32 0.6931472, %v4773_v33 }
 0x9ee   :  { %v3367_v13 = vadd.f32 %v3366_v44, %v9072_v4  ;;  %v3714_v4 = vsel %vm3713_vm14, %v9139_v1, 0.0  ;;  %vm4396_vm14 = vcmask 0  }
 0x9ef   :  { %v3715_v47 = vsel %vm2002_vm6, %v3714_v4, 0.0 }
 0x9f0   :  { %v3376_v26 = vsub.f32 %v3367_v13, %v3375_v22 }
 0x9f2   :  { %v9163_v61 = vadd.f32 %v3376_v26, %v9061_v32  ;;  %v4022_v32 = vpop.f32.mrf.mxu1 }
 0xa1e   :  { %v9165_v3 = vpop.xlane.xlu1 %3699 }
 0xa1f   :  { %v3701_v30 = vsub.f32 %v9139_v1, %v9165_v3  ;;  %v4036_v1 = vsel %vm38_vm4, %v9915_v41, 0.0 }
 0xa21   :  { %v3702_v40 = vmul.f32 1.442695, %v3701_v30 }
 0xa23   :  { %4774 = vpow2.f32 %v3702_v40  ;;  %v4273_v40 = vrot.slane %v9157_v63, 2 }
 0xa29   :  { %v4775_v9 = vpop.eup %4774 }
 0xa2a   :  { %v3704_v31 = vsel %vm2002_vm6, %v4775_v9, 0.0 }
 0xa2b   :  { %3705 = vadd.xlane.f32.xlu0 %v3704_v31 }
 0xa33   :  { %3716 = vadd.xlane.f32.xlu0 %v3715_v47 }
 0xa47   :  { %4380 = vperm.xlu0 %4511, %v4366_v23  }
 0xa4b   :  { %v4002_v56 = vpop.f32.mrf.mxu0 }
 0xa4c   :  { %v4023_v37 = vadd.f32 %v4022_v32, %v4002_v56  ;;  %v4207_v38 = vpop.f32.mrf.mxu1 }
 0xa4d   :  { %v4213_v11 = vadd.f32 %v4207_v38, %v4065_v54 }
 0xa4e   :  { %v4025_v5 = vadd.f32 %v9132_v2, %v4023_v37 }
 0xa4f   :  { %v4502_v17 = vmul.f32 -1.442695, %v4213_v11 }
 0xa50   :  { %v9181_v62 = vadd.f32 %v4036_v1, %v4025_v5 }
 0xa51   :  { %4776 = vpow2.f32 %v4502_v17  ;;  %v4147_v34 = vpop.f32.mrf.mxu2 }
 0xa52   :  { %4038 = vst [vmem:[#allocation5 + $0x2] sm:$0x3] %v9181_v62  ;;  %v4210_v45 = vadd.f32 %v4147_v34, %v4062_v21  ;;  %v4167_v50 = vpop.f32.mrf.mxu3  ;;  %v4040_v35 = vsel %vm2002_vm6, %v9181_v62, -inf }
 0xa53   :  { %v4211_v14 = vadd.f32 %v4167_v50, %v4063_v24  ;;  %4041 = vmax.xlane.f32.xlu2 %v4040_v35  ;;  %v4187_v36 = vpop.f32.mrf.mxu0 }
 0xa54   :  { %v4500_v46 = vmul.f32 -1.442695, %v4210_v45  ;;  %v4212_v15 = vadd.f32 %v4187_v36, %v4064_v60  ;;  %v4039_v60 = vld [vmem:[%s9213_s1 + $0x2] sm:$0x3] }
 0xa55   :  { %v4501_v28 = vmul.f32 -1.442695, %v4211_v14 }
 0xa56   :  { %4778 = vpow2.f32 %v4500_v46 }
 0xa57   :  { %v4777_v39 = vpop.eup %4776  ;;  %4780 = vpow2.f32 %v4501_v28 }
 0xa58   :  { %v4256_v25 = vadd.f32 1.0, %v4777_v39 }
 0xa5a   :  { %4782 = vrcp.f32 %v4256_v25  ;;  %v4268_v23 = vand.u32 2147483648, %v4256_v25  ;;  %vm4262_vm10 = vweird.f32 %v4256_v25  ;;  %v4266_v56 = vand.u32 2147483647, %v4256_v25  ;;  %v4349_v28 = vpop.f32.mrf.mxu3 }
 0xa5c   :  { %v4779_v48 = vpop.eup %4778  ;;  %v4269_v54 = vor.u32 1.1754944e-38, %v4268_v23  ;;  %vm4267_vm12 = vcmp.eq.f32.partialorder %v4266_v56, 8.507059e+37 }
 0xa5d   :  { %v4781_v8 = vpop.eup %4780  ;;  %v4217_v53 = vadd.f32 1.0, %v4779_v48 }
 0xa5e   :  { %v4236_v18 = vadd.f32 1.0, %v4781_v8 }
 0xa5f   :  { %4784 = vrcp.f32 %v4217_v53  ;;  %v4229_v27 = vand.u32 2147483648, %v4217_v53  ;;  %v4227_v10 = vand.u32 2147483647, %v4217_v53  ;;  %vm4223_vm1 = vweird.f32 %v4217_v53 }
 0xa60   :  { %4786 = vrcp.f32 %v4236_v18  ;;  %v4783_v57 = vpop.eup %4782  ;;  %v4248_v7 = vand.u32 2147483648, %v4236_v18  ;;  %v4246_v6 = vand.u32 2147483647, %v4236_v18  ;;  %vm4242_vm2 = vweird.f32 %v4236_v18 }
 0xa61   :  { %v4258_v59 = vmul.f32 %v4783_v57, %v4256_v25  ;;  %4788 = vtanh.f32 %v4212_v15  ;;  %v4230_v49 = vor.u32 1.1754944e-38, %v4229_v27  ;;  %vm4228_vm7 = vcmp.eq.f32.partialorder %v4227_v10, 8.507059e+37 }
 0xa62   :  { %v4249_v44 = vor.u32 1.1754944e-38, %v4248_v7  ;;  %vm4247_vm8 = vcmp.eq.f32.partialorder %v4246_v6, 8.507059e+37  ;;  %vm4263_vm9 = vweird.f32 %v4783_v57 }
 0xa63   :  { %v4259_v19 = vsub.f32 1.0, %v4258_v59  ;;  %vm4264_vm11 = vmor %vm4262_vm10, %vm4263_vm9 }
 0xa65   :  { %v4785_v0 = vpop.eup %4784  ;;  %v4260_v52 = vmul.f32 %v4783_v57, %v4259_v19 }
 0xa66   :  { %v4787_v20 = vpop.eup %4786  ;;  %v4219_v58 = vmul.f32 %v4785_v0, %v4217_v53  ;;  %vm4224_vm15 = vweird.f32 %v4785_v0 }
 0xa67   :  { %v4238_v55 = vmul.f32 %v4787_v20, %v4236_v18  ;;  %vm4243_vm0 = vweird.f32 %v4787_v20  ;;  %vm4225_vm3 = vmor %vm4223_vm1, %vm4224_vm15  ;;  %v4789_v22 = vpop.eup %4788  ;;  %v4261_v32 = vadd.f32 %v4783_v57, %v4260_v52 }
 0xa68   :  { %v4220_v43 = vsub.f32 1.0, %v4219_v58  ;;  %vm4244_vm5 = vmor %vm4242_vm2, %vm4243_vm0 }
 0xa69   :  { %v4239_v29 = vsub.f32 1.0, %v4238_v55  ;;  %v4265_v37 = vsel %vm4264_vm11, %v4783_v57, %v4261_v32 }
 0xa6a   :  { %v4221_v51 = vmul.f32 %v4785_v0, %v4220_v43  ;;  %v4270_v11 = vsel %vm4267_vm12, %v4269_v54, %v4265_v37 }
 0xa6b   :  { %v4240_v42 = vmul.f32 %v4787_v20, %v4239_v29 }
 0xa6c   :  { %v4222_v12 = vadd.f32 %v4785_v0, %v4221_v51 }
 0xa6d   :  { %v4241_v33 = vadd.f32 %v4787_v20, %v4240_v42 }
 0xa6e   :  { %v4226_v13 = vsel %vm4225_vm3, %v4785_v0, %v4222_v12 }
 0xa6f   :  { %v4231_v26 = vsel %vm4228_vm7, %v4230_v49, %v4226_v13  ;;  %v4245_v30 = vsel %vm4244_vm5, %v4787_v20, %v4241_v33 }
 0xa70   :  { %v4250_v9 = vsel %vm4247_vm8, %v4249_v44, %v4245_v30  ;;  %v4276_v31 = vmul.f32 %v4789_v22, %v4231_v26 }
 0xa71   :  { %v4275_v4 = vmul.f32 %v4273_v40, %v4250_v9 }
 0xa73   :  { %v4277_v47 = vadd.f32 %v4276_v31, %v4275_v4 }
 0xa75   :  { %4790 = vtanh.f32 %v4277_v47 }
 0xa7b   :  { %v4791_v38 = vpop.eup %4790 }
 0xa7c   :  { %v4279_v5 = vmul.f32 %v4791_v38, %v4270_v11 }
 0xa7e   :  { %4328 = vmatmul.f32.vlgmr.msrb.gmra.mxu2 %v4279_v5 }
 0xa9e   :  { %v3706_v63 = vpop.xlane.xlu0 %3705 }
 0xa9f   :  { %4792 = vlog2.f32 %v3706_v63 }
 0xaa5   :  { %v4793_v41 = vpop.eup %4792 }
 0xaa6   :  { %v3708_v1 = vmul.f32 0.6931472, %v4793_v41  ;;  %v3717_v21 = vpop.xlane.xlu0 %3716 }
 0xaa8   :  { %v3709_v17 = vadd.f32 %v3708_v1, %v9165_v3  ;;  %v9916_v3 = vld [vmem:[#allocation25_spill] sm:$0xff] }
 0xaa9   :  { %v4363_v53 = vsel %vm38_vm4, %v9916_v3, 0.0 }
 0xaaa   :  { %v3718_v34 = vsub.f32 %v3709_v17, %v3717_v21 }
 0xaac   :  { %v3719_v45 = vadd.f32 %v3718_v34, %v9163_v61 }
 0xab9   :  { %v4381_v48 = vpop.permute.xlu0 %4380 }
 0xaba   :  { %vm4382_vm13 = vcmp.eq.s32.totalorder %v9900_v16, %v4381_v48 }
 0xac6   :  { %v4042_v24 = vpop.xlane.xlu2 %4041 }
 0xac7   :  { %v4043_v50 = vsub.f32 %v9181_v62, %v4042_v24 }
 0xac9   :  { %v4044_v35 = vmul.f32 1.442695, %v4043_v50 }
 0xacb   :  { %4794 = vpow2.f32 %v4044_v35 }
 0xad1   :  { %v4795_v14 = vpop.eup %4794 }
 0xad2   :  { %v4046_v46 = vsel %vm2002_vm6, %v4795_v14, 0.0 }
 0xad3   :  { %4047 = vadd.xlane.f32.xlu2 %v4046_v46 }
 0xb01   :  { %v4329_v39 = vpop.f32.mrf.mxu2 }
 0xb02   :  { %v4350_v25 = vadd.f32 %v4349_v28, %v4329_v39 }
 0xb04   :  { %v4352_v8 = vadd.f32 %v9132_v2, %v4350_v25 }
 0xb06   :  { %v4364_v61 = vadd.f32 %v4363_v53, %v4352_v8 }
 0xb08   :  { %4365 = vst [vmem:[#allocation5] sm:$0x3] %v4364_v61  ;;  %v4367_v18 = vsel %vm2002_vm6, %v4364_v61, -inf  ;;  %v4383_v36 = vsel %vm4382_vm13, %v4364_v61, 0.0 }
 0xb09   :  { %4368 = vmax.xlane.f32.xlu1 %v4367_v18  ;;  %v4384_v57 = vsel %vm2002_vm6, %v4383_v36, 0.0  ;;  %4421 = dma.vmem_to_hbm [thread:$0]  %s4414_s0, 256, %s4416_s26, [#allocation6], %s4923_s27, %s4923_s27, %s4924_s28  }
 0xb0a   :  { %4385 = vadd.xlane.f32.xlu2 %v4384_v57 }
 0xb22   :  { %4053 = vperm.xlu1 %4510, %v4039_v60  }
 0xb46   :  { %v4048_v29 = vpop.xlane.xlu2 %4047 }
 0xb7c   :  { %v4369_v2 = vpop.xlane.xlu1 %4368 }
 0xb7d   :  { %v4370_v0 = vsub.f32 %v4364_v61, %v4369_v2  ;;  %v4386_v12 = vpop.xlane.xlu2 %4385 }
 0xb7f   :  { %v4371_v15 = vmul.f32 1.442695, %v4370_v0 }
 0xb81   :  { %4796 = vpow2.f32 %v4371_v15 }
 0xb82   :  { %4798 = vlog2.f32 %v4048_v29 }
 0xb87   :  { %v4797_v20 = vpop.eup %4796 }
 0xb88   :  { %v4373_v58 = vsel %vm2002_vm6, %v4797_v20, 0.0 }
 0xb89   :  { %4374 = vadd.xlane.f32.xlu0 %v4373_v58 }
 0xb94   :  { %v4054_v55 = vpop.permute.xlu1 %4053 }
 0xb95   :  { %vm4055_vm4 = vcmp.eq.s32.totalorder %v9900_v16, %v4054_v55  ;;  %v4799_v16 = vpop.eup %4798 }
 0xb96   :  { %v4056_v59 = vsel %vm4055_vm4, %v9181_v62, 0.0  ;;  %v4050_v7 = vmul.f32 0.6931472, %v4799_v16 }
 0xb97   :  { %v4057_v43 = vsel %vm2002_vm6, %v4056_v59, 0.0 }
 0xb98   :  { %4058 = vadd.xlane.f32.xlu1 %v4057_v43  ;;  %v4051_v42 = vadd.f32 %v4050_v7, %v4042_v24 }
 0xbfc   :  { %v4375_v27 = vpop.xlane.xlu0 %4374 }
 0xbfd   :  { %4800 = vlog2.f32 %v4375_v27 }
 0xc03   :  { %v4801_v62 = vpop.eup %4800 }
 0xc04   :  { %v4377_v51 = vmul.f32 0.6931472, %v4801_v62 }
 0xc06   :  { %v4378_v10 = vadd.f32 %v4377_v51, %v4369_v2 }
 0xc08   :  { %v4387_v49 = vsub.f32 %v4378_v10, %v4386_v12 }
 0xc0b   :  { %v4059_v6 = vpop.xlane.xlu1 %4058 }
 0xc0c   :  { %v4060_v19 = vsub.f32 %v4051_v42, %v4059_v6 }
 0xc0e   :  { %v4061_v33 = vadd.f32 %v4060_v19, %v3719_v45 }
 0xc10   :  { %v4388_v44 = vadd.f32 %v4387_v49, %v4061_v33 }
 0xc12   :  { %v4389_v13 = vsel %vm2002_vm6, %v4388_v44, 0.0 }
 0xc13   :  { %v4390_v22 = vrot.slane %v4389_v13, 4 }
 0xc15   :  { %v4391_v26 = vadd.f32 %v4390_v22, %v4389_v13 }
 0xc17   :  { %v4392_v30 = vrot.slane %v4391_v26, 2 }
 0xc19   :  { %v4393_v40 = vadd.f32 %v4392_v30, %v4391_v26 }
 0xc1b   :  { %v4394_v9 = vrot.slane %v4393_v40, 1 }
 0xc1d   :  { %v4395_v31 = vadd.f32 %v4394_v9, %v4393_v40 }
 0xc1f   :  { %4397 = vst.msk [vmem:[#allocation3] sm:$0x1] %vm4396_vm14, %v4395_v31 }
 0xc20   :  { %4408 = dma.vmem_to_hbm [thread:$0]  %s4404_s29, 16, %s4406_s11, [#allocation4]  }
 0xc21   :  { %4916 = dma.done.wait [#allocation4], 16  }
 0xc22   :  { %4917 = vsyncadd [#allocation4], 4294967280 }
 0xc23   :  { %4918 = dma.done.wait [#allocation6], 256  }
 0xc24   :  { %4919 = vsyncadd [#allocation6], 4294967040 }
 0xc25   :  { %4430 = vsyncpa [#allocation4], 1 }
 0xc26   :  { %4431 = vsyncpa [#allocation6], 1 }

</bundles_post_ra>
